<compile_context>
chip_gen: v5e
topology: v5e:2x2
jax: 0.10.0
libtpu: 0.0.40
codegen_flags: <defaults>
</compile_context>

<pallas_src>
import jax
import jax.numpy as jnp
from jax import lax
from jax.experimental import pallas as pl
from jax.experimental.pallas import tpu as pltpu


# ----------------------------- fused kernel --------------------------------

def _fused_cnn_kernel(p1_ref, w1_ref, b1_ref, w2_ref, b2_ref,
                      wf1_ref, bf1_ref, wf2_ref, bf2_ref, o_ref):
    TB = p1_ref.shape[0] // 144          # images in this batch tile

    # ---- stage 1: conv1 (4 pool taps via block-diagonal weight) + pool + relu
    # p1 rows are ordered (b, p, q, i, j) with pooled position (2i+p, 2j+q);
    # columns are [tap (di,dj)] x [5x5 offsets].  One lane-dense matmul gives
    # all 4 taps in 4 lane-groups of 16 channels; the max over groups IS the
    # 2x2 max-pool.
    a1 = jnp.dot(p1_ref[...], w1_ref[...], preferred_element_type=jnp.float32)
    m1 = jnp.maximum(jnp.maximum(a1[:, 0:16], a1[:, 16:32]),
                     jnp.maximum(a1[:, 32:48], a1[:, 48:64]))
    # bias after the max is valid only because it is a per-channel constant
    h1 = jnp.maximum(m1 + b1_ref[...], 0.0).astype(jnp.bfloat16)   # (TB*144,16)
    # parity-split spatial layout: (b, 2*p+q, i, j, c), position = (2i+p, 2j+q)
    h1r = h1.reshape(TB, 4, 6, 6, 16)

    # ---- stage 2: conv2 via in-kernel im2col (h1 never leaves VMEM),
    #      incremental max over the 4 pool taps.
    acc2 = None
    for di in range(2):
        for dj in range(2):
            pieces = []
            for ki in range(5):
                for kj in range(5):
                    s, t = di + ki, dj + kj
                    piece = h1r[:, (s % 2) * 2 + (t % 2),
                                s // 2:s // 2 + 4, t // 2:t // 2 + 4, :]
                    pieces.append(piece.reshape(TB * 16, 16))
            pt = jnp.concatenate(pieces, axis=-1)            # (TB*16, 400)
            a2 = jnp.dot(pt, w2_ref[...], preferred_element_type=jnp.float32)
            acc2 = a2 if acc2 is None else jnp.maximum(acc2, a2)
    h2 = jnp.maximum(acc2 + b2_ref[...], 0.0).astype(jnp.bfloat16)  # (TB*16,32)
    h2r = h2.reshape(TB, 16, 32)                              # (b, oh*4+ow, c)

    # ---- stage 3: fc1 + relu.  The NCHW .view(-1,512) flatten is folded into
    # wf1's (spatial, channel, out) layout -> no in-kernel transpose needed.
    acc3 = None
    for s in range(16):
        term = jnp.dot(h2r[:, s, :], wf1_ref[s],
                       preferred_element_type=jnp.float32)
        acc3 = term if acc3 is None else acc3 + term
    h3 = jnp.maximum(acc3 + bf1_ref[...], 0.0).astype(jnp.bfloat16)  # (TB,256)

    # ---- stage 4: fc2
    o_ref[...] = (jnp.dot(h3, wf2_ref[...], preferred_element_type=jnp.float32)
                  + bf2_ref[...]).astype(o_ref.dtype)


# ------------------------------ wrapper glue --------------------------------

def _round_up(x, m):
    return ((x + m - 1) // m) * m


def _pick_batch_tile(batch, cap=128):
    """Largest batch tile up to `cap`, but >=2 grid steps for moderately large
    batches so v7x's second TensorCore is used (single step for tiny batches)."""
    if batch <= 8:
        return batch
    return min(cap, _round_up(pl.cdiv(batch, 2), 8))


def _vmem_limit_bytes():
    # v5e/v6e: 128 MiB physical VMEM per core, v7x: 64 MiB.  Use 3/4 of the
    # physical capacity (96 MiB on v5e/v6e, 48 MiB on v7x), leaving headroom
    # for Mosaic-internal scratch.
    try:
        cap = pltpu.get_tpu_info().vmem_capacity_bytes
    except Exception:
        cap = 64 * 1024 * 1024
    return int(min(cap * 3 // 4, 96 * 1024 * 1024))


def _conv1_pool_patches(x):
    """x: (B, 28, 28) bf16 -> (B*144, 100) im2col patches.

    Row order (b, p, q, i, j) with pooled output position (2i+p, 2j+q); column
    order [pool tap (di,dj)] x [5x5 offset (ki,kj)], matching the 4-way
    block-diagonal conv1 weight.  The parity-split row order lets the kernel
    slice conv2's receptive fields with contiguous (non-strided) slices.
    """
    # TODO(synk): conv1's im2col still runs as XLA glue on the raw 28x28 input;
    # a fully in-kernel gather would remove the remaining ~18x input read blowup.
    B = x.shape[0]
    cols = []
    for di in range(2):
        for dj in range(2):
            for ki in range(5):
                for kj in range(5):
                    r0, c0 = di + ki, dj + kj
                    v = x[:, r0:r0 + 23:2, c0:c0 + 23:2]          # (B,12,12)
                    v = v.reshape(B, 6, 2, 6, 2).transpose(0, 2, 4, 1, 3)
                    cols.append(v)                                # (B,2,2,6,6)
    p = jnp.stack(cols, axis=-1)                                  # (B,2,2,6,6,100)
    return p.reshape(B * 144, 100)


def _prep_kernel_params(params):
    w1 = params["w1"].astype(jnp.bfloat16)                        # (25,16)
    w1bd = jnp.zeros((100, 64), jnp.bfloat16)
    for t in range(4):                                            # 4-block diagonal
        w1bd = w1bd.at[25 * t:25 * (t + 1), 16 * t:16 * (t + 1)].set(w1)
    w2 = params["w2"].astype(jnp.bfloat16)                        # (400,32)
    # fold PyTorch's NCHW .view(-1,512) flatten (index c*16+s) into fc1's
    # weight layout: (c*16+s, out) -> (s, c, out)
    wf1 = params["wf1"].reshape(32, 16, 256).transpose(1, 0, 2).astype(jnp.bfloat16)
    wf2 = params["wf2"].astype(jnp.bfloat16)                      # (256,10)
    return (w1bd, params["b1"].reshape(1, 16).astype(jnp.float32),
            w2, params["b2"].reshape(1, 32).astype(jnp.float32),
            wf1, params["bf1"].reshape(1, 256).astype(jnp.float32),
            wf2, params["bf2"].reshape(1, 10).astype(jnp.float32))


def model_cnn_forward(params, x_nchw):
    B = x_nchw.shape[0]
    # cast once to bf16 BEFORE the patch glue (halves XLA slice/stack traffic)
    x = x_nchw.astype(jnp.bfloat16).reshape(B, 28, 28)            # Cin == 1
    p1 = _conv1_pool_patches(x)                                   # (B*144, 100)

    tb = _pick_batch_tile(B)
    grid = (pl.cdiv(B, tb),)
    bp = grid[0] * tb
    if bp != B:                                                   # pad batch tiles
        p1 = jnp.pad(p1, ((0, (bp - B) * 144), (0, 0)))

    w1bd, b1, w2, b2, wf1, bf1, wf2, bf2 = _prep_kernel_params(params)

    m1, m2 = bp * 144, bp * 16
    cost = pl.CostEstimate(
        flops=(2 * m1 * 100 * 64 + 4 * 2 * m2 * 400 * 32
               + 2 * bp * 512 * 256 + 2 * bp * 256 * 10),
        transcendentals=0,
        bytes_accessed=(p1.size * 2
                        + (w1bd.size + w2.size + wf1.size + wf2.size) * 2
                        + (b1.size + b2.size + bf1.size + bf2.size) * 4
                        + bp * 10 * 4))

    def const(*shape):
        return pl.BlockSpec(shape, lambda i: (0,) * len(shape))

    out = pl.pallas_call(
        _fused_cnn_kernel,
        out_shape=jax.ShapeDtypeStruct((bp, 10), jnp.float32),
        grid=grid,
        in_specs=[pl.BlockSpec((tb * 144, 100), lambda i: (i, 0)),
                  const(100, 64), const(1, 16),
                  const(400, 32), const(1, 32),
                  const(16, 32, 256), const(1, 256),
                  const(256, 10), const(1, 10)],
        out_specs=pl.BlockSpec((tb, 10), lambda i: (i, 0)),
        compiler_params=pltpu.CompilerParams(
            dimension_semantics=("parallel",),
            vmem_limit_bytes=_vmem_limit_bytes()),
        cost_estimate=cost,
    )(p1, w1bd, b1, w2, b2, wf1, bf1, wf2, bf2)
    return out[:B]


# ----------------------- params + pure-JAX reference ------------------------

def init_params(key):
    """Deterministic synthetic parameters.

    Conv weights are stored in im2col layout (KH*KW*Cin, Cout) (== PyTorch
    (Cout,Cin,KH,KW) transposed to (KH,KW,Cin,Cout) and reshaped); FC weights
    are (in, out) == PyTorch weight.T.
    """
    ks = jax.random.split(key, 8)
    scale = 0.05
    return {
        "w1": scale * jax.random.normal(ks[0], (5 * 5 * 1, 16), jnp.float32),
        "b1": scale * jax.random.normal(ks[1], (16,), jnp.float32),
        "w2": scale * jax.random.normal(ks[2], (5 * 5 * 16, 32), jnp.float32),
        "b2": scale * jax.random.normal(ks[3], (32,), jnp.float32),
        "wf1": scale * jax.random.normal(ks[4], (512, 256), jnp.float32),
        "bf1": scale * jax.random.normal(ks[5], (256,), jnp.float32),
        "wf2": scale * jax.random.normal(ks[6], (256, 10), jnp.float32),
        "bf2": scale * jax.random.normal(ks[7], (10,), jnp.float32),
    }


def _reference_forward(params, x_nchw):
    """Pure-JAX f32 reference with identical semantics (dropout = identity)."""
    x = jnp.transpose(x_nchw.astype(jnp.float32), (0, 2, 3, 1))   # NHWC
    w1 = params["w1"].reshape(5, 5, 1, 16)
    w2 = params["w2"].reshape(5, 5, 16, 32)

    def conv(v, w):
        return lax.conv_general_dilated(
            v, w, (1, 1), "VALID", dimension_numbers=("NHWC", "HWIO", "NHWC"))

    def pool(v):
        return lax.reduce_window(v, -jnp.inf, lax.max,
                                 (1, 2, 2, 1), (1, 2, 2, 1), "VALID")

    h1 = jax.nn.relu(pool(conv(x, w1) + params["b1"]))
    h2 = jax.nn.relu(pool(conv(h1, w2) + params["b2"]))
    flat = jnp.transpose(h2, (0, 3, 1, 2)).reshape(x.shape[0], 512)
    h3 = jax.nn.relu(flat @ params["wf1"] + params["bf1"])
    return h3 @ params["wf2"] + params["bf2"]


if __name__ == "__main__":
    key = jax.random.PRNGKey(0)
    k_param, k_x = jax.random.split(key)

    params = init_params(k_param)
    # Input must be (B, 1, 28, 28) so the flatten produces 512 features.
    x = jax.random.normal(k_x, (2, 1, 28, 28), jnp.float32)
    # TODO(synk): F.dropout(p=0.5) layers are eval-mode identities (PyTorch
    # training-mode RNG cannot be reproduced bit-exactly).

    out = jax.block_until_ready(jax.jit(model_cnn_forward)(params, x))
    assert out.shape == (2, 10) and out.dtype == jnp.float32

    ref = jax.block_until_ready(jax.jit(_reference_forward)(params, x))
    err = float(jnp.max(jnp.abs(out - ref)))
    assert err < 5e-2, f"mismatch vs pure-JAX reference: max abs err {err}"
    print("KERNEL_OK")
</pallas_src>

<mosaic_0001>
module attributes {stable_mosaic.version = 11 : i64} {
  func.func @_fused_cnn_kernel(%arg0: i32, %arg1: memref<288x100xbf16, #tpu.memory_space<vmem>>, %arg2: memref<100x64xbf16, #tpu.memory_space<vmem>>, %arg3: memref<1x16xf32, #tpu.memory_space<vmem>>, %arg4: memref<400x32xbf16, #tpu.memory_space<vmem>>, %arg5: memref<1x32xf32, #tpu.memory_space<vmem>>, %arg6: memref<16x32x256xbf16, #tpu.memory_space<vmem>>, %arg7: memref<1x256xf32, #tpu.memory_space<vmem>>, %arg8: memref<256x10xbf16, #tpu.memory_space<vmem>>, %arg9: memref<1x10xf32, #tpu.memory_space<vmem>>, %arg10: memref<2x10xf32, #tpu.memory_space<vmem>>) attributes {dimension_semantics = [#tpu.dimension_semantics<parallel>], iteration_bounds = array<i64: 1>, scalar_prefetch = 0 : i64, scratch_operands = 0 : i64, tpu.core_type = #tpu.core_type<tc>, window_params = [{transform_indices = @transform_0, window_bounds = array<i64: 288, 100>}, {pipeline_mode = #tpu.pipeline_mode<synchronous>, transform_indices = @transform_1, window_bounds = array<i64: 100, 64>}, {pipeline_mode = #tpu.pipeline_mode<synchronous>, transform_indices = @transform_2, window_bounds = array<i64: 1, 16>}, {pipeline_mode = #tpu.pipeline_mode<synchronous>, transform_indices = @transform_3, window_bounds = array<i64: 400, 32>}, {pipeline_mode = #tpu.pipeline_mode<synchronous>, transform_indices = @transform_4, window_bounds = array<i64: 1, 32>}, {pipeline_mode = #tpu.pipeline_mode<synchronous>, transform_indices = @transform_5, window_bounds = array<i64: 16, 32, 256>}, {pipeline_mode = #tpu.pipeline_mode<synchronous>, transform_indices = @transform_6, window_bounds = array<i64: 1, 256>}, {pipeline_mode = #tpu.pipeline_mode<synchronous>, transform_indices = @transform_7, window_bounds = array<i64: 256, 10>}, {pipeline_mode = #tpu.pipeline_mode<synchronous>, transform_indices = @transform_8, window_bounds = array<i64: 1, 10>}, {transform_indices = @transform_9, window_bounds = array<i64: 2, 10>}]} {
    %c0 = arith.constant 0 : index
    %c0_0 = arith.constant 0 : index
    %0 = vector.load %arg1[%c0, %c0_0] : memref<288x100xbf16, #tpu.memory_space<vmem>>, vector<288x100xbf16>
    %c0_1 = arith.constant 0 : index
    %c0_2 = arith.constant 0 : index
    %1 = vector.load %arg2[%c0_1, %c0_2] : memref<100x64xbf16, #tpu.memory_space<vmem>>, vector<100x64xbf16>
    %cst = arith.constant dense<0.000000e+00> : vector<288x64xf32>
    %2 = tpu.matmul %0, %1, %cst {dimension_numbers = #tpu.dot_dimension_numbers<[1], [0], [0], [1], [0, 0, 1, 1], [], []>} : vector<288x100xbf16>, vector<100x64xbf16>, vector<288x64xf32> -> vector<288x64xf32>
    %3 = vector.extract_strided_slice %2 {offsets = [0, 0], sizes = [288, 16], strides = [1, 1]} : vector<288x64xf32> to vector<288x16xf32>
    %4 = vector.extract_strided_slice %2 {offsets = [0, 16], sizes = [288, 16], strides = [1, 1]} : vector<288x64xf32> to vector<288x16xf32>
    %5 = arith.maximumf %3, %4 : vector<288x16xf32>
    %6 = vector.extract_strided_slice %2 {offsets = [0, 32], sizes = [288, 16], strides = [1, 1]} : vector<288x64xf32> to vector<288x16xf32>
    %7 = vector.extract_strided_slice %2 {offsets = [0, 48], sizes = [288, 16], strides = [1, 1]} : vector<288x64xf32> to vector<288x16xf32>
    %8 = arith.maximumf %6, %7 : vector<288x16xf32>
    %9 = arith.maximumf %5, %8 : vector<288x16xf32>
    %c0_3 = arith.constant 0 : index
    %c0_4 = arith.constant 0 : index
    %10 = vector.load %arg3[%c0_3, %c0_4] : memref<1x16xf32, #tpu.memory_space<vmem>>, vector<1x16xf32>
    %11 = vector.broadcast %10 : vector<1x16xf32> to vector<288x16xf32>
    %12 = arith.addf %9, %11 : vector<288x16xf32>
    %cst_5 = arith.constant 0.000000e+00 : f32
    %13 = vector.broadcast %cst_5 : f32 to vector<288x16xf32>
    %14 = arith.maximumf %12, %13 : vector<288x16xf32>
    %15 = arith.truncf %14 : vector<288x16xf32> to vector<288x16xbf16>
    %16 = vector.shape_cast %15 : vector<288x16xbf16> to vector<2x4x6x6x16xbf16>
    %17 = vector.extract_strided_slice %16 {offsets = [0, 0, 0, 0, 0], sizes = [2, 1, 4, 4, 16], strides = [1, 1, 1, 1, 1]} : vector<2x4x6x6x16xbf16> to vector<2x1x4x4x16xbf16>
    %18 = vector.shape_cast %17 : vector<2x1x4x4x16xbf16> to vector<2x4x4x16xbf16>
    %19 = vector.shape_cast %18 : vector<2x4x4x16xbf16> to vector<32x16xbf16>
    %20 = vector.extract_strided_slice %16 {offsets = [0, 1, 0, 0, 0], sizes = [2, 1, 4, 4, 16], strides = [1, 1, 1, 1, 1]} : vector<2x4x6x6x16xbf16> to vector<2x1x4x4x16xbf16>
    %21 = vector.shape_cast %20 : vector<2x1x4x4x16xbf16> to vector<2x4x4x16xbf16>
    %22 = vector.shape_cast %21 : vector<2x4x4x16xbf16> to vector<32x16xbf16>
    %23 = vector.extract_strided_slice %16 {offsets = [0, 0, 0, 1, 0], sizes = [2, 1, 4, 4, 16], strides = [1, 1, 1, 1, 1]} : vector<2x4x6x6x16xbf16> to vector<2x1x4x4x16xbf16>
    %24 = vector.shape_cast %23 : vector<2x1x4x4x16xbf16> to vector<2x4x4x16xbf16>
    %25 = vector.shape_cast %24 : vector<2x4x4x16xbf16> to vector<32x16xbf16>
    %26 = vector.extract_strided_slice %16 {offsets = [0, 1, 0, 1, 0], sizes = [2, 1, 4, 4, 16], strides = [1, 1, 1, 1, 1]} : vector<2x4x6x6x16xbf16> to vector<2x1x4x4x16xbf16>
    %27 = vector.shape_cast %26 : vector<2x1x4x4x16xbf16> to vector<2x4x4x16xbf16>
    %28 = vector.shape_cast %27 : vector<2x4x4x16xbf16> to vector<32x16xbf16>
    %29 = vector.extract_strided_slice %16 {offsets = [0, 0, 0, 2, 0], sizes = [2, 1, 4, 4, 16], strides = [1, 1, 1, 1, 1]} : vector<2x4x6x6x16xbf16> to vector<2x1x4x4x16xbf16>
    %30 = vector.shape_cast %29 : vector<2x1x4x4x16xbf16> to vector<2x4x4x16xbf16>
    %31 = vector.shape_cast %30 : vector<2x4x4x16xbf16> to vector<32x16xbf16>
    %32 = vector.extract_strided_slice %16 {offsets = [0, 2, 0, 0, 0], sizes = [2, 1, 4, 4, 16], strides = [1, 1, 1, 1, 1]} : vector<2x4x6x6x16xbf16> to vector<2x1x4x4x16xbf16>
    %33 = vector.shape_cast %32 : vector<2x1x4x4x16xbf16> to vector<2x4x4x16xbf16>
    %34 = vector.shape_cast %33 : vector<2x4x4x16xbf16> to vector<32x16xbf16>
    %35 = vector.extract_strided_slice %16 {offsets = [0, 3, 0, 0, 0], sizes = [2, 1, 4, 4, 16], strides = [1, 1, 1, 1, 1]} : vector<2x4x6x6x16xbf16> to vector<2x1x4x4x16xbf16>
    %36 = vector.shape_cast %35 : vector<2x1x4x4x16xbf16> to vector<2x4x4x16xbf16>
    %37 = vector.shape_cast %36 : vector<2x4x4x16xbf16> to vector<32x16xbf16>
    %38 = vector.extract_strided_slice %16 {offsets = [0, 2, 0, 1, 0], sizes = [2, 1, 4, 4, 16], strides = [1, 1, 1, 1, 1]} : vector<2x4x6x6x16xbf16> to vector<2x1x4x4x16xbf16>
    %39 = vector.shape_cast %38 : vector<2x1x4x4x16xbf16> to vector<2x4x4x16xbf16>
    %40 = vector.shape_cast %39 : vector<2x4x4x16xbf16> to vector<32x16xbf16>
    %41 = vector.extract_strided_slice %16 {offsets = [0, 3, 0, 1, 0], sizes = [2, 1, 4, 4, 16], strides = [1, 1, 1, 1, 1]} : vector<2x4x6x6x16xbf16> to vector<2x1x4x4x16xbf16>
    %42 = vector.shape_cast %41 : vector<2x1x4x4x16xbf16> to vector<2x4x4x16xbf16>
    %43 = vector.shape_cast %42 : vector<2x4x4x16xbf16> to vector<32x16xbf16>
    %44 = vector.extract_strided_slice %16 {offsets = [0, 2, 0, 2, 0], sizes = [2, 1, 4, 4, 16], strides = [1, 1, 1, 1, 1]} : vector<2x4x6x6x16xbf16> to vector<2x1x4x4x16xbf16>
    %45 = vector.shape_cast %44 : vector<2x1x4x4x16xbf16> to vector<2x4x4x16xbf16>
    %46 = vector.shape_cast %45 : vector<2x4x4x16xbf16> to vector<32x16xbf16>
    %47 = vector.extract_strided_slice %16 {offsets = [0, 0, 1, 0, 0], sizes = [2, 1, 4, 4, 16], strides = [1, 1, 1, 1, 1]} : vector<2x4x6x6x16xbf16> to vector<2x1x4x4x16xbf16>
    %48 = vector.shape_cast %47 : vector<2x1x4x4x16xbf16> to vector<2x4x4x16xbf16>
    %49 = vector.shape_cast %48 : vector<2x4x4x16xbf16> to vector<32x16xbf16>
    %50 = vector.extract_strided_slice %16 {offsets = [0, 1, 1, 0, 0], sizes = [2, 1, 4, 4, 16], strides = [1, 1, 1, 1, 1]} : vector<2x4x6x6x16xbf16> to vector<2x1x4x4x16xbf16>
    %51 = vector.shape_cast %50 : vector<2x1x4x4x16xbf16> to vector<2x4x4x16xbf16>
    %52 = vector.shape_cast %51 : vector<2x4x4x16xbf16> to vector<32x16xbf16>
    %53 = vector.extract_strided_slice %16 {offsets = [0, 0, 1, 1, 0], sizes = [2, 1, 4, 4, 16], strides = [1, 1, 1, 1, 1]} : vector<2x4x6x6x16xbf16> to vector<2x1x4x4x16xbf16>
    %54 = vector.shape_cast %53 : vector<2x1x4x4x16xbf16> to vector<2x4x4x16xbf16>
    %55 = vector.shape_cast %54 : vector<2x4x4x16xbf16> to vector<32x16xbf16>
    %56 = vector.extract_strided_slice %16 {offsets = [0, 1, 1, 1, 0], sizes = [2, 1, 4, 4, 16], strides = [1, 1, 1, 1, 1]} : vector<2x4x6x6x16xbf16> to vector<2x1x4x4x16xbf16>
    %57 = vector.shape_cast %56 : vector<2x1x4x4x16xbf16> to vector<2x4x4x16xbf16>
    %58 = vector.shape_cast %57 : vector<2x4x4x16xbf16> to vector<32x16xbf16>
    %59 = vector.extract_strided_slice %16 {offsets = [0, 0, 1, 2, 0], sizes = [2, 1, 4, 4, 16], strides = [1, 1, 1, 1, 1]} : vector<2x4x6x6x16xbf16> to vector<2x1x4x4x16xbf16>
    %60 = vector.shape_cast %59 : vector<2x1x4x4x16xbf16> to vector<2x4x4x16xbf16>
    %61 = vector.shape_cast %60 : vector<2x4x4x16xbf16> to vector<32x16xbf16>
    %62 = vector.extract_strided_slice %16 {offsets = [0, 2, 1, 0, 0], sizes = [2, 1, 4, 4, 16], strides = [1, 1, 1, 1, 1]} : vector<2x4x6x6x16xbf16> to vector<2x1x4x4x16xbf16>
    %63 = vector.shape_cast %62 : vector<2x1x4x4x16xbf16> to vector<2x4x4x16xbf16>
    %64 = vector.shape_cast %63 : vector<2x4x4x16xbf16> to vector<32x16xbf16>
    %65 = vector.extract_strided_slice %16 {offsets = [0, 3, 1, 0, 0], sizes = [2, 1, 4, 4, 16], strides = [1, 1, 1, 1, 1]} : vector<2x4x6x6x16xbf16> to vector<2x1x4x4x16xbf16>
    %66 = vector.shape_cast %65 : vector<2x1x4x4x16xbf16> to vector<2x4x4x16xbf16>
    %67 = vector.shape_cast %66 : vector<2x4x4x16xbf16> to vector<32x16xbf16>
    %68 = vector.extract_strided_slice %16 {offsets = [0, 2, 1, 1, 0], sizes = [2, 1, 4, 4, 16], strides = [1, 1, 1, 1, 1]} : vector<2x4x6x6x16xbf16> to vector<2x1x4x4x16xbf16>
    %69 = vector.shape_cast %68 : vector<2x1x4x4x16xbf16> to vector<2x4x4x16xbf16>
    %70 = vector.shape_cast %69 : vector<2x4x4x16xbf16> to vector<32x16xbf16>
    %71 = vector.extract_strided_slice %16 {offsets = [0, 3, 1, 1, 0], sizes = [2, 1, 4, 4, 16], strides = [1, 1, 1, 1, 1]} : vector<2x4x6x6x16xbf16> to vector<2x1x4x4x16xbf16>
    %72 = vector.shape_cast %71 : vector<2x1x4x4x16xbf16> to vector<2x4x4x16xbf16>
    %73 = vector.shape_cast %72 : vector<2x4x4x16xbf16> to vector<32x16xbf16>
    %74 = vector.extract_strided_slice %16 {offsets = [0, 2, 1, 2, 0], sizes = [2, 1, 4, 4, 16], strides = [1, 1, 1, 1, 1]} : vector<2x4x6x6x16xbf16> to vector<2x1x4x4x16xbf16>
    %75 = vector.shape_cast %74 : vector<2x1x4x4x16xbf16> to vector<2x4x4x16xbf16>
    %76 = vector.shape_cast %75 : vector<2x4x4x16xbf16> to vector<32x16xbf16>
    %77 = vector.extract_strided_slice %16 {offsets = [0, 0, 2, 0, 0], sizes = [2, 1, 4, 4, 16], strides = [1, 1, 1, 1, 1]} : vector<2x4x6x6x16xbf16> to vector<2x1x4x4x16xbf16>
    %78 = vector.shape_cast %77 : vector<2x1x4x4x16xbf16> to vector<2x4x4x16xbf16>
    %79 = vector.shape_cast %78 : vector<2x4x4x16xbf16> to vector<32x16xbf16>
    %80 = vector.extract_strided_slice %16 {offsets = [0, 1, 2, 0, 0], sizes = [2, 1, 4, 4, 16], strides = [1, 1, 1, 1, 1]} : vector<2x4x6x6x16xbf16> to vector<2x1x4x4x16xbf16>
    %81 = vector.shape_cast %80 : vector<2x1x4x4x16xbf16> to vector<2x4x4x16xbf16>
    %82 = vector.shape_cast %81 : vector<2x4x4x16xbf16> to vector<32x16xbf16>
    %83 = vector.extract_strided_slice %16 {offsets = [0, 0, 2, 1, 0], sizes = [2, 1, 4, 4, 16], strides = [1, 1, 1, 1, 1]} : vector<2x4x6x6x16xbf16> to vector<2x1x4x4x16xbf16>
    %84 = vector.shape_cast %83 : vector<2x1x4x4x16xbf16> to vector<2x4x4x16xbf16>
    %85 = vector.shape_cast %84 : vector<2x4x4x16xbf16> to vector<32x16xbf16>
    %86 = vector.extract_strided_slice %16 {offsets = [0, 1, 2, 1, 0], sizes = [2, 1, 4, 4, 16], strides = [1, 1, 1, 1, 1]} : vector<2x4x6x6x16xbf16> to vector<2x1x4x4x16xbf16>
    %87 = vector.shape_cast %86 : vector<2x1x4x4x16xbf16> to vector<2x4x4x16xbf16>
    %88 = vector.shape_cast %87 : vector<2x4x4x16xbf16> to vector<32x16xbf16>
    %89 = vector.extract_strided_slice %16 {offsets = [0, 0, 2, 2, 0], sizes = [2, 1, 4, 4, 16], strides = [1, 1, 1, 1, 1]} : vector<2x4x6x6x16xbf16> to vector<2x1x4x4x16xbf16>
    %90 = vector.shape_cast %89 : vector<2x1x4x4x16xbf16> to vector<2x4x4x16xbf16>
    %91 = vector.shape_cast %90 : vector<2x4x4x16xbf16> to vector<32x16xbf16>
    %92 = tpu.concatenate %19, %22, %25, %28, %31, %34, %37, %40, %43, %46, %49, %52, %55, %58, %61, %64 in 1 : vector<32x16xbf16>, vector<32x16xbf16>, vector<32x16xbf16>, vector<32x16xbf16>, vector<32x16xbf16>, vector<32x16xbf16>, vector<32x16xbf16>, vector<32x16xbf16>, vector<32x16xbf16>, vector<32x16xbf16>, vector<32x16xbf16>, vector<32x16xbf16>, vector<32x16xbf16>, vector<32x16xbf16>, vector<32x16xbf16>, vector<32x16xbf16> -> vector<32x256xbf16>
    %93 = tpu.concatenate %67, %70, %73, %76, %79, %82, %85, %88, %91 in 1 : vector<32x16xbf16>, vector<32x16xbf16>, vector<32x16xbf16>, vector<32x16xbf16>, vector<32x16xbf16>, vector<32x16xbf16>, vector<32x16xbf16>, vector<32x16xbf16>, vector<32x16xbf16> -> vector<32x144xbf16>
    %94 = tpu.concatenate %92, %93 in 1 : vector<32x256xbf16>, vector<32x144xbf16> -> vector<32x400xbf16>
    %c0_6 = arith.constant 0 : index
    %c0_7 = arith.constant 0 : index
    %95 = vector.load %arg4[%c0_6, %c0_7] : memref<400x32xbf16, #tpu.memory_space<vmem>>, vector<400x32xbf16>
    %cst_8 = arith.constant dense<0.000000e+00> : vector<32x32xf32>
    %96 = tpu.matmul %94, %95, %cst_8 {dimension_numbers = #tpu.dot_dimension_numbers<[1], [0], [0], [1], [0, 0, 1, 1], [], []>} : vector<32x400xbf16>, vector<400x32xbf16>, vector<32x32xf32> -> vector<32x32xf32>
    %97 = vector.extract_strided_slice %16 {offsets = [0, 1, 0, 0, 0], sizes = [2, 1, 4, 4, 16], strides = [1, 1, 1, 1, 1]} : vector<2x4x6x6x16xbf16> to vector<2x1x4x4x16xbf16>
    %98 = vector.shape_cast %97 : vector<2x1x4x4x16xbf16> to vector<2x4x4x16xbf16>
    %99 = vector.shape_cast %98 : vector<2x4x4x16xbf16> to vector<32x16xbf16>
    %100 = vector.extract_strided_slice %16 {offsets = [0, 0, 0, 1, 0], sizes = [2, 1, 4, 4, 16], strides = [1, 1, 1, 1, 1]} : vector<2x4x6x6x16xbf16> to vector<2x1x4x4x16xbf16>
    %101 = vector.shape_cast %100 : vector<2x1x4x4x16xbf16> to vector<2x4x4x16xbf16>
    %102 = vector.shape_cast %101 : vector<2x4x4x16xbf16> to vector<32x16xbf16>
    %103 = vector.extract_strided_slice %16 {offsets = [0, 1, 0, 1, 0], sizes = [2, 1, 4, 4, 16], strides = [1, 1, 1, 1, 1]} : vector<2x4x6x6x16xbf16> to vector<2x1x4x4x16xbf16>
    %104 = vector.shape_cast %103 : vector<2x1x4x4x16xbf16> to vector<2x4x4x16xbf16>
    %105 = vector.shape_cast %104 : vector<2x4x4x16xbf16> to vector<32x16xbf16>
    %106 = vector.extract_strided_slice %16 {offsets = [0, 0, 0, 2, 0], sizes = [2, 1, 4, 4, 16], strides = [1, 1, 1, 1, 1]} : vector<2x4x6x6x16xbf16> to vector<2x1x4x4x16xbf16>
    %107 = vector.shape_cast %106 : vector<2x1x4x4x16xbf16> to vector<2x4x4x16xbf16>
    %108 = vector.shape_cast %107 : vector<2x4x4x16xbf16> to vector<32x16xbf16>
    %109 = vector.extract_strided_slice %16 {offsets = [0, 1, 0, 2, 0], sizes = [2, 1, 4, 4, 16], strides = [1, 1, 1, 1, 1]} : vector<2x4x6x6x16xbf16> to vector<2x1x4x4x16xbf16>
    %110 = vector.shape_cast %109 : vector<2x1x4x4x16xbf16> to vector<2x4x4x16xbf16>
    %111 = vector.shape_cast %110 : vector<2x4x4x16xbf16> to vector<32x16xbf16>
    %112 = vector.extract_strided_slice %16 {offsets = [0, 3, 0, 0, 0], sizes = [2, 1, 4, 4, 16], strides = [1, 1, 1, 1, 1]} : vector<2x4x6x6x16xbf16> to vector<2x1x4x4x16xbf16>
    %113 = vector.shape_cast %112 : vector<2x1x4x4x16xbf16> to vector<2x4x4x16xbf16>
    %114 = vector.shape_cast %113 : vector<2x4x4x16xbf16> to vector<32x16xbf16>
    %115 = vector.extract_strided_slice %16 {offsets = [0, 2, 0, 1, 0], sizes = [2, 1, 4, 4, 16], strides = [1, 1, 1, 1, 1]} : vector<2x4x6x6x16xbf16> to vector<2x1x4x4x16xbf16>
    %116 = vector.shape_cast %115 : vector<2x1x4x4x16xbf16> to vector<2x4x4x16xbf16>
    %117 = vector.shape_cast %116 : vector<2x4x4x16xbf16> to vector<32x16xbf16>
    %118 = vector.extract_strided_slice %16 {offsets = [0, 3, 0, 1, 0], sizes = [2, 1, 4, 4, 16], strides = [1, 1, 1, 1, 1]} : vector<2x4x6x6x16xbf16> to vector<2x1x4x4x16xbf16>
    %119 = vector.shape_cast %118 : vector<2x1x4x4x16xbf16> to vector<2x4x4x16xbf16>
    %120 = vector.shape_cast %119 : vector<2x4x4x16xbf16> to vector<32x16xbf16>
    %121 = vector.extract_strided_slice %16 {offsets = [0, 2, 0, 2, 0], sizes = [2, 1, 4, 4, 16], strides = [1, 1, 1, 1, 1]} : vector<2x4x6x6x16xbf16> to vector<2x1x4x4x16xbf16>
    %122 = vector.shape_cast %121 : vector<2x1x4x4x16xbf16> to vector<2x4x4x16xbf16>
    %123 = vector.shape_cast %122 : vector<2x4x4x16xbf16> to vector<32x16xbf16>
    %124 = vector.extract_strided_slice %16 {offsets = [0, 3, 0, 2, 0], sizes = [2, 1, 4, 4, 16], strides = [1, 1, 1, 1, 1]} : vector<2x4x6x6x16xbf16> to vector<2x1x4x4x16xbf16>
    %125 = vector.shape_cast %124 : vector<2x1x4x4x16xbf16> to vector<2x4x4x16xbf16>
    %126 = vector.shape_cast %125 : vector<2x4x4x16xbf16> to vector<32x16xbf16>
    %127 = vector.extract_strided_slice %16 {offsets = [0, 1, 1, 0, 0], sizes = [2, 1, 4, 4, 16], strides = [1, 1, 1, 1, 1]} : vector<2x4x6x6x16xbf16> to vector<2x1x4x4x16xbf16>
    %128 = vector.shape_cast %127 : vector<2x1x4x4x16xbf16> to vector<2x4x4x16xbf16>
    %129 = vector.shape_cast %128 : vector<2x4x4x16xbf16> to vector<32x16xbf16>
    %130 = vector.extract_strided_slice %16 {offsets = [0, 0, 1, 1, 0], sizes = [2, 1, 4, 4, 16], strides = [1, 1, 1, 1, 1]} : vector<2x4x6x6x16xbf16> to vector<2x1x4x4x16xbf16>
    %131 = vector.shape_cast %130 : vector<2x1x4x4x16xbf16> to vector<2x4x4x16xbf16>
    %132 = vector.shape_cast %131 : vector<2x4x4x16xbf16> to vector<32x16xbf16>
    %133 = vector.extract_strided_slice %16 {offsets = [0, 1, 1, 1, 0], sizes = [2, 1, 4, 4, 16], strides = [1, 1, 1, 1, 1]} : vector<2x4x6x6x16xbf16> to vector<2x1x4x4x16xbf16>
    %134 = vector.shape_cast %133 : vector<2x1x4x4x16xbf16> to vector<2x4x4x16xbf16>
    %135 = vector.shape_cast %134 : vector<2x4x4x16xbf16> to vector<32x16xbf16>
    %136 = vector.extract_strided_slice %16 {offsets = [0, 0, 1, 2, 0], sizes = [2, 1, 4, 4, 16], strides = [1, 1, 1, 1, 1]} : vector<2x4x6x6x16xbf16> to vector<2x1x4x4x16xbf16>
    %137 = vector.shape_cast %136 : vector<2x1x4x4x16xbf16> to vector<2x4x4x16xbf16>
    %138 = vector.shape_cast %137 : vector<2x4x4x16xbf16> to vector<32x16xbf16>
    %139 = vector.extract_strided_slice %16 {offsets = [0, 1, 1, 2, 0], sizes = [2, 1, 4, 4, 16], strides = [1, 1, 1, 1, 1]} : vector<2x4x6x6x16xbf16> to vector<2x1x4x4x16xbf16>
    %140 = vector.shape_cast %139 : vector<2x1x4x4x16xbf16> to vector<2x4x4x16xbf16>
    %141 = vector.shape_cast %140 : vector<2x4x4x16xbf16> to vector<32x16xbf16>
    %142 = vector.extract_strided_slice %16 {offsets = [0, 3, 1, 0, 0], sizes = [2, 1, 4, 4, 16], strides = [1, 1, 1, 1, 1]} : vector<2x4x6x6x16xbf16> to vector<2x1x4x4x16xbf16>
    %143 = vector.shape_cast %142 : vector<2x1x4x4x16xbf16> to vector<2x4x4x16xbf16>
    %144 = vector.shape_cast %143 : vector<2x4x4x16xbf16> to vector<32x16xbf16>
    %145 = vector.extract_strided_slice %16 {offsets = [0, 2, 1, 1, 0], sizes = [2, 1, 4, 4, 16], strides = [1, 1, 1, 1, 1]} : vector<2x4x6x6x16xbf16> to vector<2x1x4x4x16xbf16>
    %146 = vector.shape_cast %145 : vector<2x1x4x4x16xbf16> to vector<2x4x4x16xbf16>
    %147 = vector.shape_cast %146 : vector<2x4x4x16xbf16> to vector<32x16xbf16>
    %148 = vector.extract_strided_slice %16 {offsets = [0, 3, 1, 1, 0], sizes = [2, 1, 4, 4, 16], strides = [1, 1, 1, 1, 1]} : vector<2x4x6x6x16xbf16> to vector<2x1x4x4x16xbf16>
    %149 = vector.shape_cast %148 : vector<2x1x4x4x16xbf16> to vector<2x4x4x16xbf16>
    %150 = vector.shape_cast %149 : vector<2x4x4x16xbf16> to vector<32x16xbf16>
    %151 = vector.extract_strided_slice %16 {offsets = [0, 2, 1, 2, 0], sizes = [2, 1, 4, 4, 16], strides = [1, 1, 1, 1, 1]} : vector<2x4x6x6x16xbf16> to vector<2x1x4x4x16xbf16>
    %152 = vector.shape_cast %151 : vector<2x1x4x4x16xbf16> to vector<2x4x4x16xbf16>
    %153 = vector.shape_cast %152 : vector<2x4x4x16xbf16> to vector<32x16xbf16>
    %154 = vector.extract_strided_slice %16 {offsets = [0, 3, 1, 2, 0], sizes = [2, 1, 4, 4, 16], strides = [1, 1, 1, 1, 1]} : vector<2x4x6x6x16xbf16> to vector<2x1x4x4x16xbf16>
    %155 = vector.shape_cast %154 : vector<2x1x4x4x16xbf16> to vector<2x4x4x16xbf16>
    %156 = vector.shape_cast %155 : vector<2x4x4x16xbf16> to vector<32x16xbf16>
    %157 = vector.extract_strided_slice %16 {offsets = [0, 1, 2, 0, 0], sizes = [2, 1, 4, 4, 16], strides = [1, 1, 1, 1, 1]} : vector<2x4x6x6x16xbf16> to vector<2x1x4x4x16xbf16>
    %158 = vector.shape_cast %157 : vector<2x1x4x4x16xbf16> to vector<2x4x4x16xbf16>
    %159 = vector.shape_cast %158 : vector<2x4x4x16xbf16> to vector<32x16xbf16>
    %160 = vector.extract_strided_slice %16 {offsets = [0, 0, 2, 1, 0], sizes = [2, 1, 4, 4, 16], strides = [1, 1, 1, 1, 1]} : vector<2x4x6x6x16xbf16> to vector<2x1x4x4x16xbf16>
    %161 = vector.shape_cast %160 : vector<2x1x4x4x16xbf16> to vector<2x4x4x16xbf16>
    %162 = vector.shape_cast %161 : vector<2x4x4x16xbf16> to vector<32x16xbf16>
    %163 = vector.extract_strided_slice %16 {offsets = [0, 1, 2, 1, 0], sizes = [2, 1, 4, 4, 16], strides = [1, 1, 1, 1, 1]} : vector<2x4x6x6x16xbf16> to vector<2x1x4x4x16xbf16>
    %164 = vector.shape_cast %163 : vector<2x1x4x4x16xbf16> to vector<2x4x4x16xbf16>
    %165 = vector.shape_cast %164 : vector<2x4x4x16xbf16> to vector<32x16xbf16>
    %166 = vector.extract_strided_slice %16 {offsets = [0, 0, 2, 2, 0], sizes = [2, 1, 4, 4, 16], strides = [1, 1, 1, 1, 1]} : vector<2x4x6x6x16xbf16> to vector<2x1x4x4x16xbf16>
    %167 = vector.shape_cast %166 : vector<2x1x4x4x16xbf16> to vector<2x4x4x16xbf16>
    %168 = vector.shape_cast %167 : vector<2x4x4x16xbf16> to vector<32x16xbf16>
    %169 = vector.extract_strided_slice %16 {offsets = [0, 1, 2, 2, 0], sizes = [2, 1, 4, 4, 16], strides = [1, 1, 1, 1, 1]} : vector<2x4x6x6x16xbf16> to vector<2x1x4x4x16xbf16>
    %170 = vector.shape_cast %169 : vector<2x1x4x4x16xbf16> to vector<2x4x4x16xbf16>
    %171 = vector.shape_cast %170 : vector<2x4x4x16xbf16> to vector<32x16xbf16>
    %172 = tpu.concatenate %99, %102, %105, %108, %111, %114, %117, %120, %123, %126, %129, %132, %135, %138, %141, %144 in 1 : vector<32x16xbf16>, vector<32x16xbf16>, vector<32x16xbf16>, vector<32x16xbf16>, vector<32x16xbf16>, vector<32x16xbf16>, vector<32x16xbf16>, vector<32x16xbf16>, vector<32x16xbf16>, vector<32x16xbf16>, vector<32x16xbf16>, vector<32x16xbf16>, vector<32x16xbf16>, vector<32x16xbf16>, vector<32x16xbf16>, vector<32x16xbf16> -> vector<32x256xbf16>
    %173 = tpu.concatenate %147, %150, %153, %156, %159, %162, %165, %168, %171 in 1 : vector<32x16xbf16>, vector<32x16xbf16>, vector<32x16xbf16>, vector<32x16xbf16>, vector<32x16xbf16>, vector<32x16xbf16>, vector<32x16xbf16>, vector<32x16xbf16>, vector<32x16xbf16> -> vector<32x144xbf16>
    %174 = tpu.concatenate %172, %173 in 1 : vector<32x256xbf16>, vector<32x144xbf16> -> vector<32x400xbf16>
    %c0_9 = arith.constant 0 : index
    %c0_10 = arith.constant 0 : index
    %175 = vector.load %arg4[%c0_9, %c0_10] : memref<400x32xbf16, #tpu.memory_space<vmem>>, vector<400x32xbf16>
    %cst_11 = arith.constant dense<0.000000e+00> : vector<32x32xf32>
    %176 = tpu.matmul %174, %175, %cst_11 {dimension_numbers = #tpu.dot_dimension_numbers<[1], [0], [0], [1], [0, 0, 1, 1], [], []>} : vector<32x400xbf16>, vector<400x32xbf16>, vector<32x32xf32> -> vector<32x32xf32>
    %177 = arith.maximumf %96, %176 : vector<32x32xf32>
    %178 = vector.extract_strided_slice %16 {offsets = [0, 2, 0, 0, 0], sizes = [2, 1, 4, 4, 16], strides = [1, 1, 1, 1, 1]} : vector<2x4x6x6x16xbf16> to vector<2x1x4x4x16xbf16>
    %179 = vector.shape_cast %178 : vector<2x1x4x4x16xbf16> to vector<2x4x4x16xbf16>
    %180 = vector.shape_cast %179 : vector<2x4x4x16xbf16> to vector<32x16xbf16>
    %181 = vector.extract_strided_slice %16 {offsets = [0, 3, 0, 0, 0], sizes = [2, 1, 4, 4, 16], strides = [1, 1, 1, 1, 1]} : vector<2x4x6x6x16xbf16> to vector<2x1x4x4x16xbf16>
    %182 = vector.shape_cast %181 : vector<2x1x4x4x16xbf16> to vector<2x4x4x16xbf16>
    %183 = vector.shape_cast %182 : vector<2x4x4x16xbf16> to vector<32x16xbf16>
    %184 = vector.extract_strided_slice %16 {offsets = [0, 2, 0, 1, 0], sizes = [2, 1, 4, 4, 16], strides = [1, 1, 1, 1, 1]} : vector<2x4x6x6x16xbf16> to vector<2x1x4x4x16xbf16>
    %185 = vector.shape_cast %184 : vector<2x1x4x4x16xbf16> to vector<2x4x4x16xbf16>
    %186 = vector.shape_cast %185 : vector<2x4x4x16xbf16> to vector<32x16xbf16>
    %187 = vector.extract_strided_slice %16 {offsets = [0, 3, 0, 1, 0], sizes = [2, 1, 4, 4, 16], strides = [1, 1, 1, 1, 1]} : vector<2x4x6x6x16xbf16> to vector<2x1x4x4x16xbf16>
    %188 = vector.shape_cast %187 : vector<2x1x4x4x16xbf16> to vector<2x4x4x16xbf16>
    %189 = vector.shape_cast %188 : vector<2x4x4x16xbf16> to vector<32x16xbf16>
    %190 = vector.extract_strided_slice %16 {offsets = [0, 2, 0, 2, 0], sizes = [2, 1, 4, 4, 16], strides = [1, 1, 1, 1, 1]} : vector<2x4x6x6x16xbf16> to vector<2x1x4x4x16xbf16>
    %191 = vector.shape_cast %190 : vector<2x1x4x4x16xbf16> to vector<2x4x4x16xbf16>
    %192 = vector.shape_cast %191 : vector<2x4x4x16xbf16> to vector<32x16xbf16>
    %193 = vector.extract_strided_slice %16 {offsets = [0, 0, 1, 0, 0], sizes = [2, 1, 4, 4, 16], strides = [1, 1, 1, 1, 1]} : vector<2x4x6x6x16xbf16> to vector<2x1x4x4x16xbf16>
    %194 = vector.shape_cast %193 : vector<2x1x4x4x16xbf16> to vector<2x4x4x16xbf16>
    %195 = vector.shape_cast %194 : vector<2x4x4x16xbf16> to vector<32x16xbf16>
    %196 = vector.extract_strided_slice %16 {offsets = [0, 1, 1, 0, 0], sizes = [2, 1, 4, 4, 16], strides = [1, 1, 1, 1, 1]} : vector<2x4x6x6x16xbf16> to vector<2x1x4x4x16xbf16>
    %197 = vector.shape_cast %196 : vector<2x1x4x4x16xbf16> to vector<2x4x4x16xbf16>
    %198 = vector.shape_cast %197 : vector<2x4x4x16xbf16> to vector<32x16xbf16>
    %199 = vector.extract_strided_slice %16 {offsets = [0, 0, 1, 1, 0], sizes = [2, 1, 4, 4, 16], strides = [1, 1, 1, 1, 1]} : vector<2x4x6x6x16xbf16> to vector<2x1x4x4x16xbf16>
    %200 = vector.shape_cast %199 : vector<2x1x4x4x16xbf16> to vector<2x4x4x16xbf16>
    %201 = vector.shape_cast %200 : vector<2x4x4x16xbf16> to vector<32x16xbf16>
    %202 = vector.extract_strided_slice %16 {offsets = [0, 1, 1, 1, 0], sizes = [2, 1, 4, 4, 16], strides = [1, 1, 1, 1, 1]} : vector<2x4x6x6x16xbf16> to vector<2x1x4x4x16xbf16>
    %203 = vector.shape_cast %202 : vector<2x1x4x4x16xbf16> to vector<2x4x4x16xbf16>
    %204 = vector.shape_cast %203 : vector<2x4x4x16xbf16> to vector<32x16xbf16>
    %205 = vector.extract_strided_slice %16 {offsets = [0, 0, 1, 2, 0], sizes = [2, 1, 4, 4, 16], strides = [1, 1, 1, 1, 1]} : vector<2x4x6x6x16xbf16> to vector<2x1x4x4x16xbf16>
    %206 = vector.shape_cast %205 : vector<2x1x4x4x16xbf16> to vector<2x4x4x16xbf16>
    %207 = vector.shape_cast %206 : vector<2x4x4x16xbf16> to vector<32x16xbf16>
    %208 = vector.extract_strided_slice %16 {offsets = [0, 2, 1, 0, 0], sizes = [2, 1, 4, 4, 16], strides = [1, 1, 1, 1, 1]} : vector<2x4x6x6x16xbf16> to vector<2x1x4x4x16xbf16>
    %209 = vector.shape_cast %208 : vector<2x1x4x4x16xbf16> to vector<2x4x4x16xbf16>
    %210 = vector.shape_cast %209 : vector<2x4x4x16xbf16> to vector<32x16xbf16>
    %211 = vector.extract_strided_slice %16 {offsets = [0, 3, 1, 0, 0], sizes = [2, 1, 4, 4, 16], strides = [1, 1, 1, 1, 1]} : vector<2x4x6x6x16xbf16> to vector<2x1x4x4x16xbf16>
    %212 = vector.shape_cast %211 : vector<2x1x4x4x16xbf16> to vector<2x4x4x16xbf16>
    %213 = vector.shape_cast %212 : vector<2x4x4x16xbf16> to vector<32x16xbf16>
    %214 = vector.extract_strided_slice %16 {offsets = [0, 2, 1, 1, 0], sizes = [2, 1, 4, 4, 16], strides = [1, 1, 1, 1, 1]} : vector<2x4x6x6x16xbf16> to vector<2x1x4x4x16xbf16>
    %215 = vector.shape_cast %214 : vector<2x1x4x4x16xbf16> to vector<2x4x4x16xbf16>
    %216 = vector.shape_cast %215 : vector<2x4x4x16xbf16> to vector<32x16xbf16>
    %217 = vector.extract_strided_slice %16 {offsets = [0, 3, 1, 1, 0], sizes = [2, 1, 4, 4, 16], strides = [1, 1, 1, 1, 1]} : vector<2x4x6x6x16xbf16> to vector<2x1x4x4x16xbf16>
    %218 = vector.shape_cast %217 : vector<2x1x4x4x16xbf16> to vector<2x4x4x16xbf16>
    %219 = vector.shape_cast %218 : vector<2x4x4x16xbf16> to vector<32x16xbf16>
    %220 = vector.extract_strided_slice %16 {offsets = [0, 2, 1, 2, 0], sizes = [2, 1, 4, 4, 16], strides = [1, 1, 1, 1, 1]} : vector<2x4x6x6x16xbf16> to vector<2x1x4x4x16xbf16>
    %221 = vector.shape_cast %220 : vector<2x1x4x4x16xbf16> to vector<2x4x4x16xbf16>
    %222 = vector.shape_cast %221 : vector<2x4x4x16xbf16> to vector<32x16xbf16>
    %223 = vector.extract_strided_slice %16 {offsets = [0, 0, 2, 0, 0], sizes = [2, 1, 4, 4, 16], strides = [1, 1, 1, 1, 1]} : vector<2x4x6x6x16xbf16> to vector<2x1x4x4x16xbf16>
    %224 = vector.shape_cast %223 : vector<2x1x4x4x16xbf16> to vector<2x4x4x16xbf16>
    %225 = vector.shape_cast %224 : vector<2x4x4x16xbf16> to vector<32x16xbf16>
    %226 = vector.extract_strided_slice %16 {offsets = [0, 1, 2, 0, 0], sizes = [2, 1, 4, 4, 16], strides = [1, 1, 1, 1, 1]} : vector<2x4x6x6x16xbf16> to vector<2x1x4x4x16xbf16>
    %227 = vector.shape_cast %226 : vector<2x1x4x4x16xbf16> to vector<2x4x4x16xbf16>
    %228 = vector.shape_cast %227 : vector<2x4x4x16xbf16> to vector<32x16xbf16>
    %229 = vector.extract_strided_slice %16 {offsets = [0, 0, 2, 1, 0], sizes = [2, 1, 4, 4, 16], strides = [1, 1, 1, 1, 1]} : vector<2x4x6x6x16xbf16> to vector<2x1x4x4x16xbf16>
    %230 = vector.shape_cast %229 : vector<2x1x4x4x16xbf16> to vector<2x4x4x16xbf16>
    %231 = vector.shape_cast %230 : vector<2x4x4x16xbf16> to vector<32x16xbf16>
    %232 = vector.extract_strided_slice %16 {offsets = [0, 1, 2, 1, 0], sizes = [2, 1, 4, 4, 16], strides = [1, 1, 1, 1, 1]} : vector<2x4x6x6x16xbf16> to vector<2x1x4x4x16xbf16>
    %233 = vector.shape_cast %232 : vector<2x1x4x4x16xbf16> to vector<2x4x4x16xbf16>
    %234 = vector.shape_cast %233 : vector<2x4x4x16xbf16> to vector<32x16xbf16>
    %235 = vector.extract_strided_slice %16 {offsets = [0, 0, 2, 2, 0], sizes = [2, 1, 4, 4, 16], strides = [1, 1, 1, 1, 1]} : vector<2x4x6x6x16xbf16> to vector<2x1x4x4x16xbf16>
    %236 = vector.shape_cast %235 : vector<2x1x4x4x16xbf16> to vector<2x4x4x16xbf16>
    %237 = vector.shape_cast %236 : vector<2x4x4x16xbf16> to vector<32x16xbf16>
    %238 = vector.extract_strided_slice %16 {offsets = [0, 2, 2, 0, 0], sizes = [2, 1, 4, 4, 16], strides = [1, 1, 1, 1, 1]} : vector<2x4x6x6x16xbf16> to vector<2x1x4x4x16xbf16>
    %239 = vector.shape_cast %238 : vector<2x1x4x4x16xbf16> to vector<2x4x4x16xbf16>
    %240 = vector.shape_cast %239 : vector<2x4x4x16xbf16> to vector<32x16xbf16>
    %241 = vector.extract_strided_slice %16 {offsets = [0, 3, 2, 0, 0], sizes = [2, 1, 4, 4, 16], strides = [1, 1, 1, 1, 1]} : vector<2x4x6x6x16xbf16> to vector<2x1x4x4x16xbf16>
    %242 = vector.shape_cast %241 : vector<2x1x4x4x16xbf16> to vector<2x4x4x16xbf16>
    %243 = vector.shape_cast %242 : vector<2x4x4x16xbf16> to vector<32x16xbf16>
    %244 = vector.extract_strided_slice %16 {offsets = [0, 2, 2, 1, 0], sizes = [2, 1, 4, 4, 16], strides = [1, 1, 1, 1, 1]} : vector<2x4x6x6x16xbf16> to vector<2x1x4x4x16xbf16>
    %245 = vector.shape_cast %244 : vector<2x1x4x4x16xbf16> to vector<2x4x4x16xbf16>
    %246 = vector.shape_cast %245 : vector<2x4x4x16xbf16> to vector<32x16xbf16>
    %247 = vector.extract_strided_slice %16 {offsets = [0, 3, 2, 1, 0], sizes = [2, 1, 4, 4, 16], strides = [1, 1, 1, 1, 1]} : vector<2x4x6x6x16xbf16> to vector<2x1x4x4x16xbf16>
    %248 = vector.shape_cast %247 : vector<2x1x4x4x16xbf16> to vector<2x4x4x16xbf16>
    %249 = vector.shape_cast %248 : vector<2x4x4x16xbf16> to vector<32x16xbf16>
    %250 = vector.extract_strided_slice %16 {offsets = [0, 2, 2, 2, 0], sizes = [2, 1, 4, 4, 16], strides = [1, 1, 1, 1, 1]} : vector<2x4x6x6x16xbf16> to vector<2x1x4x4x16xbf16>
    %251 = vector.shape_cast %250 : vector<2x1x4x4x16xbf16> to vector<2x4x4x16xbf16>
    %252 = vector.shape_cast %251 : vector<2x4x4x16xbf16> to vector<32x16xbf16>
    %253 = tpu.concatenate %180, %183, %186, %189, %192, %195, %198, %201, %204, %207, %210, %213, %216, %219, %222, %225 in 1 : vector<32x16xbf16>, vector<32x16xbf16>, vector<32x16xbf16>, vector<32x16xbf16>, vector<32x16xbf16>, vector<32x16xbf16>, vector<32x16xbf16>, vector<32x16xbf16>, vector<32x16xbf16>, vector<32x16xbf16>, vector<32x16xbf16>, vector<32x16xbf16>, vector<32x16xbf16>, vector<32x16xbf16>, vector<32x16xbf16>, vector<32x16xbf16> -> vector<32x256xbf16>
    %254 = tpu.concatenate %228, %231, %234, %237, %240, %243, %246, %249, %252 in 1 : vector<32x16xbf16>, vector<32x16xbf16>, vector<32x16xbf16>, vector<32x16xbf16>, vector<32x16xbf16>, vector<32x16xbf16>, vector<32x16xbf16>, vector<32x16xbf16>, vector<32x16xbf16> -> vector<32x144xbf16>
    %255 = tpu.concatenate %253, %254 in 1 : vector<32x256xbf16>, vector<32x144xbf16> -> vector<32x400xbf16>
    %c0_12 = arith.constant 0 : index
    %c0_13 = arith.constant 0 : index
    %256 = vector.load %arg4[%c0_12, %c0_13] : memref<400x32xbf16, #tpu.memory_space<vmem>>, vector<400x32xbf16>
    %cst_14 = arith.constant dense<0.000000e+00> : vector<32x32xf32>
    %257 = tpu.matmul %255, %256, %cst_14 {dimension_numbers = #tpu.dot_dimension_numbers<[1], [0], [0], [1], [0, 0, 1, 1], [], []>} : vector<32x400xbf16>, vector<400x32xbf16>, vector<32x32xf32> -> vector<32x32xf32>
    %258 = arith.maximumf %177, %257 : vector<32x32xf32>
    %259 = vector.extract_strided_slice %16 {offsets = [0, 3, 0, 0, 0], sizes = [2, 1, 4, 4, 16], strides = [1, 1, 1, 1, 1]} : vector<2x4x6x6x16xbf16> to vector<2x1x4x4x16xbf16>
    %260 = vector.shape_cast %259 : vector<2x1x4x4x16xbf16> to vector<2x4x4x16xbf16>
    %261 = vector.shape_cast %260 : vector<2x4x4x16xbf16> to vector<32x16xbf16>
    %262 = vector.extract_strided_slice %16 {offsets = [0, 2, 0, 1, 0], sizes = [2, 1, 4, 4, 16], strides = [1, 1, 1, 1, 1]} : vector<2x4x6x6x16xbf16> to vector<2x1x4x4x16xbf16>
    %263 = vector.shape_cast %262 : vector<2x1x4x4x16xbf16> to vector<2x4x4x16xbf16>
    %264 = vector.shape_cast %263 : vector<2x4x4x16xbf16> to vector<32x16xbf16>
    %265 = vector.extract_strided_slice %16 {offsets = [0, 3, 0, 1, 0], sizes = [2, 1, 4, 4, 16], strides = [1, 1, 1, 1, 1]} : vector<2x4x6x6x16xbf16> to vector<2x1x4x4x16xbf16>
    %266 = vector.shape_cast %265 : vector<2x1x4x4x16xbf16> to vector<2x4x4x16xbf16>
    %267 = vector.shape_cast %266 : vector<2x4x4x16xbf16> to vector<32x16xbf16>
    %268 = vector.extract_strided_slice %16 {offsets = [0, 2, 0, 2, 0], sizes = [2, 1, 4, 4, 16], strides = [1, 1, 1, 1, 1]} : vector<2x4x6x6x16xbf16> to vector<2x1x4x4x16xbf16>
    %269 = vector.shape_cast %268 : vector<2x1x4x4x16xbf16> to vector<2x4x4x16xbf16>
    %270 = vector.shape_cast %269 : vector<2x4x4x16xbf16> to vector<32x16xbf16>
    %271 = vector.extract_strided_slice %16 {offsets = [0, 3, 0, 2, 0], sizes = [2, 1, 4, 4, 16], strides = [1, 1, 1, 1, 1]} : vector<2x4x6x6x16xbf16> to vector<2x1x4x4x16xbf16>
    %272 = vector.shape_cast %271 : vector<2x1x4x4x16xbf16> to vector<2x4x4x16xbf16>
    %273 = vector.shape_cast %272 : vector<2x4x4x16xbf16> to vector<32x16xbf16>
    %274 = vector.extract_strided_slice %16 {offsets = [0, 1, 1, 0, 0], sizes = [2, 1, 4, 4, 16], strides = [1, 1, 1, 1, 1]} : vector<2x4x6x6x16xbf16> to vector<2x1x4x4x16xbf16>
    %275 = vector.shape_cast %274 : vector<2x1x4x4x16xbf16> to vector<2x4x4x16xbf16>
    %276 = vector.shape_cast %275 : vector<2x4x4x16xbf16> to vector<32x16xbf16>
    %277 = vector.extract_strided_slice %16 {offsets = [0, 0, 1, 1, 0], sizes = [2, 1, 4, 4, 16], strides = [1, 1, 1, 1, 1]} : vector<2x4x6x6x16xbf16> to vector<2x1x4x4x16xbf16>
    %278 = vector.shape_cast %277 : vector<2x1x4x4x16xbf16> to vector<2x4x4x16xbf16>
    %279 = vector.shape_cast %278 : vector<2x4x4x16xbf16> to vector<32x16xbf16>
    %280 = vector.extract_strided_slice %16 {offsets = [0, 1, 1, 1, 0], sizes = [2, 1, 4, 4, 16], strides = [1, 1, 1, 1, 1]} : vector<2x4x6x6x16xbf16> to vector<2x1x4x4x16xbf16>
    %281 = vector.shape_cast %280 : vector<2x1x4x4x16xbf16> to vector<2x4x4x16xbf16>
    %282 = vector.shape_cast %281 : vector<2x4x4x16xbf16> to vector<32x16xbf16>
    %283 = vector.extract_strided_slice %16 {offsets = [0, 0, 1, 2, 0], sizes = [2, 1, 4, 4, 16], strides = [1, 1, 1, 1, 1]} : vector<2x4x6x6x16xbf16> to vector<2x1x4x4x16xbf16>
    %284 = vector.shape_cast %283 : vector<2x1x4x4x16xbf16> to vector<2x4x4x16xbf16>
    %285 = vector.shape_cast %284 : vector<2x4x4x16xbf16> to vector<32x16xbf16>
    %286 = vector.extract_strided_slice %16 {offsets = [0, 1, 1, 2, 0], sizes = [2, 1, 4, 4, 16], strides = [1, 1, 1, 1, 1]} : vector<2x4x6x6x16xbf16> to vector<2x1x4x4x16xbf16>
    %287 = vector.shape_cast %286 : vector<2x1x4x4x16xbf16> to vector<2x4x4x16xbf16>
    %288 = vector.shape_cast %287 : vector<2x4x4x16xbf16> to vector<32x16xbf16>
    %289 = vector.extract_strided_slice %16 {offsets = [0, 3, 1, 0, 0], sizes = [2, 1, 4, 4, 16], strides = [1, 1, 1, 1, 1]} : vector<2x4x6x6x16xbf16> to vector<2x1x4x4x16xbf16>
    %290 = vector.shape_cast %289 : vector<2x1x4x4x16xbf16> to vector<2x4x4x16xbf16>
    %291 = vector.shape_cast %290 : vector<2x4x4x16xbf16> to vector<32x16xbf16>
    %292 = vector.extract_strided_slice %16 {offsets = [0, 2, 1, 1, 0], sizes = [2, 1, 4, 4, 16], strides = [1, 1, 1, 1, 1]} : vector<2x4x6x6x16xbf16> to vector<2x1x4x4x16xbf16>
    %293 = vector.shape_cast %292 : vector<2x1x4x4x16xbf16> to vector<2x4x4x16xbf16>
    %294 = vector.shape_cast %293 : vector<2x4x4x16xbf16> to vector<32x16xbf16>
    %295 = vector.extract_strided_slice %16 {offsets = [0, 3, 1, 1, 0], sizes = [2, 1, 4, 4, 16], strides = [1, 1, 1, 1, 1]} : vector<2x4x6x6x16xbf16> to vector<2x1x4x4x16xbf16>
    %296 = vector.shape_cast %295 : vector<2x1x4x4x16xbf16> to vector<2x4x4x16xbf16>
    %297 = vector.shape_cast %296 : vector<2x4x4x16xbf16> to vector<32x16xbf16>
    %298 = vector.extract_strided_slice %16 {offsets = [0, 2, 1, 2, 0], sizes = [2, 1, 4, 4, 16], strides = [1, 1, 1, 1, 1]} : vector<2x4x6x6x16xbf16> to vector<2x1x4x4x16xbf16>
    %299 = vector.shape_cast %298 : vector<2x1x4x4x16xbf16> to vector<2x4x4x16xbf16>
    %300 = vector.shape_cast %299 : vector<2x4x4x16xbf16> to vector<32x16xbf16>
    %301 = vector.extract_strided_slice %16 {offsets = [0, 3, 1, 2, 0], sizes = [2, 1, 4, 4, 16], strides = [1, 1, 1, 1, 1]} : vector<2x4x6x6x16xbf16> to vector<2x1x4x4x16xbf16>
    %302 = vector.shape_cast %301 : vector<2x1x4x4x16xbf16> to vector<2x4x4x16xbf16>
    %303 = vector.shape_cast %302 : vector<2x4x4x16xbf16> to vector<32x16xbf16>
    %304 = vector.extract_strided_slice %16 {offsets = [0, 1, 2, 0, 0], sizes = [2, 1, 4, 4, 16], strides = [1, 1, 1, 1, 1]} : vector<2x4x6x6x16xbf16> to vector<2x1x4x4x16xbf16>
    %305 = vector.shape_cast %304 : vector<2x1x4x4x16xbf16> to vector<2x4x4x16xbf16>
    %306 = vector.shape_cast %305 : vector<2x4x4x16xbf16> to vector<32x16xbf16>
    %307 = vector.extract_strided_slice %16 {offsets = [0, 0, 2, 1, 0], sizes = [2, 1, 4, 4, 16], strides = [1, 1, 1, 1, 1]} : vector<2x4x6x6x16xbf16> to vector<2x1x4x4x16xbf16>
    %308 = vector.shape_cast %307 : vector<2x1x4x4x16xbf16> to vector<2x4x4x16xbf16>
    %309 = vector.shape_cast %308 : vector<2x4x4x16xbf16> to vector<32x16xbf16>
    %310 = vector.extract_strided_slice %16 {offsets = [0, 1, 2, 1, 0], sizes = [2, 1, 4, 4, 16], strides = [1, 1, 1, 1, 1]} : vector<2x4x6x6x16xbf16> to vector<2x1x4x4x16xbf16>
    %311 = vector.shape_cast %310 : vector<2x1x4x4x16xbf16> to vector<2x4x4x16xbf16>
    %312 = vector.shape_cast %311 : vector<2x4x4x16xbf16> to vector<32x16xbf16>
    %313 = vector.extract_strided_slice %16 {offsets = [0, 0, 2, 2, 0], sizes = [2, 1, 4, 4, 16], strides = [1, 1, 1, 1, 1]} : vector<2x4x6x6x16xbf16> to vector<2x1x4x4x16xbf16>
    %314 = vector.shape_cast %313 : vector<2x1x4x4x16xbf16> to vector<2x4x4x16xbf16>
    %315 = vector.shape_cast %314 : vector<2x4x4x16xbf16> to vector<32x16xbf16>
    %316 = vector.extract_strided_slice %16 {offsets = [0, 1, 2, 2, 0], sizes = [2, 1, 4, 4, 16], strides = [1, 1, 1, 1, 1]} : vector<2x4x6x6x16xbf16> to vector<2x1x4x4x16xbf16>
    %317 = vector.shape_cast %316 : vector<2x1x4x4x16xbf16> to vector<2x4x4x16xbf16>
    %318 = vector.shape_cast %317 : vector<2x4x4x16xbf16> to vector<32x16xbf16>
    %319 = vector.extract_strided_slice %16 {offsets = [0, 3, 2, 0, 0], sizes = [2, 1, 4, 4, 16], strides = [1, 1, 1, 1, 1]} : vector<2x4x6x6x16xbf16> to vector<2x1x4x4x16xbf16>
    %320 = vector.shape_cast %319 : vector<2x1x4x4x16xbf16> to vector<2x4x4x16xbf16>
    %321 = vector.shape_cast %320 : vector<2x4x4x16xbf16> to vector<32x16xbf16>
    %322 = vector.extract_strided_slice %16 {offsets = [0, 2, 2, 1, 0], sizes = [2, 1, 4, 4, 16], strides = [1, 1, 1, 1, 1]} : vector<2x4x6x6x16xbf16> to vector<2x1x4x4x16xbf16>
    %323 = vector.shape_cast %322 : vector<2x1x4x4x16xbf16> to vector<2x4x4x16xbf16>
    %324 = vector.shape_cast %323 : vector<2x4x4x16xbf16> to vector<32x16xbf16>
    %325 = vector.extract_strided_slice %16 {offsets = [0, 3, 2, 1, 0], sizes = [2, 1, 4, 4, 16], strides = [1, 1, 1, 1, 1]} : vector<2x4x6x6x16xbf16> to vector<2x1x4x4x16xbf16>
    %326 = vector.shape_cast %325 : vector<2x1x4x4x16xbf16> to vector<2x4x4x16xbf16>
    %327 = vector.shape_cast %326 : vector<2x4x4x16xbf16> to vector<32x16xbf16>
    %328 = vector.extract_strided_slice %16 {offsets = [0, 2, 2, 2, 0], sizes = [2, 1, 4, 4, 16], strides = [1, 1, 1, 1, 1]} : vector<2x4x6x6x16xbf16> to vector<2x1x4x4x16xbf16>
    %329 = vector.shape_cast %328 : vector<2x1x4x4x16xbf16> to vector<2x4x4x16xbf16>
    %330 = vector.shape_cast %329 : vector<2x4x4x16xbf16> to vector<32x16xbf16>
    %331 = vector.extract_strided_slice %16 {offsets = [0, 3, 2, 2, 0], sizes = [2, 1, 4, 4, 16], strides = [1, 1, 1, 1, 1]} : vector<2x4x6x6x16xbf16> to vector<2x1x4x4x16xbf16>
    %332 = vector.shape_cast %331 : vector<2x1x4x4x16xbf16> to vector<2x4x4x16xbf16>
    %333 = vector.shape_cast %332 : vector<2x4x4x16xbf16> to vector<32x16xbf16>
    %334 = tpu.concatenate %261, %264, %267, %270, %273, %276, %279, %282, %285, %288, %291, %294, %297, %300, %303, %306 in 1 : vector<32x16xbf16>, vector<32x16xbf16>, vector<32x16xbf16>, vector<32x16xbf16>, vector<32x16xbf16>, vector<32x16xbf16>, vector<32x16xbf16>, vector<32x16xbf16>, vector<32x16xbf16>, vector<32x16xbf16>, vector<32x16xbf16>, vector<32x16xbf16>, vector<32x16xbf16>, vector<32x16xbf16>, vector<32x16xbf16>, vector<32x16xbf16> -> vector<32x256xbf16>
    %335 = tpu.concatenate %309, %312, %315, %318, %321, %324, %327, %330, %333 in 1 : vector<32x16xbf16>, vector<32x16xbf16>, vector<32x16xbf16>, vector<32x16xbf16>, vector<32x16xbf16>, vector<32x16xbf16>, vector<32x16xbf16>, vector<32x16xbf16>, vector<32x16xbf16> -> vector<32x144xbf16>
    %336 = tpu.concatenate %334, %335 in 1 : vector<32x256xbf16>, vector<32x144xbf16> -> vector<32x400xbf16>
    %c0_15 = arith.constant 0 : index
    %c0_16 = arith.constant 0 : index
    %337 = vector.load %arg4[%c0_15, %c0_16] : memref<400x32xbf16, #tpu.memory_space<vmem>>, vector<400x32xbf16>
    %cst_17 = arith.constant dense<0.000000e+00> : vector<32x32xf32>
    %338 = tpu.matmul %336, %337, %cst_17 {dimension_numbers = #tpu.dot_dimension_numbers<[1], [0], [0], [1], [0, 0, 1, 1], [], []>} : vector<32x400xbf16>, vector<400x32xbf16>, vector<32x32xf32> -> vector<32x32xf32>
    %339 = arith.maximumf %258, %338 : vector<32x32xf32>
    %c0_18 = arith.constant 0 : index
    %c0_19 = arith.constant 0 : index
    %340 = vector.load %arg5[%c0_18, %c0_19] : memref<1x32xf32, #tpu.memory_space<vmem>>, vector<1x32xf32>
    %341 = vector.broadcast %340 : vector<1x32xf32> to vector<32x32xf32>
    %342 = arith.addf %339, %341 : vector<32x32xf32>
    %cst_20 = arith.constant 0.000000e+00 : f32
    %343 = vector.broadcast %cst_20 : f32 to vector<32x32xf32>
    %344 = arith.maximumf %342, %343 : vector<32x32xf32>
    %345 = arith.truncf %344 : vector<32x32xf32> to vector<32x32xbf16>
    %346 = vector.shape_cast %345 : vector<32x32xbf16> to vector<2x16x32xbf16>
    %347 = vector.extract_strided_slice %346 {offsets = [0, 0, 0], sizes = [2, 1, 32], strides = [1, 1, 1]} : vector<2x16x32xbf16> to vector<2x1x32xbf16>
    %348 = vector.shape_cast %347 : vector<2x1x32xbf16> to vector<2x32xbf16>
    %c0_21 = arith.constant 0 : index
    %c0_22 = arith.constant 0 : index
    %c0_23 = arith.constant 0 : index
    %349 = vector.load %arg6[%c0_21, %c0_22, %c0_23] : memref<16x32x256xbf16, #tpu.memory_space<vmem>>, vector<1x32x256xbf16>
    %350 = vector.shape_cast %349 : vector<1x32x256xbf16> to vector<32x256xbf16>
    %cst_24 = arith.constant dense<0.000000e+00> : vector<2x256xf32>
    %351 = tpu.matmul %348, %350, %cst_24 {dimension_numbers = #tpu.dot_dimension_numbers<[1], [0], [0], [1], [0, 0, 1, 1], [], []>} : vector<2x32xbf16>, vector<32x256xbf16>, vector<2x256xf32> -> vector<2x256xf32>
    %352 = vector.extract_strided_slice %346 {offsets = [0, 1, 0], sizes = [2, 1, 32], strides = [1, 1, 1]} : vector<2x16x32xbf16> to vector<2x1x32xbf16>
    %353 = vector.shape_cast %352 : vector<2x1x32xbf16> to vector<2x32xbf16>
    %c1 = arith.constant 1 : index
    %c0_25 = arith.constant 0 : index
    %c0_26 = arith.constant 0 : index
    %354 = vector.load %arg6[%c1, %c0_25, %c0_26] : memref<16x32x256xbf16, #tpu.memory_space<vmem>>, vector<1x32x256xbf16>
    %355 = vector.shape_cast %354 : vector<1x32x256xbf16> to vector<32x256xbf16>
    %cst_27 = arith.constant dense<0.000000e+00> : vector<2x256xf32>
    %356 = tpu.matmul %353, %355, %cst_27 {dimension_numbers = #tpu.dot_dimension_numbers<[1], [0], [0], [1], [0, 0, 1, 1], [], []>} : vector<2x32xbf16>, vector<32x256xbf16>, vector<2x256xf32> -> vector<2x256xf32>
    %357 = arith.addf %351, %356 : vector<2x256xf32>
    %358 = vector.extract_strided_slice %346 {offsets = [0, 2, 0], sizes = [2, 1, 32], strides = [1, 1, 1]} : vector<2x16x32xbf16> to vector<2x1x32xbf16>
    %359 = vector.shape_cast %358 : vector<2x1x32xbf16> to vector<2x32xbf16>
    %c2 = arith.constant 2 : index
    %c0_28 = arith.constant 0 : index
    %c0_29 = arith.constant 0 : index
    %360 = vector.load %arg6[%c2, %c0_28, %c0_29] : memref<16x32x256xbf16, #tpu.memory_space<vmem>>, vector<1x32x256xbf16>
    %361 = vector.shape_cast %360 : vector<1x32x256xbf16> to vector<32x256xbf16>
    %cst_30 = arith.constant dense<0.000000e+00> : vector<2x256xf32>
    %362 = tpu.matmul %359, %361, %cst_30 {dimension_numbers = #tpu.dot_dimension_numbers<[1], [0], [0], [1], [0, 0, 1, 1], [], []>} : vector<2x32xbf16>, vector<32x256xbf16>, vector<2x256xf32> -> vector<2x256xf32>
    %363 = arith.addf %357, %362 : vector<2x256xf32>
    %364 = vector.extract_strided_slice %346 {offsets = [0, 3, 0], sizes = [2, 1, 32], strides = [1, 1, 1]} : vector<2x16x32xbf16> to vector<2x1x32xbf16>
    %365 = vector.shape_cast %364 : vector<2x1x32xbf16> to vector<2x32xbf16>
    %c3 = arith.constant 3 : index
    %c0_31 = arith.constant 0 : index
    %c0_32 = arith.constant 0 : index
    %366 = vector.load %arg6[%c3, %c0_31, %c0_32] : memref<16x32x256xbf16, #tpu.memory_space<vmem>>, vector<1x32x256xbf16>
    %367 = vector.shape_cast %366 : vector<1x32x256xbf16> to vector<32x256xbf16>
    %cst_33 = arith.constant dense<0.000000e+00> : vector<2x256xf32>
    %368 = tpu.matmul %365, %367, %cst_33 {dimension_numbers = #tpu.dot_dimension_numbers<[1], [0], [0], [1], [0, 0, 1, 1], [], []>} : vector<2x32xbf16>, vector<32x256xbf16>, vector<2x256xf32> -> vector<2x256xf32>
    %369 = arith.addf %363, %368 : vector<2x256xf32>
    %370 = vector.extract_strided_slice %346 {offsets = [0, 4, 0], sizes = [2, 1, 32], strides = [1, 1, 1]} : vector<2x16x32xbf16> to vector<2x1x32xbf16>
    %371 = vector.shape_cast %370 : vector<2x1x32xbf16> to vector<2x32xbf16>
    %c4 = arith.constant 4 : index
    %c0_34 = arith.constant 0 : index
    %c0_35 = arith.constant 0 : index
    %372 = vector.load %arg6[%c4, %c0_34, %c0_35] : memref<16x32x256xbf16, #tpu.memory_space<vmem>>, vector<1x32x256xbf16>
    %373 = vector.shape_cast %372 : vector<1x32x256xbf16> to vector<32x256xbf16>
    %cst_36 = arith.constant dense<0.000000e+00> : vector<2x256xf32>
    %374 = tpu.matmul %371, %373, %cst_36 {dimension_numbers = #tpu.dot_dimension_numbers<[1], [0], [0], [1], [0, 0, 1, 1], [], []>} : vector<2x32xbf16>, vector<32x256xbf16>, vector<2x256xf32> -> vector<2x256xf32>
    %375 = arith.addf %369, %374 : vector<2x256xf32>
    %376 = vector.extract_strided_slice %346 {offsets = [0, 5, 0], sizes = [2, 1, 32], strides = [1, 1, 1]} : vector<2x16x32xbf16> to vector<2x1x32xbf16>
    %377 = vector.shape_cast %376 : vector<2x1x32xbf16> to vector<2x32xbf16>
    %c5 = arith.constant 5 : index
    %c0_37 = arith.constant 0 : index
    %c0_38 = arith.constant 0 : index
    %378 = vector.load %arg6[%c5, %c0_37, %c0_38] : memref<16x32x256xbf16, #tpu.memory_space<vmem>>, vector<1x32x256xbf16>
    %379 = vector.shape_cast %378 : vector<1x32x256xbf16> to vector<32x256xbf16>
    %cst_39 = arith.constant dense<0.000000e+00> : vector<2x256xf32>
    %380 = tpu.matmul %377, %379, %cst_39 {dimension_numbers = #tpu.dot_dimension_numbers<[1], [0], [0], [1], [0, 0, 1, 1], [], []>} : vector<2x32xbf16>, vector<32x256xbf16>, vector<2x256xf32> -> vector<2x256xf32>
    %381 = arith.addf %375, %380 : vector<2x256xf32>
    %382 = vector.extract_strided_slice %346 {offsets = [0, 6, 0], sizes = [2, 1, 32], strides = [1, 1, 1]} : vector<2x16x32xbf16> to vector<2x1x32xbf16>
    %383 = vector.shape_cast %382 : vector<2x1x32xbf16> to vector<2x32xbf16>
    %c6 = arith.constant 6 : index
    %c0_40 = arith.constant 0 : index
    %c0_41 = arith.constant 0 : index
    %384 = vector.load %arg6[%c6, %c0_40, %c0_41] : memref<16x32x256xbf16, #tpu.memory_space<vmem>>, vector<1x32x256xbf16>
    %385 = vector.shape_cast %384 : vector<1x32x256xbf16> to vector<32x256xbf16>
    %cst_42 = arith.constant dense<0.000000e+00> : vector<2x256xf32>
    %386 = tpu.matmul %383, %385, %cst_42 {dimension_numbers = #tpu.dot_dimension_numbers<[1], [0], [0], [1], [0, 0, 1, 1], [], []>} : vector<2x32xbf16>, vector<32x256xbf16>, vector<2x256xf32> -> vector<2x256xf32>
    %387 = arith.addf %381, %386 : vector<2x256xf32>
    %388 = vector.extract_strided_slice %346 {offsets = [0, 7, 0], sizes = [2, 1, 32], strides = [1, 1, 1]} : vector<2x16x32xbf16> to vector<2x1x32xbf16>
    %389 = vector.shape_cast %388 : vector<2x1x32xbf16> to vector<2x32xbf16>
    %c7 = arith.constant 7 : index
    %c0_43 = arith.constant 0 : index
    %c0_44 = arith.constant 0 : index
    %390 = vector.load %arg6[%c7, %c0_43, %c0_44] : memref<16x32x256xbf16, #tpu.memory_space<vmem>>, vector<1x32x256xbf16>
    %391 = vector.shape_cast %390 : vector<1x32x256xbf16> to vector<32x256xbf16>
    %cst_45 = arith.constant dense<0.000000e+00> : vector<2x256xf32>
    %392 = tpu.matmul %389, %391, %cst_45 {dimension_numbers = #tpu.dot_dimension_numbers<[1], [0], [0], [1], [0, 0, 1, 1], [], []>} : vector<2x32xbf16>, vector<32x256xbf16>, vector<2x256xf32> -> vector<2x256xf32>
    %393 = arith.addf %387, %392 : vector<2x256xf32>
    %394 = vector.extract_strided_slice %346 {offsets = [0, 8, 0], sizes = [2, 1, 32], strides = [1, 1, 1]} : vector<2x16x32xbf16> to vector<2x1x32xbf16>
    %395 = vector.shape_cast %394 : vector<2x1x32xbf16> to vector<2x32xbf16>
    %c8 = arith.constant 8 : index
    %c0_46 = arith.constant 0 : index
    %c0_47 = arith.constant 0 : index
    %396 = vector.load %arg6[%c8, %c0_46, %c0_47] : memref<16x32x256xbf16, #tpu.memory_space<vmem>>, vector<1x32x256xbf16>
    %397 = vector.shape_cast %396 : vector<1x32x256xbf16> to vector<32x256xbf16>
    %cst_48 = arith.constant dense<0.000000e+00> : vector<2x256xf32>
    %398 = tpu.matmul %395, %397, %cst_48 {dimension_numbers = #tpu.dot_dimension_numbers<[1], [0], [0], [1], [0, 0, 1, 1], [], []>} : vector<2x32xbf16>, vector<32x256xbf16>, vector<2x256xf32> -> vector<2x256xf32>
    %399 = arith.addf %393, %398 : vector<2x256xf32>
    %400 = vector.extract_strided_slice %346 {offsets = [0, 9, 0], sizes = [2, 1, 32], strides = [1, 1, 1]} : vector<2x16x32xbf16> to vector<2x1x32xbf16>
    %401 = vector.shape_cast %400 : vector<2x1x32xbf16> to vector<2x32xbf16>
    %c9 = arith.constant 9 : index
    %c0_49 = arith.constant 0 : index
    %c0_50 = arith.constant 0 : index
    %402 = vector.load %arg6[%c9, %c0_49, %c0_50] : memref<16x32x256xbf16, #tpu.memory_space<vmem>>, vector<1x32x256xbf16>
    %403 = vector.shape_cast %402 : vector<1x32x256xbf16> to vector<32x256xbf16>
    %cst_51 = arith.constant dense<0.000000e+00> : vector<2x256xf32>
    %404 = tpu.matmul %401, %403, %cst_51 {dimension_numbers = #tpu.dot_dimension_numbers<[1], [0], [0], [1], [0, 0, 1, 1], [], []>} : vector<2x32xbf16>, vector<32x256xbf16>, vector<2x256xf32> -> vector<2x256xf32>
    %405 = arith.addf %399, %404 : vector<2x256xf32>
    %406 = vector.extract_strided_slice %346 {offsets = [0, 10, 0], sizes = [2, 1, 32], strides = [1, 1, 1]} : vector<2x16x32xbf16> to vector<2x1x32xbf16>
    %407 = vector.shape_cast %406 : vector<2x1x32xbf16> to vector<2x32xbf16>
    %c10 = arith.constant 10 : index
    %c0_52 = arith.constant 0 : index
    %c0_53 = arith.constant 0 : index
    %408 = vector.load %arg6[%c10, %c0_52, %c0_53] : memref<16x32x256xbf16, #tpu.memory_space<vmem>>, vector<1x32x256xbf16>
    %409 = vector.shape_cast %408 : vector<1x32x256xbf16> to vector<32x256xbf16>
    %cst_54 = arith.constant dense<0.000000e+00> : vector<2x256xf32>
    %410 = tpu.matmul %407, %409, %cst_54 {dimension_numbers = #tpu.dot_dimension_numbers<[1], [0], [0], [1], [0, 0, 1, 1], [], []>} : vector<2x32xbf16>, vector<32x256xbf16>, vector<2x256xf32> -> vector<2x256xf32>
    %411 = arith.addf %405, %410 : vector<2x256xf32>
    %412 = vector.extract_strided_slice %346 {offsets = [0, 11, 0], sizes = [2, 1, 32], strides = [1, 1, 1]} : vector<2x16x32xbf16> to vector<2x1x32xbf16>
    %413 = vector.shape_cast %412 : vector<2x1x32xbf16> to vector<2x32xbf16>
    %c11 = arith.constant 11 : index
    %c0_55 = arith.constant 0 : index
    %c0_56 = arith.constant 0 : index
    %414 = vector.load %arg6[%c11, %c0_55, %c0_56] : memref<16x32x256xbf16, #tpu.memory_space<vmem>>, vector<1x32x256xbf16>
    %415 = vector.shape_cast %414 : vector<1x32x256xbf16> to vector<32x256xbf16>
    %cst_57 = arith.constant dense<0.000000e+00> : vector<2x256xf32>
    %416 = tpu.matmul %413, %415, %cst_57 {dimension_numbers = #tpu.dot_dimension_numbers<[1], [0], [0], [1], [0, 0, 1, 1], [], []>} : vector<2x32xbf16>, vector<32x256xbf16>, vector<2x256xf32> -> vector<2x256xf32>
    %417 = arith.addf %411, %416 : vector<2x256xf32>
    %418 = vector.extract_strided_slice %346 {offsets = [0, 12, 0], sizes = [2, 1, 32], strides = [1, 1, 1]} : vector<2x16x32xbf16> to vector<2x1x32xbf16>
    %419 = vector.shape_cast %418 : vector<2x1x32xbf16> to vector<2x32xbf16>
    %c12 = arith.constant 12 : index
    %c0_58 = arith.constant 0 : index
    %c0_59 = arith.constant 0 : index
    %420 = vector.load %arg6[%c12, %c0_58, %c0_59] : memref<16x32x256xbf16, #tpu.memory_space<vmem>>, vector<1x32x256xbf16>
    %421 = vector.shape_cast %420 : vector<1x32x256xbf16> to vector<32x256xbf16>
    %cst_60 = arith.constant dense<0.000000e+00> : vector<2x256xf32>
    %422 = tpu.matmul %419, %421, %cst_60 {dimension_numbers = #tpu.dot_dimension_numbers<[1], [0], [0], [1], [0, 0, 1, 1], [], []>} : vector<2x32xbf16>, vector<32x256xbf16>, vector<2x256xf32> -> vector<2x256xf32>
    %423 = arith.addf %417, %422 : vector<2x256xf32>
    %424 = vector.extract_strided_slice %346 {offsets = [0, 13, 0], sizes = [2, 1, 32], strides = [1, 1, 1]} : vector<2x16x32xbf16> to vector<2x1x32xbf16>
    %425 = vector.shape_cast %424 : vector<2x1x32xbf16> to vector<2x32xbf16>
    %c13 = arith.constant 13 : index
    %c0_61 = arith.constant 0 : index
    %c0_62 = arith.constant 0 : index
    %426 = vector.load %arg6[%c13, %c0_61, %c0_62] : memref<16x32x256xbf16, #tpu.memory_space<vmem>>, vector<1x32x256xbf16>
    %427 = vector.shape_cast %426 : vector<1x32x256xbf16> to vector<32x256xbf16>
    %cst_63 = arith.constant dense<0.000000e+00> : vector<2x256xf32>
    %428 = tpu.matmul %425, %427, %cst_63 {dimension_numbers = #tpu.dot_dimension_numbers<[1], [0], [0], [1], [0, 0, 1, 1], [], []>} : vector<2x32xbf16>, vector<32x256xbf16>, vector<2x256xf32> -> vector<2x256xf32>
    %429 = arith.addf %423, %428 : vector<2x256xf32>
    %430 = vector.extract_strided_slice %346 {offsets = [0, 14, 0], sizes = [2, 1, 32], strides = [1, 1, 1]} : vector<2x16x32xbf16> to vector<2x1x32xbf16>
    %431 = vector.shape_cast %430 : vector<2x1x32xbf16> to vector<2x32xbf16>
    %c14 = arith.constant 14 : index
    %c0_64 = arith.constant 0 : index
    %c0_65 = arith.constant 0 : index
    %432 = vector.load %arg6[%c14, %c0_64, %c0_65] : memref<16x32x256xbf16, #tpu.memory_space<vmem>>, vector<1x32x256xbf16>
    %433 = vector.shape_cast %432 : vector<1x32x256xbf16> to vector<32x256xbf16>
    %cst_66 = arith.constant dense<0.000000e+00> : vector<2x256xf32>
    %434 = tpu.matmul %431, %433, %cst_66 {dimension_numbers = #tpu.dot_dimension_numbers<[1], [0], [0], [1], [0, 0, 1, 1], [], []>} : vector<2x32xbf16>, vector<32x256xbf16>, vector<2x256xf32> -> vector<2x256xf32>
    %435 = arith.addf %429, %434 : vector<2x256xf32>
    %436 = vector.extract_strided_slice %346 {offsets = [0, 15, 0], sizes = [2, 1, 32], strides = [1, 1, 1]} : vector<2x16x32xbf16> to vector<2x1x32xbf16>
    %437 = vector.shape_cast %436 : vector<2x1x32xbf16> to vector<2x32xbf16>
    %c15 = arith.constant 15 : index
    %c0_67 = arith.constant 0 : index
    %c0_68 = arith.constant 0 : index
    %438 = vector.load %arg6[%c15, %c0_67, %c0_68] : memref<16x32x256xbf16, #tpu.memory_space<vmem>>, vector<1x32x256xbf16>
    %439 = vector.shape_cast %438 : vector<1x32x256xbf16> to vector<32x256xbf16>
    %cst_69 = arith.constant dense<0.000000e+00> : vector<2x256xf32>
    %440 = tpu.matmul %437, %439, %cst_69 {dimension_numbers = #tpu.dot_dimension_numbers<[1], [0], [0], [1], [0, 0, 1, 1], [], []>} : vector<2x32xbf16>, vector<32x256xbf16>, vector<2x256xf32> -> vector<2x256xf32>
    %441 = arith.addf %435, %440 : vector<2x256xf32>
    %c0_70 = arith.constant 0 : index
    %c0_71 = arith.constant 0 : index
    %442 = vector.load %arg7[%c0_70, %c0_71] : memref<1x256xf32, #tpu.memory_space<vmem>>, vector<1x256xf32>
    %443 = vector.broadcast %442 : vector<1x256xf32> to vector<2x256xf32>
    %444 = arith.addf %441, %443 : vector<2x256xf32>
    %cst_72 = arith.constant 0.000000e+00 : f32
    %445 = vector.broadcast %cst_72 : f32 to vector<2x256xf32>
    %446 = arith.maximumf %444, %445 : vector<2x256xf32>
    %447 = arith.truncf %446 : vector<2x256xf32> to vector<2x256xbf16>
    %c0_73 = arith.constant 0 : index
    %c0_74 = arith.constant 0 : index
    %448 = vector.load %arg8[%c0_73, %c0_74] : memref<256x10xbf16, #tpu.memory_space<vmem>>, vector<256x10xbf16>
    %cst_75 = arith.constant dense<0.000000e+00> : vector<2x10xf32>
    %449 = tpu.matmul %447, %448, %cst_75 {dimension_numbers = #tpu.dot_dimension_numbers<[1], [0], [0], [1], [0, 0, 1, 1], [], []>} : vector<2x256xbf16>, vector<256x10xbf16>, vector<2x10xf32> -> vector<2x10xf32>
    %c0_76 = arith.constant 0 : index
    %c0_77 = arith.constant 0 : index
    %450 = vector.load %arg9[%c0_76, %c0_77] : memref<1x10xf32, #tpu.memory_space<vmem>>, vector<1x10xf32>
    %451 = vector.broadcast %450 : vector<1x10xf32> to vector<2x10xf32>
    %452 = arith.addf %449, %451 : vector<2x10xf32>
    %c0_78 = arith.constant 0 : index
    %c0_79 = arith.constant 0 : index
    %453 = vector.load %arg10[%c0_78, %c0_79] : memref<2x10xf32, #tpu.memory_space<vmem>>, vector<2x10xf32>
    tpu.vector_store %arg10[%c0_78, %c0_79], %452 {strides = array<i32>} : memref<2x10xf32, #tpu.memory_space<vmem>>, vector<2x10xf32>,
    return
  }
  func.func @transform_0(%arg0: i32) -> (i32, i32) {
    %c0_i32 = arith.constant 0 : i32
    %c0_i32_0 = arith.constant 0 : i32
    return %arg0, %c0_i32 : i32, i32
  }
  func.func @transform_1(%arg0: i32) -> (i32, i32) {
    %c0_i32 = arith.constant 0 : i32
    %c0_i32_0 = arith.constant 0 : i32
    %c0_i32_1 = arith.constant 0 : i32
    return %c0_i32, %c0_i32_0 : i32, i32
  }
  func.func @transform_2(%arg0: i32) -> (i32, i32) {
    %c0_i32 = arith.constant 0 : i32
    %c0_i32_0 = arith.constant 0 : i32
    %c0_i32_1 = arith.constant 0 : i32
    return %c0_i32, %c0_i32_0 : i32, i32
  }
  func.func @transform_3(%arg0: i32) -> (i32, i32) {
    %c0_i32 = arith.constant 0 : i32
    %c0_i32_0 = arith.constant 0 : i32
    %c0_i32_1 = arith.constant 0 : i32
    return %c0_i32, %c0_i32_0 : i32, i32
  }
  func.func @transform_4(%arg0: i32) -> (i32, i32) {
    %c0_i32 = arith.constant 0 : i32
    %c0_i32_0 = arith.constant 0 : i32
    %c0_i32_1 = arith.constant 0 : i32
    return %c0_i32, %c0_i32_0 : i32, i32
  }
  func.func @transform_5(%arg0: i32) -> (i32, i32, i32) {
    %c0_i32 = arith.constant 0 : i32
    %c0_i32_0 = arith.constant 0 : i32
    %c0_i32_1 = arith.constant 0 : i32
    %c0_i32_2 = arith.constant 0 : i32
    return %c0_i32, %c0_i32_0, %c0_i32_1 : i32, i32, i32
  }
  func.func @transform_6(%arg0: i32) -> (i32, i32) {
    %c0_i32 = arith.constant 0 : i32
    %c0_i32_0 = arith.constant 0 : i32
    %c0_i32_1 = arith.constant 0 : i32
    return %c0_i32, %c0_i32_0 : i32, i32
  }
  func.func @transform_7(%arg0: i32) -> (i32, i32) {
    %c0_i32 = arith.constant 0 : i32
    %c0_i32_0 = arith.constant 0 : i32
    %c0_i32_1 = arith.constant 0 : i32
    return %c0_i32, %c0_i32_0 : i32, i32
  }
  func.func @transform_8(%arg0: i32) -> (i32, i32) {
    %c0_i32 = arith.constant 0 : i32
    %c0_i32_0 = arith.constant 0 : i32
    %c0_i32_1 = arith.constant 0 : i32
    return %c0_i32, %c0_i32_0 : i32, i32
  }
  func.func @transform_9(%arg0: i32) -> (i32, i32) {
    %c0_i32 = arith.constant 0 : i32
    %c0_i32_0 = arith.constant 0 : i32
    return %arg0, %c0_i32 : i32, i32
  }
}

</mosaic_0001>

<bundles_post_ra>
// kernel: model_cnn_forward.1
= control target key start
LH: loop header
LB: loop body
LE: loop exit
PB: predicated region body
PF: predicated region fallthrough
CT: control target
= control target key end

     0   :  { %vm267_vm0 = vcmask 1041408   ;;  %s13244_s0 = inlined_call_operand.vmem [shape: bf16[288,100], index: 0, kind: input, shape index: {}]   ;;  %s13245_s1 = inlined_call_operand.vmem [shape: bf16[100,64], index: 1, kind: input, shape index: {}]   ;;  %s13246_s2 = inlined_call_operand.vmem [shape: f32[1,16], index: 2, kind: input, shape index: {}]   ;;  %s13247_s3 = inlined_call_operand.vmem [shape: bf16[400,32], index: 3, kind: input, shape index: {}]   ;;  %s13248_s4 = inlined_call_operand.vmem [shape: f32[1,32], index: 4, kind: input, shape index: {}]   ;;  %s13249_s5 = inlined_call_operand.vmem [shape: bf16[16,32,256], index: 5, kind: input, shape index: {}]   ;;  %s13250_s6 = inlined_call_operand.vmem [shape: f32[1,256], index: 6, kind: input, shape index: {}]   ;;  %s13251_s7 = inlined_call_operand.vmem [shape: bf16[256,10], index: 7, kind: input, shape index: {}]   ;;  %s13252_s8 = inlined_call_operand.vmem [shape: f32[1,10], index: 8, kind: input, shape index: {}]   ;;  %s13253_s9 = inlined_call_operand.hbm [shape: f32[2,10], index: 9, kind: output, shape index: {}]  }
   0x1   :  { %v82_v0 = vld [vmem:[%s13245_s1 + $0x30] sm:$0x3] }
   0x2   :  { %v198_v1 = vunpack.c.l.b16 %v82_v0 }
   0x4   :  { %v205_v2 = vpack.c.b16 %v198_v1, %v198_v1 }
   0x5   :  { %14 = vsyncpa [#allocation3], 0  ;;  %v8072_v4 = vld [vmem:[%s13245_s1 + $0x28] sm:$0xff]  ;;  %v8071_v5 = vld [vmem:[%s13245_s1 + $0x20] sm:$0xff]  ;;  %vm212_vm1 = vcmask 818176   ;;  %s8242_s19 = smov 112  }
   0x6   :  { %v269_v3 = vsel %vm267_vm0, %v205_v2, 0  ;;  %v8070_v6 = vld [vmem:[%s13245_s1 + $0x18] sm:$0xff]  ;;  %v8069_v7 = vld [vmem:[%s13245_s1 + $0x10] sm:$0xff]  ;;  %v8068_v8 = vld [vmem:[%s13245_s1 + $0x8] sm:$0xff]  ;;  %s8243_s16 = smov 96   ;;  %vm914_vm2 = vcmask 1040384  }
   0x7   :  { %272 = vmatpush.bf16.msra.mxu0 %v269_v3  ;;  %v8067_v9 = vld [vmem:[%s13245_s1] sm:$0xff]  ;;  %v8050_v11 = vld [vmem:[%s13244_s0 + $0x8] sm:$0xff]  ;;  %v8051_v12 = vld [vmem:[%s13244_s0 + $0x10] sm:$0xff]  ;;  %vm918_vm3 = vcmask 1041409   ;;  %vm922_vm4 = vcmask 1042434   ;;  %vm926_vm5 = vcmask 1043459  }
   0x8   :  { %v8049_v10 = vld [vmem:[%s13244_s0] sm:$0xff]  ;;  %v8052_v13 = vld [vmem:[%s13244_s0 + $0x18] sm:$0xff]  ;;  %v8054_v15 = vld [vmem:[%s13244_s0 + $0x28] sm:$0xff]  ;;  %vm1350_vm6 = vsmask.f32 256  ;;  %s8244_s21 = smov 16  }
   0x9   :  { %v8053_v14 = vld [vmem:[%s13244_s0 + $0x20] sm:$0xff]  ;;  %v8055_v16 = vld [vmem:[%s13244_s0 + $0x30] sm:$0xff]  ;;  %v8056_v17 = vld [vmem:[%s13244_s0 + $0x38] sm:$0xff]  ;;  %vm1351_vm7 = vsmask.f32 1284  ;;  %s8245_s22 = smov 48  }
   0xa   :  { %v8057_v18 = vld [vmem:[%s13244_s0 + $0x40] sm:$0xff]  ;;  %v8058_v21 = vld [vmem:[%s13244_s0 + $0x48] sm:$0xff]  ;;  %v8059_v24 = vld [vmem:[%s13244_s0 + $0x50] sm:$0xff]  ;;  %vm1353_vm9 = vsmask.f32 2312  ;;  %s8246_s23 = smov 64  }
   0xb   :  { %273 = vmatpush.bf16.msra.mxu0 %v8072_v4  ;;  %v8060_v27 = vld [vmem:[%s13244_s0 + $0x58] sm:$0xff]  ;;  %v8061_v30 = vld [vmem:[%s13244_s0 + $0x60] sm:$0xff]  ;;  %v8062_v36 = vld [vmem:[%s13244_s0 + $0x68] sm:$0xff]  ;;  %vm1355_vm11 = vsmask.f32 3340  ;;  %s8247_s24 = smov 32  }
   0xc   :  { %v8063_v39 = vld [vmem:[%s13244_s0 + $0x70] sm:$0xff]  ;;  %v8064_v42 = vld [vmem:[%s13244_s0 + $0x78] sm:$0xff]  ;;  %v8065_v45 = vld [vmem:[%s13244_s0 + $0x80] sm:$0xff]  ;;  %vm1357_vm13 = vsmask.f32 4368  ;;  %s8248_s25 = smov 80  }
   0xd   :  { %v8066_v51 = vld [vmem:[%s13244_s0 + $0x88] sm:$0xff]  ;;  %vm1352_vm8 = vmor %vm1350_vm6, %vm1351_vm7  ;;  %vm1359_vm15 = vsmask.f32 5396  ;;  %vm1363_vm7 = vsmask.f32 7452  ;;  %s7306_s27 = sshll.u32 %s13253_s9, 4  ;;  %s7307_s27 = int_to_ptr.hbm [resolvable:$true] %s7306_s27 }
   0xe   :  { %vm1354_vm10 = vmor %vm1352_vm8, %vm1353_vm9  ;;  %vm2650_vm9 = vcmask 523264  }
   0xf   :  { %274 = vmatpush.bf16.msra.mxu0 %v8071_v5  ;;  %vm1356_vm12 = vmor %vm1354_vm10, %vm1355_vm11  ;;  %vm2655_vm10 = vcmask 654336   ;;  %vm2660_vm11 = vcmask 785408  }
  0x10   :  { %vm1358_vm14 = vmor %vm1356_vm12, %vm1357_vm13  ;;  %vm2665_vm12 = vcmask 916480  }
  0x11   :  { %vm1360_vm0 = vmor %vm1358_vm14, %vm1359_vm15 }
  0x13   :  { %275 = vmatpush.bf16.msra.mxu0 %v8070_v6 }
  0x17   :  { %276 = vmatpush.bf16.msra.mxu0 %v8069_v7 }
  0x1b   :  { %277 = vmatpush.bf16.msra.mxu0 %v8068_v8 }
  0x1f   :  { %278 = vmatpush.bf16.msra.mxu0 %v8067_v9 }
  0x22   :  { %7411 = vmatmul.msk.bf16.vlgmr.msra.gmra.mxu0 %vm212_vm1, %v8049_v10 }
  0x32   :  { %7412 = vmatmul.msk.bf16.gmra.mxu0 %vm212_vm1, %v8050_v11 }
  0x42   :  { %7413 = vmatmul.msk.bf16.gmra.mxu0 %vm212_vm1, %v8051_v12 }
  0x52   :  { %7414 = vmatmul.msk.bf16.gmra.mxu0 %vm212_vm1, %v8052_v13 }
  0x62   :  { %7415 = vmatmul.msk.bf16.gmra.mxu0 %vm212_vm1, %v8053_v14 }
  0x72   :  { %7416 = vmatmul.msk.bf16.gmra.mxu0 %vm212_vm1, %v8054_v15 }
  0x82   :  { %7417 = vmatmul.msk.bf16.gmra.mxu0 %vm212_vm1, %v8055_v16  ;;  %v8505_v16 = vld [vmem:[%s13246_s2] ss:$0 sm:$0xff] }
  0x92   :  { %7418 = vmatmul.msk.bf16.gmra.mxu0 %vm212_vm1, %v8056_v17 }
  0x9f   :  { %v280_v19 = vpop.f32.mrf.mxu0 }
  0xa0   :  { %406 = vrot.lane.b32.xlu0 %v280_v19, %s8242_s19 }
  0xa2   :  { %7419 = vmatmul.msk.bf16.gmra.mxu0 %vm212_vm1, %v8057_v18 }
  0xa7   :  { %v282_v20 = vpop.f32.mrf.mxu0 }
  0xa8   :  { %408 = vrot.lane.b32.xlu0 %v282_v20, %s8242_s19 }
  0xaf   :  { %v8362_v22 = vpop.f32.mrf.mxu0 }
  0xb0   :  { %410 = vrot.lane.b32.xlu1 %v8362_v22, %s8242_s19 }
  0xb2   :  { %7420 = vmatmul.msk.bf16.gmra.mxu0 %vm212_vm1, %v8058_v21 }
  0xb7   :  { %v8367_v23 = vpop.f32.mrf.mxu0 }
  0xb8   :  { %13862 = vst [vmem:[#allocation5_spill] sm:$0xff] %v8367_v23 }
  0xbf   :  { %v290_v25 = vpop.f32.mrf.mxu0 }
  0xc0   :  { %414 = vrot.lane.b32.xlu0 %v290_v25, %s8242_s19 }
  0xc2   :  { %7421 = vmatmul.msk.bf16.gmra.mxu0 %vm212_vm1, %v8059_v24 }
  0xc7   :  { %v8374_v26 = vpop.f32.mrf.mxu0 }
  0xcf   :  { %v8379_v28 = vpop.f32.mrf.mxu0 }
  0xd2   :  { %7422 = vmatmul.msk.bf16.gmra.mxu0 %vm212_vm1, %v8060_v27 }
  0xd7   :  { %v8382_v29 = vpop.f32.mrf.mxu0 }
  0xd8   :  { %420 = vrot.lane.b32.xlu0 %v8382_v29, %s8242_s19 }
  0xdf   :  { %v8389_v31 = vpop.f32.mrf.mxu0 }
  0xe0   :  { %13863 = vst [vmem:[#allocation6_spill] sm:$0xff] %v8389_v31 }
  0xe2   :  { %7423 = vmatmul.msk.bf16.gmra.mxu0 %vm212_vm1, %v8061_v30 }
  0xe7   :  { %v8392_v32 = vpop.f32.mrf.mxu0 }
  0xef   :  { %v8394_v33 = vpop.f32.mrf.mxu0 }
  0xf2   :  { %7424 = vmatmul.msk.bf16.gmra.mxu0 %vm212_vm1, %v8062_v36 }
  0xf7   :  { %v8396_v34 = vpop.f32.mrf.mxu0 }
  0xff   :  { %v8398_v35 = vpop.f32.mrf.mxu0 }
 0x100   :  { %13864 = vst [vmem:[#allocation7_spill] sm:$0xff] %v8398_v35 }
 0x102   :  { %7425 = vmatmul.msk.bf16.gmra.mxu0 %vm212_vm1, %v8063_v39 }
 0x107   :  { %v8403_v37 = vpop.f32.mrf.mxu0 }
 0x10f   :  { %v8406_v38 = vpop.f32.mrf.mxu0 }
 0x112   :  { %7426 = vmatmul.msk.bf16.gmra.mxu0 %vm212_vm1, %v8064_v42  ;;  %v407_v50 = vpop.permute.xlu0 %406 }
 0x113   :  { %v514_v54 = vmax.f32 %v280_v19, %v407_v50 }
 0x117   :  { %v8411_v40 = vpop.f32.mrf.mxu0 }
 0x11a   :  { %v409_v53 = vpop.permute.xlu0 %408 }
 0x11b   :  { %v8449_v57 = vmax.f32 %v282_v20, %v409_v53 }
 0x11f   :  { %v8414_v41 = vpop.f32.mrf.mxu0 }
 0x122   :  { %7427 = vmatmul.msk.bf16.gmra.mxu0 %vm212_vm1, %v8065_v45  ;;  %v411_v60 = vpop.permute.xlu1 %410 }
 0x123   :  { %v8459_v61 = vmax.f32 %v8362_v22, %v411_v60 }
 0x127   :  { %v8419_v43 = vpop.f32.mrf.mxu0 }
 0x128   :  { %13865 = vst [vmem:[#allocation8_spill] sm:$0xff] %v8419_v43 }
 0x12f   :  { %v325_v44 = vpop.f32.mrf.mxu0 }
 0x130   :  { %442 = vrot.lane.b32.xlu1 %v325_v44, %s8242_s19 }
 0x132   :  { %7428 = vmatmul.msk.bf16.gmra.mxu0 %vm212_vm1, %v8066_v51  ;;  %v415_v56 = vpop.permute.xlu0 %414  ;;  %vm1361_vm1 = vsmask.f32 6424 }
 0x133   :  { %v518_v58 = vmax.f32 %v290_v25, %v415_v56  ;;  %vm1362_vm6 = vmor %vm1360_vm0, %vm1361_vm1 }
 0x134   :  { %vm8861_vm8 = vmor %vm1362_vm6, %vm1363_vm7 }
 0x137   :  { %v327_v46 = vpop.f32.mrf.mxu0 }
 0x138   :  { %416 = vrot.lane.b32.xlu1 %v8374_v26, %s8242_s19  ;;  %444 = vrot.lane.b32.xlu2 %v327_v46, %s8242_s19 }
 0x13f   :  { %v330_v47 = vpop.f32.mrf.mxu0 }
 0x140   :  { %446 = vrot.lane.b32.xlu2 %v330_v47, %s8242_s19 }
 0x147   :  { %v8431_v48 = vpop.f32.mrf.mxu0 }
 0x148   :  { %418 = vrot.lane.b32.xlu2 %v8379_v28, %s8242_s19 }
 0x14a   :  { %v421_v8 = vpop.permute.xlu0 %420 }
 0x14b   :  { %v8487_v11 = vmax.f32 %v8382_v29, %v421_v8 }
 0x14f   :  { %v8435_v49 = vpop.f32.mrf.mxu0 }
 0x150   :  { %450 = vrot.lane.b32.xlu1 %v8435_v49, %s8242_s19 }
 0x157   :  { %v337_v52 = vpop.f32.mrf.mxu0 }
 0x158   :  { %452 = vrot.lane.b32.xlu2 %v337_v52, %s8242_s19 }
 0x15f   :  { %v8444_v55 = vpop.f32.mrf.mxu0 }
 0x160   :  { %586 = vrot.lane.b32.xlu2 %v514_v54, %s8243_s16  ;;  %454 = vrot.lane.b32.xlu0 %v8444_v55, %s8242_s19 }
 0x167   :  { %v8451_v59 = vpop.f32.mrf.mxu0 }
 0x168   :  { %594 = vrot.lane.b32.xlu2 %v518_v58, %s8243_s16  ;;  %588 = vrot.lane.b32.xlu0 %v8449_v57, %s8243_s16 }
 0x169   :  { %456 = vrot.lane.b32.xlu1 %v8451_v59, %s8242_s19 }
 0x16f   :  { %v8467_v0 = vpop.f32.mrf.mxu0 }
 0x170   :  { %13866 = vst [vmem:[#allocation9_spill] sm:$0xff] %v8467_v0 }
 0x171   :  { %590 = vrot.lane.b32.xlu1 %v8459_v61, %s8243_s16 }
 0x177   :  { %v8473_v3 = vpop.f32.mrf.mxu0 }
 0x17f   :  { %v8484_v9 = vpop.f32.mrf.mxu0 }
 0x187   :  { %v8498_v15 = vpop.f32.mrf.mxu0 }
 0x18f   :  { %v8510_v20 = vpop.f32.mrf.mxu0 }
 0x190   :  { %13867 = vst [vmem:[#allocation10_spill] sm:$0xff] %v8510_v20 }
 0x192   :  { %v445_v62 = vpop.permute.xlu2 %444 }
 0x193   :  { %v8463_v63 = vmax.f32 %v327_v46, %v445_v62 }
 0x195   :  { %624 = vrot.lane.b32.xlu0 %v8463_v63, %s8243_s16 }
 0x197   :  { %v8533_v46 = vpop.f32.mrf.mxu0 }
 0x19a   :  { %v447_v1 = vpop.permute.xlu2 %446 }
 0x19b   :  { %v8469_v2 = vmax.f32 %v330_v47, %v447_v1 }
 0x19d   :  { %626 = vrot.lane.b32.xlu1 %v8469_v2, %s8243_s16 }
 0x19f   :  { %v8554_v53 = vpop.f32.mrf.mxu0 }
 0x1a2   :  { %v443_v4 = vpop.permute.xlu1 %442  ;;  %v419_v5 = vpop.permute.xlu2 %418 }
 0x1a3   :  { %v8475_v6 = vmax.f32 %v325_v44, %v443_v4  ;;  %v8478_v7 = vmax.f32 %v8379_v28, %v419_v5 }
 0x1a5   :  { %622 = vrot.lane.b32.xlu2 %v8475_v6, %s8243_s16  ;;  %598 = vrot.lane.b32.xlu1 %v8478_v7, %s8243_s16 }
 0x1a7   :  { %v8564_v1 = vpop.f32.mrf.mxu0 }
 0x1aa   :  { %v417_v10 = vpop.permute.xlu1 %416 }
 0x1ab   :  { %v8490_v12 = vmax.f32 %v8374_v26, %v417_v10 }
 0x1ad   :  { %600 = vrot.lane.b32.xlu2 %v8487_v11, %s8243_s16  ;;  %596 = vrot.lane.b32.xlu0 %v8490_v12, %s8243_s16 }
 0x1b2   :  { %v453_v13 = vpop.permute.xlu2 %452 }
 0x1b3   :  { %v8496_v14 = vmax.f32 %v337_v52, %v453_v13 }
 0x1b5   :  { %632 = vrot.lane.b32.xlu1 %v8496_v14, %s8243_s16 }
 0x1ba   :  { %v587_v17 = vpop.permute.xlu2 %586 }
 0x1bb   :  { %v694_v18 = vmax.f32 %v514_v54, %v587_v17 }
 0x1bd   :  { %v734_v19 = vadd.f32 %v8505_v16, %v694_v18  ;;  %424 = vrot.lane.b32.xlu1 %v8392_v32, %s8242_s19 }
 0x1bf   :  { %v770_v21 = vmax.f32 %v734_v19, 0.0 }
 0x1c1   :  { %v806_v22 = vpack.c.bf16 %v770_v21, %v770_v21 }
 0x1c2   :  { %v451_v24 = vpop.permute.xlu1 %450  ;;  %v595_v25 = vpop.permute.xlu2 %594 }
 0x1c3   :  { %v878_v26 = vrot.slane %v806_v22, 3  ;;  %v8513_v27 = vmax.f32 %v8435_v49, %v451_v24  ;;  %v698_v28 = vmax.f32 %v518_v58, %v595_v25 }
 0x1c5   :  { %v8516_v29 = vsel %vm914_vm2, %v806_v22, %v878_v26  ;;  %v919_v30 = vsel %vm918_vm3, %v806_v22, %v878_v26  ;;  %v8520_v36 = vsel %vm922_vm4, %v806_v22, %v878_v26  ;;  %v927_v39 = vsel %vm926_vm5, %v806_v22, %v878_v26  ;;  %630 = vrot.lane.b32.xlu0 %v8513_v27, %s8243_s16 }
 0x1c6   :  { %v8525_v42 = vrot.slane %v919_v30, 1  ;;  %v8527_v44 = vrot.slane %v927_v39, 3  ;;  %2079 = vst [vmem:[#allocation1] ss:$9 sm:$0xff] %v8516_v29  ;;  %460 = vrot.lane.b32.xlu1 %v8473_v3, %s8242_s19  ;;  %v738_v45 = vadd.f32 %v8505_v16, %v698_v28 }
 0x1c8   :  { %13868 = vst [vmem:[#allocation11_spill] sm:$0xff] %v8525_v42  ;;  %v774_v47 = vmax.f32 %v738_v45, 0.0 }
 0x1c9   :  { %13869 = vst [vmem:[#allocation12_spill] sm:$0xff] %v8527_v44 }
 0x1ca   :  { %2081 = vst [vmem:[#allocation1 + $0x1] ss:$9 sm:$0xff] %v8525_v42  ;;  %v8537_v49 = vpack.c.bf16 %v774_v47, %v774_v47 }
 0x1cb   :  { %2083 = vst [vmem:[#allocation1 + $0x2] ss:$9 sm:$0xff] %v8527_v44 }
 0x1cc   :  { %v8540_v50 = vrot.slane %v8537_v49, 3 }
 0x1ce   :  { %432 = vrot.lane.b32.xlu1 %v8403_v37, %s8242_s19  ;;  %v8547_v51 = vsel %vm914_vm2, %v8537_v49, %v8540_v50  ;;  %v8552_v52 = vsel %vm918_vm3, %v8537_v49, %v8540_v50 }
 0x1cf   :  { %13870 = vst [vmem:[#allocation13_spill] sm:$0xff] %v8547_v51 }
 0x1d0   :  { %13871 = vst [vmem:[#allocation14_spill] sm:$0xff] %v8552_v52 }
 0x1d2   :  { %v455_v54 = vpop.permute.xlu0 %454 }
 0x1d3   :  { %v8557_v56 = vmax.f32 %v8444_v55, %v455_v54 }
 0x1d5   :  { %634 = vrot.lane.b32.xlu2 %v8557_v56, %s8243_s16 }
 0x1d6   :  { %438 = vrot.lane.b32.xlu1 %v8414_v41, %s8242_s19 }
 0x1da   :  { %v589_v58 = vpop.permute.xlu0 %588 }
 0x1db   :  { %v695_v60 = vmax.f32 %v8449_v57, %v589_v58  ;;  %v457_v62 = vpop.permute.xlu1 %456  ;;  %v8619_v58 = vpop.f32.mrf.mxu0 }
 0x1dc   :  { %v8567_v4 = vmax.f32 %v8451_v59, %v457_v62 }
 0x1dd   :  { %v735_v5 = vadd.f32 %v8505_v16, %v695_v60  ;;  %426 = vrot.lane.b32.xlu2 %v8394_v33, %s8242_s19 }
 0x1de   :  { %636 = vrot.lane.b32.xlu0 %v8567_v4, %s8243_s16  ;;  %472 = vrot.lane.b32.xlu1 %v8564_v1, %s8242_s19 }
 0x1df   :  { %v771_v55 = vmax.f32 %v735_v5, 0.0 }
 0x1e1   :  { %v807_v8 = vpack.c.bf16 %v771_v55, %v771_v55 }
 0x1e3   :  { %v879_v57 = vrot.slane %v807_v8, 3  ;;  %v591_v10 = vpop.permute.xlu1 %590 }
 0x1e4   :  { %v696_v13 = vmax.f32 %v8459_v61, %v591_v10 }
 0x1e5   :  { %v8578_v59 = vsel %vm914_vm2, %v807_v8, %v879_v57  ;;  %v8581_v17 = vsel %vm918_vm3, %v807_v8, %v879_v57  ;;  %v936_v18 = vsel %vm922_vm4, %v807_v8, %v879_v57  ;;  %v939_v19 = vsel %vm926_vm5, %v807_v8, %v879_v57  ;;  %462 = vrot.lane.b32.xlu2 %v8484_v9, %s8242_s19 }
 0x1e6   :  { %13872 = vst [vmem:[#allocation15_spill] sm:$0xff] %v8578_v59  ;;  %v8587_v21 = vrot.slane %v936_v18, 2  ;;  %v8589_v22 = vrot.slane %v939_v19, 3  ;;  %428 = vrot.lane.b32.xlu0 %v8396_v34, %s8242_s19  ;;  %v736_v61 = vadd.f32 %v8505_v16, %v696_v13 }
 0x1e7   :  { %2085 = vst [vmem:[#allocation1 + $0x3] ss:$9 sm:$0xff] %v8578_v59 }
 0x1e8   :  { %13873 = vst [vmem:[#allocation16_spill] sm:$0xff] %v8587_v21  ;;  %v772_v24 = vmax.f32 %v736_v61, 0.0 }
 0x1e9   :  { %13874 = vst [vmem:[#allocation17_spill] sm:$0xff] %v8589_v22 }
 0x1ea   :  { %2087 = vst [vmem:[#allocation1 + $0x4] ss:$9 sm:$0xff] %v8587_v21  ;;  %v808_v25 = vpack.c.bf16 %v772_v24, %v772_v24 }
 0x1eb   :  { %2089 = vst [vmem:[#allocation1 + $0x5] ss:$9 sm:$0xff] %v8589_v22 }
 0x1ec   :  { %v880_v26 = vrot.slane %v808_v25, 3 }
 0x1ed   :  { %434 = vrot.lane.b32.xlu2 %v8406_v38, %s8242_s19 }
 0x1ee   :  { %464 = vrot.lane.b32.xlu0 %v8498_v15, %s8242_s19  ;;  %v8602_v28 = vsel %vm914_vm2, %v808_v25, %v880_v26  ;;  %v945_v30 = vsel %vm918_vm3, %v808_v25, %v880_v26  ;;  %v948_v39 = vsel %vm922_vm4, %v808_v25, %v880_v26  ;;  %v8607_v45 = vsel %vm926_vm5, %v808_v25, %v880_v26 }
 0x1ef   :  { %13875 = vst [vmem:[#allocation18_spill] sm:$0xff] %v8602_v28  ;;  %v8609_v47 = vrot.slane %v945_v30, 1  ;;  %v8611_v54 = vrot.slane %v948_v39, 2 }
 0x1f1   :  { %13876 = vst [vmem:[#allocation19_spill] sm:$0xff] %v8609_v47 }
 0x1f2   :  { %13877 = vst [vmem:[#allocation20_spill] sm:$0xff] %v8611_v54 }
 0x1f3   :  { %2091 = vst [vmem:[#allocation1 + $0x6] ss:$9 sm:$0xff] %v8609_v47 }
 0x1f4   :  { %2093 = vst [vmem:[#allocation1 + $0x7] ss:$9 sm:$0xff] %v8611_v54 }
 0x1f5   :  { %468 = vrot.lane.b32.xlu2 %v8533_v46, %s8242_s19 }
 0x1f6   :  { %436 = vrot.lane.b32.xlu0 %v8411_v40, %s8242_s19 }
 0x1fb   :  { %v8629_v61 = vld [vmem:[#allocation1] sm:$0xff] }
 0x1fc   :  { %13878 = vst [vmem:[#allocation21_spill] sm:$0xff] %v8629_v61 }
 0x1fd   :  { %474 = vrot.lane.b32.xlu2 %v8619_v58, %s8242_s19 }
 0x1fe   :  { %470 = vrot.lane.b32.xlu0 %v8554_v53, %s8242_s19 }
 0x1ff   :  { %v623_v60 = vpop.permute.xlu2 %622 }
 0x200   :  { %v712_v62 = vmax.f32 %v8475_v6, %v623_v60 }
 0x202   :  { %v752_v5 = vadd.f32 %v8505_v16, %v712_v62 }
 0x204   :  { %v788_v55 = vmax.f32 %v752_v5, 0.0 }
 0x206   :  { %v824_v8 = vpack.c.bf16 %v788_v55, %v788_v55 }
 0x207   :  { %v601_v57 = vpop.permute.xlu2 %600  ;;  %v625_v10 = vpop.permute.xlu0 %624 }
 0x208   :  { %v896_v13 = vrot.slane %v824_v8, 3  ;;  %v701_v18 = vmax.f32 %v8487_v11, %v601_v57  ;;  %v713_v19 = vmax.f32 %v8463_v63, %v625_v10 }
 0x20a   :  { %v8632_v24 = vsel %vm914_vm2, %v824_v8, %v896_v13  ;;  %v1137_v25 = vsel %vm918_vm3, %v824_v8, %v896_v13  ;;  %v8636_v6 = vsel %vm922_vm4, %v824_v8, %v896_v13  ;;  %v1143_v26 = vsel %vm926_vm5, %v824_v8, %v896_v13 }
 0x20b   :  { %v8639_v30 = vrot.slane %v1137_v25, 1  ;;  %v8641_v39 = vrot.slane %v1143_v26, 3  ;;  %2095 = vst [vmem:[#allocation1] ss:$9 sm:$0xff] %v8632_v24  ;;  %v741_v63 = vadd.f32 %v8505_v16, %v701_v18  ;;  %v753_v11 = vadd.f32 %v8505_v16, %v713_v19 }
 0x20d   :  { %13879 = vst [vmem:[#allocation22_spill] sm:$0xff] %v8639_v30  ;;  %v777_v60 = vmax.f32 %v741_v63, 0.0  ;;  %v789_v62 = vmax.f32 %v753_v11, 0.0 }
 0x20e   :  { %13880 = vst [vmem:[#allocation23_spill] sm:$0xff] %v8641_v39 }
 0x20f   :  { %2096 = vst [vmem:[#allocation1 + $0x1] ss:$9 sm:$0xff] %v8639_v30  ;;  %v627_v5 = vpop.permute.xlu1 %626  ;;  %v813_v55 = vpack.c.bf16 %v777_v60, %v777_v60  ;;  %v825_v57 = vpack.c.bf16 %v789_v62, %v789_v62 }
 0x210   :  { %2097 = vst [vmem:[#allocation1 + $0x2] ss:$9 sm:$0xff] %v8641_v39  ;;  %v714_v8 = vmax.f32 %v8469_v2, %v627_v5 }
 0x211   :  { %v885_v10 = vrot.slane %v813_v55, 3  ;;  %v897_v13 = vrot.slane %v825_v57, 3 }
 0x212   :  { %v754_v26 = vadd.f32 %v8505_v16, %v714_v8 }
 0x213   :  { %v8650_v25 = vsel %vm918_vm3, %v813_v55, %v885_v10  ;;  %v8653_v18 = vsel %vm922_vm4, %v813_v55, %v885_v10  ;;  %v8656_v19 = vsel %vm926_vm5, %v813_v55, %v885_v10  ;;  %v8660_v63 = vsel %vm914_vm2, %v825_v57, %v897_v13 }
 0x214   :  { %13881 = vst [vmem:[#allocation24_spill] sm:$0xff] %v8650_v25  ;;  %v8663_v11 = vsel %vm918_vm3, %v825_v57, %v897_v13  ;;  %v1152_v2 = vsel %vm922_vm4, %v825_v57, %v897_v13  ;;  %v1155_v60 = vsel %vm926_vm5, %v825_v57, %v897_v13  ;;  %v790_v52 = vmax.f32 %v754_v26, 0.0 }
 0x215   :  { %13882 = vst [vmem:[#allocation25_spill] sm:$0xff] %v8653_v18  ;;  %v8668_v62 = vrot.slane %v1152_v2, 2  ;;  %v8670_v5 = vrot.slane %v1155_v60, 3  ;;  %v8715_v25 = vsel %vm914_vm2, %v813_v55, %v885_v10 }
 0x216   :  { %13883 = vst [vmem:[#allocation26_spill] sm:$0xff] %v8656_v19  ;;  %v826_v8 = vpack.c.bf16 %v790_v52, %v790_v52 }
 0x217   :  { %13884 = vst [vmem:[#allocation27_spill] sm:$0xff] %v8660_v63  ;;  %v599_v61 = vpop.permute.xlu1 %598 }
 0x218   :  { %2098 = vst [vmem:[#allocation1 + $0x3] ss:$9 sm:$0xff] %v8660_v63  ;;  %v700_v51 = vmax.f32 %v8478_v7, %v599_v61  ;;  %v898_v19 = vrot.slane %v826_v8, 3 }
 0x219   :  { %13885 = vst [vmem:[#allocation28_spill] sm:$0xff] %v8668_v62 }
 0x21a   :  { %13886 = vst [vmem:[#allocation29_spill] sm:$0xff] %v8670_v5  ;;  %v740_v18 = vadd.f32 %v8505_v16, %v700_v51  ;;  %v8677_v57 = vsel %vm914_vm2, %v826_v8, %v898_v19  ;;  %v1161_v13 = vsel %vm918_vm3, %v826_v8, %v898_v19  ;;  %v1164_v2 = vsel %vm922_vm4, %v826_v8, %v898_v19 }
 0x21b   :  { %2099 = vst [vmem:[#allocation1 + $0x4] ss:$9 sm:$0xff] %v8668_v62  ;;  %v8682_v60 = vsel %vm926_vm5, %v826_v8, %v898_v19  ;;  %v8684_v43 = vrot.slane %v1161_v13, 1  ;;  %v8686_v0 = vrot.slane %v1164_v2, 2  ;;  %v972_v19 = vsel %vm922_vm4, %v8537_v49, %v8540_v50 }
 0x21c   :  { %2100 = vst [vmem:[#allocation1 + $0x5] ss:$9 sm:$0xff] %v8670_v5  ;;  %v776_v52 = vmax.f32 %v740_v18, 0.0  ;;  %v975_v8 = vsel %vm926_vm5, %v8537_v49, %v8540_v50  ;;  %v8702_v2 = vrot.slane %v972_v19, 2 }
 0x21d   :  { %13887 = vst [vmem:[#allocation30_spill] sm:$0xff] %v8677_v57 }
 0x21e   :  { %13888 = vst [vmem:[#allocation31_spill] sm:$0xff] %v8684_v43  ;;  %v812_v51 = vpack.c.bf16 %v776_v52, %v776_v52 }
 0x21f   :  { %v597_v26 = vpop.permute.xlu0 %596  ;;  %13889 = vst [vmem:[#allocation32_spill] sm:$0xff] %v8686_v0 }
 0x220   :  { %v699_v7 = vmax.f32 %v8490_v12, %v597_v26  ;;  %2101 = vst [vmem:[#allocation1 + $0x6] ss:$9 sm:$0xff] %v8684_v43  ;;  %v884_v20 = vrot.slane %v812_v51, 3 }
 0x221   :  { %2102 = vst [vmem:[#allocation1 + $0x7] ss:$9 sm:$0xff] %v8686_v0 }
 0x222   :  { %v739_v61 = vadd.f32 %v8505_v16, %v699_v7  ;;  %v8699_v18 = vsel %vm922_vm4, %v812_v51, %v884_v20  ;;  %v999_v13 = vsel %vm926_vm5, %v812_v51, %v884_v20  ;;  %13890 = vst [vmem:[#allocation33_spill] sm:$0xff] %v8702_v2  ;;  %v993_v26 = vsel %vm918_vm3, %v812_v51, %v884_v20 }
 0x223   :  { %v8711_v49 = vrot.slane %v999_v13, 3  ;;  %13894 = vst [vmem:[#allocation37_spill] sm:$0xff] %v8715_v25 }
 0x224   :  { %v775_v35 = vmax.f32 %v739_v61, 0.0  ;;  %v8706_v61 = vrot.slane %v975_v8, 3 }
 0x225   :  { %13893 = vst [vmem:[#allocation36_spill] sm:$0xff] %v8711_v49 }
 0x226   :  { %v811_v52 = vpack.c.bf16 %v775_v35, %v775_v35  ;;  %13891 = vst [vmem:[#allocation34_spill] sm:$0xff] %v8706_v61  ;;  %v8719_v35 = vsel %vm914_vm2, %v812_v51, %v884_v20 }
 0x227   :  { %v633_v12 = vpop.permute.xlu1 %632  ;;  %13895 = vst [vmem:[#allocation38_spill] sm:$0xff] %v8719_v35 }
 0x228   :  { %v717_v7 = vmax.f32 %v8496_v14, %v633_v12  ;;  %v8708_v31 = vld [vmem:[#allocation1] sm:$0xff]  ;;  %v883_v50 = vrot.slane %v811_v52, 3  ;;  %v8721_v14 = vrot.slane %v993_v26, 1 }
 0x229   :  { %13892 = vst [vmem:[#allocation35_spill] sm:$0xff] %v8708_v31 }
 0x22a   :  { %2104 = vst [vmem:[#allocation1] ss:$9 sm:$0xff] %v8702_v2  ;;  %v757_v23 = vadd.f32 %v8505_v16, %v717_v7  ;;  %v8725_v19 = vsel %vm914_vm2, %v811_v52, %v883_v50  ;;  %v981_v8 = vsel %vm918_vm3, %v811_v52, %v883_v50  ;;  %v984_v12 = vsel %vm922_vm4, %v811_v52, %v883_v50 }
 0x22b   :  { %2106 = vst [vmem:[#allocation1 + $0x1] ss:$9 sm:$0xff] %v8706_v61  ;;  %v8730_v13 = vsel %vm926_vm5, %v811_v52, %v883_v50  ;;  %v8733_v55 = vrot.slane %v981_v8, 1  ;;  %v8735_v20 = vrot.slane %v984_v12, 2 }
 0x22c   :  { %13896 = vst [vmem:[#allocation39_spill] sm:$0xff] %v8721_v14  ;;  %v793_v10 = vmax.f32 %v757_v23, 0.0 }
 0x22d   :  { %2118 = vst [vmem:[#allocation1 + $0x7] ss:$9 sm:$0xff] %v8715_v25 }
 0x22e   :  { %13897 = vst [vmem:[#allocation40_spill] sm:$0xff] %v8725_v19  ;;  %v829_v7 = vpack.c.bf16 %v793_v10, %v793_v10 }
 0x22f   :  { %2112 = vst [vmem:[#allocation1 + $0x4] ss:$9 sm:$0xff] %v8719_v35  ;;  %v635_v51 = vpop.permute.xlu2 %634  ;;  %v425_v26 = vpop.permute.xlu1 %424 }
 0x230   :  { %13898 = vst [vmem:[#allocation41_spill] sm:$0xff] %v8733_v55  ;;  %v718_v31 = vmax.f32 %v8557_v56, %v635_v51  ;;  %v8742_v52 = vmax.f32 %v8392_v32, %v425_v26  ;;  %v901_v50 = vrot.slane %v829_v7, 3 }
 0x231   :  { %13899 = vst [vmem:[#allocation42_spill] sm:$0xff] %v8735_v20 }
 0x232   :  { %2116 = vst [vmem:[#allocation1 + $0x6] ss:$9 sm:$0xff] %v8711_v49  ;;  %v758_v8 = vadd.f32 %v8505_v16, %v718_v31  ;;  %604 = vrot.lane.b32.xlu0 %v8742_v52, %s8243_s16  ;;  %v8749_v23 = vsel %vm914_vm2, %v829_v7, %v901_v50  ;;  %v1197_v12 = vsel %vm918_vm3, %v829_v7, %v901_v50 }
 0x233   :  { %2114 = vst [vmem:[#allocation1 + $0x5] ss:$9 sm:$0xff] %v8721_v14  ;;  %v1200_v10 = vsel %vm922_vm4, %v829_v7, %v901_v50  ;;  %v8754_v56 = vsel %vm926_vm5, %v829_v7, %v901_v50  ;;  %v8756_v32 = vrot.slane %v1197_v12, 1 }
 0x234   :  { %2108 = vst [vmem:[#allocation1 + $0x2] ss:$9 sm:$0xff] %v8733_v55  ;;  %v8758_v51 = vrot.slane %v1200_v10, 2  ;;  %v794_v26 = vmax.f32 %v758_v8, 0.0 }
 0x235   :  { %13900 = vst [vmem:[#allocation43_spill] sm:$0xff] %v8742_v52 }
 0x236   :  { %2110 = vst [vmem:[#allocation1 + $0x3] ss:$9 sm:$0xff] %v8735_v20  ;;  %v830_v52 = vpack.c.bf16 %v794_v26, %v794_v26 }
 0x237   :  { %13901 = vst [vmem:[#allocation44_spill] sm:$0xff] %v8749_v23  ;;  %v427_v25 = vpop.permute.xlu2 %426  ;;  %v631_v31 = vpop.permute.xlu0 %630 }
 0x238   :  { %13902 = vst [vmem:[#allocation45_spill] sm:$0xff] %v8756_v32  ;;  %v461_v49 = vpop.permute.xlu1 %460  ;;  %v8763_v23 = vmax.f32 %v8394_v33, %v427_v25  ;;  %v716_v14 = vmax.f32 %v8513_v27, %v631_v31  ;;  %v902_v7 = vrot.slane %v830_v52, 3 }
 0x239   :  { %13903 = vst [vmem:[#allocation46_spill] sm:$0xff] %v8758_v51 }
 0x23a   :  { %13905 = vst [vmem:[#allocation48_spill] sm:$0xff] %v8763_v23  ;;  %v756_v50 = vadd.f32 %v8505_v16, %v716_v14  ;;  %606 = vrot.lane.b32.xlu1 %v8763_v23, %s8243_s16  ;;  %v8772_v8 = vsel %vm914_vm2, %v830_v52, %v902_v7  ;;  %v1209_v12 = vsel %vm918_vm3, %v830_v52, %v902_v7 }
 0x23b   :  { %13906 = vst [vmem:[#allocation49_spill] sm:$0xff] %v8772_v8  ;;  %v8776_v33 = vsel %vm922_vm4, %v830_v52, %v902_v7  ;;  %v1215_v27 = vsel %vm926_vm5, %v830_v52, %v902_v7  ;;  %v8779_v25 = vrot.slane %v1209_v12, 1 }
 0x23c   :  { %v8781_v10 = vrot.slane %v1215_v27, 3  ;;  %v792_v14 = vmax.f32 %v756_v50, 0.0 }
 0x23d   :  { %v8760_v35 = vld [vmem:[#allocation1] sm:$0xff]  ;;  %13907 = vst [vmem:[#allocation50_spill] sm:$0xff] %v8779_v25 }
 0x23e   :  { %13904 = vst [vmem:[#allocation47_spill] sm:$0xff] %v8760_v35  ;;  %v828_v35 = vpack.c.bf16 %v792_v14, %v792_v14 }
 0x23f   :  { %2123 = vst [vmem:[#allocation1 + $0x2] ss:$9 sm:$0xff] %v8756_v32  ;;  %v463_v26 = vpop.permute.xlu2 %462 }
 0x240   :  { %2124 = vst [vmem:[#allocation1 + $0x3] ss:$9 sm:$0xff] %v8758_v51  ;;  %v433_v31 = vpop.permute.xlu1 %432  ;;  %v8790_v51 = vmax.f32 %v8484_v9, %v463_v26  ;;  %v900_v52 = vrot.slane %v828_v35, 3  ;;  %v8811_v26 = vmax.f32 %v8473_v3, %v461_v49 }
 0x241   :  { %13908 = vst [vmem:[#allocation51_spill] sm:$0xff] %v8781_v10  ;;  %v8787_v23 = vmax.f32 %v8403_v37, %v433_v31 }
 0x242   :  { %2125 = vst [vmem:[#allocation1 + $0x4] ss:$9 sm:$0xff] %v8772_v8  ;;  %642 = vrot.lane.b32.xlu1 %v8790_v51, %s8243_s16  ;;  %v8797_v7 = vsel %vm914_vm2, %v828_v35, %v900_v52  ;;  %v8800_v50 = vsel %vm918_vm3, %v828_v35, %v900_v52  ;;  %v1188_v12 = vsel %vm922_vm4, %v828_v35, %v900_v52 }
 0x243   :  { %2126 = vst [vmem:[#allocation1 + $0x5] ss:$9 sm:$0xff] %v8779_v25  ;;  %612 = vrot.lane.b32.xlu0 %v8787_v23, %s8243_s16  ;;  %v1191_v37 = vsel %vm926_vm5, %v828_v35, %v900_v52  ;;  %v8804_v27 = vrot.slane %v1188_v12, 2 }
 0x244   :  { %2127 = vst [vmem:[#allocation1 + $0x6] ss:$9 sm:$0xff] %v8781_v10  ;;  %v8806_v9 = vrot.slane %v1191_v37, 3 }
 0x245   :  { %13909 = vst [vmem:[#allocation52_spill] sm:$0xff] %v8787_v23 }
 0x246   :  { %13910 = vst [vmem:[#allocation53_spill] sm:$0xff] %v8790_v51 }
 0x247   :  { %13911 = vst [vmem:[#allocation54_spill] sm:$0xff] %v8797_v7  ;;  %v435_v14 = vpop.permute.xlu2 %434  ;;  %v1370_v7 = vshll.u32 %v8525_v42, 16 }
 0x248   :  { %13912 = vst [vmem:[#allocation55_spill] sm:$0xff] %v8800_v50  ;;  %v8814_v31 = vmax.f32 %v8406_v38, %v435_v14  ;;  %v439_v35 = vpop.permute.xlu1 %438 }
 0x249   :  { %13913 = vst [vmem:[#allocation56_spill] sm:$0xff] %v8804_v27  ;;  %v8821_v3 = vmax.f32 %v8414_v41, %v439_v35 }
 0x24a   :  { %13914 = vst [vmem:[#allocation57_spill] sm:$0xff] %v8806_v9  ;;  %614 = vrot.lane.b32.xlu1 %v8814_v31, %s8243_s16 }
 0x24b   :  { %2121 = vst [vmem:[#allocation1] ss:$9 sm:$0xff] %v8804_v27  ;;  %640 = vrot.lane.b32.xlu0 %v8811_v26, %s8243_s16 }
 0x24c   :  { %2122 = vst [vmem:[#allocation1 + $0x1] ss:$9 sm:$0xff] %v8806_v9 }
 0x24d   :  { %13915 = vst [vmem:[#allocation58_spill] sm:$0xff] %v8811_v26  ;;  %v1403_v26 = vshll.u32 %v8589_v22, 16 }
 0x24e   :  { %13916 = vst [vmem:[#allocation59_spill] sm:$0xff] %v8814_v31 }
 0x24f   :  { %13917 = vst [vmem:[#allocation60_spill] sm:$0xff] %v8821_v3  ;;  %v469_v41 = vpop.permute.xlu2 %468 }
 0x250   :  { %v637_v52 = vpop.permute.xlu0 %636  ;;  %v473_v35 = vpop.permute.xlu1 %472 }
 0x251   :  { %v719_v38 = vmax.f32 %v8567_v4, %v637_v52  ;;  %v8855_v50 = vmax.f32 %v8564_v1, %v473_v35  ;;  %v1382_v35 = vshrl.u32 %v8527_v44, 16  ;;  %v1410_v44 = vshll.u32 %v8602_v28, 16 }
 0x253   :  { %v759_v49 = vadd.f32 %v8505_v16, %v719_v38  ;;  %618 = vrot.lane.b32.xlu0 %v8821_v3, %s8243_s16  ;;  %13923 = vst [vmem:[#allocation66_spill] sm:$0xff] %v8855_v50 }
 0x255   :  { %v795_v12 = vmax.f32 %v759_v49, 0.0  ;;  %v8848_v49 = vrot.slane %v8520_v36, 2  ;;  %v1365_v36 = vshrl.u32 %v8516_v29, 16  ;;  %v1398_v29 = vshrl.u32 %v8587_v21, 16 }
 0x257   :  { %v8827_v37 = vpack.c.bf16 %v795_v12, %v795_v12  ;;  %13921 = vst [vmem:[#allocation64_spill] sm:$0xff] %v8848_v49  ;;  %v8852_v12 = vmax.f32 %v8533_v46, %v469_v41  ;;  %v1373_v46 = vshrl.u32 %v8525_v42, 16  ;;  %v1378_v1 = vshll.u32 %v8848_v49, 16  ;;  %v475_v31 = vpop.permute.xlu2 %474 }
 0x258   :  { %v1386_v41 = vshll.u32 %v8578_v59, 16 }
 0x259   :  { %v8830_v14 = vrot.slane %v8827_v37, 3  ;;  %13922 = vst [vmem:[#allocation65_spill] sm:$0xff] %v8852_v12  ;;  %648 = vrot.lane.b32.xlu1 %v8852_v12, %s8243_s16  ;;  %v8880_v12 = vrot.slane %v8607_v45, 3  ;;  %v1389_v45 = vshrl.u32 %v8578_v59, 16 }
 0x25a   :  { %v8901_v21 = vsel %vm8861_vm8, %v1382_v35, %v1386_v41  ;;  %v8918_v41 = vsel %vm8861_vm8, %v1398_v29, %v1403_v26 }
 0x25b   :  { %v8835_v4 = vsel %vm914_vm2, %v8827_v37, %v8830_v14  ;;  %v8840_v52 = vsel %vm922_vm4, %v8827_v37, %v8830_v14  ;;  %v8845_v38 = vsel %vm926_vm5, %v8827_v37, %v8830_v14  ;;  %652 = vrot.lane.b32.xlu0 %v8855_v50, %s8243_s16  ;;  %13929 = vst [vmem:[#allocation70_spill] sm:$0xff] %v8880_v12  ;;  %v429_v50 = vpop.permute.xlu0 %428 }
 0x25c   :  { %13918 = vst [vmem:[#allocation61_spill] sm:$0xff] %v8835_v4  ;;  %v8887_v23 = vmax.f32 %v8396_v34, %v429_v50  ;;  %v1414_v34 = vshrl.u32 %v8609_v47, 16  ;;  %v1419_v50 = vshll.u32 %v8611_v54, 16 }
 0x25d   :  { %13919 = vst [vmem:[#allocation62_spill] sm:$0xff] %v8840_v52  ;;  %v8859_v52 = vrot.slane %v8581_v17, 1  ;;  %v8875_v17 = vsel %vm8861_vm8, %v1365_v36, %v1370_v7  ;;  %v8890_v7 = vmax.f32 %v8619_v58, %v475_v31  ;;  %v8894_v36 = vsel %vm8861_vm8, %v1373_v46, %v1378_v1 }
 0x25e   :  { %13920 = vst [vmem:[#allocation63_spill] sm:$0xff] %v8845_v38  ;;  %v13925_v38 = vmov 0  ;;  %608 = vrot.lane.b32.xlu2 %v8887_v23, %s8243_s16  ;;  %v1406_v31 = vshrl.u32 %v8589_v22, 16  ;;  %v1422_v46 = vshrl.u32 %v8611_v54, 16  ;;  %v1427_v1 = vshll.u32 %v8880_v12, 16 }
 0x25f   :  { %2128 = vst [vmem:[#allocation1 + $0x7] ss:$9 sm:$0xff] %v8835_v4  ;;  %v13926_v38 = vsel %vm8861_vm8, 4294967295, %v13925_v38  ;;  %v1394_v3 = vshll.u32 %v8859_v52, 16  ;;  %v8932_v35 = vsel %vm8861_vm8, %v1414_v34, %v1419_v50  ;;  %v8948_v34 = vrot.slane %v8663_v11, 1 }
 0x260   :  { %13924 = vst [vmem:[#allocation67_spill] sm:$0xff] %v8859_v52  ;;  %v8937_v26 = vsel %vm8861_vm8, %v1422_v46, %v1427_v1  ;;  %v1435_v50 = vshll.u32 %v8639_v30, 16  ;;  %v1451_v1 = vshll.u32 %v8660_v63, 16 }
 0x261   :  { %13927 = vst [vmem:[#allocation68_spill] sm:$0xff] %v13926_v38  ;;  %v8910_v58 = vsel %vm8861_vm8, %v1389_v45, %v1394_v3  ;;  %654 = vrot.lane.b32.xlu1 %v8890_v7, %s8243_s16  ;;  %v8927_v3 = vsel %vm8861_vm8, %v1406_v31, %v1410_v44  ;;  %v8941_v45 = vrot.slane %v8636_v6, 2  ;;  %v1438_v31 = vshrl.u32 %v8639_v30, 16  ;;  %v14326_v38 = vld [vmem:[#allocation42_spill] sm:$0xff] }
 0x262   :  { %13928 = vst [vmem:[#allocation69_spill] sm:$0xff] %v8875_v17  ;;  %v1430_v6 = vshrl.u32 %v8632_v24, 16 }
 0x263   :  { %13931 = vst [vmem:[#allocation72_spill] sm:$0xff] %v8894_v36  ;;  %448 = vrot.lane.b32.xlu0 %v8431_v48, %s8242_s19  ;;  %v465_v29 = vpop.permute.xlu0 %464  ;;  %v1443_v46 = vshll.u32 %v8941_v45, 16 }
 0x264   :  { %13932 = vst [vmem:[#allocation73_spill] sm:$0xff] %v8901_v21  ;;  %v8945_v44 = vmax.f32 %v8498_v15, %v465_v29  ;;  %v8959_v15 = vrot.slane %v8682_v60, 3  ;;  %v8963_v11 = vsel %vm8861_vm8, %v1430_v6, %v1435_v50  ;;  %v1447_v29 = vshrl.u32 %v8641_v39, 16 }
 0x265   :  { %13933 = vst [vmem:[#allocation74_spill] sm:$0xff] %v8910_v58  ;;  %v1454_v60 = vshrl.u32 %v8660_v63, 16 }
 0x266   :  { %v8884_v51 = vld [vmem:[#allocation1] sm:$0xff]  ;;  %13934 = vst [vmem:[#allocation75_spill] sm:$0xff] %v8918_v41  ;;  %644 = vrot.lane.b32.xlu2 %v8945_v44, %s8243_s16  ;;  %v8982_v6 = vsel %vm8861_vm8, %v1447_v29, %v1451_v1 }
 0x267   :  { %13930 = vst [vmem:[#allocation71_spill] sm:$0xff] %v8884_v51 }
 0x268   :  { %2136 = vst [vmem:[#allocation1] ss:$9 sm:$0xff] %v8875_v17  ;;  %v1463_v17 = vshrl.u32 %v8668_v62, 16 }
 0x269   :  { %2139 = vst [vmem:[#allocation1 + $0x1] ss:$9 sm:$0xff] %v8894_v36  ;;  %v1459_v36 = vshll.u32 %v8948_v34, 16 }
 0x26a   :  { %2142 = vst [vmem:[#allocation1 + $0x2] ss:$9 sm:$0xff] %v8901_v21  ;;  %v1484_v21 = vshll.u32 %v8686_v0, 16 }
 0x26b   :  { %2145 = vst [vmem:[#allocation1 + $0x3] ss:$9 sm:$0xff] %v8910_v58  ;;  %v437_v24 = vpop.permute.xlu0 %436  ;;  %v1479_v58 = vshrl.u32 %v8684_v43, 16 }
 0x26c   :  { %13935 = vst [vmem:[#allocation76_spill] sm:$0xff] %v8927_v3  ;;  %v8978_v50 = vmax.f32 %v8411_v40, %v437_v24  ;;  %v1492_v40 = vshll.u32 %v8959_v15, 16 }
 0x26d   :  { %2148 = vst [vmem:[#allocation1 + $0x4] ss:$9 sm:$0xff] %v8918_v41  ;;  %v1475_v41 = vshll.u32 %v8677_v57, 16  ;;  %v9009_v29 = vsel %vm8861_vm8, %v1479_v58, %v1484_v21  ;;  %v1496_v21 = vshrl.u32 %v8702_v2, 16  ;;  %v1501_v58 = vshll.u32 %v8706_v61, 16 }
 0x26e   :  { %13936 = vst [vmem:[#allocation77_spill] sm:$0xff] %v8932_v35  ;;  %616 = vrot.lane.b32.xlu2 %v8978_v50, %s8243_s16 }
 0x26f   :  { %2151 = vst [vmem:[#allocation1 + $0x5] ss:$9 sm:$0xff] %v8927_v3  ;;  %v8972_v3 = vsel %vm8861_vm8, %v1438_v31, %v1443_v46  ;;  %v8989_v31 = vsel %vm8861_vm8, %v1454_v60, %v1459_v36  ;;  %v1471_v46 = vshrl.u32 %v8670_v5, 16  ;;  %v1508_v60 = vshll.u32 %v8725_v19, 16 }
 0x270   :  { %13937 = vst [vmem:[#allocation78_spill] sm:$0xff] %v8937_v26 }
 0x271   :  { %2154 = vst [vmem:[#allocation1 + $0x6] ss:$9 sm:$0xff] %v8932_v35  ;;  %v9004_v36 = vsel %vm8861_vm8, %v1471_v46, %v1475_v41  ;;  %v1512_v46 = vshrl.u32 %v8733_v55, 16 }
 0x272   :  { %13938 = vst [vmem:[#allocation79_spill] sm:$0xff] %v8941_v45 }
 0x273   :  { %2157 = vst [vmem:[#allocation1 + $0x7] ss:$9 sm:$0xff] %v8937_v26  ;;  %v1468_v26 = vshll.u32 %v8670_v5, 16 }
 0x274   :  { %13939 = vst [vmem:[#allocation80_spill] sm:$0xff] %v8948_v34 }
 0x275   :  { %13940 = vst [vmem:[#allocation81_spill] sm:$0xff] %v8959_v15  ;;  %v8999_v1 = vsel %vm8861_vm8, %v1463_v17, %v1468_v26  ;;  %v471_v17 = vpop.permute.xlu0 %470  ;;  %v9022_v26 = vrot.slane %v8730_v13, 3  ;;  %v1504_v13 = vshrl.u32 %v8706_v61, 16  ;;  %v13958_v61 = vld [vmem:[#allocation38_spill] sm:$0xff] }
 0x276   :  { %13941 = vst [vmem:[#allocation82_spill] sm:$0xff] %v8963_v11  ;;  %v9019_v41 = vmax.f32 %v8554_v53, %v471_v17  ;;  %v1517_v53 = vshll.u32 %v8735_v20, 16 }
 0x277   :  { %13943 = vst [vmem:[#allocation84_spill] sm:$0xff] %v8972_v3  ;;  %v1525_v2 = vshll.u32 %v9022_v26, 16 }
 0x278   :  { %13944 = vst [vmem:[#allocation85_spill] sm:$0xff] %v8982_v6  ;;  %650 = vrot.lane.b32.xlu2 %v9019_v41, %s8243_s16 }
 0x279   :  { %13945 = vst [vmem:[#allocation86_spill] sm:$0xff] %v8989_v31 }
 0x27a   :  { %v8968_v35 = vld [vmem:[#allocation1] sm:$0xff]  ;;  %13946 = vst [vmem:[#allocation87_spill] sm:$0xff] %v8999_v1 }
 0x27b   :  { %13942 = vst [vmem:[#allocation83_spill] sm:$0xff] %v8968_v35 }
 0x27c   :  { %2161 = vst [vmem:[#allocation1] ss:$9 sm:$0xff] %v8963_v11  ;;  %v1487_v11 = vshrl.u32 %v8686_v0, 16 }
 0x27d   :  { %2163 = vst [vmem:[#allocation1 + $0x1] ss:$9 sm:$0xff] %v8972_v3  ;;  %v1520_v3 = vshrl.u32 %v8735_v20, 16 }
 0x27e   :  { %2165 = vst [vmem:[#allocation1 + $0x2] ss:$9 sm:$0xff] %v8982_v6  ;;  %v9014_v24 = vsel %vm8861_vm8, %v1487_v11, %v1492_v40  ;;  %v9029_v11 = vrot.slane %v8699_v18, 2  ;;  %v13952_v40 = vld [vmem:[#allocation24_spill] sm:$0xff]  ;;  %v13955_v18 = vld [vmem:[#allocation39_spill] sm:$0xff] }
 0x27f   :  { %2167 = vst [vmem:[#allocation1 + $0x3] ss:$9 sm:$0xff] %v8989_v31  ;;  %v9035_v17 = vrot.slane %v13952_v40, 1  ;;  %v9051_v40 = vsel %vm8861_vm8, %v1504_v13, %v1508_v60  ;;  %v13959_v31 = vld [vmem:[#allocation36_spill] sm:$0xff]  ;;  %v13962_v60 = vld [vmem:[#allocation37_spill] sm:$0xff] }
 0x280   :  { %13947 = vst [vmem:[#allocation88_spill] sm:$0xff] %v9004_v36  ;;  %v1545_v6 = vshrl.u32 %v13959_v31, 16  ;;  %v1549_v13 = vshll.u32 %v13962_v60, 16 }
 0x281   :  { %2169 = vst [vmem:[#allocation1 + $0x4] ss:$9 sm:$0xff] %v8999_v1  ;;  %v1541_v1 = vshll.u32 %v9029_v11, 16 }
 0x282   :  { %13948 = vst [vmem:[#allocation89_spill] sm:$0xff] %v9009_v29 }
 0x283   :  { %2171 = vst [vmem:[#allocation1 + $0x5] ss:$9 sm:$0xff] %v9004_v36  ;;  %v1536_v36 = vshrl.u32 %v13955_v18, 16 }
 0x284   :  { %13949 = vst [vmem:[#allocation90_spill] sm:$0xff] %v9014_v24 }
 0x285   :  { %2173 = vst [vmem:[#allocation1 + $0x6] ss:$9 sm:$0xff] %v9009_v29  ;;  %v1533_v29 = vshll.u32 %v13955_v18, 16 }
 0x286   :  { %2175 = vst [vmem:[#allocation1 + $0x7] ss:$9 sm:$0xff] %v9014_v24  ;;  %v9042_v24 = vsel %vm8861_vm8, %v1496_v21, %v1501_v58  ;;  %v9058_v21 = vsel %vm8861_vm8, %v1512_v46, %v1517_v53  ;;  %v1557_v58 = vshll.u32 %v9035_v17, 16  ;;  %v13964_v46 = vld [vmem:[#allocation5_spill] sm:$0xff]  ;;  %v1552_v53 = vshrl.u32 %v13962_v60, 16 }
 0x287   :  { %13950 = vst [vmem:[#allocation91_spill] sm:$0xff] %v9022_v26  ;;  %v1528_v26 = vshrl.u32 %v13958_v61, 16  ;;  %412 = vrot.lane.b32.xlu2 %v13964_v46, %s8242_s19 }
 0x288   :  { %13951 = vst [vmem:[#allocation92_spill] sm:$0xff] %v9029_v11  ;;  %v9064_v11 = vsel %vm8861_vm8, %v1520_v3, %v1525_v2  ;;  %v9083_v2 = vsel %vm8861_vm8, %v1545_v6, %v1549_v13  ;;  %v9088_v3 = vsel %vm8861_vm8, %v1552_v53, %v1557_v58  ;;  %v1221_v6 = vsel %vm918_vm3, %v8827_v37, %v8830_v14  ;;  %v13970_v13 = vld [vmem:[#allocation6_spill] sm:$0xff] }
 0x289   :  { %13953 = vst [vmem:[#allocation24_spill] sm:$0xff] %v9035_v17  ;;  %v9078_v17 = vsel %vm8861_vm8, %v1536_v36, %v1541_v1  ;;  %v1561_v1 = vshrl.u32 %v8804_v27, 16  ;;  %v1566_v36 = vshll.u32 %v8806_v9, 16  ;;  %v1569_v58 = vshrl.u32 %v8806_v9, 16 }
 0x28a   :  { %13954 = vst [vmem:[#allocation93_spill] sm:$0xff] %v9042_v24  ;;  %v1577_v53 = vshrl.u32 %v8756_v32, 16  ;;  %v1601_v9 = vshrl.u32 %v8779_v25, 16 }
 0x28b   :  { %13957 = vst [vmem:[#allocation95_spill] sm:$0xff] %v9051_v40  ;;  %v9116_v37 = vsel %vm8861_vm8, %v1561_v1, %v1566_v36  ;;  %v1614_v1 = vshll.u32 %v8835_v4, 16 }
 0x28c   :  { %13960 = vst [vmem:[#allocation96_spill] sm:$0xff] %v9058_v21 }
 0x28d   :  { %v9045_v19 = vld [vmem:[#allocation1] sm:$0xff]  ;;  %13961 = vst [vmem:[#allocation97_spill] sm:$0xff] %v9064_v11 }
 0x28e   :  { %13956 = vst [vmem:[#allocation94_spill] sm:$0xff] %v9045_v19 }
 0x28f   :  { %2183 = vst [vmem:[#allocation1] ss:$9 sm:$0xff] %v9042_v24  ;;  %v9070_v24 = vsel %vm8861_vm8, %v1528_v26, %v1533_v29  ;;  %v9093_v29 = vrot.slane %v8754_v56, 3  ;;  %v9101_v26 = vrot.slane %v8776_v33, 2  ;;  %422 = vrot.lane.b32.xlu2 %v13970_v13, %s8242_s19  ;;  %v13971_v56 = vld [vmem:[#allocation46_spill] sm:$0xff]  ;;  %v1598_v33 = vshll.u32 %v8779_v25, 16 }
 0x290   :  { %2186 = vst [vmem:[#allocation1 + $0x1] ss:$9 sm:$0xff] %v9051_v40  ;;  %v1582_v40 = vshll.u32 %v13971_v56, 16 }
 0x291   :  { %2189 = vst [vmem:[#allocation1 + $0x2] ss:$9 sm:$0xff] %v9058_v21 }
 0x292   :  { %13963 = vst [vmem:[#allocation98_spill] sm:$0xff] %v9070_v24 }
 0x293   :  { %2192 = vst [vmem:[#allocation1 + $0x3] ss:$9 sm:$0xff] %v9064_v11  ;;  %v1606_v11 = vshll.u32 %v9101_v26, 16 }
 0x294   :  { %13965 = vst [vmem:[#allocation5_spill] sm:$0xff] %v9078_v17 }
 0x295   :  { %2195 = vst [vmem:[#allocation1 + $0x4] ss:$9 sm:$0xff] %v9070_v24  ;;  %v9111_v24 = vrot.slane %v1221_v6, 1  ;;  %v9129_v6 = vsel %vm8861_vm8, %v1577_v53, %v1582_v40  ;;  %v1610_v40 = vshrl.u32 %v8781_v10, 16  ;;  %v1617_v53 = vshrl.u32 %v8835_v4, 16 }
 0x296   :  { %13966 = vst [vmem:[#allocation99_spill] sm:$0xff] %v9083_v2 }
 0x297   :  { %2198 = vst [vmem:[#allocation1 + $0x5] ss:$9 sm:$0xff] %v9078_v17  ;;  %v1590_v17 = vshll.u32 %v9093_v29, 16 }
 0x298   :  { %13967 = vst [vmem:[#allocation100_spill] sm:$0xff] %v9088_v3 }
 0x299   :  { %2201 = vst [vmem:[#allocation1 + $0x6] ss:$9 sm:$0xff] %v9083_v2  ;;  %v1585_v2 = vshrl.u32 %v13971_v56, 16 }
 0x29a   :  { %2204 = vst [vmem:[#allocation1 + $0x7] ss:$9 sm:$0xff] %v9088_v3  ;;  %v13972_v3 = vld [vmem:[#allocation44_spill] sm:$0xff] }
 0x29b   :  { %13968 = vst [vmem:[#allocation101_spill] sm:$0xff] %v9093_v29  ;;  %v1573_v27 = vshll.u32 %v13972_v3, 16  ;;  %v1593_v29 = vshrl.u32 %v8772_v8, 16  ;;  %v9136_v36 = vsel %vm8861_vm8, %v1585_v2, %v1590_v17  ;;  %v13981_v17 = vld [vmem:[#allocation7_spill] sm:$0xff]  ;;  %v9156_v2 = vsel %vm8861_vm8, %v1610_v40, %v1614_v1  ;;  %v14008_v8 = vld [vmem:[#allocation65_spill] sm:$0xff] }
 0x29c   :  { %13969 = vst [vmem:[#allocation102_spill] sm:$0xff] %v9101_v26  ;;  %v1622_v26 = vshll.u32 %v9111_v24, 16  ;;  %430 = vrot.lane.b32.xlu2 %v13981_v17, %s8242_s19 }
 0x29d   :  { %13973 = vst [vmem:[#allocation6_spill] sm:$0xff] %v9111_v24  ;;  %v9124_v3 = vsel %vm8861_vm8, %v1569_v58, %v1573_v27  ;;  %v9142_v27 = vsel %vm8861_vm8, %v1593_v29, %v1598_v33  ;;  %v9148_v58 = vsel %vm8861_vm8, %v1601_v9, %v1606_v11 }
 0x29e   :  { %13974 = vst [vmem:[#allocation103_spill] sm:$0xff] %v9116_v37  ;;  %v9161_v29 = vsel %vm8861_vm8, %v1617_v53, %v1622_v26  ;;  %v13985_v26 = vld [vmem:[#allocation43_spill] sm:$0xff] }
 0x29f   :  { %13976 = vst [vmem:[#allocation105_spill] sm:$0xff] %v9124_v3 }
 0x2a0   :  { %13977 = vst [vmem:[#allocation106_spill] sm:$0xff] %v9129_v6 }
 0x2a1   :  { %v9118_v14 = vld [vmem:[#allocation1] sm:$0xff]  ;;  %13978 = vst [vmem:[#allocation107_spill] sm:$0xff] %v9136_v36 }
 0x2a2   :  { %13975 = vst [vmem:[#allocation104_spill] sm:$0xff] %v9118_v14 }
 0x2a3   :  { %2208 = vst [vmem:[#allocation1] ss:$9 sm:$0xff] %v9116_v37 }
 0x2a4   :  { %2210 = vst [vmem:[#allocation1 + $0x1] ss:$9 sm:$0xff] %v9124_v3  ;;  %v605_v11 = vpop.permute.xlu0 %604  ;;  %v13987_v3 = vld [vmem:[#allocation48_spill] sm:$0xff] }
 0x2a5   :  { %2212 = vst [vmem:[#allocation1 + $0x2] ss:$9 sm:$0xff] %v9129_v6  ;;  %v703_v33 = vmax.f32 %v13985_v26, %v605_v11 }
 0x2a6   :  { %13979 = vst [vmem:[#allocation108_spill] sm:$0xff] %v9142_v27 }
 0x2a7   :  { %2214 = vst [vmem:[#allocation1 + $0x3] ss:$9 sm:$0xff] %v9136_v36  ;;  %v743_v1 = vadd.f32 %v8505_v16, %v703_v33  ;;  %v13988_v33 = vld [vmem:[#allocation52_spill] sm:$0xff] }
 0x2a8   :  { %13980 = vst [vmem:[#allocation109_spill] sm:$0xff] %v9148_v58 }
 0x2a9   :  { %2216 = vst [vmem:[#allocation1 + $0x4] ss:$9 sm:$0xff] %v9142_v27  ;;  %v779_v40 = vmax.f32 %v743_v1, 0.0 }
 0x2aa   :  { %13982 = vst [vmem:[#allocation7_spill] sm:$0xff] %v9156_v2 }
 0x2ab   :  { %2218 = vst [vmem:[#allocation1 + $0x5] ss:$9 sm:$0xff] %v9148_v58  ;;  %v815_v53 = vpack.c.bf16 %v779_v40, %v779_v40 }
 0x2ac   :  { %13983 = vst [vmem:[#allocation110_spill] sm:$0xff] %v9161_v29  ;;  %v607_v24 = vpop.permute.xlu1 %606 }
 0x2ad   :  { %2220 = vst [vmem:[#allocation1 + $0x6] ss:$9 sm:$0xff] %v9156_v2  ;;  %v704_v37 = vmax.f32 %v13987_v3, %v607_v24  ;;  %v13999_v2 = vld [vmem:[#allocation58_spill] sm:$0xff] }
 0x2ae   :  { %2222 = vst [vmem:[#allocation1 + $0x7] ss:$9 sm:$0xff] %v9161_v29 }
 0x2af   :  { %v744_v11 = vadd.f32 %v8505_v16, %v704_v37 }
 0x2b1   :  { %v780_v26 = vmax.f32 %v744_v11, 0.0 }
 0x2b3   :  { %v816_v3 = vpack.c.bf16 %v780_v26, %v780_v26 }
 0x2b5   :  { %v9165_v9 = vld [vmem:[#allocation1] sm:$0xff]  ;;  %v613_v24 = vpop.permute.xlu0 %612 }
 0x2b6   :  { %13984 = vst [vmem:[#allocation111_spill] sm:$0xff] %v9165_v9  ;;  %v707_v1 = vmax.f32 %v13988_v33, %v613_v24 }
 0x2b7   :  { %2229 = vst [vmem:[#allocation1] ss:$9 sm:$0xff] %v8525_v42  ;;  %v887_v42 = vrot.slane %v815_v53, 3 }
 0x2b8   :  { %2231 = vst [vmem:[#allocation1 + $0x1] ss:$9 sm:$0xff] %v8848_v49 }
 0x2b9   :  { %2233 = vst [vmem:[#allocation1 + $0x2] ss:$9 sm:$0xff] %v8578_v59  ;;  %v1029_v40 = vsel %vm918_vm3, %v815_v53, %v887_v42  ;;  %v1035_v37 = vsel %vm926_vm5, %v815_v53, %v887_v42  ;;  %v9200_v11 = vsel %vm914_vm2, %v815_v53, %v887_v42 }
 0x2ba   :  { %2235 = vst [vmem:[#allocation1 + $0x3] ss:$9 sm:$0xff] %v8859_v52  ;;  %v9205_v26 = vrot.slane %v1035_v37, 3  ;;  %v609_v37 = vpop.permute.xlu2 %608 }
 0x2bb   :  { %2237 = vst [vmem:[#allocation1 + $0x4] ss:$9 sm:$0xff] %v8589_v22 }
 0x2bc   :  { %2239 = vst [vmem:[#allocation1 + $0x5] ss:$9 sm:$0xff] %v8602_v28  ;;  %v9183_v28 = vsel %vm922_vm4, %v815_v53, %v887_v42 }
 0x2bd   :  { %2241 = vst [vmem:[#allocation1 + $0x6] ss:$9 sm:$0xff] %v8611_v54  ;;  %v641_v29 = vpop.permute.xlu0 %640 }
 0x2be   :  { %2243 = vst [vmem:[#allocation1 + $0x7] ss:$9 sm:$0xff] %v8880_v12  ;;  %v721_v58 = vmax.f32 %v13999_v2, %v641_v29 }
 0x2bf   :  { %13989 = vst [vmem:[#allocation48_spill] sm:$0xff] %v9200_v11 }
 0x2c0   :  { %13991 = vst [vmem:[#allocation112_spill] sm:$0xff] %v9205_v26  ;;  %v761_v6 = vadd.f32 %v8505_v16, %v721_v58  ;;  %v14003_v58 = vld [vmem:[#allocation59_spill] sm:$0xff] }
 0x2c2   :  { %v645_v21 = vpop.permute.xlu2 %644 }
 0x2c5   :  { %v9177_v49 = vld [vmem:[#allocation1] sm:$0xff] }
 0x2c6   :  { %13986 = vst [vmem:[#allocation43_spill] sm:$0xff] %v9177_v49 }
 0x2c7   :  { %2253 = vst [vmem:[#allocation1 + $0x7] ss:$9 sm:$0xff] %v8959_v15 }
 0x2c8   :  { %2246 = vst [vmem:[#allocation1] ss:$9 sm:$0xff] %v8639_v30  ;;  %v747_v30 = vadd.f32 %v8505_v16, %v707_v1 }
 0x2c9   :  { %2247 = vst [vmem:[#allocation1 + $0x1] ss:$9 sm:$0xff] %v8941_v45  ;;  %v888_v45 = vrot.slane %v816_v3, 3 }
 0x2ca   :  { %2248 = vst [vmem:[#allocation1 + $0x2] ss:$9 sm:$0xff] %v8660_v63  ;;  %v783_v33 = vmax.f32 %v747_v30, 0.0 }
 0x2cb   :  { %2249 = vst [vmem:[#allocation1 + $0x3] ss:$9 sm:$0xff] %v8948_v34  ;;  %v9197_v15 = vsel %vm918_vm3, %v816_v3, %v888_v45  ;;  %v1044_v34 = vsel %vm922_vm4, %v816_v3, %v888_v45  ;;  %v1047_v24 = vsel %vm926_vm5, %v816_v3, %v888_v45  ;;  %v9212_v1 = vsel %vm914_vm2, %v816_v3, %v888_v45  ;;  %v13998_v3 = vld [vmem:[#allocation53_spill] sm:$0xff] }
 0x2cc   :  { %2250 = vst [vmem:[#allocation1 + $0x4] ss:$9 sm:$0xff] %v8670_v5  ;;  %v9214_v52 = vrot.slane %v1044_v34, 2  ;;  %v9216_v42 = vpack.c.bf16 %v783_v33, %v783_v33  ;;  %v9219_v53 = vrot.slane %v1047_v24, 3  ;;  %v705_v33 = vmax.f32 %v8887_v23, %v609_v37 }
 0x2cd   :  { %2251 = vst [vmem:[#allocation1 + $0x5] ss:$9 sm:$0xff] %v8677_v57  ;;  %v9202_v57 = vrot.slane %v1029_v40, 1  ;;  %v643_v40 = vpop.permute.xlu1 %642  ;;  %v9503_v49 = vrot.slane %v9197_v15, 1 }
 0x2ce   :  { %2252 = vst [vmem:[#allocation1 + $0x6] ss:$9 sm:$0xff] %v8686_v0  ;;  %v9223_v30 = vrot.slane %v9216_v42, 3  ;;  %v722_v24 = vmax.f32 %v13998_v3, %v643_v40  ;;  %v745_v36 = vadd.f32 %v8505_v16, %v705_v33  ;;  %v723_v40 = vmax.f32 %v8945_v44, %v645_v21  ;;  %v9267_v44 = vld [vmem:[%s13246_s2] ss:$0 sm:$0xff]  ;;  %v14004_v33 = vld [vmem:[#allocation60_spill] sm:$0xff] }
 0x2cf   :  { %13990 = vst [vmem:[#allocation52_spill] sm:$0xff] %v9202_v57  ;;  %v1654_v9 = vshll.u32 %v9503_v49, 16 }
 0x2d0   :  { %13993 = vst [vmem:[#allocation114_spill] sm:$0xff] %v9212_v1  ;;  %v9230_v45 = vsel %vm914_vm2, %v9216_v42, %v9223_v30  ;;  %v9235_v34 = vsel %vm918_vm3, %v9216_v42, %v9223_v30  ;;  %v762_v27 = vadd.f32 %v8505_v16, %v722_v24 }
 0x2d1   :  { %13994 = vst [vmem:[#allocation115_spill] sm:$0xff] %v9214_v52 }
 0x2d2   :  { %13995 = vst [vmem:[#allocation116_spill] sm:$0xff] %v9219_v53 }
 0x2d3   :  { %13996 = vst [vmem:[#allocation117_spill] sm:$0xff] %v9230_v45  ;;  %v781_v45 = vmax.f32 %v745_v36, 0.0 }
 0x2d4   :  { %13997 = vst [vmem:[#allocation118_spill] sm:$0xff] %v9235_v34  ;;  %v797_v34 = vmax.f32 %v761_v6, 0.0 }
 0x2d5   :  { %v9208_v12 = vld [vmem:[#allocation1] sm:$0xff]  ;;  %v9244_v14 = vpack.c.bf16 %v781_v45, %v781_v45  ;;  %v615_v37 = vpop.permute.xlu1 %614  ;;  %14002 = vst [vmem:[#allocation119_spill] sm:$0xff] %v9267_v44  ;;  %v619_v45 = vpop.permute.xlu0 %618 }
 0x2d6   :  { %13992 = vst [vmem:[#allocation113_spill] sm:$0xff] %v9208_v12  ;;  %v798_v12 = vmax.f32 %v762_v27, 0.0  ;;  %v9262_v6 = vpack.c.bf16 %v797_v34, %v797_v34  ;;  %v708_v29 = vmax.f32 %v14003_v58, %v615_v37 }
 0x2d7   :  { %2260 = vst [vmem:[#allocation1] ss:$9 sm:$0xff] %v9200_v11  ;;  %v9248_v23 = vrot.slane %v9244_v14, 3 }
 0x2d8   :  { %2262 = vst [vmem:[#allocation1 + $0x1] ss:$9 sm:$0xff] %v9202_v57  ;;  %v9250_v3 = vpack.c.bf16 %v798_v12, %v798_v12  ;;  %v763_v12 = vadd.f32 %v9267_v44, %v723_v40  ;;  %v9277_v34 = vrot.slane %v9262_v6, 3 }
 0x2d9   :  { %2264 = vst [vmem:[#allocation1 + $0x2] ss:$9 sm:$0xff] %v9205_v26  ;;  %v1053_v2 = vsel %vm918_vm3, %v9244_v14, %v9248_v23  ;;  %v1056_v16 = vsel %vm922_vm4, %v9244_v14, %v9248_v23  ;;  %v9517_v15 = vsel %vm914_vm2, %v9244_v14, %v9248_v23 }
 0x2da   :  { %2266 = vst [vmem:[#allocation1 + $0x3] ss:$9 sm:$0xff] %v9212_v1  ;;  %v9258_v36 = vrot.slane %v1053_v2, 1  ;;  %v9260_v27 = vrot.slane %v1056_v16, 2  ;;  %v9272_v21 = vrot.slane %v9250_v3, 3  ;;  %v799_v24 = vmax.f32 %v763_v12, 0.0  ;;  %v617_v12 = vpop.permute.xlu2 %616 }
 0x2db   :  { %2268 = vst [vmem:[#allocation1 + $0x4] ss:$9 sm:$0xff] %v9214_v52  ;;  %v710_v2 = vmax.f32 %v14004_v33, %v619_v45  ;;  %v748_v16 = vadd.f32 %v9267_v44, %v708_v29  ;;  %v1245_v37 = vsel %vm918_vm3, %v9262_v6, %v9277_v34  ;;  %v1251_v29 = vsel %vm926_vm5, %v9262_v6, %v9277_v34 }
 0x2dc   :  { %2270 = vst [vmem:[#allocation1 + $0x5] ss:$9 sm:$0xff] %v9219_v53  ;;  %v1260_v40 = vsel %vm922_vm4, %v9250_v3, %v9272_v21  ;;  %v1263_v4 = vsel %vm926_vm5, %v9250_v3, %v9272_v21  ;;  %v9290_v58 = vpack.c.bf16 %v799_v24, %v799_v24  ;;  %v9295_v45 = vsel %vm914_vm2, %v9250_v3, %v9272_v21 }
 0x2dd   :  { %14000 = vst [vmem:[#allocation53_spill] sm:$0xff] %v9258_v36  ;;  %v649_v35 = vpop.permute.xlu1 %648  ;;  %v9300_v33 = vrot.slane %v1260_v40, 2  ;;  %v750_v24 = vadd.f32 %v9267_v44, %v710_v2  ;;  %v9309_v32 = vrot.slane %v1263_v4, 3  ;;  %v9312_v19 = vrot.slane %v1245_v37, 1 }
 0x2de   :  { %14001 = vst [vmem:[#allocation58_spill] sm:$0xff] %v9260_v27  ;;  %v9305_v25 = vrot.slane %v9290_v58, 3  ;;  %v725_v56 = vmax.f32 %v14008_v8, %v649_v35  ;;  %v784_v51 = vmax.f32 %v748_v16, 0.0  ;;  %v709_v60 = vmax.f32 %v8978_v50, %v617_v12  ;;  %v653_v12 = vpop.permute.xlu0 %652 }
 0x2df   :  { %2272 = vst [vmem:[#allocation1 + $0x6] ss:$9 sm:$0xff] %v9258_v36  ;;  %v9316_v40 = vrot.slane %v1251_v29, 3  ;;  %v9328_v4 = vsel %vm914_vm2, %v9262_v6, %v9277_v34  ;;  %v786_v2 = vmax.f32 %v750_v24, 0.0 }
 0x2e0   :  { %2274 = vst [vmem:[#allocation1 + $0x7] ss:$9 sm:$0xff] %v9260_v27  ;;  %v1272_v8 = vsel %vm922_vm4, %v9290_v58, %v9305_v25  ;;  %v765_v16 = vadd.f32 %v9267_v44, %v725_v56  ;;  %v749_v37 = vadd.f32 %v9267_v44, %v709_v60  ;;  %v9338_v29 = vpack.c.bf16 %v784_v51, %v784_v51 }
 0x2e1   :  { %14005 = vst [vmem:[#allocation59_spill] sm:$0xff] %v9295_v45  ;;  %v9333_v50 = vrot.slane %v1272_v8, 2  ;;  %v9341_v31 = vpack.c.bf16 %v786_v2, %v786_v2  ;;  %v14015_v8 = vld [vmem:[#allocation66_spill] sm:$0xff] }
 0x2e2   :  { %14006 = vst [vmem:[#allocation60_spill] sm:$0xff] %v9300_v33  ;;  %v785_v18 = vmax.f32 %v749_v37, 0.0  ;;  %v727_v61 = vmax.f32 %v14015_v8, %v653_v12  ;;  %v9350_v51 = vrot.slane %v9338_v29, 3  ;;  %v1080_v37 = vsel %vm922_vm4, %v9216_v42, %v9223_v30 }
 0x2e3   :  { %14009 = vst [vmem:[#allocation65_spill] sm:$0xff] %v9309_v32  ;;  %v9347_v56 = vrot.slane %v9341_v31, 3 }
 0x2e4   :  { %14010 = vst [vmem:[#allocation121_spill] sm:$0xff] %v9312_v19  ;;  %v9352_v20 = vpack.c.bf16 %v785_v18, %v785_v18  ;;  %v767_v12 = vadd.f32 %v9267_v44, %v727_v61  ;;  %v1083_v18 = vsel %vm926_vm5, %v9216_v42, %v9223_v30  ;;  %v1092_v61 = vsel %vm922_vm4, %v9338_v29, %v9350_v51 }
 0x2e5   :  { %14011 = vst [vmem:[#allocation122_spill] sm:$0xff] %v9316_v40  ;;  %v655_v24 = vpop.permute.xlu1 %654  ;;  %v9357_v2 = vsel %vm922_vm4, %v9341_v31, %v9347_v56  ;;  %v9389_v42 = vrot.slane %v1083_v18, 3 }
 0x2e6   :  { %14012 = vst [vmem:[#allocation123_spill] sm:$0xff] %v9328_v4  ;;  %v9376_v55 = vrot.slane %v9352_v20, 3  ;;  %v803_v0 = vmax.f32 %v767_v12, 0.0 }
 0x2e7   :  { %v9302_v10 = vld [vmem:[#allocation1] sm:$0xff]  ;;  %14014 = vst [vmem:[#allocation125_spill] sm:$0xff] %v9333_v50 }
 0x2e8   :  { %14007 = vst [vmem:[#allocation120_spill] sm:$0xff] %v9302_v10  ;;  %v1269_v10 = vsel %vm918_vm3, %v9290_v58, %v9305_v25  ;;  %v1107_v12 = vsel %vm926_vm5, %v9352_v20, %v9376_v55 }
 0x2e9   :  { %2280 = vst [vmem:[#allocation1 + $0x3] ss:$9 sm:$0xff] %v9295_v45  ;;  %v9330_v35 = vrot.slane %v1269_v10, 1  ;;  %v801_v10 = vmax.f32 %v765_v16, 0.0  ;;  %v9362_v16 = vsel %vm926_vm5, %v9341_v31, %v9347_v56 }
 0x2ea   :  { %2281 = vst [vmem:[#allocation1 + $0x4] ss:$9 sm:$0xff] %v9300_v33 }
 0x2eb   :  { %2282 = vst [vmem:[#allocation1 + $0x5] ss:$9 sm:$0xff] %v9309_v32  ;;  %v837_v60 = vpack.c.bf16 %v801_v10, %v801_v10  ;;  %v728_v10 = vmax.f32 %v8890_v7, %v655_v24 }
 0x2ec   :  { %14013 = vst [vmem:[#allocation124_spill] sm:$0xff] %v9330_v35 }
 0x2ed   :  { %2277 = vst [vmem:[#allocation1] ss:$9 sm:$0xff] %v9328_v4  ;;  %v909_v8 = vrot.slane %v837_v60, 3  ;;  %v768_v43 = vadd.f32 %v9267_v44, %v728_v10  ;;  %v9413_v10 = vsel %vm914_vm2, %v9341_v31, %v9347_v56 }
 0x2ee   :  { %2278 = vst [vmem:[#allocation1 + $0x1] ss:$9 sm:$0xff] %v9312_v19 }
 0x2ef   :  { %2279 = vst [vmem:[#allocation1 + $0x2] ss:$9 sm:$0xff] %v9316_v40  ;;  %v9384_v7 = vsel %vm914_vm2, %v837_v60, %v909_v8  ;;  %v9387_v24 = vsel %vm918_vm3, %v837_v60, %v909_v8  ;;  %v1296_v39 = vsel %vm922_vm4, %v837_v60, %v909_v8  ;;  %v1299_v54 = vsel %vm926_vm5, %v837_v60, %v909_v8 }
 0x2f0   :  { %2283 = vst [vmem:[#allocation1 + $0x6] ss:$9 sm:$0xff] %v9330_v35  ;;  %v9458_v8 = vrot.slane %v1299_v54, 3 }
 0x2f1   :  { %2284 = vst [vmem:[#allocation1 + $0x7] ss:$9 sm:$0xff] %v9333_v50 }
 0x2f2   :  { %14016 = vst [vmem:[#allocation66_spill] sm:$0xff] %v9357_v2  ;;  %v1089_v2 = vsel %vm918_vm3, %v9338_v29, %v9350_v51 }
 0x2f3   :  { %14017 = vst [vmem:[#allocation126_spill] sm:$0xff] %v9362_v16  ;;  %v9378_v16 = vrot.slane %v1080_v37, 2  ;;  %v9394_v5 = vrot.slane %v1089_v2, 1  ;;  %v9397_v37 = vrot.slane %v1092_v61, 2  ;;  %v651_v2 = vpop.permute.xlu2 %650  ;;  %v9415_v61 = vrot.slane %v1107_v12, 3 }
 0x2f4   :  { %14019 = vst [vmem:[#allocation128_spill] sm:$0xff] %v9384_v7  ;;  %v1101_v7 = vsel %vm918_vm3, %v9352_v20, %v9376_v55  ;;  %v726_v62 = vmax.f32 %v9019_v41, %v651_v2 }
 0x2f5   :  { %14018 = vst [vmem:[#allocation127_spill] sm:$0xff] %v9378_v16  ;;  %v9404_v18 = vrot.slane %v1101_v7, 1  ;;  %v9423_v7 = vsel %vm914_vm2, %v9352_v20, %v9376_v55 }
 0x2f6   :  { %14020 = vst [vmem:[#allocation129_spill] sm:$0xff] %v9387_v24  ;;  %v9417_v24 = vpack.c.bf16 %v803_v0, %v803_v0  ;;  %v766_v63 = vadd.f32 %v9267_v44, %v726_v62  ;;  %v9456_v44 = vrot.slane %v1296_v39, 2 }
 0x2f7   :  { %14021 = vst [vmem:[#allocation130_spill] sm:$0xff] %v9389_v42 }
 0x2f8   :  { %v9391_v30 = vld [vmem:[#allocation1] sm:$0xff]  ;;  %14023 = vst [vmem:[#allocation132_spill] sm:$0xff] %v9394_v5  ;;  %v9430_v12 = vrot.slane %v9417_v24, 3  ;;  %v802_v60 = vmax.f32 %v766_v63, 0.0 }
 0x2f9   :  { %14022 = vst [vmem:[#allocation131_spill] sm:$0xff] %v9391_v30  ;;  %v804_v30 = vmax.f32 %v768_v43, 0.0 }
 0x2fa   :  { %2291 = vst [vmem:[#allocation1] ss:$9 sm:$0xff] %v9378_v16  ;;  %v1317_v41 = vsel %vm918_vm3, %v9417_v24, %v9430_v12  ;;  %v1323_v62 = vsel %vm926_vm5, %v9417_v24, %v9430_v12  ;;  %v9467_v59 = vpack.c.bf16 %v802_v60, %v802_v60  ;;  %v9473_v39 = vsel %vm914_vm2, %v9417_v24, %v9430_v12 }
 0x2fb   :  { %14024 = vst [vmem:[#allocation133_spill] sm:$0xff] %v9397_v37  ;;  %v9432_v0 = vpack.c.bf16 %v804_v30, %v804_v30  ;;  %v9462_v22 = vrot.slane %v1317_v41, 1 }
 0x2fc   :  { %2293 = vst [vmem:[#allocation1 + $0x1] ss:$9 sm:$0xff] %v9389_v42  ;;  %v9477_v54 = vrot.slane %v9467_v59, 3 }
 0x2fd   :  { %2295 = vst [vmem:[#allocation1 + $0x2] ss:$9 sm:$0xff] %v9394_v5  ;;  %v9435_v43 = vrot.slane %v9432_v0, 3 }
 0x2fe   :  { %14025 = vst [vmem:[#allocation134_spill] sm:$0xff] %v9404_v18  ;;  %v1305_v41 = vsel %vm918_vm3, %v9467_v59, %v9477_v54 }
 0x2ff   :  { %2297 = vst [vmem:[#allocation1 + $0x3] ss:$9 sm:$0xff] %v9397_v37  ;;  %v9446_v2 = vsel %vm922_vm4, %v9432_v0, %v9435_v43  ;;  %v9451_v30 = vsel %vm926_vm5, %v9432_v0, %v9435_v43  ;;  %v9484_v63 = vsel %vm914_vm2, %v9432_v0, %v9435_v43  ;;  %v9493_v60 = vrot.slane %v1305_v41, 1 }
 0x300   :  { %14026 = vst [vmem:[#allocation135_spill] sm:$0xff] %v9413_v10  ;;  %v1633_v41 = vshrl.u32 %v9202_v57, 16 }
 0x301   :  { %14027 = vst [vmem:[#allocation136_spill] sm:$0xff] %v9415_v61 }
 0x302   :  { %2305 = vst [vmem:[#allocation1 + $0x7] ss:$9 sm:$0xff] %v9413_v10 }
 0x303   :  { %14028 = vst [vmem:[#allocation137_spill] sm:$0xff] %v9423_v7 }
 0x304   :  { %2299 = vst [vmem:[#allocation1 + $0x4] ss:$9 sm:$0xff] %v9423_v7 }
 0x305   :  { %2301 = vst [vmem:[#allocation1 + $0x5] ss:$9 sm:$0xff] %v9404_v18 }
 0x306   :  { %2303 = vst [vmem:[#allocation1 + $0x6] ss:$9 sm:$0xff] %v9415_v61 }
 0x307   :  { %14029 = vst [vmem:[#allocation138_spill] sm:$0xff] %v9446_v2  ;;  %v9465_v2 = vrot.slane %v1323_v62, 3  ;;  %v1308_v62 = vsel %vm922_vm4, %v9467_v59, %v9477_v54 }
 0x308   :  { %14030 = vst [vmem:[#allocation139_spill] sm:$0xff] %v9451_v30  ;;  %v9495_v30 = vrot.slane %v1308_v62, 2 }
 0x309   :  { %14031 = vst [vmem:[#allocation140_spill] sm:$0xff] %v9456_v44 }
 0x30a   :  { %14032 = vst [vmem:[#allocation141_spill] sm:$0xff] %v9458_v8 }
 0x30b   :  { %14034 = vst [vmem:[#allocation143_spill] sm:$0xff] %v9462_v22 }
 0x30c   :  { %14035 = vst [vmem:[#allocation144_spill] sm:$0xff] %v9465_v2 }
 0x30d   :  { %v9460_v47 = vld [vmem:[#allocation1] sm:$0xff]  ;;  %14036 = vst [vmem:[#allocation145_spill] sm:$0xff] %v9473_v39 }
 0x30e   :  { %14033 = vst [vmem:[#allocation142_spill] sm:$0xff] %v9460_v47  ;;  %v9499_v47 = vrot.slane %v9183_v28, 2  ;;  %v1625_v28 = vshrl.u32 %v9200_v11, 16  ;;  %v1663_v11 = vshll.u32 %v9219_v53, 16 }
 0x30f   :  { %2308 = vst [vmem:[#allocation1] ss:$9 sm:$0xff] %v9456_v44 }
 0x310   :  { %2309 = vst [vmem:[#allocation1 + $0x1] ss:$9 sm:$0xff] %v9458_v8  ;;  %v1638_v62 = vshll.u32 %v9499_v47, 16 }
 0x311   :  { %2312 = vst [vmem:[#allocation1 + $0x4] ss:$9 sm:$0xff] %v9473_v39  ;;  %v1646_v39 = vshll.u32 %v9212_v1, 16 }
 0x312   :  { %2313 = vst [vmem:[#allocation1 + $0x5] ss:$9 sm:$0xff] %v9462_v22  ;;  %v1642_v22 = vshrl.u32 %v9205_v26, 16  ;;  %v1679_v26 = vshll.u32 %v9260_v27, 16 }
 0x313   :  { %2314 = vst [vmem:[#allocation1 + $0x6] ss:$9 sm:$0xff] %v9465_v2  ;;  %v1630_v2 = vshll.u32 %v9202_v57, 16 }
 0x314   :  { %14037 = vst [vmem:[#allocation146_spill] sm:$0xff] %v9484_v63 }
 0x315   :  { %2315 = vst [vmem:[#allocation1 + $0x7] ss:$9 sm:$0xff] %v9484_v63  ;;  %v1059_v63 = vsel %vm926_vm5, %v9244_v14, %v9248_v23  ;;  %v9524_v57 = vsel %vm8861_vm8, %v1625_v28, %v1630_v2  ;;  %v9533_v14 = vsel %vm8861_vm8, %v1633_v41, %v1638_v62  ;;  %v9537_v23 = vsel %vm8861_vm8, %v1642_v22, %v1646_v39  ;;  %v449_v41 = vpop.permute.xlu0 %448  ;;  %v413_v62 = vpop.permute.xlu2 %412 }
 0x316   :  { %14038 = vst [vmem:[#allocation147_spill] sm:$0xff] %v9493_v60  ;;  %v1666_v28 = vshrl.u32 %v9219_v53, 16  ;;  %v1682_v22 = vshrl.u32 %v9260_v27, 16 }
 0x317   :  { %14039 = vst [vmem:[#allocation148_spill] sm:$0xff] %v9495_v30 }
 0x318   :  { %2310 = vst [vmem:[#allocation1 + $0x2] ss:$9 sm:$0xff] %v9493_v60  ;;  %v1658_v60 = vshrl.u32 %v9214_v52, 16  ;;  %v1674_v52 = vshrl.u32 %v9258_v36, 16 }
 0x319   :  { %14040 = vst [vmem:[#allocation149_spill] sm:$0xff] %v9499_v47  ;;  %v1649_v47 = vshrl.u32 %v9212_v1, 16 }
 0x31a   :  { %2311 = vst [vmem:[#allocation1 + $0x3] ss:$9 sm:$0xff] %v9495_v30  ;;  %v9520_v30 = vrot.slane %v1059_v63, 3  ;;  %v1670_v63 = vshll.u32 %v9517_v15, 16 }
 0x31b   :  { %14041 = vst [vmem:[#allocation150_spill] sm:$0xff] %v9503_v49  ;;  %v9543_v2 = vsel %vm8861_vm8, %v1649_v47, %v1654_v9  ;;  %v9556_v47 = vmax.f32 %v13964_v46, %v413_v62  ;;  %v9560_v9 = vsel %vm8861_vm8, %v1658_v60, %v1663_v11  ;;  %v1257_v46 = vsel %vm918_vm3, %v9250_v3, %v9272_v21  ;;  %v14056_v62 = vld [vmem:[#allocation9_spill] sm:$0xff] }
 0x31c   :  { %14042 = vst [vmem:[#allocation151_spill] sm:$0xff] %v9517_v15  ;;  %v1687_v39 = vshll.u32 %v9520_v30, 16  ;;  %v1275_v60 = vsel %vm926_vm5, %v9290_v58, %v9305_v25  ;;  %v1698_v3 = vshrl.u32 %v9312_v19, 16 }
 0x31d   :  { %14043 = vst [vmem:[#allocation152_spill] sm:$0xff] %v9520_v30  ;;  %592 = vrot.lane.b32.xlu1 %v9556_v47, %s8243_s16 }
 0x31e   :  { %14044 = vst [vmem:[#allocation153_spill] sm:$0xff] %v9524_v57  ;;  %v9585_v11 = vsel %vm8861_vm8, %v1682_v22, %v1687_v39  ;;  %v9611_v39 = vrot.slane %v1275_v60, 3 }
 0x31f   :  { %14045 = vst [vmem:[#allocation154_spill] sm:$0xff] %v9533_v14 }
 0x320   :  { %14046 = vst [vmem:[#allocation155_spill] sm:$0xff] %v9537_v23 }
 0x321   :  { %v9529_v49 = vld [vmem:[#allocation1] sm:$0xff]  ;;  %14047 = vst [vmem:[#allocation156_spill] sm:$0xff] %v9543_v2 }
 0x322   :  { %2323 = vst [vmem:[#allocation1] ss:$9 sm:$0xff] %v9524_v57  ;;  %v9553_v57 = vmax.f32 %v8431_v48, %v449_v41  ;;  %v9577_v48 = vsel %vm8861_vm8, %v1674_v52, %v1679_v26  ;;  %v423_v52 = vpop.permute.xlu2 %422  ;;  %v1695_v26 = vshll.u32 %v9312_v19, 16  ;;  %v14055_v41 = vld [vmem:[#allocation10_spill] sm:$0xff] }
 0x323   :  { %2326 = vst [vmem:[#allocation1 + $0x1] ss:$9 sm:$0xff] %v9533_v14  ;;  %v9565_v14 = vsel %vm8861_vm8, %v1666_v28, %v1670_v63  ;;  %v1690_v63 = vshrl.u32 %v9328_v4, 16  ;;  %v9604_v28 = vsel %vm914_vm2, %v9290_v58, %v9305_v25  ;;  %v1728_v4 = vshll.u32 %v9309_v32, 16 }
 0x324   :  { %2329 = vst [vmem:[#allocation1 + $0x2] ss:$9 sm:$0xff] %v9537_v23  ;;  %v1248_v23 = vsel %vm922_vm4, %v9262_v6, %v9277_v34  ;;  %628 = vrot.lane.b32.xlu0 %v9553_v57, %s8243_s16  ;;  %v9591_v34 = vrot.slane %v1257_v46, 1  ;;  %v1723_v46 = vshrl.u32 %v9300_v33, 16  ;;  %v1711_v25 = vshll.u32 %v9295_v45, 16 }
 0x325   :  { %14048 = vst [vmem:[#allocation157_spill] sm:$0xff] %v9560_v9  ;;  %v9588_v6 = vrot.slane %v1248_v23, 2  ;;  %v1707_v23 = vshrl.u32 %v9316_v40, 16  ;;  %458 = vrot.lane.b32.xlu1 %v14056_v62, %s8242_s19  ;;  %v1735_v60 = vshll.u32 %v9604_v28, 16 }
 0x326   :  { %2332 = vst [vmem:[#allocation1 + $0x3] ss:$9 sm:$0xff] %v9543_v2  ;;  %v1719_v22 = vshll.u32 %v9591_v34, 16 }
 0x327   :  { %14049 = vst [vmem:[#allocation158_spill] sm:$0xff] %v9565_v14  ;;  %v1703_v21 = vshll.u32 %v9588_v6, 16 }
 0x328   :  { %2335 = vst [vmem:[#allocation1 + $0x4] ss:$9 sm:$0xff] %v9560_v9  ;;  %v9631_v9 = vsel %vm8861_vm8, %v1707_v23, %v1711_v25  ;;  %v9646_v25 = vsel %vm8861_vm8, %v1723_v46, %v1728_v4  ;;  %v9681_v4 = vsel %vm914_vm2, %v9338_v29, %v9350_v51 }
 0x329   :  { %14050 = vst [vmem:[#allocation159_spill] sm:$0xff] %v9577_v48 }
 0x32a   :  { %2338 = vst [vmem:[#allocation1 + $0x5] ss:$9 sm:$0xff] %v9565_v14  ;;  %v9625_v14 = vsel %vm8861_vm8, %v1698_v3, %v1703_v21  ;;  %v1731_v3 = vshrl.u32 %v9309_v32, 16  ;;  %v1747_v21 = vshrl.u32 %v9333_v50, 16  ;;  %v431_v23 = vpop.permute.xlu2 %430 }
 0x32b   :  { %14051 = vst [vmem:[#allocation160_spill] sm:$0xff] %v9585_v11 }
 0x32c   :  { %2341 = vst [vmem:[#allocation1 + $0x6] ss:$9 sm:$0xff] %v9577_v48  ;;  %466 = vrot.lane.b32.xlu0 %v14055_v41, %s8242_s19  ;;  %v1714_v48 = vshrl.u32 %v9295_v45, 16 }
 0x32d   :  { %14052 = vst [vmem:[#allocation161_spill] sm:$0xff] %v9588_v6 }
 0x32e   :  { %2344 = vst [vmem:[#allocation1 + $0x7] ss:$9 sm:$0xff] %v9585_v11  ;;  %v9617_v11 = vsel %vm8861_vm8, %v1690_v63, %v1695_v26  ;;  %v1739_v26 = vshrl.u32 %v9330_v35, 16  ;;  %v1744_v63 = vshll.u32 %v9333_v50, 16  ;;  %v9638_v2 = vsel %vm8861_vm8, %v1714_v48, %v1719_v22 }
 0x32f   :  { %14053 = vst [vmem:[#allocation162_spill] sm:$0xff] %v9591_v34  ;;  %v9653_v48 = vmax.f32 %v13981_v17, %v431_v23  ;;  %v9657_v22 = vsel %vm8861_vm8, %v1731_v3, %v1735_v60  ;;  %v1756_v60 = vshrl.u32 %v9378_v16, 16 }
 0x330   :  { %14054 = vst [vmem:[#allocation163_spill] sm:$0xff] %v9604_v28 }
 0x331   :  { %14057 = vst [vmem:[#allocation10_spill] sm:$0xff] %v9611_v39 }
 0x332   :  { %14058 = vst [vmem:[#allocation9_spill] sm:$0xff] %v9617_v11 }
 0x333   :  { %14059 = vst [vmem:[#allocation164_spill] sm:$0xff] %v9625_v14 }
 0x334   :  { %14060 = vst [vmem:[#allocation165_spill] sm:$0xff] %v9631_v9  ;;  %610 = vrot.lane.b32.xlu0 %v9653_v48, %s8243_s16 }
 0x335   :  { %v9620_v58 = vld [vmem:[#allocation1] sm:$0xff]  ;;  %14061 = vst [vmem:[#allocation166_spill] sm:$0xff] %v9638_v2 }
 0x336   :  { %2348 = vst [vmem:[#allocation1] ss:$9 sm:$0xff] %v9617_v11  ;;  %v1752_v11 = vshll.u32 %v9611_v39, 16 }
 0x337   :  { %2350 = vst [vmem:[#allocation1 + $0x1] ss:$9 sm:$0xff] %v9625_v14  ;;  %v9650_v14 = vmax.f32 %v13970_v13, %v423_v52  ;;  %v1095_v13 = vsel %vm926_vm5, %v9338_v29, %v9350_v51  ;;  %v1104_v52 = vsel %vm922_vm4, %v9352_v20, %v9376_v55  ;;  %v9696_v29 = vpop.f32.mrf.mxu0  ;;  %v1772_v51 = vshrl.u32 %v9394_v5, 16 }
 0x338   :  { %2352 = vst [vmem:[#allocation1 + $0x2] ss:$9 sm:$0xff] %v9631_v9  ;;  %v9662_v9 = vsel %vm8861_vm8, %v1739_v26, %v1744_v63  ;;  %v9674_v17 = vsel %vm8861_vm8, %v1747_v21, %v1752_v11  ;;  %v9686_v46 = vrot.slane %v1095_v13, 3  ;;  %v1761_v11 = vshll.u32 %v9389_v42, 16 }
 0x339   :  { %14062 = vst [vmem:[#allocation167_spill] sm:$0xff] %v9646_v25  ;;  %602 = vrot.lane.b32.xlu1 %v9650_v14, %s8243_s16  ;;  %v1113_v26 = vsel %vm918_vm3, %v9341_v31, %v9347_v56  ;;  %v1768_v63 = vshll.u32 %v9681_v4, 16  ;;  %v9694_v3 = vrot.slane %v1104_v52, 2  ;;  %v1777_v55 = vshll.u32 %v9397_v37, 16  ;;  %v14070_v31 = vld [vmem:[#allocation8_spill] sm:$0xff] }
 0x33a   :  { %2354 = vst [vmem:[#allocation1 + $0x3] ss:$9 sm:$0xff] %v9638_v2  ;;  %v1764_v20 = vshrl.u32 %v9389_v42, 16  ;;  %v1780_v21 = vshrl.u32 %v9397_v37, 16  ;;  %v1785_v23 = vshll.u32 %v9686_v46, 16  ;;  %v9703_v13 = vrot.slane %v1113_v26, 1 }
 0x33b   :  { %14063 = vst [vmem:[#allocation168_spill] sm:$0xff] %v9657_v22  ;;  %v9711_v56 = vsel %vm8861_vm8, %v1756_v60, %v1761_v11  ;;  %v1793_v52 = vshll.u32 %v9404_v18, 16  ;;  %v1796_v26 = vshrl.u32 %v9404_v18, 16  ;;  %v9725_v16 = vsel %vm8861_vm8, %v1772_v51, %v1777_v55  ;;  %v14159_v2 = vld [vmem:[#allocation77_spill] sm:$0xff] }
 0x33c   :  { %2356 = vst [vmem:[#allocation1 + $0x4] ss:$9 sm:$0xff] %v9646_v25  ;;  %476 = vrot.lane.b32.xlu0 %v9696_v29, %s8242_s19  ;;  %v9718_v42 = vsel %vm8861_vm8, %v1764_v20, %v1768_v63  ;;  %v1788_v60 = vshrl.u32 %v9423_v7, 16  ;;  %v1805_v11 = vshrl.u32 %v9415_v61, 16  ;;  %v9732_v63 = vsel %vm8861_vm8, %v1780_v21, %v1785_v23 }
 0x33d   :  { %14064 = vst [vmem:[#allocation169_spill] sm:$0xff] %v9662_v9  ;;  %v1817_v20 = vshll.u32 %v9703_v13, 16  ;;  %v1812_v55 = vshrl.u32 %v9413_v10, 16 }
 0x33e   :  { %2358 = vst [vmem:[#allocation1 + $0x5] ss:$9 sm:$0xff] %v9657_v22  ;;  %v9739_v51 = vsel %vm8861_vm8, %v1788_v60, %v1793_v52  ;;  %v1311_v52 = vsel %vm926_vm5, %v9467_v59, %v9477_v54  ;;  %v14146_v22 = vld [vmem:[#allocation51_spill] sm:$0xff] }
 0x33f   :  { %14065 = vst [vmem:[#allocation170_spill] sm:$0xff] %v9674_v17  ;;  %v9755_v23 = vsel %vm8861_vm8, %v1812_v55, %v1817_v20  ;;  %v9772_v60 = vrot.slane %v1311_v52, 3  ;;  %v1826_v20 = vshll.u32 %v9458_v8, 16  ;;  %v1329_v55 = vsel %vm918_vm3, %v9432_v0, %v9435_v43  ;;  %v14087_v0 = vld [vmem:[#allocation143_spill] sm:$0xff] }
 0x340   :  { %2360 = vst [vmem:[#allocation1 + $0x6] ss:$9 sm:$0xff] %v9662_v9  ;;  %v1858_v43 = vshll.u32 %v14087_v0, 16 }
 0x341   :  { %2362 = vst [vmem:[#allocation1 + $0x7] ss:$9 sm:$0xff] %v9674_v17  ;;  %440 = vrot.lane.b32.xlu1 %v14070_v31, %s8242_s19 }
 0x342   :  { %14066 = vst [vmem:[#allocation171_spill] sm:$0xff] %v9681_v4 }
 0x343   :  { %14067 = vst [vmem:[#allocation172_spill] sm:$0xff] %v9686_v46  ;;  %v1801_v46 = vshll.u32 %v9694_v3, 16 }
 0x344   :  { %14068 = vst [vmem:[#allocation173_spill] sm:$0xff] %v9694_v3  ;;  %v1809_v3 = vshll.u32 %v9413_v10, 16 }
 0x345   :  { %14069 = vst [vmem:[#allocation174_spill] sm:$0xff] %v9703_v13 }
 0x346   :  { %14071 = vst [vmem:[#allocation8_spill] sm:$0xff] %v9711_v56  ;;  %v9750_v21 = vsel %vm8861_vm8, %v1805_v11, %v1809_v3  ;;  %v1320_v3 = vsel %vm922_vm4, %v9417_v24, %v9430_v12  ;;  %v1821_v11 = vshrl.u32 %v9456_v44, 16  ;;  %v14083_v24 = vld [vmem:[#allocation147_spill] sm:$0xff]  ;;  %v1850_v44 = vshll.u32 %v9772_v60, 16 }
 0x347   :  { %14072 = vst [vmem:[#allocation175_spill] sm:$0xff] %v9718_v42  ;;  %v1837_v12 = vshrl.u32 %v14083_v24, 16 }
 0x348   :  { %v9714_v4 = vld [vmem:[#allocation1] sm:$0xff]  ;;  %14073 = vst [vmem:[#allocation176_spill] sm:$0xff] %v9725_v16 }
 0x349   :  { %2370 = vst [vmem:[#allocation1] ss:$9 sm:$0xff] %v9711_v56  ;;  %v14084_v56 = vld [vmem:[#allocation148_spill] sm:$0xff] }
 0x34a   :  { %2373 = vst [vmem:[#allocation1 + $0x1] ss:$9 sm:$0xff] %v9718_v42  ;;  %v9745_v42 = vsel %vm8861_vm8, %v1796_v26, %v1801_v46  ;;  %v14079_v46 = vld [vmem:[#allocation47_spill] sm:$0xff]  ;;  %v9770_v26 = vsel %vm914_vm2, %v9467_v59, %v9477_v54  ;;  %v9784_v59 = vrot.slane %v1329_v55, 1  ;;  %v1829_v54 = vshrl.u32 %v9458_v8, 16 }
 0x34b   :  { %14074 = vst [vmem:[#allocation177_spill] sm:$0xff] %v9732_v63  ;;  %2131 = vrot.lane.b32.xlu0 %v14079_v46, %s8244_s21  ;;  %v9779_v46 = vrot.slane %v1320_v3, 2  ;;  %v1833_v13 = vshll.u32 %v9770_v26, 16  ;;  %v1845_v52 = vshrl.u32 %v14084_v56, 16  ;;  %v1861_v55 = vshrl.u32 %v14087_v0, 16 }
 0x34c   :  { %2376 = vst [vmem:[#allocation1 + $0x2] ss:$9 sm:$0xff] %v9725_v16  ;;  %v14131_v16 = vld [vmem:[#allocation25_spill] sm:$0xff] }
 0x34d   :  { %14075 = vst [vmem:[#allocation178_spill] sm:$0xff] %v9739_v51  ;;  %v1866_v8 = vshll.u32 %v9779_v46, 16  ;;  %v9972_v17 = vrot.slane %v14131_v16, 2 }
 0x34e   :  { %2379 = vst [vmem:[#allocation1 + $0x3] ss:$9 sm:$0xff] %v9732_v63 }
 0x34f   :  { %14076 = vst [vmem:[#allocation179_spill] sm:$0xff] %v9745_v42 }
 0x350   :  { %2382 = vst [vmem:[#allocation1 + $0x4] ss:$9 sm:$0xff] %v9739_v51 }
 0x351   :  { %14077 = vst [vmem:[#allocation180_spill] sm:$0xff] %v9750_v21 }
 0x352   :  { %2385 = vst [vmem:[#allocation1 + $0x5] ss:$9 sm:$0xff] %v9745_v42  ;;  %v9802_v42 = vsel %vm8861_vm8, %v1829_v54, %v1833_v13  ;;  %v14096_v54 = vld [vmem:[#allocation146_spill] sm:$0xff] }
 0x353   :  { %14078 = vst [vmem:[#allocation181_spill] sm:$0xff] %v9755_v23 }
 0x354   :  { %2388 = vst [vmem:[#allocation1 + $0x6] ss:$9 sm:$0xff] %v9750_v21  ;;  %v9791_v21 = vsel %vm8861_vm8, %v1821_v11, %v1826_v20  ;;  %v14091_v11 = vld [vmem:[#allocation145_spill] sm:$0xff] }
 0x355   :  { %2391 = vst [vmem:[#allocation1 + $0x7] ss:$9 sm:$0xff] %v9755_v23  ;;  %v1842_v23 = vshll.u32 %v14084_v56, 16  ;;  %v1853_v20 = vshrl.u32 %v14091_v11, 16 }
 0x356   :  { %14080 = vst [vmem:[#allocation47_spill] sm:$0xff] %v9770_v26  ;;  %v14089_v26 = vld [vmem:[#allocation111_spill] sm:$0xff] }
 0x357   :  { %14081 = vst [vmem:[#allocation182_spill] sm:$0xff] %v9772_v60  ;;  %2227 = vrot.lane.b32.xlu0 %v14089_v26, %s8245_s22  ;;  %v14092_v60 = vld [vmem:[#allocation144_spill] sm:$0xff]  ;;  %v1882_v26 = vshll.u32 %v9784_v59, 16  ;;  %v9820_v13 = vsel %vm8861_vm8, %v1853_v20, %v1858_v43 }
 0x358   :  { %14082 = vst [vmem:[#allocation183_spill] sm:$0xff] %v9779_v46  ;;  %v1870_v51 = vshrl.u32 %v14092_v60, 16  ;;  %v9815_v46 = vsel %vm8861_vm8, %v1845_v52, %v1850_v44 }
 0x359   :  { %14085 = vst [vmem:[#allocation184_spill] sm:$0xff] %v9784_v59 }
 0x35a   :  { %14086 = vst [vmem:[#allocation185_spill] sm:$0xff] %v9791_v21 }
 0x35b   :  { %14090 = vst [vmem:[#allocation111_spill] sm:$0xff] %v9802_v42 }
 0x35c   :  { %v9794_v3 = vld [vmem:[#allocation1] sm:$0xff]  ;;  %14094 = vst [vmem:[#allocation188_spill] sm:$0xff] %v9815_v46 }
 0x35d   :  { %14088 = vst [vmem:[#allocation186_spill] sm:$0xff] %v9794_v3  ;;  %v9809_v3 = vsel %vm8861_vm8, %v1837_v12, %v1842_v23  ;;  %v9826_v23 = vsel %vm8861_vm8, %v1861_v55, %v1866_v8  ;;  %v1877_v12 = vshrl.u32 %v14096_v54, 16  ;;  %v14100_v8 = vld [vmem:[#allocation43_spill] sm:$0xff]  ;;  %v14102_v55 = vld [vmem:[#allocation52_spill] sm:$0xff] }
 0x35e   :  { %2394 = vst [vmem:[#allocation1] ss:$9 sm:$0xff] %v9791_v21  ;;  %v1874_v21 = vshll.u32 %v14096_v54, 16 }
 0x35f   :  { %14093 = vst [vmem:[#allocation187_spill] sm:$0xff] %v9809_v3  ;;  %v9837_v52 = vsel %vm8861_vm8, %v1877_v12, %v1882_v26  ;;  %2256 = vrot.lane.b32.xlu0 %v14100_v8, %s8246_s23  ;;  %v14106_v26 = vld [vmem:[#allocation16_spill] sm:$0xff]  ;;  %v14107_v12 = vld [vmem:[#allocation17_spill] sm:$0xff] }
 0x360   :  { %2396 = vst [vmem:[#allocation1 + $0x1] ss:$9 sm:$0xff] %v9802_v42  ;;  %v9832_v44 = vsel %vm8861_vm8, %v1870_v51, %v1874_v21  ;;  %v14103_v51 = vld [vmem:[#allocation149_spill] sm:$0xff]  ;;  %v14104_v21 = vld [vmem:[#allocation150_spill] sm:$0xff]  ;;  %v14108_v8 = vld [vmem:[#allocation12_spill] sm:$0xff] }
 0x361   :  { %2398 = vst [vmem:[#allocation1 + $0x2] ss:$9 sm:$0xff] %v9809_v3 }
 0x362   :  { %14095 = vst [vmem:[#allocation189_spill] sm:$0xff] %v9820_v13 }
 0x363   :  { %2400 = vst [vmem:[#allocation1 + $0x3] ss:$9 sm:$0xff] %v9815_v46  ;;  %v14129_v46 = vld [vmem:[#allocation38_spill] sm:$0xff] }
 0x364   :  { %14097 = vst [vmem:[#allocation190_spill] sm:$0xff] %v9826_v23 }
 0x365   :  { %2402 = vst [vmem:[#allocation1 + $0x4] ss:$9 sm:$0xff] %v9820_v13 }
 0x366   :  { %14098 = vst [vmem:[#allocation191_spill] sm:$0xff] %v9832_v44 }
 0x367   :  { %2404 = vst [vmem:[#allocation1 + $0x5] ss:$9 sm:$0xff] %v9826_v23  ;;  %2320 = vrot.lane.b32.xlu0 %v9529_v49, %s8243_s16  ;;  %v14123_v23 = vld [vmem:[#allocation32_spill] sm:$0xff] }
 0x368   :  { %14099 = vst [vmem:[#allocation192_spill] sm:$0xff] %v9837_v52 }
 0x369   :  { %2406 = vst [vmem:[#allocation1 + $0x6] ss:$9 sm:$0xff] %v9832_v44 }
 0x36a   :  { %2408 = vst [vmem:[#allocation1 + $0x7] ss:$9 sm:$0xff] %v9837_v52 }
 0x36b   :  { %14132 = vst [vmem:[#allocation25_spill] sm:$0xff] %v9972_v17 }
 0x36f   :  { %2365 = vrot.lane.b32.xlu0 %v9620_v58, %s8242_s19  ;;  %v14105_v58 = vld [vmem:[#allocation15_spill] sm:$0xff] }
 0x371   :  { %v9843_v43 = vld [vmem:[#allocation1] sm:$0xff] }
 0x372   :  { %14101 = vst [vmem:[#allocation43_spill] sm:$0xff] %v9843_v43  ;;  %v14110_v43 = vld [vmem:[#allocation20_spill] sm:$0xff] }
 0x373   :  { %2410 = vst [vmem:[#allocation1] ss:$9 sm:$0xff] %v14102_v55  ;;  %v14111_v55 = vld [vmem:[#allocation119_spill] sm:$0xff] }
 0x374   :  { %2412 = vst [vmem:[#allocation1 + $0x1] ss:$9 sm:$0xff] %v14103_v51 }
 0x375   :  { %2414 = vst [vmem:[#allocation1 + $0x2] ss:$9 sm:$0xff] %v9212_v1 }
 0x376   :  { %2416 = vst [vmem:[#allocation1 + $0x3] ss:$9 sm:$0xff] %v14104_v21 }
 0x377   :  { %2418 = vst [vmem:[#allocation1 + $0x4] ss:$9 sm:$0xff] %v9219_v53 }
 0x378   :  { %2420 = vst [vmem:[#allocation1 + $0x5] ss:$9 sm:$0xff] %v9517_v15  ;;  %v14119_v15 = vld [vmem:[#allocation29_spill] sm:$0xff] }
 0x379   :  { %2422 = vst [vmem:[#allocation1 + $0x6] ss:$9 sm:$0xff] %v9260_v27 }
 0x37a   :  { %2424 = vst [vmem:[#allocation1 + $0x7] ss:$9 sm:$0xff] %v9520_v30 }
 0x381   :  { %v2425_v20 = vld [vmem:[#allocation1] sm:$0xff] }
 0x382   :  { %2427 = vst [vmem:[#allocation1] ss:$9 sm:$0xff] %v9312_v19  ;;  %2437 = vrot.lane.b32.xlu0 %v2425_v20, %s8244_s21  ;;  %v14109_v20 = vld [vmem:[#allocation19_spill] sm:$0xff] }
 0x383   :  { %2428 = vst [vmem:[#allocation1 + $0x1] ss:$9 sm:$0xff] %v9588_v6 }
 0x384   :  { %2429 = vst [vmem:[#allocation1 + $0x2] ss:$9 sm:$0xff] %v9295_v45 }
 0x385   :  { %2430 = vst [vmem:[#allocation1 + $0x3] ss:$9 sm:$0xff] %v9591_v34 }
 0x386   :  { %2431 = vst [vmem:[#allocation1 + $0x4] ss:$9 sm:$0xff] %v9309_v32 }
 0x387   :  { %2432 = vst [vmem:[#allocation1 + $0x5] ss:$9 sm:$0xff] %v9604_v28 }
 0x388   :  { %2433 = vst [vmem:[#allocation1 + $0x6] ss:$9 sm:$0xff] %v9333_v50 }
 0x389   :  { %2434 = vst [vmem:[#allocation1 + $0x7] ss:$9 sm:$0xff] %v9611_v39 }
 0x38f   :  { %v593_v6 = vpop.permute.xlu1 %592 }
 0x390   :  { %v9866_v49 = vld [vmem:[#allocation1] sm:$0xff]  ;;  %v697_v51 = vmax.f32 %v9556_v47, %v593_v6 }
 0x391   :  { %2443 = vst [vmem:[#allocation1 + $0x1] ss:$9 sm:$0xff] %v14105_v58 }
 0x392   :  { %2445 = vst [vmem:[#allocation1 + $0x2] ss:$9 sm:$0xff] %v14106_v26  ;;  %v737_v39 = vadd.f32 %v14111_v55, %v697_v51  ;;  %v14116_v51 = vld [vmem:[#allocation23_spill] sm:$0xff] }
 0x393   :  { %2447 = vst [vmem:[#allocation1 + $0x3] ss:$9 sm:$0xff] %v14107_v12 }
 0x394   :  { %2441 = vst [vmem:[#allocation1] ss:$9 sm:$0xff] %v14108_v8  ;;  %v773_v26 = vmax.f32 %v737_v39, 0.0 }
 0x395   :  { %2449 = vst [vmem:[#allocation1 + $0x4] ss:$9 sm:$0xff] %v14109_v20 }
 0x396   :  { %2451 = vst [vmem:[#allocation1 + $0x5] ss:$9 sm:$0xff] %v14110_v43  ;;  %v629_v59 = vpop.permute.xlu0 %628  ;;  %v9880_v30 = vpack.c.bf16 %v773_v26, %v773_v26 }
 0x397   :  { %v715_v19 = vmax.f32 %v9553_v57, %v629_v59 }
 0x398   :  { %v9886_v20 = vrot.slane %v9880_v30, 3 }
 0x399   :  { %v755_v42 = vadd.f32 %v14111_v55, %v715_v19 }
 0x39a   :  { %v9896_v19 = vsel %vm914_vm2, %v9880_v30, %v9886_v20  ;;  %v9904_v47 = vsel %vm926_vm5, %v9880_v30, %v9886_v20 }
 0x39b   :  { %v791_v28 = vmax.f32 %v755_v42, 0.0  ;;  %14113 = vst [vmem:[#allocation193_spill] sm:$0xff] %v9896_v19  ;;  %v957_v42 = vsel %vm918_vm3, %v9880_v30, %v9886_v20 }
 0x39c   :  { %14114 = vst [vmem:[#allocation194_spill] sm:$0xff] %v9904_v47  ;;  %v9907_v6 = vrot.slane %v957_v42, 1  ;;  %v14118_v47 = vld [vmem:[#allocation28_spill] sm:$0xff] }
 0x39d   :  { %v9878_v34 = vpack.c.bf16 %v791_v28, %v791_v28  ;;  %2453 = vst [vmem:[#allocation1 + $0x6] ss:$9 sm:$0xff] %v9896_v19  ;;  %v459_v28 = vpop.permute.xlu1 %458 }
 0x39e   :  { %14115 = vst [vmem:[#allocation195_spill] sm:$0xff] %v9907_v6  ;;  %v9911_v39 = vmax.f32 %v14056_v62, %v459_v28  ;;  %v467_v26 = vpop.permute.xlu0 %466  ;;  %v14120_v28 = vld [vmem:[#allocation31_spill] sm:$0xff] }
 0x39f   :  { %v9883_v8 = vrot.slane %v9878_v34, 3  ;;  %2455 = vst [vmem:[#allocation1 + $0x7] ss:$9 sm:$0xff] %v9907_v6  ;;  %v9926_v21 = vmax.f32 %v14055_v41, %v467_v26 }
 0x3a0   :  { %638 = vrot.lane.b32.xlu2 %v9911_v39, %s8243_s16 }
 0x3a1   :  { %v9891_v57 = vsel %vm926_vm5, %v9878_v34, %v9883_v8  ;;  %v1173_v42 = vsel %vm918_vm3, %v9878_v34, %v9883_v8 }
 0x3a2   :  { %14112 = vst [vmem:[#allocation119_spill] sm:$0xff] %v9891_v57  ;;  %v14117_v57 = vld [vmem:[#allocation27_spill] sm:$0xff]  ;;  %v9934_v44 = vrot.slane %v1173_v42, 1 }
 0x3a4   :  { %14122 = vst [vmem:[#allocation197_spill] sm:$0xff] %v9934_v44 }
 0x3a6   :  { %v9915_v59 = vld [vmem:[#allocation1] sm:$0xff]  ;;  %v611_v26 = vpop.permute.xlu0 %610 }
 0x3a7   :  { %2458 = vst [vmem:[#allocation1] ss:$9 sm:$0xff] %v14116_v51  ;;  %v9932_v51 = vsel %vm914_vm2, %v9878_v34, %v9883_v8 }
 0x3a8   :  { %2459 = vst [vmem:[#allocation1 + $0x1] ss:$9 sm:$0xff] %v14117_v57  ;;  %646 = vrot.lane.b32.xlu2 %v9926_v21, %s8243_s16 }
 0x3a9   :  { %2460 = vst [vmem:[#allocation1 + $0x2] ss:$9 sm:$0xff] %v14118_v47 }
 0x3aa   :  { %2461 = vst [vmem:[#allocation1 + $0x3] ss:$9 sm:$0xff] %v14119_v15 }
 0x3ab   :  { %v603_v62 = vpop.permute.xlu1 %602  ;;  %2462 = vst [vmem:[#allocation1 + $0x4] ss:$9 sm:$0xff] %v14120_v28 }
 0x3ac   :  { %v702_v52 = vmax.f32 %v9650_v14, %v603_v62  ;;  %14121 = vst [vmem:[#allocation196_spill] sm:$0xff] %v9932_v51  ;;  %v706_v62 = vmax.f32 %v9653_v48, %v611_v26  ;;  %v14128_v26 = vld [vmem:[#allocation42_spill] sm:$0xff] }
 0x3ad   :  { %2463 = vst [vmem:[#allocation1 + $0x5] ss:$9 sm:$0xff] %v14123_v23 }
 0x3ae   :  { %2464 = vst [vmem:[#allocation1 + $0x6] ss:$9 sm:$0xff] %v9932_v51  ;;  %v742_v47 = vadd.f32 %v14111_v55, %v702_v52  ;;  %v746_v28 = vadd.f32 %v14111_v55, %v706_v62  ;;  %v477_v63 = vpop.permute.xlu0 %476 }
 0x3af   :  { %2465 = vst [vmem:[#allocation1 + $0x7] ss:$9 sm:$0xff] %v9934_v44 }
 0x3b0   :  { %v778_v41 = vmax.f32 %v742_v47, 0.0  ;;  %v782_v62 = vmax.f32 %v746_v28, 0.0  ;;  %v14134_v28 = vld [vmem:[#allocation26_spill] sm:$0xff] }
 0x3b2   :  { %v9942_v14 = vpack.c.bf16 %v778_v41, %v778_v41  ;;  %v14127_v41 = vld [vmem:[#allocation41_spill] sm:$0xff]  ;;  %v9969_v3 = vpack.c.bf16 %v782_v62, %v782_v62 }
 0x3b4   :  { %v9946_v42 = vrot.slane %v9942_v14, 3  ;;  %v9986_v62 = vrot.slane %v9969_v3, 3 }
 0x3b6   :  { %v2466_v13 = vld [vmem:[#allocation1] sm:$0xff]  ;;  %v9952_v52 = vsel %vm918_vm3, %v9942_v14, %v9946_v42  ;;  %v9957_v47 = vsel %vm922_vm4, %v9942_v14, %v9946_v42  ;;  %v9962_v48 = vsel %vm926_vm5, %v9942_v14, %v9946_v42  ;;  %v9997_v16 = vsel %vm926_vm5, %v9969_v3, %v9986_v62 }
 0x3b7   :  { %14124 = vst [vmem:[#allocation198_spill] sm:$0xff] %v9952_v52  ;;  %2470 = vrot.lane.b32.xlu0 %v2466_v13, %s8247_s24  ;;  %v14130_v52 = vld [vmem:[#allocation39_spill] sm:$0xff]  ;;  %v9979_v13 = vmax.f32 %v9696_v29, %v477_v63  ;;  %v14139_v63 = vld [vmem:[#allocation94_spill] sm:$0xff] }
 0x3b8   :  { %14125 = vst [vmem:[#allocation199_spill] sm:$0xff] %v9957_v47  ;;  %v441_v47 = vpop.permute.xlu1 %440 }
 0x3b9   :  { %14126 = vst [vmem:[#allocation200_spill] sm:$0xff] %v9962_v48  ;;  %v14133_v48 = vld [vmem:[#allocation36_spill] sm:$0xff]  ;;  %656 = vrot.lane.b32.xlu2 %v9979_v13, %s8243_s16 }
 0x3ba   :  { %2472 = vst [vmem:[#allocation1] ss:$9 sm:$0xff] %v14127_v41  ;;  %v9976_v41 = vmax.f32 %v14070_v31, %v441_v47  ;;  %v14138_v31 = vld [vmem:[#allocation71_spill] sm:$0xff]  ;;  %v14140_v47 = vld [vmem:[#allocation45_spill] sm:$0xff] }
 0x3bb   :  { %2474 = vst [vmem:[#allocation1 + $0x1] ss:$9 sm:$0xff] %v14128_v26  ;;  %v9982_v26 = vrot.slane %v14134_v28, 3  ;;  %v14141_v28 = vld [vmem:[#allocation46_spill] sm:$0xff] }
 0x3bc   :  { %2476 = vst [vmem:[#allocation1 + $0x2] ss:$9 sm:$0xff] %v14129_v46  ;;  %v14136_v46 = vld [vmem:[#allocation37_spill] sm:$0xff]  ;;  %620 = vrot.lane.b32.xlu1 %v9976_v41, %s8243_s16 }
 0x3bd   :  { %2478 = vst [vmem:[#allocation1 + $0x3] ss:$9 sm:$0xff] %v14130_v52  ;;  %v14144_v52 = vld [vmem:[#allocation62_spill] sm:$0xff] }
 0x3be   :  { %2480 = vst [vmem:[#allocation1 + $0x4] ss:$9 sm:$0xff] %v14133_v48  ;;  %v14143_v48 = vld [vmem:[#allocation50_spill] sm:$0xff]  ;;  %v10008_v9 = vrot.slane %v14144_v52, 2  ;;  %v960_v52 = vsel %vm922_vm4, %v9880_v30, %v9886_v20  ;;  %v14157_v20 = vld [vmem:[#allocation75_spill] sm:$0xff] }
 0x3bf   :  { %14135 = vst [vmem:[#allocation26_spill] sm:$0xff] %v9982_v26 }
 0x3c0   :  { %2482 = vst [vmem:[#allocation1 + $0x5] ss:$9 sm:$0xff] %v14136_v46  ;;  %v14142_v46 = vld [vmem:[#allocation49_spill] sm:$0xff] }
 0x3c1   :  { %2484 = vst [vmem:[#allocation1 + $0x6] ss:$9 sm:$0xff] %v9972_v17  ;;  %2180 = vrot.lane.b32.xlu2 %v14139_v63, %s8247_s24  ;;  %v14150_v63 = vld [vmem:[#allocation83_spill] sm:$0xff] }
 0x3c2   :  { %2486 = vst [vmem:[#allocation1 + $0x7] ss:$9 sm:$0xff] %v9982_v26 }
 0x3c3   :  { %14137 = vst [vmem:[#allocation201_spill] sm:$0xff] %v9997_v16  ;;  %v14147_v16 = vld [vmem:[#allocation63_spill] sm:$0xff] }
 0x3c4   :  { %2133 = vrot.lane.b32.xlu1 %v14138_v31, %s8244_s21  ;;  %14145 = vst [vmem:[#allocation71_spill] sm:$0xff] %v10008_v9  ;;  %v10012_v25 = vrot.slane %v14147_v16, 3  ;;  %v14149_v31 = vld [vmem:[#allocation61_spill] sm:$0xff] }
 0x3c6   :  { %14148 = vst [vmem:[#allocation94_spill] sm:$0xff] %v10012_v25 }
 0x3c9   :  { %v2487_v29 = vld [vmem:[#allocation1] sm:$0xff] }
 0x3ca   :  { %2489 = vst [vmem:[#allocation1] ss:$9 sm:$0xff] %v14140_v47  ;;  %v10024_v47 = vrot.slane %v960_v52, 2  ;;  %v1885_v52 = vshrl.u32 %v9896_v19, 16 }
 0x3cb   :  { %2490 = vst [vmem:[#allocation1 + $0x1] ss:$9 sm:$0xff] %v14141_v28  ;;  %v14151_v28 = vld [vmem:[#allocation104_spill] sm:$0xff] }
 0x3cc   :  { %2491 = vst [vmem:[#allocation1 + $0x2] ss:$9 sm:$0xff] %v14142_v46  ;;  %2178 = vrot.lane.b32.xlu1 %v14150_v63, %s8247_s24  ;;  %2225 = vrot.lane.b32.xlu2 %v14151_v28, %s8245_s22  ;;  %v1890_v63 = vshll.u32 %v9907_v6, 16  ;;  %v14156_v46 = vld [vmem:[#allocation74_spill] sm:$0xff]  ;;  %v1893_v28 = vshrl.u32 %v9907_v6, 16  ;;  %v1898_v30 = vshll.u32 %v10024_v47, 16 }
 0x3cd   :  { %2492 = vst [vmem:[#allocation1 + $0x3] ss:$9 sm:$0xff] %v14143_v48  ;;  %v14155_v48 = vld [vmem:[#allocation131_spill] sm:$0xff] }
 0x3ce   :  { %2493 = vst [vmem:[#allocation1 + $0x4] ss:$9 sm:$0xff] %v14146_v22  ;;  %v14153_v22 = vld [vmem:[#allocation73_spill] sm:$0xff] }
 0x3cf   :  { %2494 = vst [vmem:[#allocation1 + $0x5] ss:$9 sm:$0xff] %v14149_v31  ;;  %v14154_v31 = vld [vmem:[#allocation113_spill] sm:$0xff] }
 0x3d0   :  { %2495 = vst [vmem:[#allocation1 + $0x6] ss:$9 sm:$0xff] %v10008_v9 }
 0x3d1   :  { %2496 = vst [vmem:[#allocation1 + $0x7] ss:$9 sm:$0xff] %v10012_v25 }
 0x3d2   :  { %14152 = vst [vmem:[#allocation62_spill] sm:$0xff] %v10024_v47 }
 0x3d4   :  { %2258 = vrot.lane.b32.xlu1 %v14154_v31, %s8246_s23  ;;  %2289 = vrot.lane.b32.xlu2 %v14155_v48, %s8248_s25  ;;  %v10041_v31 = vsel %vm8861_vm8, %v1885_v52, %v1890_v63  ;;  %v14161_v48 = vld [vmem:[#allocation78_spill] sm:$0xff]  ;;  %v1176_v63 = vsel %vm922_vm4, %v9878_v34, %v9883_v8  ;;  %v14168_v34 = vld [vmem:[#allocation87_spill] sm:$0xff]  ;;  %v1901_v8 = vshrl.u32 %v9932_v51, 16 }
 0x3d5   :  { %14160 = vst [vmem:[#allocation63_spill] sm:$0xff] %v10041_v31  ;;  %v10057_v52 = vrot.slane %v1176_v63, 2  ;;  %v14169_v63 = vld [vmem:[#allocation88_spill] sm:$0xff] }
 0x3d7   :  { %14165 = vst [vmem:[#allocation104_spill] sm:$0xff] %v10057_v52 }
 0x3d8   :  { %v2497_v16 = vld [vmem:[#allocation1] sm:$0xff] }
 0x3d9   :  { %2503 = vst [vmem:[#allocation1] ss:$9 sm:$0xff] %v14153_v22  ;;  %v14158_v22 = vld [vmem:[#allocation76_spill] sm:$0xff] }
 0x3da   :  { %2505 = vst [vmem:[#allocation1 + $0x1] ss:$9 sm:$0xff] %v14156_v46  ;;  %v10046_v46 = vsel %vm8861_vm8, %v1893_v28, %v1898_v30  ;;  %v1906_v28 = vshll.u32 %v9934_v44, 16  ;;  %v14167_v30 = vld [vmem:[#allocation86_spill] sm:$0xff] }
 0x3db   :  { %2507 = vst [vmem:[#allocation1 + $0x2] ss:$9 sm:$0xff] %v14157_v20  ;;  %v14163_v20 = vld [vmem:[#allocation120_spill] sm:$0xff] }
 0x3dc   :  { %2509 = vst [vmem:[#allocation1 + $0x3] ss:$9 sm:$0xff] %v14158_v22  ;;  %2287 = vrot.lane.b32.xlu1 %v14163_v20, %s8248_s25  ;;  %v14164_v22 = vld [vmem:[#allocation142_spill] sm:$0xff]  ;;  %v1914_v20 = vshll.u32 %v10057_v52, 16 }
 0x3dd   :  { %2511 = vst [vmem:[#allocation1 + $0x4] ss:$9 sm:$0xff] %v14159_v2  ;;  %2318 = vrot.lane.b32.xlu2 %v14164_v22, %s8243_s16  ;;  %v14166_v2 = vld [vmem:[#allocation85_spill] sm:$0xff]  ;;  %v1909_v22 = vshrl.u32 %v9934_v44, 16 }
 0x3de   :  { %2513 = vst [vmem:[#allocation1 + $0x5] ss:$9 sm:$0xff] %v14161_v48 }
 0x3df   :  { %14162 = vst [vmem:[#allocation83_spill] sm:$0xff] %v10046_v46 }
 0x3e0   :  { %2516 = vst [vmem:[#allocation1 + $0x6] ss:$9 sm:$0xff] %v10041_v31 }
 0x3e1   :  { %2519 = vst [vmem:[#allocation1 + $0x7] ss:$9 sm:$0xff] %v10046_v46 }
 0x3e4   :  { %2367 = vrot.lane.b32.xlu1 %v9714_v4, %s8242_s19  ;;  %v14172_v4 = vld [vmem:[#allocation90_spill] sm:$0xff] }
 0x3e5   :  { %2439 = vrot.lane.b32.xlu2 %v9866_v49, %s8244_s21  ;;  %v10079_v49 = vsel %vm8861_vm8, %v1909_v22, %v1914_v20  ;;  %v10095_v22 = vsel %vm914_vm2, %v9942_v14, %v9946_v42  ;;  %v14180_v14 = vld [vmem:[#allocation99_spill] sm:$0xff]  ;;  %v14181_v42 = vld [vmem:[#allocation100_spill] sm:$0xff] }
 0x3e6   :  { %14173 = vst [vmem:[#allocation131_spill] sm:$0xff] %v10079_v49  ;;  %v1930_v20 = vshll.u32 %v10095_v22, 16 }
 0x3e7   :  { %14175 = vst [vmem:[#allocation142_spill] sm:$0xff] %v10095_v22 }
 0x3e8   :  { %v2520_v48 = vld [vmem:[#allocation1] sm:$0xff] }
 0x3e9   :  { %2522 = vst [vmem:[#allocation1] ss:$9 sm:$0xff] %v14166_v2  ;;  %v14170_v2 = vld [vmem:[#allocation89_spill] sm:$0xff] }
 0x3ea   :  { %2523 = vst [vmem:[#allocation1 + $0x1] ss:$9 sm:$0xff] %v14167_v30  ;;  %v10074_v30 = vsel %vm8861_vm8, %v1901_v8, %v1906_v28  ;;  %v1923_v28 = vshll.u32 %v9982_v26, 16 }
 0x3eb   :  { %2524 = vst [vmem:[#allocation1 + $0x2] ss:$9 sm:$0xff] %v14168_v34 }
 0x3ec   :  { %2525 = vst [vmem:[#allocation1 + $0x3] ss:$9 sm:$0xff] %v14169_v63  ;;  %2468 = vrot.lane.b32.xlu1 %v9915_v59, %s8247_s24  ;;  %v14176_v59 = vld [vmem:[#allocation96_spill] sm:$0xff] }
 0x3ed   :  { %2526 = vst [vmem:[#allocation1 + $0x4] ss:$9 sm:$0xff] %v14170_v2  ;;  %2499 = vrot.lane.b32.xlu2 %v2487_v29, %s8245_s22  ;;  %v1918_v2 = vshrl.u32 %v9972_v17, 16  ;;  %v14177_v29 = vld [vmem:[#allocation97_spill] sm:$0xff] }
 0x3ee   :  { %14171 = vst [vmem:[#allocation113_spill] sm:$0xff] %v10074_v30 }
 0x3ef   :  { %2527 = vst [vmem:[#allocation1 + $0x5] ss:$9 sm:$0xff] %v14172_v4  ;;  %v10090_v8 = vsel %vm8861_vm8, %v1918_v2, %v1923_v28  ;;  %v14178_v2 = vld [vmem:[#allocation98_spill] sm:$0xff]  ;;  %v14179_v28 = vld [vmem:[#allocation5_spill] sm:$0xff] }
 0x3f0   :  { %2529 = vst [vmem:[#allocation1 + $0x6] ss:$9 sm:$0xff] %v10074_v30 }
 0x3f1   :  { %2531 = vst [vmem:[#allocation1 + $0x7] ss:$9 sm:$0xff] %v10079_v49  ;;  %v1926_v49 = vshrl.u32 %v9982_v26, 16 }
 0x3f2   :  { %14174 = vst [vmem:[#allocation120_spill] sm:$0xff] %v10090_v8 }
 0x3f4   :  { %2501 = vrot.lane.b32.xlu1 %v2497_v16, %s8245_s22 }
 0x3f8   :  { %v2532_v4 = vld [vmem:[#allocation1] sm:$0xff] }
 0x3f9   :  { %2551 = vst [vmem:[#allocation1 + $0x6] ss:$9 sm:$0xff] %v10090_v8  ;;  %2536 = vrot.lane.b32.xlu0 %v2532_v4, %s8246_s23  ;;  %v10110_v4 = vsel %vm8861_vm8, %v1926_v49, %v1930_v20  ;;  %v1934_v8 = vshrl.u32 %v10008_v9, 16  ;;  %v14185_v20 = vld [vmem:[#allocation108_spill] sm:$0xff] }
 0x3fa   :  { %2538 = vst [vmem:[#allocation1] ss:$9 sm:$0xff] %v14176_v59  ;;  %v639_v22 = vpop.permute.xlu2 %638  ;;  %v14183_v59 = vld [vmem:[#allocation106_spill] sm:$0xff] }
 0x3fb   :  { %2540 = vst [vmem:[#allocation1 + $0x1] ss:$9 sm:$0xff] %v14177_v29  ;;  %v720_v29 = vmax.f32 %v9911_v39, %v639_v22  ;;  %v14189_v22 = vld [vmem:[#allocation110_spill] sm:$0xff] }
 0x3fc   :  { %2542 = vst [vmem:[#allocation1 + $0x2] ss:$9 sm:$0xff] %v14178_v2  ;;  %2534 = vrot.lane.b32.xlu1 %v2520_v48, %s8246_s23 }
 0x3fd   :  { %2544 = vst [vmem:[#allocation1 + $0x3] ss:$9 sm:$0xff] %v14179_v28  ;;  %v760_v49 = vadd.f32 %v14111_v55, %v720_v29  ;;  %v14187_v28 = vld [vmem:[#allocation7_spill] sm:$0xff] }
 0x3fe   :  { %2546 = vst [vmem:[#allocation1 + $0x4] ss:$9 sm:$0xff] %v14180_v14  ;;  %v14184_v14 = vld [vmem:[#allocation107_spill] sm:$0xff] }
 0x3ff   :  { %2548 = vst [vmem:[#allocation1 + $0x5] ss:$9 sm:$0xff] %v14181_v42  ;;  %v1939_v42 = vshll.u32 %v10012_v25, 16  ;;  %v796_v48 = vmax.f32 %v760_v49, 0.0 }
 0x400   :  { %14182 = vst [vmem:[#allocation202_spill] sm:$0xff] %v10110_v4 }
 0x401   :  { %2554 = vst [vmem:[#allocation1 + $0x7] ss:$9 sm:$0xff] %v10110_v4  ;;  %v14186_v4 = vld [vmem:[#allocation109_spill] sm:$0xff]  ;;  %v10126_v39 = vsel %vm8861_vm8, %v1934_v8, %v1939_v42  ;;  %v1942_v8 = vshrl.u32 %v10012_v25, 16 }
 0x402   :  { %14188 = vst [vmem:[#allocation203_spill] sm:$0xff] %v10126_v39 }
 0x408   :  { %v2555_v16 = vld [vmem:[#allocation1] sm:$0xff] }
 0x409   :  { %2557 = vst [vmem:[#allocation1] ss:$9 sm:$0xff] %v14183_v59  ;;  %2569 = vrot.lane.b32.xlu0 %v2555_v16, %s8248_s25  ;;  %v832_v16 = vpack.c.bf16 %v796_v48, %v796_v48 }
 0x40a   :  { %2558 = vst [vmem:[#allocation1 + $0x1] ss:$9 sm:$0xff] %v14184_v14 }
 0x40b   :  { %2559 = vst [vmem:[#allocation1 + $0x2] ss:$9 sm:$0xff] %v14185_v20  ;;  %v904_v59 = vrot.slane %v832_v16, 3 }
 0x40c   :  { %2560 = vst [vmem:[#allocation1 + $0x3] ss:$9 sm:$0xff] %v14186_v4 }
 0x40d   :  { %2561 = vst [vmem:[#allocation1 + $0x4] ss:$9 sm:$0xff] %v14187_v28  ;;  %v10131_v14 = vsel %vm914_vm2, %v832_v16, %v904_v59  ;;  %v10134_v29 = vsel %vm918_vm3, %v832_v16, %v904_v59  ;;  %v10137_v49 = vsel %vm922_vm4, %v832_v16, %v904_v59  ;;  %v10140_v28 = vsel %vm926_vm5, %v832_v16, %v904_v59  ;;  %v14192_v59 = vld [vmem:[#allocation67_spill] sm:$0xff] }
 0x40e   :  { %2562 = vst [vmem:[#allocation1 + $0x5] ss:$9 sm:$0xff] %v14189_v22  ;;  %v1946_v42 = vshll.u32 %v10131_v14, 16 }
 0x40f   :  { %2564 = vst [vmem:[#allocation1 + $0x6] ss:$9 sm:$0xff] %v10126_v39  ;;  %v647_v39 = vpop.permute.xlu2 %646 }
 0x410   :  { %14190 = vst [vmem:[#allocation204_spill] sm:$0xff] %v10131_v14  ;;  %v10146_v48 = vsel %vm8861_vm8, %v1942_v8, %v1946_v42  ;;  %v724_v22 = vmax.f32 %v9926_v21, %v647_v39  ;;  %v14193_v8 = vld [vmem:[#allocation18_spill] sm:$0xff]  ;;  %v14198_v39 = vld [vmem:[#allocation81_spill] sm:$0xff] }
 0x411   :  { %14191 = vst [vmem:[#allocation205_spill] sm:$0xff] %v10146_v48  ;;  %v14195_v21 = vld [vmem:[#allocation70_spill] sm:$0xff] }
 0x412   :  { %2566 = vst [vmem:[#allocation1 + $0x7] ss:$9 sm:$0xff] %v10146_v48  ;;  %v764_v4 = vadd.f32 %v14111_v55, %v724_v22 }
 0x414   :  { %v800_v20 = vmax.f32 %v764_v4, 0.0  ;;  %v14196_v4 = vld [vmem:[#allocation80_spill] sm:$0xff] }
 0x416   :  { %v10151_v30 = vpack.c.bf16 %v800_v20, %v800_v20  ;;  %v14197_v20 = vld [vmem:[#allocation30_spill] sm:$0xff] }
 0x417   :  { %v657_v22 = vpop.permute.xlu2 %656 }
 0x418   :  { %v10157_v16 = vrot.slane %v10151_v30, 3  ;;  %v729_v42 = vmax.f32 %v9979_v13, %v657_v22  ;;  %v14200_v13 = vld [vmem:[#allocation115_spill] sm:$0xff] }
 0x419   :  { %v2567_v2 = vld [vmem:[#allocation1] sm:$0xff] }
 0x41a   :  { %2573 = vst [vmem:[#allocation1] ss:$9 sm:$0xff] %v14105_v58  ;;  %2571 = vrot.lane.b32.xlu2 %v2567_v2, %s8248_s25  ;;  %v10164_v55 = vsel %vm926_vm5, %v10151_v30, %v10157_v16  ;;  %v1065_v58 = vsel %vm918_vm3, %v9969_v3, %v9986_v62 }
 0x41b   :  { %2575 = vst [vmem:[#allocation1 + $0x1] ss:$9 sm:$0xff] %v14192_v59 }
 0x41c   :  { %2577 = vst [vmem:[#allocation1 + $0x2] ss:$9 sm:$0xff] %v14107_v12 }
 0x41d   :  { %2579 = vst [vmem:[#allocation1 + $0x3] ss:$9 sm:$0xff] %v14193_v8 }
 0x41e   :  { %14194 = vst [vmem:[#allocation206_spill] sm:$0xff] %v10164_v55 }
 0x41f   :  { %2581 = vst [vmem:[#allocation1 + $0x4] ss:$9 sm:$0xff] %v14110_v43 }
 0x420   :  { %2583 = vst [vmem:[#allocation1 + $0x5] ss:$9 sm:$0xff] %v14195_v21 }
 0x421   :  { %2585 = vst [vmem:[#allocation1 + $0x6] ss:$9 sm:$0xff] %v9907_v6 }
 0x422   :  { %2587 = vst [vmem:[#allocation1 + $0x7] ss:$9 sm:$0xff] %v10024_v47 }
 0x429   :  { %v2588_v2 = vld [vmem:[#allocation1] sm:$0xff] }
 0x42a   :  { %2590 = vst [vmem:[#allocation1] ss:$9 sm:$0xff] %v14117_v57  ;;  %2600 = vrot.lane.b32.xlu2 %v2588_v2, %s8243_s16  ;;  %v8198_v2 = vld [vmem:[%s13246_s2] ss:$0 sm:$0xff]  ;;  %v14199_v57 = vld [vmem:[#allocation112_spill] sm:$0xff] }
 0x42b   :  { %2591 = vst [vmem:[#allocation1 + $0x1] ss:$9 sm:$0xff] %v14196_v4  ;;  %v769_v55 = vadd.f32 %v8198_v2, %v729_v42  ;;  %v10215_v42 = vsel %vm914_vm2, %v9969_v3, %v9986_v62 }
 0x42c   :  { %2592 = vst [vmem:[#allocation1 + $0x2] ss:$9 sm:$0xff] %v14119_v15 }
 0x42d   :  { %2593 = vst [vmem:[#allocation1 + $0x3] ss:$9 sm:$0xff] %v14197_v20  ;;  %v805_v14 = vmax.f32 %v769_v55, 0.0 }
 0x42e   :  { %2594 = vst [vmem:[#allocation1 + $0x4] ss:$9 sm:$0xff] %v14123_v23 }
 0x42f   :  { %2595 = vst [vmem:[#allocation1 + $0x5] ss:$9 sm:$0xff] %v14198_v39  ;;  %v10184_v59 = vpack.c.bf16 %v805_v14, %v805_v14 }
 0x430   :  { %2596 = vst [vmem:[#allocation1 + $0x6] ss:$9 sm:$0xff] %v9934_v44 }
 0x431   :  { %2597 = vst [vmem:[#allocation1 + $0x7] ss:$9 sm:$0xff] %v10057_v52  ;;  %v10193_v22 = vrot.slane %v10184_v59, 3 }
 0x432   :  { %14204 = vst [vmem:[#allocation210_spill] sm:$0xff] %v10215_v42 }
 0x433   :  { %v10200_v14 = vsel %vm918_vm3, %v10184_v59, %v10193_v22  ;;  %v10205_v55 = vsel %vm922_vm4, %v10184_v59, %v10193_v22 }
 0x434   :  { %14201 = vst [vmem:[#allocation207_spill] sm:$0xff] %v10200_v14 }
 0x435   :  { %14202 = vst [vmem:[#allocation208_spill] sm:$0xff] %v10205_v55 }
 0x438   :  { %v2598_v4 = vld [vmem:[#allocation1] sm:$0xff] }
 0x439   :  { %2604 = vst [vmem:[#allocation1] ss:$9 sm:$0xff] %v14199_v57  ;;  %2602 = vrot.lane.b32.xlu1 %v2598_v4, %s8243_s16  ;;  %v10210_v4 = vsel %vm926_vm5, %v10184_v59, %v10193_v22 }
 0x43a   :  { %2606 = vst [vmem:[#allocation1 + $0x1] ss:$9 sm:$0xff] %v9212_v1 }
 0x43b   :  { %2608 = vst [vmem:[#allocation1 + $0x2] ss:$9 sm:$0xff] %v14200_v13 }
 0x43c   :  { %2610 = vst [vmem:[#allocation1 + $0x3] ss:$9 sm:$0xff] %v9219_v53 }
 0x43d   :  { %2612 = vst [vmem:[#allocation1 + $0x4] ss:$9 sm:$0xff] %v9258_v36  ;;  %v10217_v36 = vrot.slane %v1065_v58, 1  ;;  %v1281_v58 = vsel %vm918_vm3, %v10151_v30, %v10157_v16 }
 0x43e   :  { %14203 = vst [vmem:[#allocation209_spill] sm:$0xff] %v10210_v4  ;;  %v621_v4 = vpop.permute.xlu1 %620 }
 0x43f   :  { %14205 = vst [vmem:[#allocation211_spill] sm:$0xff] %v10217_v36  ;;  %v711_v55 = vmax.f32 %v9976_v41, %v621_v4 }
 0x440   :  { %2614 = vst [vmem:[#allocation1 + $0x5] ss:$9 sm:$0xff] %v9260_v27 }
 0x441   :  { %2616 = vst [vmem:[#allocation1 + $0x6] ss:$9 sm:$0xff] %v10215_v42 }
 0x442   :  { %2618 = vst [vmem:[#allocation1 + $0x7] ss:$9 sm:$0xff] %v10217_v36 }
 0x449   :  { %v2619_v14 = vld [vmem:[#allocation1] sm:$0xff] }
 0x44a   :  { %2621 = vst [vmem:[#allocation1] ss:$9 sm:$0xff] %v9316_v40  ;;  %2631 = vrot.lane.b32.xlu1 %v2619_v14, %s8242_s19  ;;  %v10236_v14 = vsel %vm914_vm2, %v10151_v30, %v10157_v16  ;;  %v10238_v40 = vrot.slane %v1281_v58, 1 }
 0x44b   :  { %2622 = vst [vmem:[#allocation1 + $0x1] ss:$9 sm:$0xff] %v9295_v45 }
 0x44c   :  { %2623 = vst [vmem:[#allocation1 + $0x2] ss:$9 sm:$0xff] %v9300_v33  ;;  %v751_v33 = vadd.f32 %v8198_v2, %v711_v55 }
 0x44d   :  { %2624 = vst [vmem:[#allocation1 + $0x3] ss:$9 sm:$0xff] %v9309_v32 }
 0x44e   :  { %2625 = vst [vmem:[#allocation1 + $0x4] ss:$9 sm:$0xff] %v9330_v35  ;;  %v787_v13 = vmax.f32 %v751_v33, 0.0 }
 0x44f   :  { %2626 = vst [vmem:[#allocation1 + $0x5] ss:$9 sm:$0xff] %v9333_v50 }
 0x450   :  { %14206 = vst [vmem:[#allocation212_spill] sm:$0xff] %v10236_v14  ;;  %v10242_v57 = vpack.c.bf16 %v787_v13, %v787_v13  ;;  %v14211_v13 = vld [vmem:[#allocation66_spill] sm:$0xff] }
 0x451   :  { %14207 = vst [vmem:[#allocation213_spill] sm:$0xff] %v10238_v40  ;;  %v10268_v55 = vrot.slane %v14211_v13, 2  ;;  %v14216_v13 = vld [vmem:[#allocation138_spill] sm:$0xff] }
 0x452   :  { %2627 = vst [vmem:[#allocation1 + $0x6] ss:$9 sm:$0xff] %v10236_v14  ;;  %v10245_v41 = vrot.slane %v10242_v57, 3 }
 0x453   :  { %2628 = vst [vmem:[#allocation1 + $0x7] ss:$9 sm:$0xff] %v10238_v40 }
 0x454   :  { %v10250_v4 = vsel %vm918_vm3, %v10242_v57, %v10245_v41  ;;  %v10255_v58 = vsel %vm922_vm4, %v10242_v57, %v10245_v41  ;;  %v10260_v2 = vsel %vm926_vm5, %v10242_v57, %v10245_v41  ;;  %14212 = vst [vmem:[#allocation66_spill] sm:$0xff] %v10268_v55  ;;  %vm2645_vm5 = vcmask 392192  }
 0x455   :  { %14208 = vst [vmem:[#allocation214_spill] sm:$0xff] %v10250_v4 }
 0x456   :  { %14209 = vst [vmem:[#allocation215_spill] sm:$0xff] %v10255_v58  ;;  %v14213_v58 = vld [vmem:[#allocation126_spill] sm:$0xff] }
 0x457   :  { %14210 = vst [vmem:[#allocation216_spill] sm:$0xff] %v10260_v2  ;;  %v10272_v4 = vrot.slane %v14213_v58, 3  ;;  %v10284_v2 = vrot.slane %v14216_v13, 2  ;;  %v14218_v58 = vld [vmem:[#allocation139_spill] sm:$0xff] }
 0x458   :  { %v10288_v35 = vrot.slane %v14218_v58, 3  ;;  %v14222_v13 = vld [vmem:[#allocation155_spill] sm:$0xff]  ;;  %v14223_v58 = vld [vmem:[#allocation156_spill] sm:$0xff] }
 0x459   :  { %14214 = vst [vmem:[#allocation126_spill] sm:$0xff] %v10272_v4 }
 0x45a   :  { %v2629_v33 = vld [vmem:[#allocation1] sm:$0xff]  ;;  %14217 = vst [vmem:[#allocation138_spill] sm:$0xff] %v10284_v2 }
 0x45b   :  { %2702 = vst [vmem:[#allocation1] ss:$9 sm:$0xff] %v9394_v5  ;;  %2633 = vrot.lane.b32.xlu0 %v2629_v33, %s8242_s19 }
 0x45c   :  { %2704 = vst [vmem:[#allocation1 + $0x1] ss:$9 sm:$0xff] %v9397_v37 }
 0x45d   :  { %2706 = vst [vmem:[#allocation1 + $0x2] ss:$9 sm:$0xff] %v9423_v7 }
 0x45e   :  { %2708 = vst [vmem:[#allocation1 + $0x3] ss:$9 sm:$0xff] %v9404_v18 }
 0x45f   :  { %2710 = vst [vmem:[#allocation1 + $0x4] ss:$9 sm:$0xff] %v9415_v61  ;;  %v14225_v61 = vld [vmem:[#allocation158_spill] sm:$0xff] }
 0x460   :  { %2712 = vst [vmem:[#allocation1 + $0x5] ss:$9 sm:$0xff] %v9413_v10  ;;  %v1949_v10 = vshrl.u32 %v10215_v42, 16  ;;  %v1284_v42 = vsel %vm922_vm4, %v10151_v30, %v10157_v16  ;;  %v14234_v30 = vld [vmem:[#allocation168_spill] sm:$0xff]  ;;  %v14235_v16 = vld [vmem:[#allocation169_spill] sm:$0xff] }
 0x461   :  { %2714 = vst [vmem:[#allocation1 + $0x6] ss:$9 sm:$0xff] %v10268_v55 }
 0x462   :  { %2716 = vst [vmem:[#allocation1 + $0x7] ss:$9 sm:$0xff] %v10272_v4 }
 0x463   :  { %14219 = vst [vmem:[#allocation139_spill] sm:$0xff] %v10288_v35 }
 0x469   :  { %v10277_v33 = vld [vmem:[#allocation1] sm:$0xff] }
 0x46a   :  { %14215 = vst [vmem:[#allocation217_spill] sm:$0xff] %v10277_v33  ;;  %v1068_v33 = vsel %vm922_vm4, %v9969_v3, %v9986_v62  ;;  %v14226_v3 = vld [vmem:[#allocation159_spill] sm:$0xff]  ;;  %vm2640_vm4 = vcmask 261120  }
 0x46b   :  { %2718 = vst [vmem:[#allocation1] ss:$9 sm:$0xff] %v14083_v24  ;;  %v14224_v24 = vld [vmem:[#allocation157_spill] sm:$0xff] }
 0x46c   :  { %2719 = vst [vmem:[#allocation1 + $0x1] ss:$9 sm:$0xff] %v14084_v56 }
 0x46d   :  { %2720 = vst [vmem:[#allocation1 + $0x2] ss:$9 sm:$0xff] %v14091_v11  ;;  %v10296_v11 = vrot.slane %v1068_v33, 2  ;;  %v14228_v33 = vld [vmem:[#allocation160_spill] sm:$0xff] }
 0x46e   :  { %2721 = vst [vmem:[#allocation1 + $0x3] ss:$9 sm:$0xff] %v14087_v0 }
 0x46f   :  { %2722 = vst [vmem:[#allocation1 + $0x4] ss:$9 sm:$0xff] %v14092_v60  ;;  %v1954_v60 = vshll.u32 %v10217_v36, 16  ;;  %v1962_v56 = vshll.u32 %v10296_v11, 16 }
 0x470   :  { %2723 = vst [vmem:[#allocation1 + $0x5] ss:$9 sm:$0xff] %v14096_v54  ;;  %v1957_v54 = vshrl.u32 %v10217_v36, 16 }
 0x471   :  { %2724 = vst [vmem:[#allocation1 + $0x6] ss:$9 sm:$0xff] %v10284_v2  ;;  %v10311_v62 = vsel %vm8861_vm8, %v1949_v10, %v1954_v60  ;;  %v1970_v10 = vshll.u32 %v10238_v40, 16  ;;  %v14232_v60 = vld [vmem:[#allocation166_spill] sm:$0xff] }
 0x472   :  { %2725 = vst [vmem:[#allocation1 + $0x7] ss:$9 sm:$0xff] %v10288_v35 }
 0x473   :  { %14220 = vst [vmem:[#allocation218_spill] sm:$0xff] %v10296_v11 }
 0x474   :  { %14227 = vst [vmem:[#allocation220_spill] sm:$0xff] %v10311_v62 }
 0x479   :  { %v10298_v0 = vld [vmem:[#allocation1] sm:$0xff] }
 0x47a   :  { %14221 = vst [vmem:[#allocation219_spill] sm:$0xff] %v10298_v0  ;;  %v10316_v0 = vsel %vm8861_vm8, %v1957_v54, %v1962_v56  ;;  %v1973_v56 = vshrl.u32 %v10238_v40, 16 }
 0x47b   :  { %2727 = vst [vmem:[#allocation1] ss:$9 sm:$0xff] %v14222_v13 }
 0x47c   :  { %2729 = vst [vmem:[#allocation1 + $0x1] ss:$9 sm:$0xff] %v14223_v58 }
 0x47d   :  { %2731 = vst [vmem:[#allocation1 + $0x2] ss:$9 sm:$0xff] %v14224_v24  ;;  %v14231_v24 = vld [vmem:[#allocation165_spill] sm:$0xff] }
 0x47e   :  { %2733 = vst [vmem:[#allocation1 + $0x3] ss:$9 sm:$0xff] %v14225_v61  ;;  %v10323_v61 = vrot.slane %v1284_v42, 2 }
 0x47f   :  { %2735 = vst [vmem:[#allocation1 + $0x4] ss:$9 sm:$0xff] %v14226_v3 }
 0x480   :  { %2737 = vst [vmem:[#allocation1 + $0x5] ss:$9 sm:$0xff] %v14228_v33  ;;  %v1978_v54 = vshll.u32 %v10323_v61, 16 }
 0x481   :  { %14229 = vst [vmem:[#allocation221_spill] sm:$0xff] %v10316_v0 }
 0x482   :  { %2740 = vst [vmem:[#allocation1 + $0x6] ss:$9 sm:$0xff] %v10311_v62  ;;  %v1965_v62 = vshrl.u32 %v10236_v14, 16  ;;  %v1982_v14 = vshrl.u32 %v10268_v55, 16  ;;  %v14245_v55 = vld [vmem:[#allocation180_spill] sm:$0xff] }
 0x483   :  { %2743 = vst [vmem:[#allocation1 + $0x7] ss:$9 sm:$0xff] %v10316_v0  ;;  %v14233_v0 = vld [vmem:[#allocation167_spill] sm:$0xff] }
 0x484   :  { %14230 = vst [vmem:[#allocation222_spill] sm:$0xff] %v10323_v61  ;;  %v10337_v42 = vsel %vm8861_vm8, %v1965_v62, %v1970_v10  ;;  %v10355_v10 = vsel %vm914_vm2, %v10242_v57, %v10245_v41  ;;  %v14246_v57 = vld [vmem:[#allocation181_spill] sm:$0xff] }
 0x485   :  { %14236 = vst [vmem:[#allocation223_spill] sm:$0xff] %v10337_v42 }
 0x486   :  { %14240 = vst [vmem:[#allocation226_spill] sm:$0xff] %v10355_v10 }
 0x48a   :  { %v2744_v3 = vld [vmem:[#allocation1] sm:$0xff] }
 0x48b   :  { %2746 = vst [vmem:[#allocation1] ss:$9 sm:$0xff] %v14231_v24  ;;  %2758 = vrot.lane.b32.xlu2 %v2744_v3, %s8244_s21  ;;  %v14237_v3 = vld [vmem:[#allocation170_spill] sm:$0xff] }
 0x48c   :  { %2747 = vst [vmem:[#allocation1 + $0x1] ss:$9 sm:$0xff] %v14232_v60  ;;  %v10342_v60 = vsel %vm8861_vm8, %v1973_v56, %v1978_v54  ;;  %v14241_v56 = vld [vmem:[#allocation176_spill] sm:$0xff]  ;;  %v14242_v54 = vld [vmem:[#allocation177_spill] sm:$0xff] }
 0x48d   :  { %2748 = vst [vmem:[#allocation1 + $0x2] ss:$9 sm:$0xff] %v14233_v0 }
 0x48e   :  { %2749 = vst [vmem:[#allocation1 + $0x3] ss:$9 sm:$0xff] %v14234_v30  ;;  %v1987_v30 = vshll.u32 %v10272_v4, 16 }
 0x48f   :  { %2750 = vst [vmem:[#allocation1 + $0x4] ss:$9 sm:$0xff] %v14235_v16 }
 0x490   :  { %2751 = vst [vmem:[#allocation1 + $0x5] ss:$9 sm:$0xff] %v14237_v3  ;;  %v10350_v16 = vsel %vm8861_vm8, %v1982_v14, %v1987_v30  ;;  %v14244_v14 = vld [vmem:[#allocation179_spill] sm:$0xff]  ;;  %v1990_v30 = vshrl.u32 %v10272_v4, 16  ;;  %v1998_v4 = vshrl.u32 %v10284_v2, 16 }
 0x491   :  { %14238 = vst [vmem:[#allocation224_spill] sm:$0xff] %v10342_v60 }
 0x492   :  { %2753 = vst [vmem:[#allocation1 + $0x6] ss:$9 sm:$0xff] %v10337_v42  ;;  %v14243_v42 = vld [vmem:[#allocation178_spill] sm:$0xff] }
 0x493   :  { %2755 = vst [vmem:[#allocation1 + $0x7] ss:$9 sm:$0xff] %v10342_v60  ;;  %v1994_v60 = vshll.u32 %v10355_v10, 16 }
 0x494   :  { %14239 = vst [vmem:[#allocation225_spill] sm:$0xff] %v10350_v16 }
 0x495   :  { %v10369_v41 = vsel %vm8861_vm8, %v1990_v30, %v1994_v60  ;;  %v14251_v30 = vld [vmem:[#allocation189_spill] sm:$0xff] }
 0x496   :  { %14247 = vst [vmem:[#allocation227_spill] sm:$0xff] %v10369_v41 }
 0x49a   :  { %v2756_v62 = vld [vmem:[#allocation1] sm:$0xff] }
 0x49b   :  { %2775 = vst [vmem:[#allocation1 + $0x6] ss:$9 sm:$0xff] %v10350_v16  ;;  %2760 = vrot.lane.b32.xlu0 %v2756_v62, %s8244_s21  ;;  %v10375_v62 = vsel %vm914_vm2, %v10184_v59, %v10193_v22  ;;  %v14249_v16 = vld [vmem:[#allocation187_spill] sm:$0xff]  ;;  %v2006_v59 = vshrl.u32 %v10288_v35, 16  ;;  %vm2635_vm2 = vcmask 130048  }
 0x49c   :  { %2762 = vst [vmem:[#allocation1] ss:$9 sm:$0xff] %v14241_v56  ;;  %v2010_v60 = vshll.u32 %v10375_v62, 16  ;;  %v14253_v22 = vld [vmem:[#allocation191_spill] sm:$0xff] }
 0x49d   :  { %2764 = vst [vmem:[#allocation1 + $0x1] ss:$9 sm:$0xff] %v14242_v54 }
 0x49e   :  { %2766 = vst [vmem:[#allocation1 + $0x2] ss:$9 sm:$0xff] %v14243_v42  ;;  %v10394_v2 = vsel %vm8861_vm8, %v2006_v59, %v2010_v60  ;;  %v14261_v59 = vld [vmem:[#allocation163_spill] sm:$0xff]  ;;  %v14314_v42 = vld [vmem:[#allocation108_spill] sm:$0xff] }
 0x49f   :  { %2768 = vst [vmem:[#allocation1 + $0x3] ss:$9 sm:$0xff] %v14244_v14  ;;  %v14305_v14 = vld [vmem:[#allocation98_spill] sm:$0xff] }
 0x4a0   :  { %2770 = vst [vmem:[#allocation1 + $0x4] ss:$9 sm:$0xff] %v14245_v55  ;;  %v14250_v55 = vld [vmem:[#allocation188_spill] sm:$0xff] }
 0x4a1   :  { %2772 = vst [vmem:[#allocation1 + $0x5] ss:$9 sm:$0xff] %v14246_v57  ;;  %v2003_v57 = vshll.u32 %v10288_v35, 16  ;;  %v14257_v35 = vld [vmem:[#allocation150_spill] sm:$0xff] }
 0x4a2   :  { %2778 = vst [vmem:[#allocation1 + $0x7] ss:$9 sm:$0xff] %v10369_v41  ;;  %v14252_v41 = vld [vmem:[#allocation190_spill] sm:$0xff] }
 0x4a3   :  { %14248 = vst [vmem:[#allocation228_spill] sm:$0xff] %v10375_v62 }
 0x4a4   :  { %14256 = vst [vmem:[#allocation230_spill] sm:$0xff] %v10394_v2 }
 0x4a9   :  { %v2779_v10 = vld [vmem:[#allocation1] sm:$0xff] }
 0x4aa   :  { %2781 = vst [vmem:[#allocation1] ss:$9 sm:$0xff] %v14249_v16  ;;  %2793 = vrot.lane.b32.xlu0 %v2779_v10, %s8247_s24  ;;  %v10389_v16 = vsel %vm8861_vm8, %v1998_v4, %v2003_v57  ;;  %v14255_v10 = vld [vmem:[#allocation192_spill] sm:$0xff]  ;;  %v14258_v4 = vld [vmem:[#allocation151_spill] sm:$0xff] }
 0x4ab   :  { %2782 = vst [vmem:[#allocation1 + $0x1] ss:$9 sm:$0xff] %v14250_v55  ;;  %v14259_v57 = vld [vmem:[#allocation152_spill] sm:$0xff] }
 0x4ac   :  { %2783 = vst [vmem:[#allocation1 + $0x2] ss:$9 sm:$0xff] %v14251_v30 }
 0x4ad   :  { %2784 = vst [vmem:[#allocation1 + $0x3] ss:$9 sm:$0xff] %v14252_v41 }
 0x4ae   :  { %2785 = vst [vmem:[#allocation1 + $0x4] ss:$9 sm:$0xff] %v14253_v22 }
 0x4af   :  { %14254 = vst [vmem:[#allocation229_spill] sm:$0xff] %v10389_v16 }
 0x4b0   :  { %2786 = vst [vmem:[#allocation1 + $0x5] ss:$9 sm:$0xff] %v14255_v10 }
 0x4b1   :  { %2788 = vst [vmem:[#allocation1 + $0x6] ss:$9 sm:$0xff] %v10389_v16  ;;  %v14265_v16 = vld [vmem:[#allocation194_spill] sm:$0xff] }
 0x4b2   :  { %2790 = vst [vmem:[#allocation1 + $0x7] ss:$9 sm:$0xff] %v10394_v2  ;;  %v14262_v2 = vld [vmem:[#allocation10_spill] sm:$0xff] }
 0x4b9   :  { %v2791_v62 = vld [vmem:[#allocation1] sm:$0xff] }
 0x4ba   :  { %2797 = vst [vmem:[#allocation1] ss:$9 sm:$0xff] %v9212_v1  ;;  %2795 = vrot.lane.b32.xlu2 %v2791_v62, %s8247_s24  ;;  %v14260_v62 = vld [vmem:[#allocation162_spill] sm:$0xff] }
 0x4bb   :  { %2799 = vst [vmem:[#allocation1 + $0x1] ss:$9 sm:$0xff] %v14257_v35  ;;  %v14291_v35 = vld [vmem:[#allocation77_spill] sm:$0xff]  ;;  %v14292_v1 = vld [vmem:[#allocation78_spill] sm:$0xff] }
 0x4bc   :  { %2801 = vst [vmem:[#allocation1 + $0x2] ss:$9 sm:$0xff] %v9219_v53  ;;  %v14289_v53 = vld [vmem:[#allocation75_spill] sm:$0xff] }
 0x4bd   :  { %2803 = vst [vmem:[#allocation1 + $0x3] ss:$9 sm:$0xff] %v14258_v4 }
 0x4be   :  { %2805 = vst [vmem:[#allocation1 + $0x4] ss:$9 sm:$0xff] %v9260_v27  ;;  %v14284_v27 = vld [vmem:[#allocation61_spill] sm:$0xff] }
 0x4bf   :  { %2807 = vst [vmem:[#allocation1 + $0x5] ss:$9 sm:$0xff] %v14259_v57  ;;  %v14282_v57 = vld [vmem:[#allocation50_spill] sm:$0xff] }
 0x4c0   :  { %2809 = vst [vmem:[#allocation1 + $0x6] ss:$9 sm:$0xff] %v10217_v36  ;;  %v14263_v36 = vld [vmem:[#allocation16_spill] sm:$0xff] }
 0x4c1   :  { %2811 = vst [vmem:[#allocation1 + $0x7] ss:$9 sm:$0xff] %v10296_v11 }
 0x4c8   :  { %v2812_v60 = vld [vmem:[#allocation1] sm:$0xff] }
 0x4c9   :  { %2814 = vst [vmem:[#allocation1] ss:$9 sm:$0xff] %v9295_v45  ;;  %2824 = vrot.lane.b32.xlu1 %v2812_v60, %s8245_s22  ;;  %v14264_v60 = vld [vmem:[#allocation19_spill] sm:$0xff]  ;;  %v14281_v45 = vld [vmem:[#allocation49_spill] sm:$0xff] }
 0x4ca   :  { %2815 = vst [vmem:[#allocation1 + $0x1] ss:$9 sm:$0xff] %v14260_v62 }
 0x4cb   :  { %2816 = vst [vmem:[#allocation1 + $0x2] ss:$9 sm:$0xff] %v9309_v32 }
 0x4cc   :  { %2817 = vst [vmem:[#allocation1 + $0x3] ss:$9 sm:$0xff] %v14261_v59  ;;  %v10422_v59 = vrot.slane %v14265_v16, 3  ;;  %v14270_v16 = vld [vmem:[#allocation119_spill] sm:$0xff] }
 0x4cd   :  { %2818 = vst [vmem:[#allocation1 + $0x4] ss:$9 sm:$0xff] %v9333_v50  ;;  %v14276_v50 = vld [vmem:[#allocation37_spill] sm:$0xff] }
 0x4ce   :  { %2819 = vst [vmem:[#allocation1 + $0x5] ss:$9 sm:$0xff] %v14262_v2  ;;  %v14273_v2 = vld [vmem:[#allocation38_spill] sm:$0xff] }
 0x4cf   :  { %2820 = vst [vmem:[#allocation1 + $0x6] ss:$9 sm:$0xff] %v10238_v40  ;;  %v14268_v40 = vld [vmem:[#allocation28_spill] sm:$0xff] }
 0x4d0   :  { %2821 = vst [vmem:[#allocation1 + $0x7] ss:$9 sm:$0xff] %v10323_v61  ;;  %v14267_v61 = vld [vmem:[#allocation13_spill] sm:$0xff] }
 0x4d1   :  { %14266 = vst [vmem:[#allocation194_spill] sm:$0xff] %v10422_v59 }
 0x4d7   :  { %v2822_v11 = vld [vmem:[#allocation1] sm:$0xff] }
 0x4d8   :  { %2828 = vst [vmem:[#allocation1] ss:$9 sm:$0xff] %v14263_v36  ;;  %2826 = vrot.lane.b32.xlu1 %v2822_v11, %s8245_s22  ;;  %v14269_v11 = vld [vmem:[#allocation31_spill] sm:$0xff] }
 0x4d9   :  { %2830 = vst [vmem:[#allocation1 + $0x1] ss:$9 sm:$0xff] %v14107_v12 }
 0x4da   :  { %2832 = vst [vmem:[#allocation1 + $0x2] ss:$9 sm:$0xff] %v14264_v60  ;;  %v10434_v60 = vrot.slane %v14270_v16, 3  ;;  %v14277_v16 = vld [vmem:[#allocation198_spill] sm:$0xff] }
 0x4db   :  { %2834 = vst [vmem:[#allocation1 + $0x3] ss:$9 sm:$0xff] %v14110_v43  ;;  %v10446_v32 = vrot.slane %v14277_v16, 1  ;;  %v14283_v16 = vld [vmem:[#allocation51_spill] sm:$0xff] }
 0x4dc   :  { %2836 = vst [vmem:[#allocation1 + $0x4] ss:$9 sm:$0xff] %v9896_v19  ;;  %v14272_v19 = vld [vmem:[#allocation54_spill] sm:$0xff] }
 0x4dd   :  { %2838 = vst [vmem:[#allocation1 + $0x5] ss:$9 sm:$0xff] %v9907_v6 }
 0x4de   :  { %2840 = vst [vmem:[#allocation1 + $0x6] ss:$9 sm:$0xff] %v10422_v59 }
 0x4df   :  { %2842 = vst [vmem:[#allocation1 + $0x7] ss:$9 sm:$0xff] %v14267_v61 }
 0x4e0   :  { %14271 = vst [vmem:[#allocation119_spill] sm:$0xff] %v10434_v60 }
 0x4e6   :  { %v2843_v36 = vld [vmem:[#allocation1] sm:$0xff] }
 0x4e7   :  { %2845 = vst [vmem:[#allocation1] ss:$9 sm:$0xff] %v14268_v40  ;;  %2855 = vrot.lane.b32.xlu2 %v2843_v36, %s8246_s23  ;;  %v14274_v36 = vld [vmem:[#allocation39_spill] sm:$0xff] }
 0x4e8   :  { %2846 = vst [vmem:[#allocation1 + $0x1] ss:$9 sm:$0xff] %v14119_v15 }
 0x4e9   :  { %2847 = vst [vmem:[#allocation1 + $0x2] ss:$9 sm:$0xff] %v14269_v11  ;;  %v14275_v11 = vld [vmem:[#allocation36_spill] sm:$0xff] }
 0x4ea   :  { %2848 = vst [vmem:[#allocation1 + $0x3] ss:$9 sm:$0xff] %v14123_v23 }
 0x4eb   :  { %2849 = vst [vmem:[#allocation1 + $0x4] ss:$9 sm:$0xff] %v9932_v51  ;;  %v14279_v51 = vld [vmem:[#allocation199_spill] sm:$0xff] }
 0x4ec   :  { %2850 = vst [vmem:[#allocation1 + $0x5] ss:$9 sm:$0xff] %v9934_v44  ;;  %v10450_v62 = vrot.slane %v14279_v51, 2  ;;  %v10461_v51 = vrot.slane %v10134_v29, 1  ;;  %v2014_v29 = vshrl.u32 %v10422_v59, 16  ;;  %v14295_v59 = vld [vmem:[#allocation55_spill] sm:$0xff] }
 0x4ed   :  { %2851 = vst [vmem:[#allocation1 + $0x6] ss:$9 sm:$0xff] %v10434_v60  ;;  %v10495_v22 = vrot.slane %v14295_v59, 1  ;;  %v2037_v59 = vshrl.u32 %v14272_v19, 16 }
 0x4ee   :  { %2852 = vst [vmem:[#allocation1 + $0x7] ss:$9 sm:$0xff] %v14272_v19 }
 0x4ef   :  { %14278 = vst [vmem:[#allocation39_spill] sm:$0xff] %v10446_v32 }
 0x4f0   :  { %14280 = vst [vmem:[#allocation37_spill] sm:$0xff] %v10450_v62 }
 0x4f1   :  { %14285 = vst [vmem:[#allocation198_spill] sm:$0xff] %v10461_v51 }
 0x4f2   :  { %14296 = vst [vmem:[#allocation55_spill] sm:$0xff] %v10495_v22 }
 0x4f5   :  { %v2853_v40 = vld [vmem:[#allocation1] sm:$0xff] }
 0x4f6   :  { %2859 = vst [vmem:[#allocation1] ss:$9 sm:$0xff] %v14273_v2  ;;  %2857 = vrot.lane.b32.xlu0 %v2853_v40, %s8246_s23 }
 0x4f7   :  { %2861 = vst [vmem:[#allocation1 + $0x1] ss:$9 sm:$0xff] %v14274_v36 }
 0x4f8   :  { %2863 = vst [vmem:[#allocation1 + $0x2] ss:$9 sm:$0xff] %v14275_v11 }
 0x4f9   :  { %2865 = vst [vmem:[#allocation1 + $0x3] ss:$9 sm:$0xff] %v14276_v50 }
 0x4fa   :  { %2867 = vst [vmem:[#allocation1 + $0x4] ss:$9 sm:$0xff] %v9972_v17 }
 0x4fb   :  { %2869 = vst [vmem:[#allocation1 + $0x5] ss:$9 sm:$0xff] %v9982_v26  ;;  %v10465_v26 = vrot.slane %v10137_v49, 2 }
 0x4fc   :  { %2871 = vst [vmem:[#allocation1 + $0x6] ss:$9 sm:$0xff] %v10446_v32 }
 0x4fd   :  { %2873 = vst [vmem:[#allocation1 + $0x7] ss:$9 sm:$0xff] %v10450_v62 }
 0x4fe   :  { %14286 = vst [vmem:[#allocation199_spill] sm:$0xff] %v10465_v26 }
 0x504   :  { %v2874_v40 = vld [vmem:[#allocation1] sm:$0xff] }
 0x505   :  { %2876 = vst [vmem:[#allocation1] ss:$9 sm:$0xff] %v14281_v45  ;;  %2886 = vrot.lane.b32.xlu0 %v2874_v40, %s8248_s25  ;;  %v14287_v40 = vld [vmem:[#allocation14_spill] sm:$0xff] }
 0x506   :  { %2877 = vst [vmem:[#allocation1 + $0x1] ss:$9 sm:$0xff] %v14282_v57  ;;  %v10471_v17 = vrot.slane %v14287_v40, 1  ;;  %v2021_v40 = vshrl.u32 %v14267_v61, 16 }
 0x507   :  { %2878 = vst [vmem:[#allocation1 + $0x2] ss:$9 sm:$0xff] %v14283_v16 }
 0x508   :  { %2879 = vst [vmem:[#allocation1 + $0x3] ss:$9 sm:$0xff] %v14284_v27  ;;  %v2026_v49 = vshll.u32 %v10471_v17, 16 }
 0x509   :  { %2880 = vst [vmem:[#allocation1 + $0x4] ss:$9 sm:$0xff] %v10008_v9  ;;  %v14290_v9 = vld [vmem:[#allocation76_spill] sm:$0xff] }
 0x50a   :  { %2881 = vst [vmem:[#allocation1 + $0x5] ss:$9 sm:$0xff] %v10012_v25  ;;  %v2018_v25 = vshll.u32 %v14267_v61, 16 }
 0x50b   :  { %2882 = vst [vmem:[#allocation1 + $0x6] ss:$9 sm:$0xff] %v10461_v51 }
 0x50c   :  { %2883 = vst [vmem:[#allocation1 + $0x7] ss:$9 sm:$0xff] %v10465_v26  ;;  %v10485_v10 = vsel %vm8861_vm8, %v2014_v29, %v2018_v25  ;;  %v2030_v25 = vshrl.u32 %v10434_v60, 16  ;;  %v2042_v29 = vshll.u32 %v10495_v22, 16 }
 0x50d   :  { %14288 = vst [vmem:[#allocation14_spill] sm:$0xff] %v10471_v17 }
 0x50e   :  { %14293 = vst [vmem:[#allocation231_spill] sm:$0xff] %v10485_v10  ;;  %v10514_v60 = vsel %vm8861_vm8, %v2037_v59, %v2042_v29  ;;  %v2054_v29 = vshrl.u32 %v10450_v62, 16 }
 0x50f   :  { %14302 = vst [vmem:[#allocation234_spill] sm:$0xff] %v10514_v60 }
 0x513   :  { %v2884_v4 = vld [vmem:[#allocation1] sm:$0xff] }
 0x514   :  { %2890 = vst [vmem:[#allocation1] ss:$9 sm:$0xff] %v14289_v53  ;;  %2888 = vrot.lane.b32.xlu2 %v2884_v4, %s8248_s25  ;;  %v10490_v4 = vsel %vm8861_vm8, %v2021_v40, %v2026_v49  ;;  %v14297_v49 = vld [vmem:[#allocation89_spill] sm:$0xff]  ;;  %v2034_v40 = vshll.u32 %v14272_v19, 16 }
 0x515   :  { %2892 = vst [vmem:[#allocation1 + $0x1] ss:$9 sm:$0xff] %v14290_v9 }
 0x516   :  { %2894 = vst [vmem:[#allocation1 + $0x2] ss:$9 sm:$0xff] %v14291_v35 }
 0x517   :  { %2896 = vst [vmem:[#allocation1 + $0x3] ss:$9 sm:$0xff] %v14292_v1 }
 0x518   :  { %2898 = vst [vmem:[#allocation1 + $0x4] ss:$9 sm:$0xff] %v10041_v31  ;;  %v14303_v31 = vld [vmem:[#allocation200_spill] sm:$0xff] }
 0x519   :  { %2900 = vst [vmem:[#allocation1 + $0x5] ss:$9 sm:$0xff] %v10046_v46  ;;  %v10509_v46 = vsel %vm8861_vm8, %v2030_v25, %v2034_v40  ;;  %v10519_v30 = vrot.slane %v14303_v31, 3  ;;  %v2046_v25 = vshrl.u32 %v10446_v32, 16  ;;  %v2051_v40 = vshll.u32 %v10450_v62, 16  ;;  %v14309_v31 = vld [vmem:[#allocation120_spill] sm:$0xff] }
 0x51a   :  { %14294 = vst [vmem:[#allocation232_spill] sm:$0xff] %v10490_v4 }
 0x51b   :  { %2903 = vst [vmem:[#allocation1 + $0x6] ss:$9 sm:$0xff] %v10485_v10  ;;  %v14298_v10 = vld [vmem:[#allocation90_spill] sm:$0xff]  ;;  %v2059_v59 = vshll.u32 %v10519_v30, 16 }
 0x51c   :  { %2906 = vst [vmem:[#allocation1 + $0x7] ss:$9 sm:$0xff] %v10490_v4  ;;  %v14299_v4 = vld [vmem:[#allocation113_spill] sm:$0xff] }
 0x51d   :  { %14300 = vst [vmem:[#allocation233_spill] sm:$0xff] %v10509_v46  ;;  %v10538_v32 = vsel %vm8861_vm8, %v2054_v29, %v2059_v59  ;;  %v2071_v29 = vshrl.u32 %v10465_v26, 16 }
 0x51e   :  { %14304 = vst [vmem:[#allocation200_spill] sm:$0xff] %v10519_v30  ;;  %v10543_v30 = vrot.slane %v10140_v28, 3  ;;  %v14318_v28 = vld [vmem:[#allocation203_spill] sm:$0xff] }
 0x51f   :  { %14312 = vst [vmem:[#allocation236_spill] sm:$0xff] %v10538_v32 }
 0x520   :  { %14313 = vst [vmem:[#allocation237_spill] sm:$0xff] %v10543_v30  ;;  %v2076_v59 = vshll.u32 %v10543_v30, 16 }
 0x523   :  { %v2907_v41 = vld [vmem:[#allocation1] sm:$0xff] }
 0x524   :  { %2909 = vst [vmem:[#allocation1] ss:$9 sm:$0xff] %v14168_v34  ;;  %2921 = vrot.lane.b32.xlu1 %v2907_v41, %s8243_s16  ;;  %v14301_v41 = vld [vmem:[#allocation131_spill] sm:$0xff] }
 0x525   :  { %2910 = vst [vmem:[#allocation1 + $0x1] ss:$9 sm:$0xff] %v14169_v63 }
 0x526   :  { %2911 = vst [vmem:[#allocation1 + $0x2] ss:$9 sm:$0xff] %v14297_v49 }
 0x527   :  { %2912 = vst [vmem:[#allocation1 + $0x3] ss:$9 sm:$0xff] %v14298_v10 }
 0x528   :  { %2913 = vst [vmem:[#allocation1 + $0x4] ss:$9 sm:$0xff] %v14299_v4  ;;  %v10533_v4 = vsel %vm8861_vm8, %v2046_v25, %v2051_v40  ;;  %v2063_v25 = vshrl.u32 %v10461_v51, 16  ;;  %v2068_v40 = vshll.u32 %v10465_v26, 16  ;;  %v14337_v26 = vld [vmem:[#allocation82_spill] sm:$0xff] }
 0x529   :  { %2914 = vst [vmem:[#allocation1 + $0x5] ss:$9 sm:$0xff] %v14301_v41  ;;  %v14306_v41 = vld [vmem:[#allocation5_spill] sm:$0xff] }
 0x52a   :  { %2916 = vst [vmem:[#allocation1 + $0x6] ss:$9 sm:$0xff] %v10509_v46  ;;  %v14307_v46 = vld [vmem:[#allocation99_spill] sm:$0xff] }
 0x52b   :  { %2918 = vst [vmem:[#allocation1 + $0x7] ss:$9 sm:$0xff] %v10514_v60  ;;  %v14308_v60 = vld [vmem:[#allocation100_spill] sm:$0xff] }
 0x52c   :  { %14310 = vst [vmem:[#allocation235_spill] sm:$0xff] %v10533_v4 }
 0x532   :  { %v2919_v55 = vld [vmem:[#allocation1] sm:$0xff] }
 0x533   :  { %2925 = vst [vmem:[#allocation1] ss:$9 sm:$0xff] %v14305_v14  ;;  %2923 = vrot.lane.b32.xlu0 %v2919_v55, %s8243_s16  ;;  %v14311_v55 = vld [vmem:[#allocation202_spill] sm:$0xff] }
 0x534   :  { %2927 = vst [vmem:[#allocation1 + $0x1] ss:$9 sm:$0xff] %v14306_v41 }
 0x535   :  { %2929 = vst [vmem:[#allocation1 + $0x2] ss:$9 sm:$0xff] %v14307_v46 }
 0x536   :  { %2931 = vst [vmem:[#allocation1 + $0x3] ss:$9 sm:$0xff] %v14308_v60 }
 0x537   :  { %2933 = vst [vmem:[#allocation1 + $0x4] ss:$9 sm:$0xff] %v14309_v31  ;;  %v10557_v31 = vsel %vm8861_vm8, %v2063_v25, %v2068_v40  ;;  %v14323_v40 = vld [vmem:[#allocation33_spill] sm:$0xff] }
 0x538   :  { %2935 = vst [vmem:[#allocation1 + $0x5] ss:$9 sm:$0xff] %v14311_v55  ;;  %v14315_v55 = vld [vmem:[#allocation109_spill] sm:$0xff] }
 0x539   :  { %2938 = vst [vmem:[#allocation1 + $0x6] ss:$9 sm:$0xff] %v10533_v4  ;;  %v14316_v4 = vld [vmem:[#allocation7_spill] sm:$0xff] }
 0x53a   :  { %2941 = vst [vmem:[#allocation1 + $0x7] ss:$9 sm:$0xff] %v10538_v32  ;;  %v14317_v32 = vld [vmem:[#allocation110_spill] sm:$0xff] }
 0x53b   :  { %14319 = vst [vmem:[#allocation238_spill] sm:$0xff] %v10557_v31 }
 0x541   :  { %v2942_v62 = vld [vmem:[#allocation1] sm:$0xff] }
 0x542   :  { %2944 = vst [vmem:[#allocation1] ss:$9 sm:$0xff] %v14314_v42  ;;  %2956 = vrot.lane.b32.xlu2 %v2942_v62, %s8242_s19  ;;  %v10562_v62 = vsel %vm8861_vm8, %v2071_v29, %v2076_v59  ;;  %v14324_v29 = vld [vmem:[#allocation34_spill] sm:$0xff]  ;;  %v14325_v59 = vld [vmem:[#allocation41_spill] sm:$0xff] }
 0x543   :  { %2945 = vst [vmem:[#allocation1 + $0x1] ss:$9 sm:$0xff] %v14315_v55 }
 0x544   :  { %2946 = vst [vmem:[#allocation1 + $0x2] ss:$9 sm:$0xff] %v14316_v4 }
 0x545   :  { %2947 = vst [vmem:[#allocation1 + $0x3] ss:$9 sm:$0xff] %v14317_v32 }
 0x546   :  { %2948 = vst [vmem:[#allocation1 + $0x4] ss:$9 sm:$0xff] %v14318_v28 }
 0x547   :  { %2949 = vst [vmem:[#allocation1 + $0x5] ss:$9 sm:$0xff] %v10146_v48  ;;  %v14349_v48 = vld [vmem:[#allocation11_spill] sm:$0xff] }
 0x548   :  { %14320 = vst [vmem:[#allocation239_spill] sm:$0xff] %v10562_v62 }
 0x549   :  { %2951 = vst [vmem:[#allocation1 + $0x6] ss:$9 sm:$0xff] %v10557_v31 }
 0x54a   :  { %2953 = vst [vmem:[#allocation1 + $0x7] ss:$9 sm:$0xff] %v10562_v62  ;;  %v14336_v62 = vld [vmem:[#allocation74_spill] sm:$0xff] }
 0x551   :  { %v2954_v30 = vld [vmem:[#allocation1] sm:$0xff] }
 0x552   :  { %2960 = vst [vmem:[#allocation1] ss:$9 sm:$0xff] %v14107_v12  ;;  %2958 = vrot.lane.b32.xlu1 %v2954_v30, %s8242_s19 }
 0x553   :  { %2962 = vst [vmem:[#allocation1 + $0x1] ss:$9 sm:$0xff] %v14193_v8 }
 0x554   :  { %2964 = vst [vmem:[#allocation1 + $0x2] ss:$9 sm:$0xff] %v14110_v43 }
 0x555   :  { %2966 = vst [vmem:[#allocation1 + $0x3] ss:$9 sm:$0xff] %v14195_v21 }
 0x556   :  { %2968 = vst [vmem:[#allocation1 + $0x4] ss:$9 sm:$0xff] %v9907_v6 }
 0x557   :  { %2970 = vst [vmem:[#allocation1 + $0x5] ss:$9 sm:$0xff] %v10024_v47  ;;  %v14345_v47 = vld [vmem:[#allocation103_spill] sm:$0xff] }
 0x558   :  { %2972 = vst [vmem:[#allocation1 + $0x6] ss:$9 sm:$0xff] %v14267_v61  ;;  %v14333_v61 = vld [vmem:[#allocation69_spill] sm:$0xff] }
 0x559   :  { %2974 = vst [vmem:[#allocation1 + $0x7] ss:$9 sm:$0xff] %v10471_v17 }
 0x560   :  { %v10575_v25 = vld [vmem:[#allocation1] sm:$0xff] }
 0x561   :  { %14321 = vst [vmem:[#allocation240_spill] sm:$0xff] %v10575_v25 }
 0x562   :  { %2976 = vst [vmem:[#allocation1] ss:$9 sm:$0xff] %v14119_v15 }
 0x563   :  { %2977 = vst [vmem:[#allocation1 + $0x1] ss:$9 sm:$0xff] %v14197_v20 }
 0x564   :  { %2978 = vst [vmem:[#allocation1 + $0x2] ss:$9 sm:$0xff] %v14123_v23 }
 0x565   :  { %2979 = vst [vmem:[#allocation1 + $0x3] ss:$9 sm:$0xff] %v14198_v39 }
 0x566   :  { %2980 = vst [vmem:[#allocation1 + $0x4] ss:$9 sm:$0xff] %v9934_v44 }
 0x567   :  { %2981 = vst [vmem:[#allocation1 + $0x5] ss:$9 sm:$0xff] %v10057_v52  ;;  %v14341_v52 = vld [vmem:[#allocation93_spill] sm:$0xff] }
 0x568   :  { %2982 = vst [vmem:[#allocation1 + $0x6] ss:$9 sm:$0xff] %v14272_v19  ;;  %v14331_v19 = vld [vmem:[#allocation46_spill] sm:$0xff] }
 0x569   :  { %2983 = vst [vmem:[#allocation1 + $0x7] ss:$9 sm:$0xff] %v10495_v22  ;;  %v14328_v22 = vld [vmem:[#allocation56_spill] sm:$0xff] }
 0x570   :  { %v10585_v30 = vld [vmem:[#allocation1] sm:$0xff] }
 0x571   :  { %14322 = vst [vmem:[#allocation241_spill] sm:$0xff] %v10585_v30  ;;  %v14329_v30 = vld [vmem:[#allocation57_spill] sm:$0xff] }
 0x572   :  { %3295 = vst [vmem:[#allocation1] ss:$9 sm:$0xff] %v14323_v40  ;;  %v14330_v40 = vld [vmem:[#allocation45_spill] sm:$0xff] }
 0x573   :  { %3297 = vst [vmem:[#allocation1 + $0x1] ss:$9 sm:$0xff] %v14324_v29 }
 0x574   :  { %3299 = vst [vmem:[#allocation1 + $0x2] ss:$9 sm:$0xff] %v14325_v59 }
 0x575   :  { %3301 = vst [vmem:[#allocation1 + $0x3] ss:$9 sm:$0xff] %v14326_v38 }
 0x576   :  { %3303 = vst [vmem:[#allocation1 + $0x4] ss:$9 sm:$0xff] %v14273_v2 }
 0x577   :  { %3305 = vst [vmem:[#allocation1 + $0x5] ss:$9 sm:$0xff] %v14274_v36 }
 0x578   :  { %3307 = vst [vmem:[#allocation1 + $0x6] ss:$9 sm:$0xff] %v14275_v11 }
 0x579   :  { %3309 = vst [vmem:[#allocation1 + $0x7] ss:$9 sm:$0xff] %v14276_v50 }
 0x580   :  { %v10595_v25 = vld [vmem:[#allocation1] sm:$0xff] }
 0x581   :  { %14327 = vst [vmem:[#allocation33_spill] sm:$0xff] %v10595_v25  ;;  %v14334_v25 = vld [vmem:[#allocation72_spill] sm:$0xff] }
 0x582   :  { %3311 = vst [vmem:[#allocation1] ss:$9 sm:$0xff] %v14328_v22  ;;  %v14335_v22 = vld [vmem:[#allocation73_spill] sm:$0xff] }
 0x583   :  { %3312 = vst [vmem:[#allocation1 + $0x1] ss:$9 sm:$0xff] %v14329_v30 }
 0x584   :  { %3313 = vst [vmem:[#allocation1 + $0x2] ss:$9 sm:$0xff] %v14330_v40 }
 0x585   :  { %3314 = vst [vmem:[#allocation1 + $0x3] ss:$9 sm:$0xff] %v14331_v19 }
 0x586   :  { %3315 = vst [vmem:[#allocation1 + $0x4] ss:$9 sm:$0xff] %v14281_v45 }
 0x587   :  { %3316 = vst [vmem:[#allocation1 + $0x5] ss:$9 sm:$0xff] %v14282_v57 }
 0x588   :  { %3317 = vst [vmem:[#allocation1 + $0x6] ss:$9 sm:$0xff] %v14283_v16 }
 0x589   :  { %3318 = vst [vmem:[#allocation1 + $0x7] ss:$9 sm:$0xff] %v14284_v27 }
 0x590   :  { %v10605_v17 = vld [vmem:[#allocation1] sm:$0xff] }
 0x591   :  { %14332 = vst [vmem:[#allocation34_spill] sm:$0xff] %v10605_v17  ;;  %v14340_v17 = vld [vmem:[#allocation86_spill] sm:$0xff] }
 0x592   :  { %3320 = vst [vmem:[#allocation1] ss:$9 sm:$0xff] %v14333_v61  ;;  %v14338_v61 = vld [vmem:[#allocation84_spill] sm:$0xff] }
 0x593   :  { %3322 = vst [vmem:[#allocation1 + $0x1] ss:$9 sm:$0xff] %v14334_v25  ;;  %v14339_v25 = vld [vmem:[#allocation85_spill] sm:$0xff] }
 0x594   :  { %3324 = vst [vmem:[#allocation1 + $0x2] ss:$9 sm:$0xff] %v14335_v22 }
 0x595   :  { %3326 = vst [vmem:[#allocation1 + $0x3] ss:$9 sm:$0xff] %v14336_v62 }
 0x596   :  { %3328 = vst [vmem:[#allocation1 + $0x4] ss:$9 sm:$0xff] %v14289_v53 }
 0x597   :  { %3330 = vst [vmem:[#allocation1 + $0x5] ss:$9 sm:$0xff] %v14290_v9 }
 0x598   :  { %3332 = vst [vmem:[#allocation1 + $0x6] ss:$9 sm:$0xff] %v14291_v35 }
 0x599   :  { %3334 = vst [vmem:[#allocation1 + $0x7] ss:$9 sm:$0xff] %v14292_v1 }
 0x5a0   :  { %v3335_v31 = vld [vmem:[#allocation1] sm:$0xff] }
 0x5a1   :  { %3337 = vst [vmem:[#allocation1] ss:$9 sm:$0xff] %v14337_v26  ;;  %3347 = vrot.lane.b32.xlu0 %v3335_v31, %s8244_s21  ;;  %v14342_v26 = vld [vmem:[#allocation95_spill] sm:$0xff]  ;;  %v14343_v31 = vld [vmem:[#allocation96_spill] sm:$0xff] }
 0x5a2   :  { %3338 = vst [vmem:[#allocation1 + $0x1] ss:$9 sm:$0xff] %v14338_v61  ;;  %v14344_v61 = vld [vmem:[#allocation97_spill] sm:$0xff] }
 0x5a3   :  { %3339 = vst [vmem:[#allocation1 + $0x2] ss:$9 sm:$0xff] %v14339_v25 }
 0x5a4   :  { %3340 = vst [vmem:[#allocation1 + $0x3] ss:$9 sm:$0xff] %v14340_v17 }
 0x5a5   :  { %3341 = vst [vmem:[#allocation1 + $0x4] ss:$9 sm:$0xff] %v14168_v34 }
 0x5a6   :  { %3342 = vst [vmem:[#allocation1 + $0x5] ss:$9 sm:$0xff] %v14169_v63 }
 0x5a7   :  { %3343 = vst [vmem:[#allocation1 + $0x6] ss:$9 sm:$0xff] %v14297_v49 }
 0x5a8   :  { %3344 = vst [vmem:[#allocation1 + $0x7] ss:$9 sm:$0xff] %v14298_v10 }
 0x5af   :  { %v3345_v51 = vld [vmem:[#allocation1] sm:$0xff] }
 0x5b0   :  { %3351 = vst [vmem:[#allocation1] ss:$9 sm:$0xff] %v14341_v52  ;;  %3349 = vrot.lane.b32.xlu1 %v3345_v51, %s8244_s21  ;;  %v14346_v52 = vld [vmem:[#allocation105_spill] sm:$0xff]  ;;  %v14347_v51 = vld [vmem:[#allocation106_spill] sm:$0xff] }
 0x5b1   :  { %3353 = vst [vmem:[#allocation1 + $0x1] ss:$9 sm:$0xff] %v14342_v26  ;;  %v14348_v26 = vld [vmem:[#allocation107_spill] sm:$0xff] }
 0x5b2   :  { %3355 = vst [vmem:[#allocation1 + $0x2] ss:$9 sm:$0xff] %v14343_v31 }
 0x5b3   :  { %3357 = vst [vmem:[#allocation1 + $0x3] ss:$9 sm:$0xff] %v14344_v61 }
 0x5b4   :  { %3359 = vst [vmem:[#allocation1 + $0x4] ss:$9 sm:$0xff] %v14305_v14 }
 0x5b5   :  { %3361 = vst [vmem:[#allocation1 + $0x5] ss:$9 sm:$0xff] %v14306_v41 }
 0x5b6   :  { %3363 = vst [vmem:[#allocation1 + $0x6] ss:$9 sm:$0xff] %v14307_v46 }
 0x5b7   :  { %3365 = vst [vmem:[#allocation1 + $0x7] ss:$9 sm:$0xff] %v14308_v60 }
 0x5be   :  { %v3366_v44 = vld [vmem:[#allocation1] sm:$0xff] }
 0x5bf   :  { %3368 = vst [vmem:[#allocation1] ss:$9 sm:$0xff] %v14345_v47  ;;  %3378 = vrot.lane.b32.xlu2 %v3366_v44, %s8247_s24  ;;  %v14350_v44 = vld [vmem:[#allocation64_spill] sm:$0xff]  ;;  %v14351_v47 = vld [vmem:[#allocation15_spill] sm:$0xff] }
 0x5c0   :  { %3369 = vst [vmem:[#allocation1 + $0x1] ss:$9 sm:$0xff] %v14346_v52  ;;  %v14352_v52 = vld [vmem:[#allocation67_spill] sm:$0xff] }
 0x5c1   :  { %3370 = vst [vmem:[#allocation1 + $0x2] ss:$9 sm:$0xff] %v14347_v51 }
 0x5c2   :  { %3371 = vst [vmem:[#allocation1 + $0x3] ss:$9 sm:$0xff] %v14348_v26 }
 0x5c3   :  { %3372 = vst [vmem:[#allocation1 + $0x4] ss:$9 sm:$0xff] %v14314_v42 }
 0x5c4   :  { %3373 = vst [vmem:[#allocation1 + $0x5] ss:$9 sm:$0xff] %v14315_v55 }
 0x5c5   :  { %3374 = vst [vmem:[#allocation1 + $0x6] ss:$9 sm:$0xff] %v14316_v4 }
 0x5c6   :  { %3375 = vst [vmem:[#allocation1 + $0x7] ss:$9 sm:$0xff] %v14317_v32  ;;  %v14353_v32 = vld [vmem:[#allocation22_spill] sm:$0xff] }
 0x5cd   :  { %v3376_v6 = vld [vmem:[#allocation1] sm:$0xff] }
 0x5ce   :  { %3382 = vst [vmem:[#allocation1] ss:$9 sm:$0xff] %v14349_v48  ;;  %3380 = vrot.lane.b32.xlu0 %v3376_v6, %s8247_s24  ;;  %v14354_v6 = vld [vmem:[#allocation79_spill] sm:$0xff] }
 0x5cf   :  { %3384 = vst [vmem:[#allocation1 + $0x1] ss:$9 sm:$0xff] %v14350_v44  ;;  %v14355_v48 = vld [vmem:[#allocation27_spill] sm:$0xff]  ;;  %v14356_v44 = vld [vmem:[#allocation80_spill] sm:$0xff] }
 0x5d0   :  { %3386 = vst [vmem:[#allocation1 + $0x2] ss:$9 sm:$0xff] %v14351_v47 }
 0x5d1   :  { %3388 = vst [vmem:[#allocation1 + $0x3] ss:$9 sm:$0xff] %v14352_v52 }
 0x5d2   :  { %3390 = vst [vmem:[#allocation1 + $0x4] ss:$9 sm:$0xff] %v14107_v12 }
 0x5d3   :  { %3392 = vst [vmem:[#allocation1 + $0x5] ss:$9 sm:$0xff] %v14193_v8 }
 0x5d4   :  { %3394 = vst [vmem:[#allocation1 + $0x6] ss:$9 sm:$0xff] %v14110_v43 }
 0x5d5   :  { %3396 = vst [vmem:[#allocation1 + $0x7] ss:$9 sm:$0xff] %v14195_v21 }
 0x5dc   :  { %v3397_v28 = vld [vmem:[#allocation1] sm:$0xff] }
 0x5dd   :  { %3399 = vst [vmem:[#allocation1] ss:$9 sm:$0xff] %v14353_v32  ;;  %3409 = vrot.lane.b32.xlu1 %v3397_v28, %s8245_s22  ;;  %v14357_v32 = vld [vmem:[#allocation40_spill] sm:$0xff]  ;;  %v14358_v28 = vld [vmem:[#allocation91_spill] sm:$0xff] }
 0x5de   :  { %3400 = vst [vmem:[#allocation1 + $0x1] ss:$9 sm:$0xff] %v14354_v6  ;;  %v14359_v6 = vld [vmem:[#allocation92_spill] sm:$0xff] }
 0x5df   :  { %3401 = vst [vmem:[#allocation1 + $0x2] ss:$9 sm:$0xff] %v14355_v48  ;;  %v14382_v48 = vld [vmem:[#allocation9_spill] sm:$0xff] }
 0x5e0   :  { %3402 = vst [vmem:[#allocation1 + $0x3] ss:$9 sm:$0xff] %v14356_v44  ;;  %v14377_v44 = vld [vmem:[#allocation153_spill] sm:$0xff] }
 0x5e1   :  { %3403 = vst [vmem:[#allocation1 + $0x4] ss:$9 sm:$0xff] %v14119_v15 }
 0x5e2   :  { %3404 = vst [vmem:[#allocation1 + $0x5] ss:$9 sm:$0xff] %v14197_v20  ;;  %v14375_v20 = vld [vmem:[#allocation144_spill] sm:$0xff] }
 0x5e3   :  { %3405 = vst [vmem:[#allocation1 + $0x6] ss:$9 sm:$0xff] %v14123_v23  ;;  %v14360_v23 = vld [vmem:[#allocation24_spill] sm:$0xff] }
 0x5e4   :  { %3406 = vst [vmem:[#allocation1 + $0x7] ss:$9 sm:$0xff] %v14198_v39 }
 0x5eb   :  { %v3407_v21 = vld [vmem:[#allocation1] sm:$0xff] }
 0x5ec   :  { %3413 = vst [vmem:[#allocation1] ss:$9 sm:$0xff] %v14324_v29  ;;  %3411 = vrot.lane.b32.xlu1 %v3407_v21, %s8245_s22  ;;  %v14361_v21 = vld [vmem:[#allocation44_spill] sm:$0xff]  ;;  %v14362_v29 = vld [vmem:[#allocation101_spill] sm:$0xff] }
 0x5ed   :  { %3415 = vst [vmem:[#allocation1 + $0x1] ss:$9 sm:$0xff] %v14357_v32  ;;  %v14363_v32 = vld [vmem:[#allocation102_spill] sm:$0xff] }
 0x5ee   :  { %3417 = vst [vmem:[#allocation1 + $0x2] ss:$9 sm:$0xff] %v14326_v38 }
 0x5ef   :  { %3419 = vst [vmem:[#allocation1 + $0x3] ss:$9 sm:$0xff] %v14358_v28  ;;  %v14365_v28 = vld [vmem:[#allocation127_spill] sm:$0xff] }
 0x5f0   :  { %3421 = vst [vmem:[#allocation1 + $0x4] ss:$9 sm:$0xff] %v14274_v36 }
 0x5f1   :  { %3423 = vst [vmem:[#allocation1 + $0x5] ss:$9 sm:$0xff] %v14359_v6  ;;  %v14364_v6 = vld [vmem:[#allocation6_spill] sm:$0xff] }
 0x5f2   :  { %3425 = vst [vmem:[#allocation1 + $0x6] ss:$9 sm:$0xff] %v14276_v50 }
 0x5f3   :  { %3427 = vst [vmem:[#allocation1 + $0x7] ss:$9 sm:$0xff] %v14360_v23 }
 0x5fa   :  { %v3428_v39 = vld [vmem:[#allocation1] sm:$0xff] }
 0x5fb   :  { %3430 = vst [vmem:[#allocation1] ss:$9 sm:$0xff] %v14329_v30  ;;  %3440 = vrot.lane.b32.xlu1 %v3428_v39, %s8246_s23  ;;  %v14366_v39 = vld [vmem:[#allocation130_spill] sm:$0xff]  ;;  %v14367_v30 = vld [vmem:[#allocation136_spill] sm:$0xff] }
 0x5fc   :  { %3431 = vst [vmem:[#allocation1 + $0x1] ss:$9 sm:$0xff] %v14361_v21  ;;  %v14368_v21 = vld [vmem:[#allocation135_spill] sm:$0xff] }
 0x5fd   :  { %3432 = vst [vmem:[#allocation1 + $0x2] ss:$9 sm:$0xff] %v14331_v19 }
 0x5fe   :  { %3433 = vst [vmem:[#allocation1 + $0x3] ss:$9 sm:$0xff] %v14362_v29  ;;  %v14373_v29 = vld [vmem:[#allocation145_spill] sm:$0xff] }
 0x5ff   :  { %3434 = vst [vmem:[#allocation1 + $0x4] ss:$9 sm:$0xff] %v14282_v57 }
 0x600   :  { %3435 = vst [vmem:[#allocation1 + $0x5] ss:$9 sm:$0xff] %v14363_v32  ;;  %v14369_v32 = vld [vmem:[#allocation140_spill] sm:$0xff] }
 0x601   :  { %3436 = vst [vmem:[#allocation1 + $0x6] ss:$9 sm:$0xff] %v14284_v27 }
 0x602   :  { %3437 = vst [vmem:[#allocation1 + $0x7] ss:$9 sm:$0xff] %v14364_v6 }
 0x609   :  { %v3438_v23 = vld [vmem:[#allocation1] sm:$0xff] }
 0x60a   :  { %3444 = vst [vmem:[#allocation1] ss:$9 sm:$0xff] %v14365_v28  ;;  %3442 = vrot.lane.b32.xlu0 %v3438_v23, %s8246_s23  ;;  %v14370_v23 = vld [vmem:[#allocation141_spill] sm:$0xff]  ;;  %v14371_v28 = vld [vmem:[#allocation147_spill] sm:$0xff] }
 0x60b   :  { %3446 = vst [vmem:[#allocation1 + $0x1] ss:$9 sm:$0xff] %v14366_v39 }
 0x60c   :  { %3448 = vst [vmem:[#allocation1 + $0x2] ss:$9 sm:$0xff] %v9394_v5  ;;  %v14372_v5 = vld [vmem:[#allocation148_spill] sm:$0xff] }
 0x60d   :  { %3450 = vst [vmem:[#allocation1 + $0x3] ss:$9 sm:$0xff] %v9397_v37 }
 0x60e   :  { %3452 = vst [vmem:[#allocation1 + $0x4] ss:$9 sm:$0xff] %v9423_v7  ;;  %v14374_v7 = vld [vmem:[#allocation143_spill] sm:$0xff] }
 0x60f   :  { %3454 = vst [vmem:[#allocation1 + $0x5] ss:$9 sm:$0xff] %v9404_v18 }
 0x610   :  { %3456 = vst [vmem:[#allocation1 + $0x6] ss:$9 sm:$0xff] %v14367_v30  ;;  %v14376_v30 = vld [vmem:[#allocation146_spill] sm:$0xff] }
 0x611   :  { %3458 = vst [vmem:[#allocation1 + $0x7] ss:$9 sm:$0xff] %v14368_v21 }
 0x618   :  { %v3459_v6 = vld [vmem:[#allocation1] sm:$0xff] }
 0x619   :  { %3461 = vst [vmem:[#allocation1] ss:$9 sm:$0xff] %v14369_v32  ;;  %3471 = vrot.lane.b32.xlu1 %v3459_v6, %s8248_s25  ;;  %v14378_v6 = vld [vmem:[#allocation154_spill] sm:$0xff]  ;;  %v14379_v32 = vld [vmem:[#allocation157_spill] sm:$0xff] }
 0x61a   :  { %3462 = vst [vmem:[#allocation1 + $0x1] ss:$9 sm:$0xff] %v14370_v23 }
 0x61b   :  { %3463 = vst [vmem:[#allocation1 + $0x2] ss:$9 sm:$0xff] %v14371_v28  ;;  %v14381_v28 = vld [vmem:[#allocation159_spill] sm:$0xff] }
 0x61c   :  { %3464 = vst [vmem:[#allocation1 + $0x3] ss:$9 sm:$0xff] %v14372_v5 }
 0x61d   :  { %3465 = vst [vmem:[#allocation1 + $0x4] ss:$9 sm:$0xff] %v14373_v29  ;;  %v14380_v29 = vld [vmem:[#allocation158_spill] sm:$0xff] }
 0x61e   :  { %3466 = vst [vmem:[#allocation1 + $0x5] ss:$9 sm:$0xff] %v14374_v7 }
 0x61f   :  { %3467 = vst [vmem:[#allocation1 + $0x6] ss:$9 sm:$0xff] %v14375_v20 }
 0x620   :  { %3468 = vst [vmem:[#allocation1 + $0x7] ss:$9 sm:$0xff] %v14376_v30 }
 0x627   :  { %v3469_v15 = vld [vmem:[#allocation1] sm:$0xff] }
 0x628   :  { %3475 = vst [vmem:[#allocation1] ss:$9 sm:$0xff] %v14377_v44  ;;  %3473 = vrot.lane.b32.xlu2 %v3469_v15, %s8248_s25  ;;  %v14383_v15 = vld [vmem:[#allocation164_spill] sm:$0xff] }
 0x629   :  { %3477 = vst [vmem:[#allocation1 + $0x1] ss:$9 sm:$0xff] %v14378_v6  ;;  %v14384_v6 = vld [vmem:[#allocation166_spill] sm:$0xff]  ;;  %v14385_v44 = vld [vmem:[#allocation168_spill] sm:$0xff] }
 0x62a   :  { %3479 = vst [vmem:[#allocation1 + $0x2] ss:$9 sm:$0xff] %v14222_v13 }
 0x62b   :  { %3481 = vst [vmem:[#allocation1 + $0x3] ss:$9 sm:$0xff] %v14223_v58 }
 0x62c   :  { %3483 = vst [vmem:[#allocation1 + $0x4] ss:$9 sm:$0xff] %v14379_v32 }
 0x62d   :  { %3485 = vst [vmem:[#allocation1 + $0x5] ss:$9 sm:$0xff] %v14380_v29  ;;  %v14386_v29 = vld [vmem:[#allocation169_spill] sm:$0xff] }
 0x62e   :  { %3487 = vst [vmem:[#allocation1 + $0x6] ss:$9 sm:$0xff] %v14381_v28  ;;  %v14387_v28 = vld [vmem:[#allocation8_spill] sm:$0xff] }
 0x62f   :  { %3489 = vst [vmem:[#allocation1 + $0x7] ss:$9 sm:$0xff] %v14228_v33 }
 0x636   :  { %v3490_v20 = vld [vmem:[#allocation1] sm:$0xff] }
 0x637   :  { %3492 = vst [vmem:[#allocation1] ss:$9 sm:$0xff] %v14382_v48  ;;  %3502 = vrot.lane.b32.xlu1 %v3490_v20, %s8243_s16  ;;  %v14388_v20 = vld [vmem:[#allocation175_spill] sm:$0xff] }
 0x638   :  { %3493 = vst [vmem:[#allocation1 + $0x1] ss:$9 sm:$0xff] %v14383_v15  ;;  %v14389_v15 = vld [vmem:[#allocation178_spill] sm:$0xff]  ;;  %v14390_v48 = vld [vmem:[#allocation179_spill] sm:$0xff] }
 0x639   :  { %3494 = vst [vmem:[#allocation1 + $0x2] ss:$9 sm:$0xff] %v14231_v24 }
 0x63a   :  { %3495 = vst [vmem:[#allocation1 + $0x3] ss:$9 sm:$0xff] %v14384_v6 }
 0x63b   :  { %3496 = vst [vmem:[#allocation1 + $0x4] ss:$9 sm:$0xff] %v14233_v0  ;;  %v14394_v0 = vld [vmem:[#allocation185_spill] sm:$0xff] }
 0x63c   :  { %3497 = vst [vmem:[#allocation1 + $0x5] ss:$9 sm:$0xff] %v14385_v44  ;;  %v14391_v44 = vld [vmem:[#allocation180_spill] sm:$0xff] }
 0x63d   :  { %3498 = vst [vmem:[#allocation1 + $0x6] ss:$9 sm:$0xff] %v14386_v29  ;;  %v14392_v29 = vld [vmem:[#allocation181_spill] sm:$0xff] }
 0x63e   :  { %3499 = vst [vmem:[#allocation1 + $0x7] ss:$9 sm:$0xff] %v14237_v3 }
 0x645   :  { %v3500_v33 = vld [vmem:[#allocation1] sm:$0xff] }
 0x646   :  { %3506 = vst [vmem:[#allocation1] ss:$9 sm:$0xff] %v14387_v28  ;;  %3504 = vrot.lane.b32.xlu1 %v3500_v33, %s8243_s16  ;;  %v14395_v28 = vld [vmem:[#allocation111_spill] sm:$0xff] }
 0x647   :  { %3508 = vst [vmem:[#allocation1 + $0x1] ss:$9 sm:$0xff] %v14388_v20  ;;  %v14396_v33 = vld [vmem:[#allocation187_spill] sm:$0xff]  ;;  %v14397_v20 = vld [vmem:[#allocation188_spill] sm:$0xff] }
 0x648   :  { %3510 = vst [vmem:[#allocation1 + $0x2] ss:$9 sm:$0xff] %v14241_v56  ;;  %v14398_v56 = vld [vmem:[#allocation189_spill] sm:$0xff] }
 0x649   :  { %3512 = vst [vmem:[#allocation1 + $0x3] ss:$9 sm:$0xff] %v14242_v54  ;;  %v14399_v54 = vld [vmem:[#allocation190_spill] sm:$0xff] }
 0x64a   :  { %3514 = vst [vmem:[#allocation1 + $0x4] ss:$9 sm:$0xff] %v14389_v15  ;;  %v14400_v15 = vld [vmem:[#allocation191_spill] sm:$0xff] }
 0x64b   :  { %3516 = vst [vmem:[#allocation1 + $0x5] ss:$9 sm:$0xff] %v14390_v48  ;;  %v14401_v48 = vld [vmem:[#allocation192_spill] sm:$0xff] }
 0x64c   :  { %3518 = vst [vmem:[#allocation1 + $0x6] ss:$9 sm:$0xff] %v14391_v44 }
 0x64d   :  { %3520 = vst [vmem:[#allocation1 + $0x7] ss:$9 sm:$0xff] %v14392_v29  ;;  %v14402_v29 = vld [vmem:[#allocation52_spill] sm:$0xff] }
 0x654   :  { %v10723_v3 = vld [vmem:[#allocation1] sm:$0xff] }
 0x655   :  { %14393 = vst [vmem:[#allocation56_spill] sm:$0xff] %v10723_v3  ;;  %v14403_v3 = vld [vmem:[#allocation149_spill] sm:$0xff] }
 0x656   :  { %3523 = vst [vmem:[#allocation1] ss:$9 sm:$0xff] %v14394_v0  ;;  %v14405_v0 = vld [vmem:[#allocation150_spill] sm:$0xff] }
 0x657   :  { %3524 = vst [vmem:[#allocation1 + $0x1] ss:$9 sm:$0xff] %v14395_v28  ;;  %v14404_v28 = vld [vmem:[#allocation114_spill] sm:$0xff] }
 0x658   :  { %3525 = vst [vmem:[#allocation1 + $0x2] ss:$9 sm:$0xff] %v14396_v33  ;;  %v14411_v33 = vld [vmem:[#allocation121_spill] sm:$0xff] }
 0x659   :  { %3526 = vst [vmem:[#allocation1 + $0x3] ss:$9 sm:$0xff] %v14397_v20  ;;  %v14406_v20 = vld [vmem:[#allocation116_spill] sm:$0xff] }
 0x65a   :  { %3527 = vst [vmem:[#allocation1 + $0x4] ss:$9 sm:$0xff] %v14398_v56  ;;  %v14407_v56 = vld [vmem:[#allocation151_spill] sm:$0xff] }
 0x65b   :  { %3528 = vst [vmem:[#allocation1 + $0x5] ss:$9 sm:$0xff] %v14399_v54  ;;  %v14408_v54 = vld [vmem:[#allocation58_spill] sm:$0xff] }
 0x65c   :  { %3529 = vst [vmem:[#allocation1 + $0x6] ss:$9 sm:$0xff] %v14400_v15  ;;  %v14409_v15 = vld [vmem:[#allocation152_spill] sm:$0xff] }
 0x65d   :  { %3530 = vst [vmem:[#allocation1 + $0x7] ss:$9 sm:$0xff] %v14401_v48 }
 0x664   :  { %v3531_v44 = vld [vmem:[#allocation1] sm:$0xff] }
 0x665   :  { %3537 = vst [vmem:[#allocation1] ss:$9 sm:$0xff] %v14402_v29  ;;  %3535 = vrot.lane.b32.xlu0 %v3531_v44, %s8242_s19  ;;  %v14412_v29 = vld [vmem:[#allocation161_spill] sm:$0xff]  ;;  %v14413_v44 = vld [vmem:[#allocation59_spill] sm:$0xff] }
 0x666   :  { %3539 = vst [vmem:[#allocation1 + $0x1] ss:$9 sm:$0xff] %v14403_v3  ;;  %v14414_v3 = vld [vmem:[#allocation162_spill] sm:$0xff] }
 0x667   :  { %3541 = vst [vmem:[#allocation1 + $0x2] ss:$9 sm:$0xff] %v14404_v28  ;;  %v14415_v28 = vld [vmem:[#allocation65_spill] sm:$0xff] }
 0x668   :  { %3543 = vst [vmem:[#allocation1 + $0x3] ss:$9 sm:$0xff] %v14405_v0  ;;  %v14416_v0 = vld [vmem:[#allocation163_spill] sm:$0xff] }
 0x669   :  { %3545 = vst [vmem:[#allocation1 + $0x4] ss:$9 sm:$0xff] %v14406_v20  ;;  %v14417_v20 = vld [vmem:[#allocation125_spill] sm:$0xff] }
 0x66a   :  { %3547 = vst [vmem:[#allocation1 + $0x5] ss:$9 sm:$0xff] %v14407_v56  ;;  %v14418_v56 = vld [vmem:[#allocation10_spill] sm:$0xff] }
 0x66b   :  { %3549 = vst [vmem:[#allocation1 + $0x6] ss:$9 sm:$0xff] %v14408_v54 }
 0x66c   :  { %3551 = vst [vmem:[#allocation1 + $0x7] ss:$9 sm:$0xff] %v14409_v15 }
 0x673   :  { %v10742_v48 = vld [vmem:[#allocation1] sm:$0xff] }
 0x674   :  { %14410 = vst [vmem:[#allocation57_spill] sm:$0xff] %v10742_v48  ;;  %v14420_v48 = vld [vmem:[#allocation171_spill] sm:$0xff] }
 0x675   :  { %3553 = vst [vmem:[#allocation1] ss:$9 sm:$0xff] %v14411_v33  ;;  %v14422_v33 = vld [vmem:[#allocation173_spill] sm:$0xff] }
 0x676   :  { %3554 = vst [vmem:[#allocation1 + $0x1] ss:$9 sm:$0xff] %v14412_v29  ;;  %v14421_v29 = vld [vmem:[#allocation172_spill] sm:$0xff] }
 0x677   :  { %3555 = vst [vmem:[#allocation1 + $0x2] ss:$9 sm:$0xff] %v14413_v44 }
 0x678   :  { %3556 = vst [vmem:[#allocation1 + $0x3] ss:$9 sm:$0xff] %v14414_v3 }
 0x679   :  { %3557 = vst [vmem:[#allocation1 + $0x4] ss:$9 sm:$0xff] %v14415_v28 }
 0x67a   :  { %3558 = vst [vmem:[#allocation1 + $0x5] ss:$9 sm:$0xff] %v14416_v0  ;;  %v14423_v0 = vld [vmem:[#allocation174_spill] sm:$0xff] }
 0x67b   :  { %3559 = vst [vmem:[#allocation1 + $0x6] ss:$9 sm:$0xff] %v14417_v20 }
 0x67c   :  { %3560 = vst [vmem:[#allocation1 + $0x7] ss:$9 sm:$0xff] %v14418_v56 }
 0x683   :  { %v10752_v54 = vld [vmem:[#allocation1] sm:$0xff] }
 0x684   :  { %14419 = vst [vmem:[#allocation69_spill] sm:$0xff] %v10752_v54  ;;  %v14424_v54 = vld [vmem:[#allocation47_spill] sm:$0xff] }
 0x685   :  { %3562 = vst [vmem:[#allocation1] ss:$9 sm:$0xff] %v14366_v39  ;;  %v14426_v39 = vld [vmem:[#allocation183_spill] sm:$0xff] }
 0x686   :  { %3564 = vst [vmem:[#allocation1 + $0x1] ss:$9 sm:$0xff] %v14420_v48  ;;  %v14425_v48 = vld [vmem:[#allocation182_spill] sm:$0xff] }
 0x687   :  { %3566 = vst [vmem:[#allocation1 + $0x2] ss:$9 sm:$0xff] %v9397_v37 }
 0x688   :  { %3568 = vst [vmem:[#allocation1 + $0x3] ss:$9 sm:$0xff] %v14421_v29 }
 0x689   :  { %3570 = vst [vmem:[#allocation1 + $0x4] ss:$9 sm:$0xff] %v9404_v18 }
 0x68a   :  { %3572 = vst [vmem:[#allocation1 + $0x5] ss:$9 sm:$0xff] %v14422_v33  ;;  %v14427_v33 = vld [vmem:[#allocation184_spill] sm:$0xff] }
 0x68b   :  { %3574 = vst [vmem:[#allocation1 + $0x6] ss:$9 sm:$0xff] %v14368_v21 }
 0x68c   :  { %3576 = vst [vmem:[#allocation1 + $0x7] ss:$9 sm:$0xff] %v14423_v0 }
 0x693   :  { %v3577_v20 = vld [vmem:[#allocation1] sm:$0xff] }
 0x694   :  { %3579 = vst [vmem:[#allocation1] ss:$9 sm:$0xff] %v14370_v23  ;;  %3589 = vrot.lane.b32.xlu2 %v3577_v20, %s8244_s21  ;;  %v14428_v20 = vld [vmem:[#allocation25_spill] sm:$0xff] }
 0x695   :  { %3580 = vst [vmem:[#allocation1 + $0x1] ss:$9 sm:$0xff] %v14424_v54  ;;  %v14429_v54 = vld [vmem:[#allocation26_spill] sm:$0xff] }
 0x696   :  { %3581 = vst [vmem:[#allocation1 + $0x2] ss:$9 sm:$0xff] %v14372_v5 }
 0x697   :  { %3582 = vst [vmem:[#allocation1 + $0x3] ss:$9 sm:$0xff] %v14425_v48 }
 0x698   :  { %3583 = vst [vmem:[#allocation1 + $0x4] ss:$9 sm:$0xff] %v14374_v7 }
 0x699   :  { %3584 = vst [vmem:[#allocation1 + $0x5] ss:$9 sm:$0xff] %v14426_v39 }
 0x69a   :  { %3585 = vst [vmem:[#allocation1 + $0x6] ss:$9 sm:$0xff] %v14376_v30 }
 0x69b   :  { %3586 = vst [vmem:[#allocation1 + $0x7] ss:$9 sm:$0xff] %v14427_v33 }
 0x6a2   :  { %v3587_v0 = vld [vmem:[#allocation1] sm:$0xff] }
 0x6a3   :  { %3593 = vst [vmem:[#allocation1] ss:$9 sm:$0xff] %v14325_v59  ;;  %3591 = vrot.lane.b32.xlu2 %v3587_v0, %s8244_s21  ;;  %v14430_v0 = vld [vmem:[#allocation71_spill] sm:$0xff]  ;;  %v14431_v59 = vld [vmem:[#allocation94_spill] sm:$0xff] }
 0x6a4   :  { %3595 = vst [vmem:[#allocation1 + $0x1] ss:$9 sm:$0xff] %v14326_v38 }
 0x6a5   :  { %3597 = vst [vmem:[#allocation1 + $0x2] ss:$9 sm:$0xff] %v14273_v2 }
 0x6a6   :  { %3599 = vst [vmem:[#allocation1 + $0x3] ss:$9 sm:$0xff] %v14274_v36 }
 0x6a7   :  { %3601 = vst [vmem:[#allocation1 + $0x4] ss:$9 sm:$0xff] %v14275_v11 }
 0x6a8   :  { %3603 = vst [vmem:[#allocation1 + $0x5] ss:$9 sm:$0xff] %v14276_v50 }
 0x6a9   :  { %3605 = vst [vmem:[#allocation1 + $0x6] ss:$9 sm:$0xff] %v14428_v20 }
 0x6aa   :  { %3607 = vst [vmem:[#allocation1 + $0x7] ss:$9 sm:$0xff] %v14429_v54 }
 0x6b1   :  { %v3608_v23 = vld [vmem:[#allocation1] sm:$0xff] }
 0x6b2   :  { %3610 = vst [vmem:[#allocation1] ss:$9 sm:$0xff] %v14330_v40  ;;  %3620 = vrot.lane.b32.xlu1 %v3608_v23, %s8247_s24  ;;  %v14432_v23 = vld [vmem:[#allocation63_spill] sm:$0xff] }
 0x6b3   :  { %3611 = vst [vmem:[#allocation1 + $0x1] ss:$9 sm:$0xff] %v14331_v19  ;;  %v14433_v40 = vld [vmem:[#allocation83_spill] sm:$0xff] }
 0x6b4   :  { %3612 = vst [vmem:[#allocation1 + $0x2] ss:$9 sm:$0xff] %v14281_v45 }
 0x6b5   :  { %3613 = vst [vmem:[#allocation1 + $0x3] ss:$9 sm:$0xff] %v14282_v57 }
 0x6b6   :  { %3614 = vst [vmem:[#allocation1 + $0x4] ss:$9 sm:$0xff] %v14283_v16 }
 0x6b7   :  { %3615 = vst [vmem:[#allocation1 + $0x5] ss:$9 sm:$0xff] %v14284_v27 }
 0x6b8   :  { %3616 = vst [vmem:[#allocation1 + $0x6] ss:$9 sm:$0xff] %v14430_v0 }
 0x6b9   :  { %3617 = vst [vmem:[#allocation1 + $0x7] ss:$9 sm:$0xff] %v14431_v59 }
 0x6c0   :  { %v3618_v20 = vld [vmem:[#allocation1] sm:$0xff] }
 0x6c1   :  { %3624 = vst [vmem:[#allocation1] ss:$9 sm:$0xff] %v14335_v22  ;;  %3622 = vrot.lane.b32.xlu1 %v3618_v20, %s8247_s24  ;;  %v14434_v20 = vld [vmem:[#allocation113_spill] sm:$0xff] }
 0x6c2   :  { %3626 = vst [vmem:[#allocation1 + $0x1] ss:$9 sm:$0xff] %v14336_v62  ;;  %v14435_v62 = vld [vmem:[#allocation131_spill] sm:$0xff] }
 0x6c3   :  { %3628 = vst [vmem:[#allocation1 + $0x2] ss:$9 sm:$0xff] %v14289_v53 }
 0x6c4   :  { %3630 = vst [vmem:[#allocation1 + $0x3] ss:$9 sm:$0xff] %v14290_v9 }
 0x6c5   :  { %3632 = vst [vmem:[#allocation1 + $0x4] ss:$9 sm:$0xff] %v14291_v35 }
 0x6c6   :  { %3634 = vst [vmem:[#allocation1 + $0x5] ss:$9 sm:$0xff] %v14292_v1 }
 0x6c7   :  { %3636 = vst [vmem:[#allocation1 + $0x6] ss:$9 sm:$0xff] %v14432_v23 }
 0x6c8   :  { %3638 = vst [vmem:[#allocation1 + $0x7] ss:$9 sm:$0xff] %v14433_v40 }
 0x6cf   :  { %v3639_v0 = vld [vmem:[#allocation1] sm:$0xff] }
 0x6d0   :  { %3641 = vst [vmem:[#allocation1] ss:$9 sm:$0xff] %v14339_v25  ;;  %3651 = vrot.lane.b32.xlu0 %v3639_v0, %s8245_s22  ;;  %v14436_v0 = vld [vmem:[#allocation120_spill] sm:$0xff] }
 0x6d1   :  { %3642 = vst [vmem:[#allocation1 + $0x1] ss:$9 sm:$0xff] %v14340_v17  ;;  %v14437_v17 = vld [vmem:[#allocation202_spill] sm:$0xff] }
 0x6d2   :  { %3643 = vst [vmem:[#allocation1 + $0x2] ss:$9 sm:$0xff] %v14168_v34 }
 0x6d3   :  { %3644 = vst [vmem:[#allocation1 + $0x3] ss:$9 sm:$0xff] %v14169_v63 }
 0x6d4   :  { %3645 = vst [vmem:[#allocation1 + $0x4] ss:$9 sm:$0xff] %v14297_v49 }
 0x6d5   :  { %3646 = vst [vmem:[#allocation1 + $0x5] ss:$9 sm:$0xff] %v14298_v10 }
 0x6d6   :  { %3647 = vst [vmem:[#allocation1 + $0x6] ss:$9 sm:$0xff] %v14434_v20 }
 0x6d7   :  { %3648 = vst [vmem:[#allocation1 + $0x7] ss:$9 sm:$0xff] %v14435_v62 }
 0x6de   :  { %v3649_v22 = vld [vmem:[#allocation1] sm:$0xff] }
 0x6df   :  { %3655 = vst [vmem:[#allocation1] ss:$9 sm:$0xff] %v14343_v31  ;;  %3653 = vrot.lane.b32.xlu0 %v3649_v22, %s8245_s22  ;;  %v14438_v22 = vld [vmem:[#allocation110_spill] sm:$0xff]  ;;  %v14440_v31 = vld [vmem:[#allocation205_spill] sm:$0xff] }
 0x6e0   :  { %3657 = vst [vmem:[#allocation1 + $0x1] ss:$9 sm:$0xff] %v14344_v61  ;;  %v14439_v61 = vld [vmem:[#allocation203_spill] sm:$0xff] }
 0x6e1   :  { %3659 = vst [vmem:[#allocation1 + $0x2] ss:$9 sm:$0xff] %v14305_v14 }
 0x6e2   :  { %3661 = vst [vmem:[#allocation1 + $0x3] ss:$9 sm:$0xff] %v14306_v41 }
 0x6e3   :  { %3663 = vst [vmem:[#allocation1 + $0x4] ss:$9 sm:$0xff] %v14307_v46 }
 0x6e4   :  { %3665 = vst [vmem:[#allocation1 + $0x5] ss:$9 sm:$0xff] %v14308_v60 }
 0x6e5   :  { %3667 = vst [vmem:[#allocation1 + $0x6] ss:$9 sm:$0xff] %v14436_v0 }
 0x6e6   :  { %3669 = vst [vmem:[#allocation1 + $0x7] ss:$9 sm:$0xff] %v14437_v17 }
 0x6ed   :  { %v3670_v25 = vld [vmem:[#allocation1] sm:$0xff] }
 0x6ee   :  { %3672 = vst [vmem:[#allocation1] ss:$9 sm:$0xff] %v14347_v51  ;;  %3682 = vrot.lane.b32.xlu2 %v3670_v25, %s8246_s23  ;;  %v14441_v25 = vld [vmem:[#allocation70_spill] sm:$0xff] }
 0x6ef   :  { %3673 = vst [vmem:[#allocation1 + $0x1] ss:$9 sm:$0xff] %v14348_v26  ;;  %v14442_v26 = vld [vmem:[#allocation195_spill] sm:$0xff]  ;;  %v14443_v51 = vld [vmem:[#allocation62_spill] sm:$0xff] }
 0x6f0   :  { %3674 = vst [vmem:[#allocation1 + $0x2] ss:$9 sm:$0xff] %v14314_v42 }
 0x6f1   :  { %3675 = vst [vmem:[#allocation1 + $0x3] ss:$9 sm:$0xff] %v14315_v55 }
 0x6f2   :  { %3676 = vst [vmem:[#allocation1 + $0x4] ss:$9 sm:$0xff] %v14316_v4 }
 0x6f3   :  { %3677 = vst [vmem:[#allocation1 + $0x5] ss:$9 sm:$0xff] %v14438_v22 }
 0x6f4   :  { %3678 = vst [vmem:[#allocation1 + $0x6] ss:$9 sm:$0xff] %v14439_v61  ;;  %v14444_v61 = vld [vmem:[#allocation27_spill] sm:$0xff] }
 0x6f5   :  { %3679 = vst [vmem:[#allocation1 + $0x7] ss:$9 sm:$0xff] %v14440_v31 }
 0x6fc   :  { %v3680_v17 = vld [vmem:[#allocation1] sm:$0xff] }
 0x6fd   :  { %3686 = vst [vmem:[#allocation1] ss:$9 sm:$0xff] %v14351_v47  ;;  %3684 = vrot.lane.b32.xlu2 %v3680_v17, %s8246_s23  ;;  %v14445_v17 = vld [vmem:[#allocation80_spill] sm:$0xff]  ;;  %v14447_v47 = vld [vmem:[#allocation30_spill] sm:$0xff] }
 0x6fe   :  { %3688 = vst [vmem:[#allocation1 + $0x1] ss:$9 sm:$0xff] %v14352_v52  ;;  %v14446_v52 = vld [vmem:[#allocation29_spill] sm:$0xff] }
 0x6ff   :  { %3690 = vst [vmem:[#allocation1 + $0x2] ss:$9 sm:$0xff] %v14107_v12 }
 0x700   :  { %3692 = vst [vmem:[#allocation1 + $0x3] ss:$9 sm:$0xff] %v14193_v8  ;;  %v14448_v8 = vld [vmem:[#allocation32_spill] sm:$0xff] }
 0x701   :  { %3694 = vst [vmem:[#allocation1 + $0x4] ss:$9 sm:$0xff] %v14110_v43  ;;  %v14449_v43 = vld [vmem:[#allocation81_spill] sm:$0xff] }
 0x702   :  { %3696 = vst [vmem:[#allocation1 + $0x5] ss:$9 sm:$0xff] %v14441_v25  ;;  %v14450_v25 = vld [vmem:[#allocation197_spill] sm:$0xff] }
 0x703   :  { %3698 = vst [vmem:[#allocation1 + $0x6] ss:$9 sm:$0xff] %v14442_v26  ;;  %v14451_v26 = vld [vmem:[#allocation104_spill] sm:$0xff] }
 0x704   :  { %3700 = vst [vmem:[#allocation1 + $0x7] ss:$9 sm:$0xff] %v14443_v51 }
 0x70b   :  { %v3701_v31 = vld [vmem:[#allocation1] sm:$0xff] }
 0x70c   :  { %3703 = vst [vmem:[#allocation1] ss:$9 sm:$0xff] %v14444_v61  ;;  %3713 = vrot.lane.b32.xlu1 %v3701_v31, %s8248_s25  ;;  %v14452_v31 = vld [vmem:[#allocation91_spill] sm:$0xff]  ;;  %v14454_v61 = vld [vmem:[#allocation24_spill] sm:$0xff] }
 0x70d   :  { %3704 = vst [vmem:[#allocation1 + $0x1] ss:$9 sm:$0xff] %v14445_v17  ;;  %v14453_v17 = vld [vmem:[#allocation92_spill] sm:$0xff] }
 0x70e   :  { %3705 = vst [vmem:[#allocation1 + $0x2] ss:$9 sm:$0xff] %v14446_v52 }
 0x70f   :  { %3706 = vst [vmem:[#allocation1 + $0x3] ss:$9 sm:$0xff] %v14447_v47 }
 0x710   :  { %3707 = vst [vmem:[#allocation1 + $0x4] ss:$9 sm:$0xff] %v14448_v8 }
 0x711   :  { %3708 = vst [vmem:[#allocation1 + $0x5] ss:$9 sm:$0xff] %v14449_v43 }
 0x712   :  { %3709 = vst [vmem:[#allocation1 + $0x6] ss:$9 sm:$0xff] %v14450_v25  ;;  %v14455_v25 = vld [vmem:[#allocation142_spill] sm:$0xff] }
 0x713   :  { %3710 = vst [vmem:[#allocation1 + $0x7] ss:$9 sm:$0xff] %v14451_v26 }
 0x71a   :  { %v3711_v51 = vld [vmem:[#allocation1] sm:$0xff] }
 0x71b   :  { %3717 = vst [vmem:[#allocation1] ss:$9 sm:$0xff] %v14326_v38  ;;  %3715 = vrot.lane.b32.xlu1 %v3711_v51, %s8248_s25  ;;  %v14456_v51 = vld [vmem:[#allocation101_spill] sm:$0xff]  ;;  %v14458_v38 = vld [vmem:[#allocation6_spill] sm:$0xff] }
 0x71c   :  { %3719 = vst [vmem:[#allocation1 + $0x1] ss:$9 sm:$0xff] %v14452_v31  ;;  %v14457_v31 = vld [vmem:[#allocation102_spill] sm:$0xff] }
 0x71d   :  { %3721 = vst [vmem:[#allocation1 + $0x2] ss:$9 sm:$0xff] %v14274_v36 }
 0x71e   :  { %3723 = vst [vmem:[#allocation1 + $0x3] ss:$9 sm:$0xff] %v14453_v17  ;;  %v14460_v17 = vld [vmem:[#allocation132_spill] sm:$0xff] }
 0x71f   :  { %3725 = vst [vmem:[#allocation1 + $0x4] ss:$9 sm:$0xff] %v14276_v50 }
 0x720   :  { %3727 = vst [vmem:[#allocation1 + $0x5] ss:$9 sm:$0xff] %v14454_v61  ;;  %v14459_v61 = vld [vmem:[#allocation204_spill] sm:$0xff] }
 0x721   :  { %3729 = vst [vmem:[#allocation1 + $0x6] ss:$9 sm:$0xff] %v14429_v54 }
 0x722   :  { %3731 = vst [vmem:[#allocation1 + $0x7] ss:$9 sm:$0xff] %v14455_v25 }
 0x729   :  { %v3732_v26 = vld [vmem:[#allocation1] sm:$0xff] }
 0x72a   :  { %3734 = vst [vmem:[#allocation1] ss:$9 sm:$0xff] %v14331_v19  ;;  %3744 = vrot.lane.b32.xlu2 %v3732_v26, %s8243_s16  ;;  %v14461_v26 = vld [vmem:[#allocation137_spill] sm:$0xff]  ;;  %v14463_v19 = vld [vmem:[#allocation66_spill] sm:$0xff] }
 0x72b   :  { %3735 = vst [vmem:[#allocation1 + $0x1] ss:$9 sm:$0xff] %v14456_v51  ;;  %v14462_v51 = vld [vmem:[#allocation136_spill] sm:$0xff] }
 0x72c   :  { %3736 = vst [vmem:[#allocation1 + $0x2] ss:$9 sm:$0xff] %v14282_v57 }
 0x72d   :  { %3737 = vst [vmem:[#allocation1 + $0x3] ss:$9 sm:$0xff] %v14457_v31  ;;  %v14465_v31 = vld [vmem:[#allocation147_spill] sm:$0xff] }
 0x72e   :  { %3738 = vst [vmem:[#allocation1 + $0x4] ss:$9 sm:$0xff] %v14284_v27 }
 0x72f   :  { %3739 = vst [vmem:[#allocation1 + $0x5] ss:$9 sm:$0xff] %v14458_v38  ;;  %v14464_v38 = vld [vmem:[#allocation126_spill] sm:$0xff] }
 0x730   :  { %3740 = vst [vmem:[#allocation1 + $0x6] ss:$9 sm:$0xff] %v14431_v59 }
 0x731   :  { %3741 = vst [vmem:[#allocation1 + $0x7] ss:$9 sm:$0xff] %v14459_v61 }
 0x738   :  { %v3742_v25 = vld [vmem:[#allocation1] sm:$0xff] }
 0x739   :  { %3748 = vst [vmem:[#allocation1] ss:$9 sm:$0xff] %v14460_v17  ;;  %3746 = vrot.lane.b32.xlu2 %v3742_v25, %s8243_s16  ;;  %v14466_v25 = vld [vmem:[#allocation145_spill] sm:$0xff] }
 0x73a   :  { %3750 = vst [vmem:[#allocation1 + $0x1] ss:$9 sm:$0xff] %v9397_v37 }
 0x73b   :  { %3752 = vst [vmem:[#allocation1 + $0x2] ss:$9 sm:$0xff] %v14461_v26  ;;  %v14467_v26 = vld [vmem:[#allocation144_spill] sm:$0xff] }
 0x73c   :  { %3754 = vst [vmem:[#allocation1 + $0x3] ss:$9 sm:$0xff] %v9404_v18 }
 0x73d   :  { %3756 = vst [vmem:[#allocation1 + $0x4] ss:$9 sm:$0xff] %v14462_v51  ;;  %v14468_v51 = vld [vmem:[#allocation138_spill] sm:$0xff] }
 0x73e   :  { %3758 = vst [vmem:[#allocation1 + $0x5] ss:$9 sm:$0xff] %v14368_v21 }
 0x73f   :  { %3760 = vst [vmem:[#allocation1 + $0x6] ss:$9 sm:$0xff] %v14463_v19  ;;  %v14469_v19 = vld [vmem:[#allocation139_spill] sm:$0xff] }
 0x740   :  { %3762 = vst [vmem:[#allocation1 + $0x7] ss:$9 sm:$0xff] %v14464_v38 }
 0x747   :  { %v3763_v61 = vld [vmem:[#allocation1] sm:$0xff] }
 0x748   :  { %3765 = vst [vmem:[#allocation1] ss:$9 sm:$0xff] %v14465_v31  ;;  %3775 = vrot.lane.b32.xlu0 %v3763_v61, %s8242_s19  ;;  %v14470_v61 = vld [vmem:[#allocation158_spill] sm:$0xff]  ;;  %v14473_v31 = vld [vmem:[#allocation220_spill] sm:$0xff] }
 0x749   :  { %3766 = vst [vmem:[#allocation1 + $0x1] ss:$9 sm:$0xff] %v14372_v5 }
 0x74a   :  { %3767 = vst [vmem:[#allocation1 + $0x2] ss:$9 sm:$0xff] %v14466_v25  ;;  %v14471_v25 = vld [vmem:[#allocation159_spill] sm:$0xff] }
 0x74b   :  { %3768 = vst [vmem:[#allocation1 + $0x3] ss:$9 sm:$0xff] %v14374_v7 }
 0x74c   :  { %3769 = vst [vmem:[#allocation1 + $0x4] ss:$9 sm:$0xff] %v14467_v26  ;;  %v14472_v26 = vld [vmem:[#allocation160_spill] sm:$0xff] }
 0x74d   :  { %3770 = vst [vmem:[#allocation1 + $0x5] ss:$9 sm:$0xff] %v14376_v30 }
 0x74e   :  { %3771 = vst [vmem:[#allocation1 + $0x6] ss:$9 sm:$0xff] %v14468_v51  ;;  %v14474_v51 = vld [vmem:[#allocation221_spill] sm:$0xff] }
 0x74f   :  { %3772 = vst [vmem:[#allocation1 + $0x7] ss:$9 sm:$0xff] %v14469_v19 }
 0x756   :  { %v3773_v17 = vld [vmem:[#allocation1] sm:$0xff] }
 0x757   :  { %3839 = vst [vmem:[#allocation1] ss:$9 sm:$0xff] %v14222_v13  ;;  %3777 = vrot.lane.b32.xlu0 %v3773_v17, %s8242_s19  ;;  %v14476_v17 = vld [vmem:[#allocation167_spill] sm:$0xff] }
 0x758   :  { %3841 = vst [vmem:[#allocation1 + $0x1] ss:$9 sm:$0xff] %v14223_v58  ;;  %v14477_v58 = vld [vmem:[#allocation168_spill] sm:$0xff] }
 0x759   :  { %3843 = vst [vmem:[#allocation1 + $0x2] ss:$9 sm:$0xff] %v14379_v32  ;;  %v14478_v32 = vld [vmem:[#allocation169_spill] sm:$0xff] }
 0x75a   :  { %3845 = vst [vmem:[#allocation1 + $0x3] ss:$9 sm:$0xff] %v14470_v61  ;;  %v14479_v61 = vld [vmem:[#allocation170_spill] sm:$0xff] }
 0x75b   :  { %3847 = vst [vmem:[#allocation1 + $0x4] ss:$9 sm:$0xff] %v14471_v25  ;;  %v14480_v25 = vld [vmem:[#allocation223_spill] sm:$0xff] }
 0x75c   :  { %3849 = vst [vmem:[#allocation1 + $0x5] ss:$9 sm:$0xff] %v14472_v26  ;;  %v14481_v26 = vld [vmem:[#allocation224_spill] sm:$0xff] }
 0x75d   :  { %3851 = vst [vmem:[#allocation1 + $0x6] ss:$9 sm:$0xff] %v14473_v31 }
 0x75e   :  { %3853 = vst [vmem:[#allocation1 + $0x7] ss:$9 sm:$0xff] %v14474_v51  ;;  %v14483_v51 = vld [vmem:[#allocation176_spill] sm:$0xff] }
 0x765   :  { %v10888_v43 = vld [vmem:[#allocation1] sm:$0xff] }
 0x766   :  { %14475 = vst [vmem:[#allocation72_spill] sm:$0xff] %v10888_v43  ;;  %v14484_v43 = vld [vmem:[#allocation177_spill] sm:$0xff] }
 0x767   :  { %3855 = vst [vmem:[#allocation1] ss:$9 sm:$0xff] %v14231_v24  ;;  %v14485_v24 = vld [vmem:[#allocation178_spill] sm:$0xff] }
 0x768   :  { %3856 = vst [vmem:[#allocation1 + $0x1] ss:$9 sm:$0xff] %v14384_v6  ;;  %v14486_v6 = vld [vmem:[#allocation179_spill] sm:$0xff] }
 0x769   :  { %3857 = vst [vmem:[#allocation1 + $0x2] ss:$9 sm:$0xff] %v14476_v17  ;;  %v14487_v17 = vld [vmem:[#allocation180_spill] sm:$0xff] }
 0x76a   :  { %3858 = vst [vmem:[#allocation1 + $0x3] ss:$9 sm:$0xff] %v14477_v58  ;;  %v14488_v58 = vld [vmem:[#allocation181_spill] sm:$0xff] }
 0x76b   :  { %3859 = vst [vmem:[#allocation1 + $0x4] ss:$9 sm:$0xff] %v14478_v32  ;;  %v14489_v32 = vld [vmem:[#allocation225_spill] sm:$0xff] }
 0x76c   :  { %3860 = vst [vmem:[#allocation1 + $0x5] ss:$9 sm:$0xff] %v14479_v61  ;;  %v14490_v61 = vld [vmem:[#allocation227_spill] sm:$0xff] }
 0x76d   :  { %3861 = vst [vmem:[#allocation1 + $0x6] ss:$9 sm:$0xff] %v14480_v25 }
 0x76e   :  { %3862 = vst [vmem:[#allocation1 + $0x7] ss:$9 sm:$0xff] %v14481_v26  ;;  %v14491_v26 = vld [vmem:[#allocation187_spill] sm:$0xff] }
 0x775   :  { %v10898_v31 = vld [vmem:[#allocation1] sm:$0xff] }
 0x776   :  { %14482 = vst [vmem:[#allocation82_spill] sm:$0xff] %v10898_v31  ;;  %v14492_v31 = vld [vmem:[#allocation188_spill] sm:$0xff] }
 0x777   :  { %3864 = vst [vmem:[#allocation1] ss:$9 sm:$0xff] %v14483_v51  ;;  %v14499_v51 = vld [vmem:[#allocation114_spill] sm:$0xff] }
 0x778   :  { %3866 = vst [vmem:[#allocation1 + $0x1] ss:$9 sm:$0xff] %v14484_v43  ;;  %v14493_v43 = vld [vmem:[#allocation189_spill] sm:$0xff] }
 0x779   :  { %3868 = vst [vmem:[#allocation1 + $0x2] ss:$9 sm:$0xff] %v14485_v24  ;;  %v14494_v24 = vld [vmem:[#allocation190_spill] sm:$0xff] }
 0x77a   :  { %3870 = vst [vmem:[#allocation1 + $0x3] ss:$9 sm:$0xff] %v14486_v6  ;;  %v14495_v6 = vld [vmem:[#allocation191_spill] sm:$0xff] }
 0x77b   :  { %3872 = vst [vmem:[#allocation1 + $0x4] ss:$9 sm:$0xff] %v14487_v17  ;;  %v14496_v17 = vld [vmem:[#allocation192_spill] sm:$0xff] }
 0x77c   :  { %3874 = vst [vmem:[#allocation1 + $0x5] ss:$9 sm:$0xff] %v14488_v58  ;;  %v14497_v58 = vld [vmem:[#allocation229_spill] sm:$0xff] }
 0x77d   :  { %3876 = vst [vmem:[#allocation1 + $0x6] ss:$9 sm:$0xff] %v14489_v32  ;;  %v14498_v32 = vld [vmem:[#allocation230_spill] sm:$0xff] }
 0x77e   :  { %3878 = vst [vmem:[#allocation1 + $0x7] ss:$9 sm:$0xff] %v14490_v61 }
 0x785   :  { %v3879_v25 = vld [vmem:[#allocation1] sm:$0xff] }
 0x786   :  { %3881 = vst [vmem:[#allocation1] ss:$9 sm:$0xff] %v14491_v26  ;;  %3891 = vrot.lane.b32.xlu1 %v3879_v25, %s8244_s21  ;;  %v14500_v25 = vld [vmem:[#allocation150_spill] sm:$0xff] }
 0x787   :  { %3882 = vst [vmem:[#allocation1 + $0x1] ss:$9 sm:$0xff] %v14492_v31  ;;  %v14501_v31 = vld [vmem:[#allocation116_spill] sm:$0xff] }
 0x788   :  { %3883 = vst [vmem:[#allocation1 + $0x2] ss:$9 sm:$0xff] %v14493_v43  ;;  %v14502_v43 = vld [vmem:[#allocation151_spill] sm:$0xff] }
 0x789   :  { %3884 = vst [vmem:[#allocation1 + $0x3] ss:$9 sm:$0xff] %v14494_v24  ;;  %v14503_v24 = vld [vmem:[#allocation58_spill] sm:$0xff] }
 0x78a   :  { %3885 = vst [vmem:[#allocation1 + $0x4] ss:$9 sm:$0xff] %v14495_v6 }
 0x78b   :  { %3886 = vst [vmem:[#allocation1 + $0x5] ss:$9 sm:$0xff] %v14496_v17  ;;  %v14504_v17 = vld [vmem:[#allocation211_spill] sm:$0xff] }
 0x78c   :  { %3887 = vst [vmem:[#allocation1 + $0x6] ss:$9 sm:$0xff] %v14497_v58  ;;  %v14505_v58 = vld [vmem:[#allocation218_spill] sm:$0xff] }
 0x78d   :  { %3888 = vst [vmem:[#allocation1 + $0x7] ss:$9 sm:$0xff] %v14498_v32 }
 0x794   :  { %v3889_v61 = vld [vmem:[#allocation1] sm:$0xff] }
 0x795   :  { %3895 = vst [vmem:[#allocation1] ss:$9 sm:$0xff] %v14499_v51  ;;  %3893 = vrot.lane.b32.xlu1 %v3889_v61, %s8244_s21  ;;  %v14506_v61 = vld [vmem:[#allocation163_spill] sm:$0xff] }
 0x796   :  { %3897 = vst [vmem:[#allocation1 + $0x1] ss:$9 sm:$0xff] %v14500_v25 }
 0x797   :  { %3899 = vst [vmem:[#allocation1 + $0x2] ss:$9 sm:$0xff] %v14501_v31 }
 0x798   :  { %3901 = vst [vmem:[#allocation1 + $0x3] ss:$9 sm:$0xff] %v14502_v43  ;;  %v14507_v43 = vld [vmem:[#allocation125_spill] sm:$0xff] }
 0x799   :  { %3903 = vst [vmem:[#allocation1 + $0x4] ss:$9 sm:$0xff] %v14503_v24 }
 0x79a   :  { %3905 = vst [vmem:[#allocation1 + $0x5] ss:$9 sm:$0xff] %v14409_v15  ;;  %v14508_v15 = vld [vmem:[#allocation213_spill] sm:$0xff] }
 0x79b   :  { %3907 = vst [vmem:[#allocation1 + $0x6] ss:$9 sm:$0xff] %v14504_v17  ;;  %v14509_v17 = vld [vmem:[#allocation222_spill] sm:$0xff] }
 0x79c   :  { %3909 = vst [vmem:[#allocation1 + $0x7] ss:$9 sm:$0xff] %v14505_v58 }
 0x7a3   :  { %v3910_v32 = vld [vmem:[#allocation1] sm:$0xff] }
 0x7a4   :  { %3912 = vst [vmem:[#allocation1] ss:$9 sm:$0xff] %v14413_v44  ;;  %3922 = vrot.lane.b32.xlu2 %v3910_v32, %s8247_s24  ;;  %v14510_v32 = vld [vmem:[#allocation173_spill] sm:$0xff] }
 0x7a5   :  { %3913 = vst [vmem:[#allocation1 + $0x1] ss:$9 sm:$0xff] %v14414_v3 }
 0x7a6   :  { %3914 = vst [vmem:[#allocation1 + $0x2] ss:$9 sm:$0xff] %v14415_v28 }
 0x7a7   :  { %3915 = vst [vmem:[#allocation1 + $0x3] ss:$9 sm:$0xff] %v14506_v61  ;;  %v14511_v61 = vld [vmem:[#allocation174_spill] sm:$0xff] }
 0x7a8   :  { %3916 = vst [vmem:[#allocation1 + $0x4] ss:$9 sm:$0xff] %v14507_v43 }
 0x7a9   :  { %3917 = vst [vmem:[#allocation1 + $0x5] ss:$9 sm:$0xff] %v14418_v56 }
 0x7aa   :  { %3918 = vst [vmem:[#allocation1 + $0x6] ss:$9 sm:$0xff] %v14508_v15  ;;  %v14512_v15 = vld [vmem:[#allocation226_spill] sm:$0xff] }
 0x7ab   :  { %3919 = vst [vmem:[#allocation1 + $0x7] ss:$9 sm:$0xff] %v14509_v17 }
 0x7b2   :  { %v3920_v58 = vld [vmem:[#allocation1] sm:$0xff] }
 0x7b3   :  { %3926 = vst [vmem:[#allocation1] ss:$9 sm:$0xff] %v9397_v37  ;;  %3924 = vrot.lane.b32.xlu2 %v3920_v58, %s8247_s24  ;;  %v14513_v58 = vld [vmem:[#allocation228_spill] sm:$0xff] }
 0x7b4   :  { %3928 = vst [vmem:[#allocation1 + $0x1] ss:$9 sm:$0xff] %v14421_v29  ;;  %v14521_v29 = vld [vmem:[#allocation232_spill] sm:$0xff] }
 0x7b5   :  { %3930 = vst [vmem:[#allocation1 + $0x2] ss:$9 sm:$0xff] %v9404_v18 }
 0x7b6   :  { %3932 = vst [vmem:[#allocation1 + $0x3] ss:$9 sm:$0xff] %v14510_v32 }
 0x7b7   :  { %3934 = vst [vmem:[#allocation1 + $0x4] ss:$9 sm:$0xff] %v14368_v21 }
 0x7b8   :  { %3936 = vst [vmem:[#allocation1 + $0x5] ss:$9 sm:$0xff] %v14511_v61  ;;  %v14519_v61 = vld [vmem:[#allocation199_spill] sm:$0xff] }
 0x7b9   :  { %3938 = vst [vmem:[#allocation1 + $0x6] ss:$9 sm:$0xff] %v14464_v38  ;;  %v14529_v38 = vld [vmem:[#allocation238_spill] sm:$0xff] }
 0x7ba   :  { %3940 = vst [vmem:[#allocation1 + $0x7] ss:$9 sm:$0xff] %v14512_v15 }
 0x7c1   :  { %v3941_v17 = vld [vmem:[#allocation1] sm:$0xff] }
 0x7c2   :  { %3943 = vst [vmem:[#allocation1] ss:$9 sm:$0xff] %v14372_v5  ;;  %3953 = vrot.lane.b32.xlu0 %v3941_v17, %s8245_s22  ;;  %v14514_v17 = vld [vmem:[#allocation25_spill] sm:$0xff] }
 0x7c3   :  { %3944 = vst [vmem:[#allocation1 + $0x1] ss:$9 sm:$0xff] %v14425_v48  ;;  %v14518_v48 = vld [vmem:[#allocation198_spill] sm:$0xff] }
 0x7c4   :  { %3945 = vst [vmem:[#allocation1 + $0x2] ss:$9 sm:$0xff] %v14374_v7 }
 0x7c5   :  { %3946 = vst [vmem:[#allocation1 + $0x3] ss:$9 sm:$0xff] %v14426_v39  ;;  %v14516_v39 = vld [vmem:[#allocation37_spill] sm:$0xff] }
 0x7c6   :  { %3947 = vst [vmem:[#allocation1 + $0x4] ss:$9 sm:$0xff] %v14376_v30 }
 0x7c7   :  { %3948 = vst [vmem:[#allocation1 + $0x5] ss:$9 sm:$0xff] %v14427_v33  ;;  %v14515_v33 = vld [vmem:[#allocation39_spill] sm:$0xff] }
 0x7c8   :  { %3949 = vst [vmem:[#allocation1 + $0x6] ss:$9 sm:$0xff] %v14469_v19  ;;  %v14528_v19 = vld [vmem:[#allocation205_spill] sm:$0xff] }
 0x7c9   :  { %3950 = vst [vmem:[#allocation1 + $0x7] ss:$9 sm:$0xff] %v14513_v58 }
 0x7d0   :  { %v3951_v15 = vld [vmem:[#allocation1] sm:$0xff] }
 0x7d1   :  { %3957 = vst [vmem:[#allocation1] ss:$9 sm:$0xff] %v14273_v2  ;;  %3955 = vrot.lane.b32.xlu0 %v3951_v15, %s8245_s22  ;;  %v14517_v15 = vld [vmem:[#allocation71_spill] sm:$0xff] }
 0x7d2   :  { %3959 = vst [vmem:[#allocation1 + $0x1] ss:$9 sm:$0xff] %v14274_v36 }
 0x7d3   :  { %3961 = vst [vmem:[#allocation1 + $0x2] ss:$9 sm:$0xff] %v14275_v11 }
 0x7d4   :  { %3963 = vst [vmem:[#allocation1 + $0x3] ss:$9 sm:$0xff] %v14276_v50 }
 0x7d5   :  { %3965 = vst [vmem:[#allocation1 + $0x4] ss:$9 sm:$0xff] %v14514_v17 }
 0x7d6   :  { %3967 = vst [vmem:[#allocation1 + $0x5] ss:$9 sm:$0xff] %v14429_v54 }
 0x7d7   :  { %3969 = vst [vmem:[#allocation1 + $0x6] ss:$9 sm:$0xff] %v14515_v33  ;;  %v14525_v33 = vld [vmem:[#allocation235_spill] sm:$0xff] }
 0x7d8   :  { %3971 = vst [vmem:[#allocation1 + $0x7] ss:$9 sm:$0xff] %v14516_v39 }
 0x7df   :  { %v3972_v58 = vld [vmem:[#allocation1] sm:$0xff] }
 0x7e0   :  { %3974 = vst [vmem:[#allocation1] ss:$9 sm:$0xff] %v14281_v45  ;;  %3984 = vrot.lane.b32.xlu1 %v3972_v58, %s8246_s23  ;;  %v14520_v58 = vld [vmem:[#allocation231_spill] sm:$0xff] }
 0x7e1   :  { %3975 = vst [vmem:[#allocation1 + $0x1] ss:$9 sm:$0xff] %v14282_v57 }
 0x7e2   :  { %3976 = vst [vmem:[#allocation1 + $0x2] ss:$9 sm:$0xff] %v14283_v16 }
 0x7e3   :  { %3977 = vst [vmem:[#allocation1 + $0x3] ss:$9 sm:$0xff] %v14284_v27 }
 0x7e4   :  { %3978 = vst [vmem:[#allocation1 + $0x4] ss:$9 sm:$0xff] %v14517_v15 }
 0x7e5   :  { %3979 = vst [vmem:[#allocation1 + $0x5] ss:$9 sm:$0xff] %v14431_v59 }
 0x7e6   :  { %3980 = vst [vmem:[#allocation1 + $0x6] ss:$9 sm:$0xff] %v14518_v48 }
 0x7e7   :  { %3981 = vst [vmem:[#allocation1 + $0x7] ss:$9 sm:$0xff] %v14519_v61 }
 0x7ee   :  { %v3982_v32 = vld [vmem:[#allocation1] sm:$0xff] }
 0x7ef   :  { %3988 = vst [vmem:[#allocation1] ss:$9 sm:$0xff] %v14289_v53  ;;  %3986 = vrot.lane.b32.xlu1 %v3982_v32, %s8246_s23  ;;  %v14522_v32 = vld [vmem:[#allocation233_spill] sm:$0xff] }
 0x7f0   :  { %3990 = vst [vmem:[#allocation1 + $0x1] ss:$9 sm:$0xff] %v14290_v9 }
 0x7f1   :  { %3992 = vst [vmem:[#allocation1 + $0x2] ss:$9 sm:$0xff] %v14291_v35 }
 0x7f2   :  { %3994 = vst [vmem:[#allocation1 + $0x3] ss:$9 sm:$0xff] %v14292_v1  ;;  %v14546_v1 = vld [vmem:[#allocation142_spill] sm:$0xff] }
 0x7f3   :  { %3996 = vst [vmem:[#allocation1 + $0x4] ss:$9 sm:$0xff] %v14432_v23 }
 0x7f4   :  { %3998 = vst [vmem:[#allocation1 + $0x5] ss:$9 sm:$0xff] %v14433_v40 }
 0x7f5   :  { %4000 = vst [vmem:[#allocation1 + $0x6] ss:$9 sm:$0xff] %v14520_v58  ;;  %v14523_v58 = vld [vmem:[#allocation234_spill] sm:$0xff] }
 0x7f6   :  { %4002 = vst [vmem:[#allocation1 + $0x7] ss:$9 sm:$0xff] %v14521_v29 }
 0x7fd   :  { %v4003_v48 = vld [vmem:[#allocation1] sm:$0xff] }
 0x7fe   :  { %4005 = vst [vmem:[#allocation1] ss:$9 sm:$0xff] %v14168_v34  ;;  %4015 = vrot.lane.b32.xlu2 %v4003_v48, %s8248_s25  ;;  %v14524_v48 = vld [vmem:[#allocation202_spill] sm:$0xff] }
 0x7ff   :  { %4006 = vst [vmem:[#allocation1 + $0x1] ss:$9 sm:$0xff] %v14169_v63  ;;  %v14543_v63 = vld [vmem:[#allocation21_spill] sm:$0xff] }
 0x800   :  { %4007 = vst [vmem:[#allocation1 + $0x2] ss:$9 sm:$0xff] %v14297_v49 }
 0x801   :  { %4008 = vst [vmem:[#allocation1 + $0x3] ss:$9 sm:$0xff] %v14298_v10  ;;  %v11069_v10 = vld [vmem:[%s13247_s3 + $0x10] sm:$0xff] }
 0x802   :  { %4009 = vst [vmem:[#allocation1 + $0x4] ss:$9 sm:$0xff] %v14434_v20  ;;  %v14542_v20 = vld [vmem:[#allocation55_spill] sm:$0xff] }
 0x803   :  { %4010 = vst [vmem:[#allocation1 + $0x5] ss:$9 sm:$0xff] %v14435_v62  ;;  %v14540_v62 = vld [vmem:[#allocation104_spill] sm:$0xff] }
 0x804   :  { %4011 = vst [vmem:[#allocation1 + $0x6] ss:$9 sm:$0xff] %v14522_v32  ;;  %v14526_v32 = vld [vmem:[#allocation236_spill] sm:$0xff] }
 0x805   :  { %4012 = vst [vmem:[#allocation1 + $0x7] ss:$9 sm:$0xff] %v14523_v58 }
 0x80c   :  { %v4013_v29 = vld [vmem:[#allocation1] sm:$0xff] }
 0x80d   :  { %4019 = vst [vmem:[#allocation1] ss:$9 sm:$0xff] %v14305_v14  ;;  %4017 = vrot.lane.b32.xlu2 %v4013_v29, %s8248_s25  ;;  %v14527_v29 = vld [vmem:[#allocation203_spill] sm:$0xff]  ;;  %v14539_v14 = vld [vmem:[#allocation197_spill] sm:$0xff] }
 0x80e   :  { %4021 = vst [vmem:[#allocation1 + $0x1] ss:$9 sm:$0xff] %v14306_v41  ;;  %v14538_v41 = vld [vmem:[#allocation81_spill] sm:$0xff] }
 0x80f   :  { %4023 = vst [vmem:[#allocation1 + $0x2] ss:$9 sm:$0xff] %v14307_v46 }
 0x810   :  { %4025 = vst [vmem:[#allocation1 + $0x3] ss:$9 sm:$0xff] %v14308_v60  ;;  %v11049_v60 = vld [vmem:[%s13247_s3 + $0x20] sm:$0xff] }
 0x811   :  { %4027 = vst [vmem:[#allocation1 + $0x4] ss:$9 sm:$0xff] %v14436_v0 }
 0x812   :  { %4029 = vst [vmem:[#allocation1 + $0x5] ss:$9 sm:$0xff] %v14524_v48 }
 0x813   :  { %4031 = vst [vmem:[#allocation1 + $0x6] ss:$9 sm:$0xff] %v14525_v33  ;;  %v14530_v33 = vld [vmem:[#allocation239_spill] sm:$0xff] }
 0x814   :  { %4033 = vst [vmem:[#allocation1 + $0x7] ss:$9 sm:$0xff] %v14526_v32  ;;  %v2132_v32 = vpop.permute.xlu0 %2131 }
 0x815   :  { %v2637_v34 = vsel %vm2635_vm2, %v14543_v63, %v2132_v32  ;;  %v14544_v63 = vld [vmem:[#allocation92_spill] sm:$0xff] }
 0x81b   :  { %v4034_v58 = vld [vmem:[#allocation1] sm:$0xff] }
 0x81c   :  { %4036 = vst [vmem:[#allocation1] ss:$9 sm:$0xff] %v14314_v42  ;;  %4046 = vrot.lane.b32.xlu0 %v4034_v58, %s8243_s16  ;;  %v14531_v58 = vld [vmem:[#allocation18_spill] sm:$0xff]  ;;  %v11032_v42 = vpop.permute.xlu1 %2133 }
 0x81d   :  { %4037 = vst [vmem:[#allocation1 + $0x1] ss:$9 sm:$0xff] %v14315_v55  ;;  %v14532_v55 = vld [vmem:[#allocation20_spill] sm:$0xff] }
 0x81e   :  { %4038 = vst [vmem:[#allocation1 + $0x2] ss:$9 sm:$0xff] %v14316_v4  ;;  %v14533_v4 = vld [vmem:[#allocation70_spill] sm:$0xff] }
 0x81f   :  { %4039 = vst [vmem:[#allocation1 + $0x3] ss:$9 sm:$0xff] %v14438_v22  ;;  %v11012_v22 = vpop.permute.xlu2 %2180 }
 0x820   :  { %4040 = vst [vmem:[#allocation1 + $0x4] ss:$9 sm:$0xff] %v14527_v29  ;;  %v14534_v29 = vld [vmem:[#allocation195_spill] sm:$0xff] }
 0x821   :  { %4041 = vst [vmem:[#allocation1 + $0x5] ss:$9 sm:$0xff] %v14528_v19  ;;  %v14535_v19 = vld [vmem:[#allocation62_spill] sm:$0xff] }
 0x822   :  { %4042 = vst [vmem:[#allocation1 + $0x6] ss:$9 sm:$0xff] %v14529_v38  ;;  %v11020_v38 = vpop.permute.xlu0 %2227 }
 0x823   :  { %4043 = vst [vmem:[#allocation1 + $0x7] ss:$9 sm:$0xff] %v14530_v33  ;;  %v11018_v33 = vld [vmem:[%s13247_s3 + $0x38] sm:$0xff] }
 0x824   :  { %3219 = vmatpush.bf16.msra.mxu1 %v11018_v33  ;;  %4140 = vmatpush.bf16.msrb.mxu0 %v11018_v33  ;;  %v2179_v46 = vpop.permute.xlu1 %2178 }
 0x82a   :  { %v4044_v48 = vld [vmem:[#allocation1] sm:$0xff] }
 0x82b   :  { %4050 = vst [vmem:[#allocation1] ss:$9 sm:$0xff] %v14107_v12  ;;  %4048 = vrot.lane.b32.xlu0 %v4044_v48, %s8243_s16  ;;  %v14536_v48 = vld [vmem:[#allocation13_spill] sm:$0xff] }
 0x82c   :  { %4052 = vst [vmem:[#allocation1 + $0x1] ss:$9 sm:$0xff] %v14531_v58  ;;  %v11030_v58 = vld [vmem:[%s13247_s3 + $0x30] sm:$0xff]  ;;  %v2259_v49 = vpop.permute.xlu1 %2258 }
 0x82d   :  { %4054 = vst [vmem:[#allocation1 + $0x2] ss:$9 sm:$0xff] %v14532_v55  ;;  %3220 = vmatpush.bf16.msra.mxu1 %v11030_v58  ;;  %4141 = vmatpush.bf16.msrb.mxu0 %v11030_v58 }
 0x82e   :  { %4056 = vst [vmem:[#allocation1 + $0x3] ss:$9 sm:$0xff] %v14533_v4  ;;  %v14537_v4 = vld [vmem:[#allocation14_spill] sm:$0xff] }
 0x82f   :  { %4058 = vst [vmem:[#allocation1 + $0x4] ss:$9 sm:$0xff] %v14534_v29 }
 0x830   :  { %4060 = vst [vmem:[#allocation1 + $0x5] ss:$9 sm:$0xff] %v14535_v19  ;;  %v2226_v19 = vpop.permute.xlu2 %2225 }
 0x831   :  { %4062 = vst [vmem:[#allocation1 + $0x6] ss:$9 sm:$0xff] %v14536_v48  ;;  %v11039_v48 = vld [vmem:[%s13247_s3 + $0x28] sm:$0xff] }
 0x832   :  { %4064 = vst [vmem:[#allocation1 + $0x7] ss:$9 sm:$0xff] %v14537_v4  ;;  %3221 = vmatpush.bf16.msra.mxu1 %v11039_v48  ;;  %4142 = vmatpush.bf16.msrb.mxu0 %v11039_v48  ;;  %v2257_v4 = vpop.permute.xlu0 %2256 }
 0x836   :  { %3222 = vmatpush.bf16.msra.mxu1 %v11049_v60  ;;  %4143 = vmatpush.bf16.msrb.mxu0 %v11049_v60 }
 0x839   :  { %v4065_v0 = vld [vmem:[#allocation1] sm:$0xff] }
 0x83a   :  { %4067 = vst [vmem:[#allocation1] ss:$9 sm:$0xff] %v14446_v52  ;;  %4077 = vrot.lane.b32.xlu2 %v4065_v0, %s8242_s19  ;;  %v11060_v0 = vld [vmem:[%s13247_s3 + $0x18] sm:$0xff] }
 0x83b   :  { %4068 = vst [vmem:[#allocation1 + $0x1] ss:$9 sm:$0xff] %v14447_v47  ;;  %v14541_v47 = vld [vmem:[#allocation54_spill] sm:$0xff]  ;;  %3223 = vmatpush.bf16.msra.mxu1 %v11060_v0  ;;  %4144 = vmatpush.bf16.msrb.mxu0 %v11060_v0 }
 0x83c   :  { %4069 = vst [vmem:[#allocation1 + $0x2] ss:$9 sm:$0xff] %v14448_v8 }
 0x83d   :  { %4070 = vst [vmem:[#allocation1 + $0x3] ss:$9 sm:$0xff] %v14538_v41  ;;  %v2290_v41 = vpop.permute.xlu2 %2289 }
 0x83e   :  { %4071 = vst [vmem:[#allocation1 + $0x4] ss:$9 sm:$0xff] %v14539_v14 }
 0x83f   :  { %4072 = vst [vmem:[#allocation1 + $0x5] ss:$9 sm:$0xff] %v14540_v62  ;;  %v2321_v62 = vpop.permute.xlu0 %2320  ;;  %3224 = vmatpush.bf16.msra.mxu1 %v11069_v10  ;;  %4145 = vmatpush.bf16.msrb.mxu0 %v11069_v10 }
 0x840   :  { %4073 = vst [vmem:[#allocation1 + $0x6] ss:$9 sm:$0xff] %v14541_v47  ;;  %v11079_v47 = vld [vmem:[%s13247_s3 + $0x8] sm:$0xff] }
 0x841   :  { %4074 = vst [vmem:[#allocation1 + $0x7] ss:$9 sm:$0xff] %v14542_v20  ;;  %v2642_v20 = vsel %vm2640_vm4, %v2637_v34, %v2179_v46  ;;  %v11091_v46 = vld [vmem:[%s13247_s3] sm:$0xff] }
 0x842   :  { %v2647_v23 = vsel %vm2645_vm5, %v2642_v20, %v2226_v19  ;;  %v14545_v34 = vld [vmem:[#allocation24_spill] sm:$0xff]  ;;  %v2288_v19 = vpop.permute.xlu1 %2287 }
 0x843   :  { %3225 = vmatpush.bf16.msra.mxu1 %v11079_v47  ;;  %4146 = vmatpush.bf16.msrb.mxu0 %v11079_v47  ;;  %v2652_v20 = vsel %vm2650_vm9, %v2647_v23, %v2257_v4  ;;  %v14547_v23 = vld [vmem:[#allocation200_spill] sm:$0xff] }
 0x844   :  { %v2657_v32 = vsel %vm2655_vm10, %v2652_v20, %v2288_v19  ;;  %v14548_v19 = vld [vmem:[#allocation35_spill] sm:$0xff] }
 0x845   :  { %v2639_v20 = vsel %vm2635_vm2, %v14548_v19, %v11032_v42 }
 0x847   :  { %3226 = vmatpush.bf16.msra.mxu1 %v11091_v46  ;;  %4147 = vmatpush.bf16.msrb.mxu0 %v11091_v46 }
 0x848   :  { %v4075_v40 = vld [vmem:[#allocation1] sm:$0xff] }
 0x849   :  { %4081 = vst [vmem:[#allocation1] ss:$9 sm:$0xff] %v14274_v36  ;;  %4079 = vrot.lane.b32.xlu1 %v4075_v40, %s8242_s19  ;;  %v2319_v40 = vpop.permute.xlu2 %2318 }
 0x84a   :  { %4083 = vst [vmem:[#allocation1 + $0x1] ss:$9 sm:$0xff] %v14544_v63  ;;  %v2366_v63 = vpop.permute.xlu0 %2365  ;;  %v2662_v35 = vsel %vm2660_vm11, %v2657_v32, %v2319_v40 }
 0x84b   :  { %4085 = vst [vmem:[#allocation1 + $0x2] ss:$9 sm:$0xff] %v14276_v50  ;;  %v2667_v4 = vsel %vm2665_vm12, %v2662_v35, %v2366_v63  ;;  %v14550_v35 = vld [vmem:[#allocation102_spill] sm:$0xff] }
 0x84c   :  { %4087 = vst [vmem:[#allocation1 + $0x3] ss:$9 sm:$0xff] %v14545_v34  ;;  %3227 = vmatmul.bf16.vlgmr.msra.gmra.mxu1 %v2667_v4  ;;  %v2644_v34 = vsel %vm2640_vm4, %v2639_v20, %v11012_v22  ;;  %v14551_v63 = vld [vmem:[#allocation6_spill] sm:$0xff]  ;;  %v2368_v22 = vpop.permute.xlu1 %2367  ;;  %v14552_v4 = vld [vmem:[#allocation204_spill] sm:$0xff] }
 0x84d   :  { %4089 = vst [vmem:[#allocation1 + $0x4] ss:$9 sm:$0xff] %v14429_v54  ;;  %v2649_v40 = vsel %vm2645_vm5, %v2644_v34, %v11020_v38  ;;  %v14553_v34 = vld [vmem:[#allocation237_spill] sm:$0xff]  ;;  %v14555_v20 = vld [vmem:[#allocation48_spill] sm:$0xff] }
 0x84e   :  { %4091 = vst [vmem:[#allocation1 + $0x5] ss:$9 sm:$0xff] %v14546_v1  ;;  %v2654_v32 = vsel %vm2650_vm9, %v2649_v40, %v2259_v49  ;;  %v14556_v40 = vld [vmem:[#allocation52_spill] sm:$0xff] }
 0x84f   :  { %4093 = vst [vmem:[#allocation1 + $0x6] ss:$9 sm:$0xff] %v14516_v39  ;;  %v2659_v42 = vsel %vm2655_vm10, %v2654_v32, %v2290_v41  ;;  %v14557_v41 = vld [vmem:[#allocation112_spill] sm:$0xff]  ;;  %v14558_v32 = vld [vmem:[#allocation115_spill] sm:$0xff] }
 0x850   :  { %4095 = vst [vmem:[#allocation1 + $0x7] ss:$9 sm:$0xff] %v14547_v23  ;;  %v2664_v38 = vsel %vm2660_vm11, %v2659_v42, %v2321_v62  ;;  %v14559_v62 = vld [vmem:[#allocation53_spill] sm:$0xff] }
 0x851   :  { %v2670_v49 = vsel %vm2665_vm12, %v2664_v38, %v2368_v22  ;;  %v14561_v22 = vld [vmem:[#allocation123_spill] sm:$0xff]  ;;  %v14562_v38 = vld [vmem:[#allocation121_spill] sm:$0xff] }
 0x852   :  { %v2438_v39 = vpop.permute.xlu0 %2437 }
 0x854   :  { %v2469_v23 = vpop.permute.xlu1 %2468 }
 0x857   :  { %v11109_v1 = vld [vmem:[#allocation1] sm:$0xff] }
 0x858   :  { %14549 = vst [vmem:[#allocation84_spill] sm:$0xff] %v11109_v1  ;;  %v11172_v1 = vld [vmem:[%s13247_s3 + $0x68] sm:$0xff] }
 0x859   :  { %4097 = vst [vmem:[#allocation1] ss:$9 sm:$0xff] %v14282_v57 }
 0x85a   :  { %4098 = vst [vmem:[#allocation1 + $0x1] ss:$9 sm:$0xff] %v14550_v35  ;;  %v11149_v35 = vpop.permute.xlu2 %2439 }
 0x85b   :  { %4099 = vst [vmem:[#allocation1 + $0x2] ss:$9 sm:$0xff] %v14284_v27 }
 0x85c   :  { %4100 = vst [vmem:[#allocation1 + $0x3] ss:$9 sm:$0xff] %v14551_v63  ;;  %3232 = vmatmul.bf16.gmra.mxu1 %v2670_v49  ;;  %v14563_v49 = vld [vmem:[#allocation122_spill] sm:$0xff]  ;;  %v14567_v63 = vld [vmem:[#allocation127_spill] sm:$0xff] }
 0x85d   :  { %4101 = vst [vmem:[#allocation1 + $0x4] ss:$9 sm:$0xff] %v14431_v59  ;;  %v14581_v59 = vld [vmem:[#allocation157_spill] sm:$0xff] }
 0x85e   :  { %4102 = vst [vmem:[#allocation1 + $0x5] ss:$9 sm:$0xff] %v14552_v4 }
 0x85f   :  { %4103 = vst [vmem:[#allocation1 + $0x6] ss:$9 sm:$0xff] %v14519_v61  ;;  %v14569_v61 = vld [vmem:[#allocation132_spill] sm:$0xff] }
 0x860   :  { %4104 = vst [vmem:[#allocation1 + $0x7] ss:$9 sm:$0xff] %v14553_v34  ;;  %v14565_v34 = vld [vmem:[#allocation124_spill] sm:$0xff] }
 0x867   :  { %v11125_v19 = vld [vmem:[#allocation1] sm:$0xff] }
 0x868   :  { %14554 = vst [vmem:[#allocation93_spill] sm:$0xff] %v11125_v19  ;;  %v14570_v19 = vld [vmem:[#allocation137_spill] sm:$0xff] }
 0x869   :  { %4286 = vst [vmem:[#allocation1] ss:$9 sm:$0xff] %v14555_v20  ;;  %v14564_v20 = vld [vmem:[#allocation60_spill] sm:$0xff] }
 0x86a   :  { %4288 = vst [vmem:[#allocation1 + $0x1] ss:$9 sm:$0xff] %v14556_v40 }
 0x86b   :  { %4290 = vst [vmem:[#allocation1 + $0x2] ss:$9 sm:$0xff] %v14557_v41 }
 0x86c   :  { %4292 = vst [vmem:[#allocation1 + $0x3] ss:$9 sm:$0xff] %v14499_v51 }
 0x86d   :  { %4294 = vst [vmem:[#allocation1 + $0x4] ss:$9 sm:$0xff] %v14558_v32 }
 0x86e   :  { %4296 = vst [vmem:[#allocation1 + $0x5] ss:$9 sm:$0xff] %v14501_v31 }
 0x86f   :  { %4298 = vst [vmem:[#allocation1 + $0x6] ss:$9 sm:$0xff] %v14559_v62  ;;  %v14575_v62 = vld [vmem:[#allocation145_spill] sm:$0xff] }
 0x870   :  { %4300 = vst [vmem:[#allocation1 + $0x7] ss:$9 sm:$0xff] %v14503_v24 }
 0x877   :  { %v11135_v42 = vld [vmem:[#allocation1] sm:$0xff] }
 0x878   :  { %14560 = vst [vmem:[#allocation95_spill] sm:$0xff] %v11135_v42  ;;  %v11154_v42 = vld [vmem:[%s13247_s3 + $0x78] sm:$0xff] }
 0x879   :  { %4302 = vst [vmem:[#allocation1] ss:$9 sm:$0xff] %v14561_v22  ;;  %v14568_v22 = vld [vmem:[#allocation130_spill] sm:$0xff]  ;;  %3238 = vmatpush.bf16.msra.mxu2 %v11154_v42 }
 0x87a   :  { %4303 = vst [vmem:[#allocation1 + $0x1] ss:$9 sm:$0xff] %v14562_v38 }
 0x87b   :  { %4304 = vst [vmem:[#allocation1 + $0x2] ss:$9 sm:$0xff] %v14563_v49  ;;  %v11188_v49 = vld [vmem:[%s13247_s3 + $0x58] sm:$0xff] }
 0x87c   :  { %4305 = vst [vmem:[#allocation1 + $0x3] ss:$9 sm:$0xff] %v14413_v44 }
 0x87d   :  { %4306 = vst [vmem:[#allocation1 + $0x4] ss:$9 sm:$0xff] %v14564_v20  ;;  %v14574_v20 = vld [vmem:[#allocation147_spill] sm:$0xff] }
 0x87e   :  { %4307 = vst [vmem:[#allocation1 + $0x5] ss:$9 sm:$0xff] %v14415_v28 }
 0x87f   :  { %4308 = vst [vmem:[#allocation1 + $0x6] ss:$9 sm:$0xff] %v14565_v34 }
 0x880   :  { %4309 = vst [vmem:[#allocation1 + $0x7] ss:$9 sm:$0xff] %v14507_v43 }
 0x887   :  { %v11145_v4 = vld [vmem:[#allocation1] sm:$0xff] }
 0x888   :  { %14566 = vst [vmem:[#allocation103_spill] sm:$0xff] %v11145_v4  ;;  %v2502_v4 = vpop.permute.xlu1 %2501 }
 0x889   :  { %4311 = vst [vmem:[#allocation1] ss:$9 sm:$0xff] %v14567_v63  ;;  %v14571_v63 = vld [vmem:[#allocation136_spill] sm:$0xff] }
 0x88a   :  { %4313 = vst [vmem:[#allocation1 + $0x1] ss:$9 sm:$0xff] %v14568_v22  ;;  %v11164_v22 = vld [vmem:[%s13247_s3 + $0x70] sm:$0xff] }
 0x88b   :  { %4315 = vst [vmem:[#allocation1 + $0x2] ss:$9 sm:$0xff] %v14569_v61  ;;  %3239 = vmatpush.bf16.msra.mxu2 %v11164_v22  ;;  %v14572_v61 = vld [vmem:[#allocation140_spill] sm:$0xff] }
 0x88c   :  { %4317 = vst [vmem:[#allocation1 + $0x3] ss:$9 sm:$0xff] %v9397_v37  ;;  %v11178_v37 = vld [vmem:[%s13247_s3 + $0x60] sm:$0xff] }
 0x88d   :  { %4319 = vst [vmem:[#allocation1 + $0x4] ss:$9 sm:$0xff] %v14570_v19  ;;  %v2500_v19 = vpop.permute.xlu2 %2499 }
 0x88e   :  { %4321 = vst [vmem:[#allocation1 + $0x5] ss:$9 sm:$0xff] %v9404_v18  ;;  %v2471_v18 = vpop.permute.xlu0 %2470 }
 0x88f   :  { %4323 = vst [vmem:[#allocation1 + $0x6] ss:$9 sm:$0xff] %v14571_v63  ;;  %3240 = vmatpush.bf16.msra.mxu2 %v11172_v1 }
 0x890   :  { %4325 = vst [vmem:[#allocation1 + $0x7] ss:$9 sm:$0xff] %v14368_v21  ;;  %v14573_v21 = vld [vmem:[#allocation141_spill] sm:$0xff]  ;;  %v2535_v34 = vpop.permute.xlu1 %2534 }
 0x893   :  { %3241 = vmatpush.bf16.msra.mxu2 %v11178_v37 }
 0x895   :  { %v2572_v32 = vpop.permute.xlu2 %2571 }
 0x897   :  { %v4326_v63 = vld [vmem:[#allocation1] sm:$0xff]  ;;  %3242 = vmatpush.bf16.msra.mxu2 %v11188_v49 }
 0x898   :  { %4328 = vst [vmem:[#allocation1] ss:$9 sm:$0xff] %v14572_v61  ;;  %4338 = vrot.lane.b32.xlu2 %v4326_v63, %s8244_s21  ;;  %v2537_v63 = vpop.permute.xlu0 %2536  ;;  %v14576_v61 = vld [vmem:[#allocation144_spill] sm:$0xff]  ;;  %v2603_v41 = vpop.permute.xlu1 %2602 }
 0x899   :  { %4329 = vst [vmem:[#allocation1 + $0x1] ss:$9 sm:$0xff] %v14573_v21  ;;  %v11198_v21 = vld [vmem:[%s13247_s3 + $0x50] sm:$0xff] }
 0x89a   :  { %4330 = vst [vmem:[#allocation1 + $0x2] ss:$9 sm:$0xff] %v14574_v20  ;;  %v14577_v20 = vld [vmem:[#allocation186_spill] sm:$0xff] }
 0x89b   :  { %4331 = vst [vmem:[#allocation1 + $0x3] ss:$9 sm:$0xff] %v14372_v5  ;;  %v2673_v5 = vsel %vm2635_vm2, %v14577_v20, %v2438_v39  ;;  %3243 = vmatpush.bf16.msra.mxu2 %v11198_v21  ;;  %v11216_v39 = vld [vmem:[%s13247_s3 + $0x40] sm:$0xff]  ;;  %v14579_v20 = vld [vmem:[#allocation154_spill] sm:$0xff] }
 0x89c   :  { %4332 = vst [vmem:[#allocation1 + $0x4] ss:$9 sm:$0xff] %v14575_v62  ;;  %v2677_v62 = vsel %vm2640_vm4, %v2673_v5, %v2469_v23  ;;  %v14578_v5 = vld [vmem:[#allocation153_spill] sm:$0xff] }
 0x89d   :  { %4333 = vst [vmem:[#allocation1 + $0x5] ss:$9 sm:$0xff] %v14374_v7  ;;  %v11208_v7 = vld [vmem:[%s13247_s3 + $0x48] sm:$0xff]  ;;  %v2601_v53 = vpop.permute.xlu2 %2600 }
 0x89e   :  { %4334 = vst [vmem:[#allocation1 + $0x6] ss:$9 sm:$0xff] %v14576_v61  ;;  %v2681_v61 = vsel %vm2645_vm5, %v2677_v62, %v2500_v19  ;;  %v14580_v62 = vld [vmem:[#allocation156_spill] sm:$0xff] }
 0x89f   :  { %4335 = vst [vmem:[#allocation1 + $0x7] ss:$9 sm:$0xff] %v14376_v30  ;;  %3244 = vmatpush.bf16.msra.mxu2 %v11208_v7  ;;  %v2685_v9 = vsel %vm2650_vm9, %v2681_v61, %v2535_v34 }
 0x8a0   :  { %v2570_v23 = vpop.permute.xlu0 %2569  ;;  %v2632_v34 = vpop.permute.xlu1 %2631 }
 0x8a1   :  { %v2689_v19 = vsel %vm2655_vm10, %v2685_v9, %v2570_v23  ;;  %v14584_v9 = vld [vmem:[#allocation160_spill] sm:$0xff] }
 0x8a2   :  { %v2693_v61 = vsel %vm2660_vm11, %v2689_v19, %v2601_v53  ;;  %v14585_v53 = vld [vmem:[#allocation43_spill] sm:$0xff] }
 0x8a3   :  { %3245 = vmatpush.bf16.msra.mxu2 %v11216_v39  ;;  %v2675_v23 = vsel %vm2635_vm2, %v14585_v53, %v11149_v35  ;;  %v14589_v53 = vld [vmem:[#allocation166_spill] sm:$0xff] }
 0x8a4   :  { %v2679_v19 = vsel %vm2640_vm4, %v2675_v23, %v2471_v18 }
 0x8a6   :  { %v4336_v30 = vld [vmem:[#allocation1] sm:$0xff] }
 0x8a7   :  { %4342 = vst [vmem:[#allocation1] ss:$9 sm:$0xff] %v14578_v5  ;;  %4340 = vrot.lane.b32.xlu1 %v4336_v30, %s8244_s21  ;;  %8178 = vmatpush.bf16.msrb.mxu2 %v11018_v33  ;;  %v2697_v5 = vsel %vm2665_vm12, %v2693_v61, %v2632_v34  ;;  %v14582_v30 = vld [vmem:[#allocation158_spill] sm:$0xff]  ;;  %v2683_v61 = vsel %vm2645_vm5, %v2679_v19, %v2502_v4  ;;  %v14590_v4 = vld [vmem:[#allocation167_spill] sm:$0xff]  ;;  %v14591_v19 = vld [vmem:[#allocation168_spill] sm:$0xff] }
 0x8a8   :  { %4344 = vst [vmem:[#allocation1 + $0x1] ss:$9 sm:$0xff] %v14579_v20  ;;  %3246 = vmatmul.bf16.vlgmr.msra.gmra.mxu2 %v2697_v5  ;;  %v14583_v20 = vld [vmem:[#allocation159_spill] sm:$0xff]  ;;  %v14586_v5 = vld [vmem:[#allocation9_spill] sm:$0xff] }
 0x8a9   :  { %4346 = vst [vmem:[#allocation1 + $0x2] ss:$9 sm:$0xff] %v14222_v13 }
 0x8aa   :  { %4348 = vst [vmem:[#allocation1 + $0x3] ss:$9 sm:$0xff] %v14580_v62 }
 0x8ab   :  { %4350 = vst [vmem:[#allocation1 + $0x4] ss:$9 sm:$0xff] %v14581_v59  ;;  %8179 = vmatpush.bf16.msrb.mxu2 %v11030_v58  ;;  %v14588_v59 = vld [vmem:[#allocation165_spill] sm:$0xff] }
 0x8ac   :  { %4352 = vst [vmem:[#allocation1 + $0x5] ss:$9 sm:$0xff] %v14582_v30  ;;  %v2634_v30 = vpop.permute.xlu0 %2633 }
 0x8ad   :  { %4354 = vst [vmem:[#allocation1 + $0x6] ss:$9 sm:$0xff] %v14583_v20  ;;  %v14587_v20 = vld [vmem:[#allocation164_spill] sm:$0xff] }
 0x8ae   :  { %4356 = vst [vmem:[#allocation1 + $0x7] ss:$9 sm:$0xff] %v14584_v9  ;;  %v2687_v9 = vsel %vm2650_vm9, %v2683_v61, %v2537_v63  ;;  %v14593_v63 = vld [vmem:[#allocation170_spill] sm:$0xff]  ;;  %v14597_v61 = vld [vmem:[#allocation176_spill] sm:$0xff] }
 0x8af   :  { %8180 = vmatpush.bf16.msrb.mxu2 %v11039_v48  ;;  %v2691_v35 = vsel %vm2655_vm10, %v2687_v9, %v2572_v32  ;;  %v14596_v9 = vld [vmem:[#allocation175_spill] sm:$0xff] }
 0x8b0   :  { %v2695_v18 = vsel %vm2660_vm11, %v2691_v35, %v2603_v41  ;;  %v11259_v41 = vld [vmem:[%s13247_s3 + $0xc0] sm:$0xff] }
 0x8b1   :  { %v2700_v23 = vsel %vm2665_vm12, %v2695_v18, %v2634_v30  ;;  %14594 = vst [vmem:[#allocation105_spill] sm:$0xff] %v11259_v41  ;;  %3283 = vmatpush.bf16.msrb.mxu1 %v11259_v41  ;;  %v14595_v30 = vld [vmem:[#allocation8_spill] sm:$0xff]  ;;  %v14599_v18 = vld [vmem:[#allocation177_spill] sm:$0xff] }
 0x8b2   :  { %v14598_v35 = vld [vmem:[#allocation240_spill] sm:$0xff] }
 0x8b3   :  { %8181 = vmatpush.bf16.msrb.mxu2 %v11049_v60 }
 0x8b4   :  { %7617 = vmatmul.msk.bf16.vlgmr.msrb.gmra.mxu1 %vm2635_vm2, %v14598_v35  ;;  %v14606_v35 = vld [vmem:[#allocation188_spill] sm:$0xff] }
 0x8b5   :  { %v4357_v34 = vld [vmem:[#allocation1] sm:$0xff] }
 0x8b6   :  { %4359 = vst [vmem:[#allocation1] ss:$9 sm:$0xff] %v14586_v5  ;;  %4369 = vrot.lane.b32.xlu0 %v4357_v34, %s8247_s24  ;;  %v14592_v34 = vld [vmem:[#allocation169_spill] sm:$0xff] }
 0x8b7   :  { %4360 = vst [vmem:[#allocation1 + $0x1] ss:$9 sm:$0xff] %v14587_v20  ;;  %8182 = vmatpush.bf16.msrb.mxu2 %v11060_v0  ;;  %v14601_v20 = vld [vmem:[#allocation179_spill] sm:$0xff]  ;;  %v14603_v5 = vld [vmem:[#allocation181_spill] sm:$0xff] }
 0x8b8   :  { %4361 = vst [vmem:[#allocation1 + $0x2] ss:$9 sm:$0xff] %v14588_v59  ;;  %3251 = vmatmul.bf16.gmra.mxu2 %v2700_v23  ;;  %v14600_v23 = vld [vmem:[#allocation178_spill] sm:$0xff] }
 0x8b9   :  { %4362 = vst [vmem:[#allocation1 + $0x3] ss:$9 sm:$0xff] %v14589_v53 }
 0x8ba   :  { %4363 = vst [vmem:[#allocation1 + $0x4] ss:$9 sm:$0xff] %v14590_v4  ;;  %v14625_v4 = vld [vmem:[#allocation217_spill] sm:$0xff] }
 0x8bb   :  { %4364 = vst [vmem:[#allocation1 + $0x5] ss:$9 sm:$0xff] %v14591_v19  ;;  %8183 = vmatpush.bf16.msrb.mxu2 %v11069_v10 }
 0x8bc   :  { %4365 = vst [vmem:[#allocation1 + $0x6] ss:$9 sm:$0xff] %v14592_v34  ;;  %v14624_v34 = vld [vmem:[#allocation28_spill] sm:$0xff] }
 0x8bd   :  { %4366 = vst [vmem:[#allocation1 + $0x7] ss:$9 sm:$0xff] %v14593_v63  ;;  %v14604_v63 = vld [vmem:[#allocation185_spill] sm:$0xff] }
 0x8bf   :  { %8184 = vmatpush.bf16.msrb.mxu2 %v11079_v47 }
 0x8c3   :  { %8185 = vmatpush.bf16.msrb.mxu2 %v11091_v46 }
 0x8c4   :  { %v4367_v32 = vld [vmem:[#allocation1] sm:$0xff] }
 0x8c5   :  { %4373 = vst [vmem:[#allocation1] ss:$9 sm:$0xff] %v14595_v30  ;;  %4371 = vrot.lane.b32.xlu2 %v4367_v32, %s8247_s24  ;;  %v14602_v30 = vld [vmem:[#allocation180_spill] sm:$0xff] }
 0x8c6   :  { %4375 = vst [vmem:[#allocation1 + $0x1] ss:$9 sm:$0xff] %v14596_v9  ;;  %v14605_v9 = vld [vmem:[#allocation111_spill] sm:$0xff] }
 0x8c7   :  { %4204 = vmatpush.bf16.msra.mxu2 %v11259_v41  ;;  %4377 = vst [vmem:[#allocation1 + $0x2] ss:$9 sm:$0xff] %v14597_v61  ;;  %v14607_v41 = vld [vmem:[#allocation241_spill] sm:$0xff] }
 0x8c8   :  { %4379 = vst [vmem:[#allocation1 + $0x3] ss:$9 sm:$0xff] %v14599_v18  ;;  %7618 = vmatmul.msk.bf16.gmra.mxu1 %vm2635_vm2, %v14607_v41  ;;  %v14612_v41 = vld [vmem:[#allocation151_spill] sm:$0xff] }
 0x8c9   :  { %4381 = vst [vmem:[#allocation1 + $0x4] ss:$9 sm:$0xff] %v14600_v23  ;;  %v14608_v23 = vld [vmem:[#allocation189_spill] sm:$0xff]  ;;  %v14623_v18 = vld [vmem:[#allocation27_spill] sm:$0xff] }
 0x8ca   :  { %4383 = vst [vmem:[#allocation1 + $0x5] ss:$9 sm:$0xff] %v14601_v20  ;;  %v14609_v20 = vld [vmem:[#allocation190_spill] sm:$0xff] }
 0x8cb   :  { %4385 = vst [vmem:[#allocation1 + $0x6] ss:$9 sm:$0xff] %v14602_v30  ;;  %v14622_v30 = vld [vmem:[#allocation23_spill] sm:$0xff] }
 0x8cc   :  { %4387 = vst [vmem:[#allocation1 + $0x7] ss:$9 sm:$0xff] %v14603_v5  ;;  %v14610_v5 = vld [vmem:[#allocation192_spill] sm:$0xff] }
 0x8d3   :  { %v4388_v32 = vld [vmem:[#allocation1] sm:$0xff] }
 0x8d4   :  { %4390 = vst [vmem:[#allocation1] ss:$9 sm:$0xff] %v14604_v63  ;;  %4400 = vrot.lane.b32.xlu1 %v4388_v32, %s8245_s22  ;;  %v14611_v32 = vld [vmem:[#allocation149_spill] sm:$0xff] }
 0x8d5   :  { %4391 = vst [vmem:[#allocation1 + $0x1] ss:$9 sm:$0xff] %v14605_v9  ;;  %v14613_v9 = vld [vmem:[#allocation152_spill] sm:$0xff] }
 0x8d6   :  { %4392 = vst [vmem:[#allocation1 + $0x2] ss:$9 sm:$0xff] %v14491_v26  ;;  %v11355_v26 = vld [vmem:[%s13247_s3 + $0x90] sm:$0xff] }
 0x8d7   :  { %4393 = vst [vmem:[#allocation1 + $0x3] ss:$9 sm:$0xff] %v14606_v35 }
 0x8d8   :  { %4394 = vst [vmem:[#allocation1 + $0x4] ss:$9 sm:$0xff] %v14608_v23  ;;  %v11348_v23 = vld [vmem:[%s13247_s3 + $0x98] sm:$0xff] }
 0x8d9   :  { %4395 = vst [vmem:[#allocation1 + $0x5] ss:$9 sm:$0xff] %v14609_v20  ;;  %v14620_v20 = vld [vmem:[#allocation193_spill] sm:$0xff] }
 0x8da   :  { %4396 = vst [vmem:[#allocation1 + $0x6] ss:$9 sm:$0xff] %v14495_v6  ;;  %v14619_v6 = vld [vmem:[#allocation19_spill] sm:$0xff] }
 0x8db   :  { %4397 = vst [vmem:[#allocation1 + $0x7] ss:$9 sm:$0xff] %v14610_v5 }
 0x8dc   :  { %14621 = vst [vmem:[#allocation11_spill] sm:$0xff] %v11355_v26 }
 0x8e2   :  { %v4398_v63 = vld [vmem:[#allocation1] sm:$0xff] }
 0x8e3   :  { %4404 = vst [vmem:[#allocation1] ss:$9 sm:$0xff] %v14556_v40  ;;  %4402 = vrot.lane.b32.xlu0 %v4398_v63, %s8245_s22  ;;  %v14614_v63 = vld [vmem:[#allocation161_spill] sm:$0xff]  ;;  %v2759_v40 = vpop.permute.xlu2 %2758 }
 0x8e4   :  { %4406 = vst [vmem:[#allocation1 + $0x1] ss:$9 sm:$0xff] %v14611_v32  ;;  %v14615_v32 = vld [vmem:[#allocation163_spill] sm:$0xff]  ;;  %v2986_v53 = vsel %vm2635_vm2, %v14625_v4, %v2759_v40 }
 0x8e5   :  { %4408 = vst [vmem:[#allocation1 + $0x2] ss:$9 sm:$0xff] %v14499_v51  ;;  %v11382_v4 = vld [vmem:[%s13247_s3 + $0x80] sm:$0xff] }
 0x8e6   :  { %4410 = vst [vmem:[#allocation1 + $0x3] ss:$9 sm:$0xff] %v14500_v25  ;;  %v11329_v25 = vld [vmem:[%s13247_s3 + $0xa8] sm:$0xff] }
 0x8e7   :  { %4412 = vst [vmem:[#allocation1 + $0x4] ss:$9 sm:$0xff] %v14501_v31 }
 0x8e8   :  { %4414 = vst [vmem:[#allocation1 + $0x5] ss:$9 sm:$0xff] %v14612_v41  ;;  %v14618_v41 = vld [vmem:[#allocation16_spill] sm:$0xff] }
 0x8e9   :  { %4416 = vst [vmem:[#allocation1 + $0x6] ss:$9 sm:$0xff] %v14503_v24 }
 0x8ea   :  { %4418 = vst [vmem:[#allocation1 + $0x7] ss:$9 sm:$0xff] %v14613_v9  ;;  %v11304_v9 = vpop.permute.xlu0 %2760 }
 0x8f1   :  { %v4419_v5 = vld [vmem:[#allocation1] sm:$0xff] }
 0x8f2   :  { %4421 = vst [vmem:[#allocation1] ss:$9 sm:$0xff] %v14562_v38  ;;  %4431 = vrot.lane.b32.xlu2 %v4419_v5, %s8246_s23  ;;  %v11309_v5 = vld [vmem:[%s13247_s3 + $0xb8] sm:$0xff] }
 0x8f3   :  { %4422 = vst [vmem:[#allocation1 + $0x1] ss:$9 sm:$0xff] %v14614_v63  ;;  %3257 = vmatpush.bf16.msra.mxu3 %v11309_v5  ;;  %4178 = vmatpush.bf16.msra.mxu1 %v11309_v5  ;;  %v11316_v63 = vld [vmem:[%s13247_s3 + $0xb0] sm:$0xff] }
 0x8f4   :  { %4423 = vst [vmem:[#allocation1 + $0x2] ss:$9 sm:$0xff] %v14413_v44 }
 0x8f5   :  { %4424 = vst [vmem:[#allocation1 + $0x3] ss:$9 sm:$0xff] %v14414_v3  ;;  %v11322_v3 = vpop.permute.xlu2 %2795 }
 0x8f6   :  { %4425 = vst [vmem:[#allocation1 + $0x4] ss:$9 sm:$0xff] %v14415_v28 }
 0x8f7   :  { %4426 = vst [vmem:[#allocation1 + $0x5] ss:$9 sm:$0xff] %v14615_v32  ;;  %v14616_v32 = vld [vmem:[#allocation12_spill] sm:$0xff]  ;;  %3258 = vmatpush.bf16.msra.mxu3 %v11316_v63  ;;  %4179 = vmatpush.bf16.msra.mxu1 %v11316_v63 }
 0x8f8   :  { %4427 = vst [vmem:[#allocation1 + $0x6] ss:$9 sm:$0xff] %v14507_v43 }
 0x8f9   :  { %4428 = vst [vmem:[#allocation1 + $0x7] ss:$9 sm:$0xff] %v14418_v56  ;;  %v14617_v56 = vld [vmem:[#allocation15_spill] sm:$0xff] }
 0x8fb   :  { %3259 = vmatpush.bf16.msra.mxu3 %v11329_v25  ;;  %4180 = vmatpush.bf16.msra.mxu1 %v11329_v25 }
 0x900   :  { %v4429_v38 = vld [vmem:[#allocation1] sm:$0xff] }
 0x901   :  { %4435 = vst [vmem:[#allocation1] ss:$9 sm:$0xff] %v14616_v32  ;;  %4433 = vrot.lane.b32.xlu1 %v4429_v38, %s8246_s23  ;;  %v2794_v32 = vpop.permute.xlu0 %2793  ;;  %v2825_v38 = vpop.permute.xlu1 %2824 }
 0x902   :  { %4437 = vst [vmem:[#allocation1 + $0x1] ss:$9 sm:$0xff] %v14617_v56  ;;  %v2990_v59 = vsel %vm2640_vm4, %v2986_v53, %v2794_v32 }
 0x903   :  { %4439 = vst [vmem:[#allocation1 + $0x2] ss:$9 sm:$0xff] %v14618_v41  ;;  %v11340_v41 = vld [vmem:[%s13247_s3 + $0xa0] sm:$0xff] }
 0x904   :  { %4441 = vst [vmem:[#allocation1 + $0x3] ss:$9 sm:$0xff] %v14107_v12  ;;  %3260 = vmatpush.bf16.msra.mxu3 %v11340_v41  ;;  %4181 = vmatpush.bf16.msra.mxu1 %v11340_v41 }
 0x905   :  { %4443 = vst [vmem:[#allocation1 + $0x4] ss:$9 sm:$0xff] %v14619_v6  ;;  %v2856_v6 = vpop.permute.xlu2 %2855 }
 0x906   :  { %4445 = vst [vmem:[#allocation1 + $0x5] ss:$9 sm:$0xff] %v14532_v55 }
 0x907   :  { %4447 = vst [vmem:[#allocation1 + $0x6] ss:$9 sm:$0xff] %v14620_v20 }
 0x908   :  { %4449 = vst [vmem:[#allocation1 + $0x7] ss:$9 sm:$0xff] %v14534_v29  ;;  %3261 = vmatpush.bf16.msra.mxu3 %v11348_v23  ;;  %4182 = vmatpush.bf16.msra.mxu1 %v11348_v23 }
 0x909   :  { %v2858_v35 = vpop.permute.xlu0 %2857  ;;  %v2827_v61 = vpop.permute.xlu1 %2826 }
 0x90c   :  { %3262 = vmatpush.bf16.msra.mxu3 %v11355_v26  ;;  %4183 = vmatpush.bf16.msra.mxu1 %v11355_v26  ;;  %v2994_v26 = vsel %vm2645_vm5, %v2990_v59, %v2825_v38 }
 0x90d   :  { %v2889_v19 = vpop.permute.xlu2 %2888  ;;  %v2998_v53 = vsel %vm2650_vm9, %v2994_v26, %v2856_v6  ;;  %v14629_v6 = vld [vmem:[#allocation41_spill] sm:$0xff]  ;;  %v14630_v26 = vld [vmem:[#allocation42_spill] sm:$0xff] }
 0x90f   :  { %v4450_v20 = vld [vmem:[#allocation1] sm:$0xff] }
 0x910   :  { %4452 = vst [vmem:[#allocation1] ss:$9 sm:$0xff] %v14622_v30  ;;  %4462 = vrot.lane.b32.xlu0 %v4450_v20, %s8248_s25  ;;  %v11369_v30 = vld [vmem:[%s13247_s3 + $0x88] sm:$0xff]  ;;  %v14627_v20 = vld [vmem:[#allocation31_spill] sm:$0xff] }
 0x911   :  { %4453 = vst [vmem:[#allocation1 + $0x1] ss:$9 sm:$0xff] %v14623_v18  ;;  %3263 = vmatpush.bf16.msra.mxu3 %v11369_v30  ;;  %4184 = vmatpush.bf16.msra.mxu1 %v11369_v30  ;;  %v2887_v40 = vpop.permute.xlu0 %2886  ;;  %v2922_v59 = vpop.permute.xlu1 %2921 }
 0x912   :  { %4454 = vst [vmem:[#allocation1 + $0x2] ss:$9 sm:$0xff] %v14624_v34  ;;  %v14628_v34 = vld [vmem:[#allocation196_spill] sm:$0xff]  ;;  %v3002_v32 = vsel %vm2655_vm10, %v2998_v53, %v2887_v40 }
 0x913   :  { %4455 = vst [vmem:[#allocation1 + $0x3] ss:$9 sm:$0xff] %v14446_v52 }
 0x914   :  { %14626 = vst [vmem:[#allocation64_spill] sm:$0xff] %v11369_v30 }
 0x915   :  { %4456 = vst [vmem:[#allocation1 + $0x4] ss:$9 sm:$0xff] %v14627_v20  ;;  %3264 = vmatpush.bf16.msra.mxu3 %v11382_v4  ;;  %4185 = vmatpush.bf16.msra.mxu1 %v11382_v4  ;;  %v2957_v38 = vpop.permute.xlu2 %2956 }
 0x916   :  { %4457 = vst [vmem:[#allocation1 + $0x5] ss:$9 sm:$0xff] %v14448_v8 }
 0x917   :  { %4458 = vst [vmem:[#allocation1 + $0x6] ss:$9 sm:$0xff] %v14628_v34  ;;  %v3006_v34 = vsel %vm2660_vm11, %v3002_v32, %v2922_v59  ;;  %v14632_v59 = vld [vmem:[#allocation45_spill] sm:$0xff] }
 0x918   :  { %4459 = vst [vmem:[#allocation1 + $0x7] ss:$9 sm:$0xff] %v14539_v14  ;;  %v3010_v20 = vsel %vm2665_vm12, %v3006_v34, %v2957_v38  ;;  %v14631_v34 = vld [vmem:[#allocation219_spill] sm:$0xff] }
 0x919   :  { %4159 = vmatpush.bf16.msrb.mxu3 %v11154_v42  ;;  %5158 = vmatpush.bf16.msrb.mxu1 %v11154_v42  ;;  %v2924_v38 = vpop.permute.xlu0 %2923 }
 0x91a   :  { %3265 = vmatmul.bf16.vlgmr.msra.gmra.mxu3 %v3010_v20 }
 0x91d   :  { %4160 = vmatpush.bf16.msrb.mxu3 %v11164_v22  ;;  %5159 = vmatpush.bf16.msrb.mxu1 %v11164_v22 }
 0x91f   :  { %v4460_v30 = vld [vmem:[#allocation1] sm:$0xff] }
 0x920   :  { %4466 = vst [vmem:[#allocation1] ss:$9 sm:$0xff] %v14629_v6  ;;  %4464 = vrot.lane.b32.xlu2 %v4460_v30, %s8248_s25  ;;  %v2988_v30 = vsel %vm2635_vm2, %v14631_v34, %v11304_v9  ;;  %v14633_v9 = vld [vmem:[#allocation46_spill] sm:$0xff] }
 0x921   :  { %4468 = vst [vmem:[#allocation1 + $0x1] ss:$9 sm:$0xff] %v14630_v26  ;;  %4161 = vmatpush.bf16.msrb.mxu3 %v11172_v1  ;;  %5160 = vmatpush.bf16.msrb.mxu1 %v11172_v1  ;;  %v2992_v20 = vsel %vm2640_vm4, %v2988_v30, %v11322_v3  ;;  %v14634_v30 = vld [vmem:[#allocation94_spill] sm:$0xff]  ;;  %v14653_v26 = vld [vmem:[#allocation97_spill] sm:$0xff] }
 0x922   :  { %4470 = vst [vmem:[#allocation1 + $0x2] ss:$9 sm:$0xff] %v14273_v2  ;;  %v2996_v40 = vsel %vm2645_vm5, %v2992_v20, %v2827_v61  ;;  %v14635_v20 = vld [vmem:[#allocation73_spill] sm:$0xff]  ;;  %v14654_v6 = vld [vmem:[#allocation98_spill] sm:$0xff] }
 0x923   :  { %4472 = vst [vmem:[#allocation1 + $0x3] ss:$9 sm:$0xff] %v14274_v36  ;;  %v3000_v32 = vsel %vm2650_vm9, %v2996_v40, %v2858_v35  ;;  %v2959_v35 = vpop.permute.xlu1 %2958  ;;  %v14636_v40 = vld [vmem:[#allocation74_spill] sm:$0xff] }
 0x924   :  { %4474 = vst [vmem:[#allocation1 + $0x4] ss:$9 sm:$0xff] %v14275_v11  ;;  %v3004_v3 = vsel %vm2655_vm10, %v3000_v32, %v2889_v19  ;;  %v14638_v32 = vld [vmem:[#allocation76_spill] sm:$0xff] }
 0x925   :  { %4476 = vst [vmem:[#allocation1 + $0x5] ss:$9 sm:$0xff] %v14276_v50  ;;  %4162 = vmatpush.bf16.msrb.mxu3 %v11178_v37  ;;  %5161 = vmatpush.bf16.msrb.mxu1 %v11178_v37  ;;  %v3008_v61 = vsel %vm2660_vm11, %v3004_v3, %v2924_v38  ;;  %v14639_v38 = vld [vmem:[#allocation77_spill] sm:$0xff]  ;;  %v14641_v3 = vld [vmem:[#allocation63_spill] sm:$0xff] }
 0x926   :  { %4478 = vst [vmem:[#allocation1 + $0x6] ss:$9 sm:$0xff] %v14514_v17  ;;  %v3013_v34 = vsel %vm2665_vm12, %v3008_v61, %v2959_v35  ;;  %v14643_v35 = vld [vmem:[#allocation85_spill] sm:$0xff] }
 0x927   :  { %4480 = vst [vmem:[#allocation1 + $0x7] ss:$9 sm:$0xff] %v14429_v54 }
 0x929   :  { %4163 = vmatpush.bf16.msrb.mxu3 %v11188_v49  ;;  %5162 = vmatpush.bf16.msrb.mxu1 %v11188_v49 }
 0x92a   :  { %3270 = vmatmul.bf16.gmra.mxu3 %v3013_v34  ;;  %v14645_v34 = vld [vmem:[#allocation87_spill] sm:$0xff] }
 0x92d   :  { %4164 = vmatpush.bf16.msrb.mxu3 %v11198_v21  ;;  %5163 = vmatpush.bf16.msrb.mxu1 %v11198_v21 }
 0x92e   :  { %v4481_v53 = vld [vmem:[#allocation1] sm:$0xff] }
 0x92f   :  { %4483 = vst [vmem:[#allocation1] ss:$9 sm:$0xff] %v14632_v59  ;;  %4493 = vrot.lane.b32.xlu1 %v4481_v53, %s8243_s16  ;;  %v14637_v53 = vld [vmem:[#allocation75_spill] sm:$0xff]  ;;  %v14652_v59 = vld [vmem:[#allocation96_spill] sm:$0xff] }
 0x930   :  { %4484 = vst [vmem:[#allocation1 + $0x1] ss:$9 sm:$0xff] %v14633_v9 }
 0x931   :  { %4485 = vst [vmem:[#allocation1 + $0x2] ss:$9 sm:$0xff] %v14281_v45  ;;  %4165 = vmatpush.bf16.msrb.mxu3 %v11208_v7  ;;  %5164 = vmatpush.bf16.msrb.mxu1 %v11208_v7 }
 0x932   :  { %4486 = vst [vmem:[#allocation1 + $0x3] ss:$9 sm:$0xff] %v14282_v57 }
 0x933   :  { %4487 = vst [vmem:[#allocation1 + $0x4] ss:$9 sm:$0xff] %v14283_v16 }
 0x934   :  { %4488 = vst [vmem:[#allocation1 + $0x5] ss:$9 sm:$0xff] %v14284_v27 }
 0x935   :  { %4489 = vst [vmem:[#allocation1 + $0x6] ss:$9 sm:$0xff] %v14517_v15  ;;  %4166 = vmatpush.bf16.msrb.mxu3 %v11216_v39  ;;  %5165 = vmatpush.bf16.msrb.mxu1 %v11216_v39 }
 0x936   :  { %4490 = vst [vmem:[#allocation1 + $0x7] ss:$9 sm:$0xff] %v14634_v30 }
 0x939   :  { %5139 = vmatpush.bf16.msra.mxu3 %v11018_v33  ;;  %v14640_v33 = vld [vmem:[#allocation78_spill] sm:$0xff] }
 0x93d   :  { %5140 = vmatpush.bf16.msra.mxu3 %v11030_v58  ;;  %v4491_v19 = vld [vmem:[#allocation1] sm:$0xff] }
 0x93e   :  { %4497 = vst [vmem:[#allocation1] ss:$9 sm:$0xff] %v14635_v20  ;;  %4495 = vrot.lane.b32.xlu0 %v4491_v19, %s8243_s16  ;;  %v14642_v58 = vld [vmem:[#allocation83_spill] sm:$0xff]  ;;  %v14646_v19 = vld [vmem:[#allocation88_spill] sm:$0xff] }
 0x93f   :  { %4499 = vst [vmem:[#allocation1 + $0x1] ss:$9 sm:$0xff] %v14636_v40  ;;  %v14648_v40 = vld [vmem:[#allocation90_spill] sm:$0xff]  ;;  %v14650_v20 = vld [vmem:[#allocation131_spill] sm:$0xff] }
 0x940   :  { %4501 = vst [vmem:[#allocation1 + $0x2] ss:$9 sm:$0xff] %v14637_v53 }
 0x941   :  { %5141 = vmatpush.bf16.msra.mxu3 %v11039_v48  ;;  %4503 = vst [vmem:[#allocation1 + $0x3] ss:$9 sm:$0xff] %v14638_v32  ;;  %v14644_v48 = vld [vmem:[#allocation86_spill] sm:$0xff] }
 0x942   :  { %4505 = vst [vmem:[#allocation1 + $0x4] ss:$9 sm:$0xff] %v14639_v38 }
 0x943   :  { %4507 = vst [vmem:[#allocation1 + $0x5] ss:$9 sm:$0xff] %v14640_v33 }
 0x944   :  { %4509 = vst [vmem:[#allocation1 + $0x6] ss:$9 sm:$0xff] %v14641_v3 }
 0x945   :  { %5142 = vmatpush.bf16.msra.mxu3 %v11049_v60  ;;  %4511 = vst [vmem:[#allocation1 + $0x7] ss:$9 sm:$0xff] %v14642_v58  ;;  %v14647_v60 = vld [vmem:[#allocation89_spill] sm:$0xff]  ;;  %v14700_v58 = vld [vmem:[#allocation34_spill] sm:$0xff] }
 0x949   :  { %5143 = vmatpush.bf16.msra.mxu3 %v11060_v0  ;;  %v14649_v0 = vld [vmem:[#allocation113_spill] sm:$0xff] }
 0x94c   :  { %v4512_v61 = vld [vmem:[#allocation1] sm:$0xff] }
 0x94d   :  { %5144 = vmatpush.bf16.msra.mxu3 %v11069_v10  ;;  %4514 = vst [vmem:[#allocation1] ss:$9 sm:$0xff] %v14643_v35  ;;  %4524 = vrot.lane.b32.xlu2 %v4512_v61, %s8242_s19  ;;  %v3348_v10 = vpop.permute.xlu0 %3347  ;;  %v3379_v35 = vpop.permute.xlu2 %3378 }
 0x94e   :  { %4515 = vst [vmem:[#allocation1 + $0x1] ss:$9 sm:$0xff] %v14644_v48  ;;  %v14651_v48 = vld [vmem:[#allocation33_spill] sm:$0xff] }
 0x94f   :  { %4516 = vst [vmem:[#allocation1 + $0x2] ss:$9 sm:$0xff] %v14645_v34  ;;  %v3780_v9 = vsel %vm2635_vm2, %v14651_v48, %v3348_v10  ;;  %v14661_v10 = vld [vmem:[#allocation106_spill] sm:$0xff]  ;;  %v14699_v34 = vld [vmem:[#allocation135_spill] sm:$0xff] }
 0x950   :  { %4517 = vst [vmem:[#allocation1 + $0x3] ss:$9 sm:$0xff] %v14646_v19  ;;  %v14698_v19 = vld [vmem:[#allocation136_spill] sm:$0xff] }
 0x951   :  { %5145 = vmatpush.bf16.msra.mxu3 %v11079_v47  ;;  %4518 = vst [vmem:[#allocation1 + $0x4] ss:$9 sm:$0xff] %v14647_v60  ;;  %v3784_v47 = vsel %vm2640_vm4, %v3780_v9, %v3379_v35  ;;  %v14659_v60 = vld [vmem:[#allocation202_spill] sm:$0xff]  ;;  %v14662_v9 = vld [vmem:[#allocation107_spill] sm:$0xff]  ;;  %v14663_v35 = vld [vmem:[#allocation108_spill] sm:$0xff] }
 0x952   :  { %4519 = vst [vmem:[#allocation1 + $0x5] ss:$9 sm:$0xff] %v14648_v40  ;;  %v14658_v40 = vld [vmem:[#allocation120_spill] sm:$0xff] }
 0x953   :  { %4520 = vst [vmem:[#allocation1 + $0x6] ss:$9 sm:$0xff] %v14649_v0  ;;  %v14655_v0 = vld [vmem:[#allocation5_spill] sm:$0xff] }
 0x954   :  { %4521 = vst [vmem:[#allocation1 + $0x7] ss:$9 sm:$0xff] %v14650_v20  ;;  %v14656_v20 = vld [vmem:[#allocation99_spill] sm:$0xff] }
 0x955   :  { %5146 = vmatpush.bf16.msra.mxu3 %v11091_v46  ;;  %v14657_v46 = vld [vmem:[#allocation100_spill] sm:$0xff] }
 0x95b   :  { %v4522_v61 = vld [vmem:[#allocation1] sm:$0xff] }
 0x95c   :  { %4528 = vst [vmem:[#allocation1] ss:$9 sm:$0xff] %v14652_v59  ;;  %4526 = vrot.lane.b32.xlu1 %v4522_v61, %s8242_s19  ;;  %v14664_v61 = vld [vmem:[#allocation109_spill] sm:$0xff]  ;;  %v14666_v59 = vld [vmem:[#allocation110_spill] sm:$0xff] }
 0x95d   :  { %4530 = vst [vmem:[#allocation1 + $0x1] ss:$9 sm:$0xff] %v14653_v26  ;;  %v14665_v26 = vld [vmem:[#allocation7_spill] sm:$0xff] }
 0x95e   :  { %4532 = vst [vmem:[#allocation1 + $0x2] ss:$9 sm:$0xff] %v14654_v6  ;;  %v14693_v6 = vld [vmem:[#allocation132_spill] sm:$0xff] }
 0x95f   :  { %4534 = vst [vmem:[#allocation1 + $0x3] ss:$9 sm:$0xff] %v14655_v0  ;;  %v14684_v0 = vld [vmem:[#allocation122_spill] sm:$0xff] }
 0x960   :  { %4536 = vst [vmem:[#allocation1 + $0x4] ss:$9 sm:$0xff] %v14656_v20  ;;  %v14667_v20 = vld [vmem:[#allocation203_spill] sm:$0xff] }
 0x961   :  { %4538 = vst [vmem:[#allocation1 + $0x5] ss:$9 sm:$0xff] %v14657_v46  ;;  %v14668_v46 = vld [vmem:[#allocation205_spill] sm:$0xff] }
 0x962   :  { %4540 = vst [vmem:[#allocation1 + $0x6] ss:$9 sm:$0xff] %v14658_v40  ;;  %v11482_v40 = vpop.permute.xlu1 %3349 }
 0x963   :  { %4542 = vst [vmem:[#allocation1 + $0x7] ss:$9 sm:$0xff] %v14659_v60 }
 0x96a   :  { %v11472_v48 = vld [vmem:[#allocation1] sm:$0xff] }
 0x96b   :  { %14660 = vst [vmem:[#allocation22_spill] sm:$0xff] %v11472_v48 }
 0x96c   :  { %4544 = vst [vmem:[#allocation1] ss:$9 sm:$0xff] %v14661_v10  ;;  %v3410_v10 = vpop.permute.xlu1 %3409 }
 0x96d   :  { %4545 = vst [vmem:[#allocation1 + $0x1] ss:$9 sm:$0xff] %v14662_v9  ;;  %v14670_v9 = vld [vmem:[#allocation67_spill] sm:$0xff]  ;;  %v3788_v48 = vsel %vm2645_vm5, %v3784_v47, %v3410_v10  ;;  %v14674_v47 = vld [vmem:[#allocation80_spill] sm:$0xff] }
 0x96e   :  { %4546 = vst [vmem:[#allocation1 + $0x2] ss:$9 sm:$0xff] %v14663_v35 }
 0x96f   :  { %4547 = vst [vmem:[#allocation1 + $0x3] ss:$9 sm:$0xff] %v14664_v61 }
 0x970   :  { %4548 = vst [vmem:[#allocation1 + $0x4] ss:$9 sm:$0xff] %v14665_v26  ;;  %v14671_v26 = vld [vmem:[#allocation18_spill] sm:$0xff] }
 0x971   :  { %4549 = vst [vmem:[#allocation1 + $0x5] ss:$9 sm:$0xff] %v14666_v59  ;;  %v14678_v59 = vld [vmem:[#allocation112_spill] sm:$0xff] }
 0x972   :  { %4550 = vst [vmem:[#allocation1 + $0x6] ss:$9 sm:$0xff] %v14667_v20  ;;  %v14672_v20 = vld [vmem:[#allocation70_spill] sm:$0xff] }
 0x973   :  { %4551 = vst [vmem:[#allocation1 + $0x7] ss:$9 sm:$0xff] %v14668_v46  ;;  %v14673_v46 = vld [vmem:[#allocation62_spill] sm:$0xff] }
 0x97a   :  { %v11484_v60 = vld [vmem:[#allocation1] sm:$0xff] }
 0x97b   :  { %14669 = vst [vmem:[#allocation79_spill] sm:$0xff] %v11484_v60  ;;  %v11495_v60 = vpop.permute.xlu1 %3411 }
 0x97c   :  { %4553 = vst [vmem:[#allocation1] ss:$9 sm:$0xff] %v14617_v56 }
 0x97d   :  { %4555 = vst [vmem:[#allocation1 + $0x1] ss:$9 sm:$0xff] %v14670_v9 }
 0x97e   :  { %4557 = vst [vmem:[#allocation1 + $0x2] ss:$9 sm:$0xff] %v14107_v12 }
 0x97f   :  { %4559 = vst [vmem:[#allocation1 + $0x3] ss:$9 sm:$0xff] %v14671_v26  ;;  %v14675_v26 = vld [vmem:[#allocation30_spill] sm:$0xff] }
 0x980   :  { %4561 = vst [vmem:[#allocation1 + $0x4] ss:$9 sm:$0xff] %v14532_v55 }
 0x981   :  { %4563 = vst [vmem:[#allocation1 + $0x5] ss:$9 sm:$0xff] %v14672_v20  ;;  %v14676_v20 = vld [vmem:[#allocation81_spill] sm:$0xff] }
 0x982   :  { %4565 = vst [vmem:[#allocation1 + $0x6] ss:$9 sm:$0xff] %v14534_v29 }
 0x983   :  { %4567 = vst [vmem:[#allocation1 + $0x7] ss:$9 sm:$0xff] %v14673_v46  ;;  %v3441_v10 = vpop.permute.xlu1 %3440  ;;  %v14677_v46 = vld [vmem:[#allocation104_spill] sm:$0xff] }
 0x984   :  { %v3792_v9 = vsel %vm2650_vm9, %v3788_v48, %v3441_v10 }
 0x98a   :  { %v4568_v56 = vld [vmem:[#allocation1] sm:$0xff] }
 0x98b   :  { %4570 = vst [vmem:[#allocation1] ss:$9 sm:$0xff] %v14623_v18  ;;  %4580 = vrot.lane.b32.xlu0 %v4568_v56, %s8244_s21  ;;  %v14679_v56 = vld [vmem:[#allocation115_spill] sm:$0xff]  ;;  %v3472_v48 = vpop.permute.xlu1 %3471 }
 0x98c   :  { %4571 = vst [vmem:[#allocation1 + $0x1] ss:$9 sm:$0xff] %v14674_v47  ;;  %v3796_v10 = vsel %vm2655_vm10, %v3792_v9, %v3472_v48  ;;  %v14680_v47 = vld [vmem:[#allocation53_spill] sm:$0xff]  ;;  %v14685_v9 = vld [vmem:[#allocation60_spill] sm:$0xff] }
 0x98d   :  { %4572 = vst [vmem:[#allocation1 + $0x2] ss:$9 sm:$0xff] %v14446_v52 }
 0x98e   :  { %4573 = vst [vmem:[#allocation1 + $0x3] ss:$9 sm:$0xff] %v14675_v26  ;;  %v3228_v26 = vpop.f32.mrf.mxu1 }
 0x98f   :  { %4574 = vst [vmem:[#allocation1 + $0x4] ss:$9 sm:$0xff] %v14448_v8 }
 0x990   :  { %4575 = vst [vmem:[#allocation1 + $0x5] ss:$9 sm:$0xff] %v14676_v20  ;;  %v3247_v20 = vpop.f32.mrf.mxu2 }
 0x991   :  { %4576 = vst [vmem:[#allocation1 + $0x6] ss:$9 sm:$0xff] %v14539_v14 }
 0x992   :  { %4577 = vst [vmem:[#allocation1 + $0x7] ss:$9 sm:$0xff] %v14677_v46  ;;  %v14681_v46 = vld [vmem:[#allocation210_spill] sm:$0xff] }
 0x998   :  { %v11523_v48 = vpop.f32.mrf.mxu2 }
 0x999   :  { %v4578_v18 = vld [vmem:[#allocation1] sm:$0xff]  ;;  %14686 = vst [vmem:[#allocation44_spill] sm:$0xff] %v11523_v48 }
 0x99a   :  { %4584 = vst [vmem:[#allocation1] ss:$9 sm:$0xff] %v14678_v59  ;;  %4582 = vrot.lane.b32.xlu2 %v4578_v18, %s8244_s21  ;;  %v14682_v59 = vld [vmem:[#allocation211_spill] sm:$0xff]  ;;  %v3248_v18 = vadd.f32 %v3247_v20, %v3228_v26  ;;  %v11527_v26 = vpop.f32.mrf.mxu1 }
 0x99b   :  { %4586 = vst [vmem:[#allocation1 + $0x1] ss:$9 sm:$0xff] %v14499_v51 }
 0x99c   :  { %4588 = vst [vmem:[#allocation1 + $0x2] ss:$9 sm:$0xff] %v14679_v56 }
 0x99d   :  { %4590 = vst [vmem:[#allocation1 + $0x3] ss:$9 sm:$0xff] %v14501_v31  ;;  %v3266_v61 = vpop.f32.mrf.mxu3 }
 0x99e   :  { %4592 = vst [vmem:[#allocation1 + $0x4] ss:$9 sm:$0xff] %v14680_v47  ;;  %v11517_v35 = vadd.f32 %v3266_v61, %v3248_v18  ;;  %v14687_v47 = vld [vmem:[#allocation124_spill] sm:$0xff]  ;;  %v14691_v61 = vld [vmem:[#allocation213_spill] sm:$0xff]  ;;  %v3381_v18 = vpop.permute.xlu0 %3380 }
 0x99f   :  { %4594 = vst [vmem:[#allocation1 + $0x5] ss:$9 sm:$0xff] %v14503_v24 }
 0x9a0   :  { %4596 = vst [vmem:[#allocation1 + $0x6] ss:$9 sm:$0xff] %v14681_v46  ;;  %v3503_v46 = vpop.permute.xlu1 %3502  ;;  %v3252_v48 = vpop.f32.mrf.mxu2 }
 0x9a1   :  { %4598 = vst [vmem:[#allocation1 + $0x7] ss:$9 sm:$0xff] %v14682_v59  ;;  %v11530_v20 = vsel %vm2660_vm11, %v3796_v10, %v3503_v46  ;;  %v14695_v10 = vld [vmem:[#allocation137_spill] sm:$0xff] }
 0x9a2   :  { %14683 = vst [vmem:[#allocation40_spill] sm:$0xff] %v11517_v35 }
 0x9a3   :  { %14688 = vst [vmem:[#allocation26_spill] sm:$0xff] %v11527_v26  ;;  %v14694_v26 = vld [vmem:[#allocation133_spill] sm:$0xff] }
 0x9a4   :  { %14689 = vst [vmem:[#allocation21_spill] sm:$0xff] %v11530_v20 }
 0x9a8   :  { %v4599_v56 = vld [vmem:[#allocation1] sm:$0xff] }
 0x9a9   :  { %4601 = vst [vmem:[#allocation1] ss:$9 sm:$0xff] %v14684_v0  ;;  %4611 = vrot.lane.b32.xlu1 %v4599_v56, %s8247_s24  ;;  %v14690_v0 = vld [vmem:[#allocation212_spill] sm:$0xff]  ;;  %v11535_v56 = vpop.f32.mrf.mxu3 }
 0x9aa   :  { %4602 = vst [vmem:[#allocation1 + $0x1] ss:$9 sm:$0xff] %v14413_v44 }
 0x9ab   :  { %4603 = vst [vmem:[#allocation1 + $0x2] ss:$9 sm:$0xff] %v14685_v9  ;;  %v3233_v9 = vpop.f32.mrf.mxu1 }
 0x9ac   :  { %4604 = vst [vmem:[#allocation1 + $0x3] ss:$9 sm:$0xff] %v14415_v28 }
 0x9ad   :  { %4605 = vst [vmem:[#allocation1 + $0x4] ss:$9 sm:$0xff] %v14687_v47  ;;  %v3253_v47 = vadd.f32 %v3252_v48, %v3233_v9  ;;  %v3782_v9 = vsel %vm2635_vm2, %v14700_v58, %v11482_v40  ;;  %v14701_v48 = vld [vmem:[#allocation66_spill] sm:$0xff] }
 0x9ae   :  { %4606 = vst [vmem:[#allocation1 + $0x5] ss:$9 sm:$0xff] %v14507_v43 }
 0x9af   :  { %4607 = vst [vmem:[#allocation1 + $0x6] ss:$9 sm:$0xff] %v14690_v0  ;;  %v14697_v0 = vld [vmem:[#allocation134_spill] sm:$0xff] }
 0x9b0   :  { %4608 = vst [vmem:[#allocation1 + $0x7] ss:$9 sm:$0xff] %v14691_v61 }
 0x9b1   :  { %14692 = vst [vmem:[#allocation35_spill] sm:$0xff] %v11535_v56  ;;  %v3271_v46 = vpop.f32.mrf.mxu3  ;;  %v3443_v56 = vpop.permute.xlu0 %3442 }
 0x9b2   :  { %v11541_v20 = vadd.f32 %v3271_v46, %v3253_v47 }
 0x9b4   :  { %14696 = vst [vmem:[#allocation48_spill] sm:$0xff] %v11541_v20  ;;  %v3474_v20 = vpop.permute.xlu2 %3473 }
 0x9b7   :  { %v4609_v35 = vld [vmem:[#allocation1] sm:$0xff] }
 0x9b8   :  { %4615 = vst [vmem:[#allocation1] ss:$9 sm:$0xff] %v14693_v6  ;;  %4613 = vrot.lane.b32.xlu0 %v4609_v35, %s8247_s24  ;;  %v3786_v35 = vsel %vm2640_vm4, %v3782_v9, %v3381_v18  ;;  %v3505_v6 = vpop.permute.xlu1 %3504  ;;  %v14706_v18 = vld [vmem:[#allocation143_spill] sm:$0xff]  ;;  %v14713_v9 = vld [vmem:[#allocation158_spill] sm:$0xff] }
 0x9b9   :  { %4617 = vst [vmem:[#allocation1 + $0x1] ss:$9 sm:$0xff] %v14694_v26  ;;  %v14702_v26 = vld [vmem:[#allocation126_spill] sm:$0xff]  ;;  %v3790_v47 = vsel %vm2645_vm5, %v3786_v35, %v11495_v60  ;;  %v14704_v60 = vld [vmem:[#allocation148_spill] sm:$0xff]  ;;  %v14714_v35 = vld [vmem:[#allocation159_spill] sm:$0xff] }
 0x9ba   :  { %4619 = vst [vmem:[#allocation1 + $0x2] ss:$9 sm:$0xff] %v14695_v10  ;;  %v3794_v46 = vsel %vm2650_vm9, %v3790_v47, %v3443_v56  ;;  %v14705_v56 = vld [vmem:[#allocation145_spill] sm:$0xff]  ;;  %v14717_v47 = vld [vmem:[#allocation220_spill] sm:$0xff] }
 0x9bb   :  { %4621 = vst [vmem:[#allocation1 + $0x3] ss:$9 sm:$0xff] %v14697_v0  ;;  %v3536_v0 = vpop.permute.xlu0 %3535 }
 0x9bc   :  { %4623 = vst [vmem:[#allocation1 + $0x4] ss:$9 sm:$0xff] %v14698_v19  ;;  %v3798_v19 = vsel %vm2655_vm10, %v3794_v46, %v3474_v20  ;;  %v14707_v20 = vld [vmem:[#allocation144_spill] sm:$0xff]  ;;  %v14718_v46 = vld [vmem:[#allocation221_spill] sm:$0xff] }
 0x9bd   :  { %4625 = vst [vmem:[#allocation1 + $0x5] ss:$9 sm:$0xff] %v14699_v34  ;;  %v3802_v34 = vsel %vm2660_vm11, %v3798_v19, %v3505_v6  ;;  %v14708_v6 = vld [vmem:[#allocation146_spill] sm:$0xff]  ;;  %v14710_v19 = vld [vmem:[#allocation139_spill] sm:$0xff] }
 0x9be   :  { %4627 = vst [vmem:[#allocation1 + $0x6] ss:$9 sm:$0xff] %v14701_v48  ;;  %v3807_v40 = vsel %vm2665_vm12, %v3802_v34, %v3536_v0  ;;  %v14703_v48 = vld [vmem:[#allocation147_spill] sm:$0xff]  ;;  %v14709_v34 = vld [vmem:[#allocation138_spill] sm:$0xff]  ;;  %v14711_v0 = vld [vmem:[#allocation84_spill] sm:$0xff] }
 0x9bf   :  { %4629 = vst [vmem:[#allocation1 + $0x7] ss:$9 sm:$0xff] %v14702_v26  ;;  %4153 = vmatmul.bf16.vlgmr.msrb.gmra.mxu2 %v3807_v40  ;;  %v14719_v40 = vld [vmem:[#allocation64_spill] sm:$0xff] }
 0x9c0   :  { %5177 = vmatpush.bf16.msrb.mxu2 %v11309_v5 }
 0x9c4   :  { %5178 = vmatpush.bf16.msrb.mxu2 %v11316_v63  ;;  %v14712_v63 = vld [vmem:[#allocation157_spill] sm:$0xff] }
 0x9c6   :  { %v4630_v58 = vld [vmem:[#allocation1] sm:$0xff] }
 0x9c7   :  { %4632 = vst [vmem:[#allocation1] ss:$9 sm:$0xff] %v14703_v48  ;;  %4642 = vrot.lane.b32.xlu2 %v4630_v58, %s8245_s22  ;;  %v14736_v48 = vld [vmem:[#allocation227_spill] sm:$0xff] }
 0x9c8   :  { %4633 = vst [vmem:[#allocation1 + $0x1] ss:$9 sm:$0xff] %v14704_v60  ;;  %5179 = vmatpush.bf16.msrb.mxu2 %v11329_v25  ;;  %v14715_v25 = vld [vmem:[#allocation160_spill] sm:$0xff] }
 0x9c9   :  { %4634 = vst [vmem:[#allocation1 + $0x2] ss:$9 sm:$0xff] %v14705_v56  ;;  %v14733_v60 = vld [vmem:[#allocation180_spill] sm:$0xff] }
 0x9ca   :  { %4635 = vst [vmem:[#allocation1 + $0x3] ss:$9 sm:$0xff] %v14706_v18 }
 0x9cb   :  { %4636 = vst [vmem:[#allocation1 + $0x4] ss:$9 sm:$0xff] %v14707_v20 }
 0x9cc   :  { %4637 = vst [vmem:[#allocation1 + $0x5] ss:$9 sm:$0xff] %v14708_v6  ;;  %5180 = vmatpush.bf16.msrb.mxu2 %v11340_v41  ;;  %v14716_v41 = vld [vmem:[#allocation11_spill] sm:$0xff] }
 0x9cd   :  { %4638 = vst [vmem:[#allocation1 + $0x6] ss:$9 sm:$0xff] %v14709_v34 }
 0x9ce   :  { %4639 = vst [vmem:[#allocation1 + $0x7] ss:$9 sm:$0xff] %v14710_v19 }
 0x9cf   :  { %7619 = vmatmul.msk.bf16.vlgmr.msra.gmra.mxu2 %vm2635_vm2, %v14711_v0  ;;  %v14722_v0 = vld [vmem:[#allocation93_spill] sm:$0xff] }
 0x9d0   :  { %5181 = vmatpush.bf16.msrb.mxu2 %v11348_v23  ;;  %v14720_v23 = vld [vmem:[#allocation165_spill] sm:$0xff] }
 0x9d4   :  { %5182 = vmatpush.bf16.msrb.mxu2 %v14716_v41  ;;  %v14723_v41 = vld [vmem:[#allocation167_spill] sm:$0xff] }
 0x9d5   :  { %v4640_v5 = vld [vmem:[#allocation1] sm:$0xff] }
 0x9d6   :  { %4646 = vst [vmem:[#allocation1] ss:$9 sm:$0xff] %v14222_v13  ;;  %4644 = vrot.lane.b32.xlu1 %v4640_v5, %s8245_s22  ;;  %v14721_v5 = vld [vmem:[#allocation166_spill] sm:$0xff]  ;;  %v14732_v13 = vld [vmem:[#allocation179_spill] sm:$0xff] }
 0x9d7   :  { %4648 = vst [vmem:[#allocation1 + $0x1] ss:$9 sm:$0xff] %v14580_v62  ;;  %v14724_v62 = vld [vmem:[#allocation168_spill] sm:$0xff] }
 0x9d8   :  { %4650 = vst [vmem:[#allocation1 + $0x2] ss:$9 sm:$0xff] %v14712_v63  ;;  %5183 = vmatpush.bf16.msrb.mxu2 %v14719_v40  ;;  %v14725_v40 = vld [vmem:[#allocation169_spill] sm:$0xff] }
 0x9d9   :  { %4652 = vst [vmem:[#allocation1 + $0x3] ss:$9 sm:$0xff] %v14713_v9 }
 0x9da   :  { %4654 = vst [vmem:[#allocation1 + $0x4] ss:$9 sm:$0xff] %v14714_v35 }
 0x9db   :  { %4656 = vst [vmem:[#allocation1 + $0x5] ss:$9 sm:$0xff] %v14715_v25 }
 0x9dc   :  { %4658 = vst [vmem:[#allocation1 + $0x6] ss:$9 sm:$0xff] %v14717_v47  ;;  %5184 = vmatpush.bf16.msrb.mxu2 %v11382_v4  ;;  %v14726_v4 = vld [vmem:[#allocation170_spill] sm:$0xff] }
 0x9dd   :  { %4660 = vst [vmem:[#allocation1 + $0x7] ss:$9 sm:$0xff] %v14718_v46 }
 0x9df   :  { %7620 = vmatmul.msk.bf16.gmra.mxu2 %vm2635_vm2, %v14722_v0  ;;  %v14729_v0 = vld [vmem:[#allocation176_spill] sm:$0xff] }
 0x9e0   :  { %6083 = vmatpush.bf16.msra.mxu2 %v11154_v42  ;;  %v14727_v42 = vld [vmem:[#allocation223_spill] sm:$0xff] }
 0x9e4   :  { %v4661_v58 = vld [vmem:[#allocation1] sm:$0xff]  ;;  %6084 = vmatpush.bf16.msra.mxu2 %v11164_v22  ;;  %v14730_v22 = vld [vmem:[#allocation177_spill] sm:$0xff] }
 0x9e5   :  { %4663 = vst [vmem:[#allocation1] ss:$9 sm:$0xff] %v14720_v23  ;;  %4673 = vrot.lane.b32.xlu0 %v4661_v58, %s8246_s23  ;;  %v14728_v23 = vld [vmem:[#allocation224_spill] sm:$0xff] }
 0x9e6   :  { %4664 = vst [vmem:[#allocation1 + $0x1] ss:$9 sm:$0xff] %v14721_v5  ;;  %v14731_v5 = vld [vmem:[#allocation178_spill] sm:$0xff] }
 0x9e7   :  { %4665 = vst [vmem:[#allocation1 + $0x2] ss:$9 sm:$0xff] %v14723_v41 }
 0x9e8   :  { %4666 = vst [vmem:[#allocation1 + $0x3] ss:$9 sm:$0xff] %v14724_v62  ;;  %6085 = vmatpush.bf16.msra.mxu2 %v11172_v1  ;;  %v14734_v1 = vld [vmem:[#allocation181_spill] sm:$0xff] }
 0x9e9   :  { %4667 = vst [vmem:[#allocation1 + $0x4] ss:$9 sm:$0xff] %v14725_v40  ;;  %v14759_v40 = vld [vmem:[#allocation28_spill] sm:$0xff] }
 0x9ea   :  { %4668 = vst [vmem:[#allocation1 + $0x5] ss:$9 sm:$0xff] %v14726_v4 }
 0x9eb   :  { %4669 = vst [vmem:[#allocation1 + $0x6] ss:$9 sm:$0xff] %v14727_v42  ;;  %v14758_v42 = vld [vmem:[#allocation13_spill] sm:$0xff] }
 0x9ec   :  { %4670 = vst [vmem:[#allocation1 + $0x7] ss:$9 sm:$0xff] %v14728_v23  ;;  %6086 = vmatpush.bf16.msra.mxu2 %v11178_v37  ;;  %v14735_v37 = vld [vmem:[#allocation225_spill] sm:$0xff] }
 0x9f0   :  { %6087 = vmatpush.bf16.msra.mxu2 %v11188_v49 }
 0x9f3   :  { %v4671_v58 = vld [vmem:[#allocation1] sm:$0xff] }
 0x9f4   :  { %4677 = vst [vmem:[#allocation1] ss:$9 sm:$0xff] %v14729_v0  ;;  %4675 = vrot.lane.b32.xlu2 %v4671_v58, %s8246_s23  ;;  %6088 = vmatpush.bf16.msra.mxu2 %v11198_v21  ;;  %v14737_v58 = vld [vmem:[#allocation187_spill] sm:$0xff]  ;;  %v14739_v0 = vld [vmem:[#allocation189_spill] sm:$0xff]  ;;  %v14740_v21 = vld [vmem:[#allocation190_spill] sm:$0xff] }
 0x9f5   :  { %4679 = vst [vmem:[#allocation1 + $0x1] ss:$9 sm:$0xff] %v14730_v22  ;;  %v14738_v22 = vld [vmem:[#allocation188_spill] sm:$0xff] }
 0x9f6   :  { %4681 = vst [vmem:[#allocation1 + $0x2] ss:$9 sm:$0xff] %v14731_v5 }
 0x9f7   :  { %4683 = vst [vmem:[#allocation1 + $0x3] ss:$9 sm:$0xff] %v14732_v13  ;;  %v14756_v13 = vld [vmem:[#allocation193_spill] sm:$0xff] }
 0x9f8   :  { %4685 = vst [vmem:[#allocation1 + $0x4] ss:$9 sm:$0xff] %v14733_v60  ;;  %6089 = vmatpush.bf16.msra.mxu2 %v11208_v7  ;;  %v14744_v7 = vld [vmem:[#allocation230_spill] sm:$0xff] }
 0x9f9   :  { %4687 = vst [vmem:[#allocation1 + $0x5] ss:$9 sm:$0xff] %v14734_v1  ;;  %v14741_v1 = vld [vmem:[#allocation191_spill] sm:$0xff] }
 0x9fa   :  { %4689 = vst [vmem:[#allocation1 + $0x6] ss:$9 sm:$0xff] %v14735_v37  ;;  %v14742_v37 = vld [vmem:[#allocation192_spill] sm:$0xff] }
 0x9fb   :  { %4691 = vst [vmem:[#allocation1 + $0x7] ss:$9 sm:$0xff] %v14736_v48  ;;  %v14743_v48 = vld [vmem:[#allocation229_spill] sm:$0xff] }
 0x9fc   :  { %6090 = vmatpush.bf16.msra.mxu2 %v11216_v39 }
 0xa02   :  { %v4692_v49 = vld [vmem:[#allocation1] sm:$0xff] }
 0xa03   :  { %4694 = vst [vmem:[#allocation1] ss:$9 sm:$0xff] %v14737_v58  ;;  %4704 = vrot.lane.b32.xlu1 %v4692_v49, %s8248_s25  ;;  %v14745_v49 = vld [vmem:[#allocation150_spill] sm:$0xff]  ;;  %v14747_v58 = vld [vmem:[#allocation152_spill] sm:$0xff] }
 0xa04   :  { %4695 = vst [vmem:[#allocation1 + $0x1] ss:$9 sm:$0xff] %v14738_v22  ;;  %v14746_v22 = vld [vmem:[#allocation151_spill] sm:$0xff] }
 0xa05   :  { %4696 = vst [vmem:[#allocation1 + $0x2] ss:$9 sm:$0xff] %v14739_v0 }
 0xa06   :  { %4697 = vst [vmem:[#allocation1 + $0x3] ss:$9 sm:$0xff] %v14740_v21 }
 0xa07   :  { %4698 = vst [vmem:[#allocation1 + $0x4] ss:$9 sm:$0xff] %v14741_v1 }
 0xa08   :  { %4699 = vst [vmem:[#allocation1 + $0x5] ss:$9 sm:$0xff] %v14742_v37  ;;  %v3590_v37 = vpop.permute.xlu2 %3589 }
 0xa09   :  { %4700 = vst [vmem:[#allocation1 + $0x6] ss:$9 sm:$0xff] %v14743_v48  ;;  %v14748_v48 = vld [vmem:[#allocation218_spill] sm:$0xff] }
 0xa0a   :  { %4701 = vst [vmem:[#allocation1 + $0x7] ss:$9 sm:$0xff] %v14744_v7 }
 0xa11   :  { %v4702_v39 = vld [vmem:[#allocation1] sm:$0xff] }
 0xa12   :  { %4708 = vst [vmem:[#allocation1] ss:$9 sm:$0xff] %v14499_v51  ;;  %4706 = vrot.lane.b32.xlu0 %v4702_v39, %s8248_s25  ;;  %v3592_v51 = vpop.permute.xlu2 %3591  ;;  %v14749_v39 = vld [vmem:[#allocation162_spill] sm:$0xff] }
 0xa13   :  { %4710 = vst [vmem:[#allocation1 + $0x1] ss:$9 sm:$0xff] %v14745_v49  ;;  %v14750_v49 = vld [vmem:[#allocation163_spill] sm:$0xff] }
 0xa14   :  { %4712 = vst [vmem:[#allocation1 + $0x2] ss:$9 sm:$0xff] %v14501_v31 }
 0xa15   :  { %4714 = vst [vmem:[#allocation1 + $0x3] ss:$9 sm:$0xff] %v14746_v22  ;;  %v3621_v22 = vpop.permute.xlu1 %3620 }
 0xa16   :  { %4716 = vst [vmem:[#allocation1 + $0x4] ss:$9 sm:$0xff] %v14503_v24 }
 0xa17   :  { %4718 = vst [vmem:[#allocation1 + $0x5] ss:$9 sm:$0xff] %v14747_v58  ;;  %v14751_v58 = vld [vmem:[#allocation10_spill] sm:$0xff] }
 0xa18   :  { %4720 = vst [vmem:[#allocation1 + $0x6] ss:$9 sm:$0xff] %v14682_v59 }
 0xa19   :  { %4722 = vst [vmem:[#allocation1 + $0x7] ss:$9 sm:$0xff] %v14748_v48  ;;  %v14752_v48 = vld [vmem:[#allocation222_spill] sm:$0xff] }
 0xa1a   :  { %v3683_v1 = vpop.permute.xlu2 %3682 }
 0xa1d   :  { %v3623_v21 = vpop.permute.xlu1 %3622 }
 0xa20   :  { %v4723_v7 = vld [vmem:[#allocation1] sm:$0xff] }
 0xa21   :  { %4725 = vst [vmem:[#allocation1] ss:$9 sm:$0xff] %v14413_v44  ;;  %4735 = vrot.lane.b32.xlu2 %v4723_v7, %s8243_s16  ;;  %v3652_v44 = vpop.permute.xlu0 %3651  ;;  %v14753_v7 = vld [vmem:[#allocation16_spill] sm:$0xff] }
 0xa22   :  { %4726 = vst [vmem:[#allocation1 + $0x1] ss:$9 sm:$0xff] %v14749_v39  ;;  %v14754_v39 = vld [vmem:[#allocation19_spill] sm:$0xff]  ;;  %v3685_v60 = vpop.permute.xlu2 %3684 }
 0xa23   :  { %4727 = vst [vmem:[#allocation1 + $0x2] ss:$9 sm:$0xff] %v14415_v28 }
 0xa24   :  { %4728 = vst [vmem:[#allocation1 + $0x3] ss:$9 sm:$0xff] %v14750_v49  ;;  %v14755_v49 = vld [vmem:[#allocation57_spill] sm:$0xff] }
 0xa25   :  { %4729 = vst [vmem:[#allocation1 + $0x4] ss:$9 sm:$0xff] %v14507_v43  ;;  %v3714_v23 = vpop.permute.xlu1 %3713 }
 0xa26   :  { %4730 = vst [vmem:[#allocation1 + $0x5] ss:$9 sm:$0xff] %v14751_v58  ;;  %v3810_v58 = vsel %vm2635_vm2, %v14755_v49, %v3590_v37 }
 0xa27   :  { %4731 = vst [vmem:[#allocation1 + $0x6] ss:$9 sm:$0xff] %v14691_v61 }
 0xa28   :  { %4732 = vst [vmem:[#allocation1 + $0x7] ss:$9 sm:$0xff] %v14752_v48  ;;  %v3814_v48 = vsel %vm2640_vm4, %v3810_v58, %v3621_v22 }
 0xa29   :  { %v3654_v5 = vpop.permute.xlu0 %3653 }
 0xa2a   :  { %v3745_v37 = vpop.permute.xlu2 %3744 }
 0xa2f   :  { %v4733_v0 = vld [vmem:[#allocation1] sm:$0xff] }
 0xa30   :  { %4739 = vst [vmem:[#allocation1] ss:$9 sm:$0xff] %v14753_v7  ;;  %4737 = vrot.lane.b32.xlu1 %v4733_v0, %s8243_s16  ;;  %v3818_v7 = vsel %vm2645_vm5, %v3814_v48, %v3652_v44  ;;  %v14757_v0 = vld [vmem:[#allocation194_spill] sm:$0xff]  ;;  %v14760_v44 = vld [vmem:[#allocation105_spill] sm:$0xff]  ;;  %v14761_v48 = vld [vmem:[#allocation31_spill] sm:$0xff] }
 0xa31   :  { %4741 = vst [vmem:[#allocation1 + $0x1] ss:$9 sm:$0xff] %v14107_v12  ;;  %v3776_v49 = vpop.permute.xlu0 %3775 }
 0xa32   :  { %4743 = vst [vmem:[#allocation1 + $0x2] ss:$9 sm:$0xff] %v14754_v39  ;;  %v3822_v39 = vsel %vm2650_vm9, %v3818_v7, %v3683_v1  ;;  %v14763_v1 = vld [vmem:[#allocation69_spill] sm:$0xff] }
 0xa33   :  { %4745 = vst [vmem:[#allocation1 + $0x3] ss:$9 sm:$0xff] %v14532_v55  ;;  %v3826_v4 = vsel %vm2655_vm10, %v3822_v39, %v3714_v23  ;;  %v14762_v23 = vld [vmem:[#allocation196_spill] sm:$0xff]  ;;  %v14765_v39 = vld [vmem:[#allocation54_spill] sm:$0xff] }
 0xa34   :  { %4747 = vst [vmem:[#allocation1 + $0x4] ss:$9 sm:$0xff] %v14756_v13  ;;  %v3830_v13 = vsel %vm2660_vm11, %v3826_v4, %v3745_v37  ;;  %v3812_v4 = vsel %vm2635_vm2, %v14763_v1, %v3592_v51  ;;  %v3716_v37 = vpop.permute.xlu1 %3715  ;;  %v14770_v1 = vld [vmem:[#allocation199_spill] sm:$0xff] }
 0xa35   :  { %4749 = vst [vmem:[#allocation1 + $0x5] ss:$9 sm:$0xff] %v14534_v29  ;;  %v3834_v22 = vsel %vm2665_vm12, %v3830_v13, %v3776_v49  ;;  %v3816_v7 = vsel %vm2640_vm4, %v3812_v4, %v3623_v21 }
 0xa36   :  { %4751 = vst [vmem:[#allocation1 + $0x6] ss:$9 sm:$0xff] %v14757_v0  ;;  %4167 = vmatmul.bf16.vlgmr.msrb.gmra.mxu3 %v3834_v22  ;;  %v3820_v0 = vsel %vm2645_vm5, %v3816_v7, %v3654_v5  ;;  %v14767_v5 = vld [vmem:[#allocation37_spill] sm:$0xff]  ;;  %v14772_v7 = vld [vmem:[#allocation83_spill] sm:$0xff] }
 0xa37   :  { %4753 = vst [vmem:[#allocation1 + $0x7] ss:$9 sm:$0xff] %v14758_v42  ;;  %5203 = vmatpush.bf16.msrb.mxu3 %v14760_v44  ;;  %v3824_v49 = vsel %vm2650_vm9, %v3820_v0, %v3685_v60  ;;  %v14766_v60 = vld [vmem:[#allocation39_spill] sm:$0xff]  ;;  %v14774_v0 = vld [vmem:[#allocation232_spill] sm:$0xff] }
 0xa38   :  { %v3828_v13 = vsel %vm2655_vm10, %v3824_v49, %v3716_v37  ;;  %v14775_v49 = vld [vmem:[#allocation87_spill] sm:$0xff] }
 0xa39   :  { %v3778_v22 = vpop.permute.xlu0 %3777 }
 0xa3e   :  { %v4754_v58 = vld [vmem:[#allocation1] sm:$0xff] }
 0xa3f   :  { %4756 = vst [vmem:[#allocation1] ss:$9 sm:$0xff] %v14759_v40  ;;  %4766 = vrot.lane.b32.xlu0 %v4754_v58, %s8242_s19  ;;  %v14764_v40 = vld [vmem:[#allocation119_spill] sm:$0xff]  ;;  %v3747_v58 = vpop.permute.xlu2 %3746 }
 0xa40   :  { %4757 = vst [vmem:[#allocation1 + $0x1] ss:$9 sm:$0xff] %v14446_v52  ;;  %v3832_v44 = vsel %vm2660_vm11, %v3828_v13, %v3747_v58  ;;  %v14776_v13 = vld [vmem:[#allocation88_spill] sm:$0xff]  ;;  %v14778_v58 = vld [vmem:[#allocation90_spill] sm:$0xff] }
 0xa41   :  { %4758 = vst [vmem:[#allocation1 + $0x2] ss:$9 sm:$0xff] %v14761_v48  ;;  %v3837_v48 = vsel %vm2665_vm12, %v3832_v44, %v3778_v22  ;;  %v14777_v22 = vld [vmem:[#allocation89_spill] sm:$0xff] }
 0xa42   :  { %4759 = vst [vmem:[#allocation1 + $0x3] ss:$9 sm:$0xff] %v14448_v8  ;;  %v14779_v44 = vld [vmem:[#allocation113_spill] sm:$0xff] }
 0xa43   :  { %4760 = vst [vmem:[#allocation1 + $0x4] ss:$9 sm:$0xff] %v14762_v23  ;;  %v14769_v23 = vld [vmem:[#allocation198_spill] sm:$0xff] }
 0xa44   :  { %4761 = vst [vmem:[#allocation1 + $0x5] ss:$9 sm:$0xff] %v14539_v14 }
 0xa45   :  { %4762 = vst [vmem:[#allocation1 + $0x6] ss:$9 sm:$0xff] %v14764_v40  ;;  %v14773_v40 = vld [vmem:[#allocation231_spill] sm:$0xff] }
 0xa46   :  { %4763 = vst [vmem:[#allocation1 + $0x7] ss:$9 sm:$0xff] %v14765_v39  ;;  %4172 = vmatmul.bf16.gmra.mxu3 %v3837_v48  ;;  %v14781_v48 = vld [vmem:[#allocation233_spill] sm:$0xff] }
 0xa4d   :  { %v4764_v51 = vld [vmem:[#allocation1] sm:$0xff] }
 0xa4e   :  { %4830 = vst [vmem:[#allocation1] ss:$9 sm:$0xff] %v14273_v2  ;;  %4768 = vrot.lane.b32.xlu2 %v4764_v51, %s8242_s19  ;;  %v14780_v51 = vld [vmem:[#allocation131_spill] sm:$0xff] }
 0xa4f   :  { %4832 = vst [vmem:[#allocation1 + $0x1] ss:$9 sm:$0xff] %v14274_v36 }
 0xa50   :  { %4834 = vst [vmem:[#allocation1 + $0x2] ss:$9 sm:$0xff] %v14275_v11 }
 0xa51   :  { %4836 = vst [vmem:[#allocation1 + $0x3] ss:$9 sm:$0xff] %v14276_v50 }
 0xa52   :  { %4838 = vst [vmem:[#allocation1 + $0x4] ss:$9 sm:$0xff] %v14514_v17 }
 0xa53   :  { %4840 = vst [vmem:[#allocation1 + $0x5] ss:$9 sm:$0xff] %v14429_v54 }
 0xa54   :  { %4842 = vst [vmem:[#allocation1 + $0x6] ss:$9 sm:$0xff] %v14766_v60  ;;  %v14786_v60 = vld [vmem:[#allocation100_spill] sm:$0xff] }
 0xa55   :  { %4844 = vst [vmem:[#allocation1 + $0x7] ss:$9 sm:$0xff] %v14767_v5  ;;  %v14785_v5 = vld [vmem:[#allocation99_spill] sm:$0xff] }
 0xa5c   :  { %v11685_v21 = vld [vmem:[#allocation1] sm:$0xff] }
 0xa5d   :  { %14768 = vst [vmem:[#allocation123_spill] sm:$0xff] %v11685_v21  ;;  %v14788_v21 = vld [vmem:[#allocation202_spill] sm:$0xff] }
 0xa5e   :  { %4846 = vst [vmem:[#allocation1] ss:$9 sm:$0xff] %v14281_v45 }
 0xa5f   :  { %4847 = vst [vmem:[#allocation1 + $0x1] ss:$9 sm:$0xff] %v14282_v57 }
 0xa60   :  { %4848 = vst [vmem:[#allocation1 + $0x2] ss:$9 sm:$0xff] %v14283_v16  ;;  %v14870_v16 = vld [vmem:[#allocation230_spill] sm:$0xff] }
 0xa61   :  { %4849 = vst [vmem:[#allocation1 + $0x3] ss:$9 sm:$0xff] %v14284_v27  ;;  %v14867_v27 = vld [vmem:[#allocation192_spill] sm:$0xff] }
 0xa62   :  { %4850 = vst [vmem:[#allocation1 + $0x4] ss:$9 sm:$0xff] %v14517_v15 }
 0xa63   :  { %4851 = vst [vmem:[#allocation1 + $0x5] ss:$9 sm:$0xff] %v14634_v30 }
 0xa64   :  { %4852 = vst [vmem:[#allocation1 + $0x6] ss:$9 sm:$0xff] %v14769_v23  ;;  %v14783_v23 = vld [vmem:[#allocation98_spill] sm:$0xff] }
 0xa65   :  { %4853 = vst [vmem:[#allocation1 + $0x7] ss:$9 sm:$0xff] %v14770_v1  ;;  %v3923_v1 = vpop.permute.xlu2 %3922 }
 0xa6c   :  { %v11695_v4 = vld [vmem:[#allocation1] sm:$0xff] }
 0xa6d   :  { %14771 = vst [vmem:[#allocation186_spill] sm:$0xff] %v11695_v4  ;;  %v14787_v4 = vld [vmem:[#allocation120_spill] sm:$0xff] }
 0xa6e   :  { %4855 = vst [vmem:[#allocation1] ss:$9 sm:$0xff] %v14637_v53  ;;  %v14862_v53 = vld [vmem:[#allocation189_spill] sm:$0xff] }
 0xa6f   :  { %4857 = vst [vmem:[#allocation1 + $0x1] ss:$9 sm:$0xff] %v14638_v32 }
 0xa70   :  { %4859 = vst [vmem:[#allocation1 + $0x2] ss:$9 sm:$0xff] %v14639_v38 }
 0xa71   :  { %4861 = vst [vmem:[#allocation1 + $0x3] ss:$9 sm:$0xff] %v14640_v33 }
 0xa72   :  { %4863 = vst [vmem:[#allocation1 + $0x4] ss:$9 sm:$0xff] %v14641_v3 }
 0xa73   :  { %4865 = vst [vmem:[#allocation1 + $0x5] ss:$9 sm:$0xff] %v14772_v7 }
 0xa74   :  { %4867 = vst [vmem:[#allocation1 + $0x6] ss:$9 sm:$0xff] %v14773_v40  ;;  %v14782_v40 = vld [vmem:[#allocation234_spill] sm:$0xff] }
 0xa75   :  { %4869 = vst [vmem:[#allocation1 + $0x7] ss:$9 sm:$0xff] %v14774_v0 }
 0xa7c   :  { %v4870_v37 = vld [vmem:[#allocation1] sm:$0xff] }
 0xa7d   :  { %4872 = vst [vmem:[#allocation1] ss:$9 sm:$0xff] %v14775_v49  ;;  %4882 = vrot.lane.b32.xlu0 %v4870_v37, %s8244_s21  ;;  %v14784_v37 = vld [vmem:[#allocation5_spill] sm:$0xff] }
 0xa7e   :  { %4873 = vst [vmem:[#allocation1 + $0x1] ss:$9 sm:$0xff] %v14776_v13  ;;  %v14798_v13 = vld [vmem:[#allocation239_spill] sm:$0xff] }
 0xa7f   :  { %4874 = vst [vmem:[#allocation1 + $0x2] ss:$9 sm:$0xff] %v14777_v22  ;;  %v14797_v22 = vld [vmem:[#allocation238_spill] sm:$0xff] }
 0xa80   :  { %4875 = vst [vmem:[#allocation1 + $0x3] ss:$9 sm:$0xff] %v14778_v58 }
 0xa81   :  { %4876 = vst [vmem:[#allocation1 + $0x4] ss:$9 sm:$0xff] %v14779_v44  ;;  %v3892_v44 = vpop.permute.xlu1 %3891 }
 0xa82   :  { %4877 = vst [vmem:[#allocation1 + $0x5] ss:$9 sm:$0xff] %v14780_v51  ;;  %v14789_v51 = vld [vmem:[#allocation235_spill] sm:$0xff] }
 0xa83   :  { %4878 = vst [vmem:[#allocation1 + $0x6] ss:$9 sm:$0xff] %v14781_v48  ;;  %v14790_v48 = vld [vmem:[#allocation236_spill] sm:$0xff] }
 0xa84   :  { %4879 = vst [vmem:[#allocation1 + $0x7] ss:$9 sm:$0xff] %v14782_v40  ;;  %v3925_v40 = vpop.permute.xlu2 %3924 }
 0xa8b   :  { %v4880_v0 = vld [vmem:[#allocation1] sm:$0xff] }
 0xa8c   :  { %4886 = vst [vmem:[#allocation1] ss:$9 sm:$0xff] %v14783_v23  ;;  %4884 = vrot.lane.b32.xlu1 %v4880_v0, %s8244_s21  ;;  %v14791_v23 = vld [vmem:[#allocation108_spill] sm:$0xff]  ;;  %v14792_v0 = vld [vmem:[#allocation109_spill] sm:$0xff] }
 0xa8d   :  { %4888 = vst [vmem:[#allocation1 + $0x1] ss:$9 sm:$0xff] %v14784_v37  ;;  %v14793_v37 = vld [vmem:[#allocation7_spill] sm:$0xff] }
 0xa8e   :  { %4890 = vst [vmem:[#allocation1 + $0x2] ss:$9 sm:$0xff] %v14785_v5  ;;  %v3954_v5 = vpop.permute.xlu0 %3953 }
 0xa8f   :  { %4892 = vst [vmem:[#allocation1 + $0x3] ss:$9 sm:$0xff] %v14786_v60  ;;  %v4016_v60 = vpop.permute.xlu2 %4015 }
 0xa90   :  { %4894 = vst [vmem:[#allocation1 + $0x4] ss:$9 sm:$0xff] %v14787_v4  ;;  %v14794_v4 = vld [vmem:[#allocation110_spill] sm:$0xff] }
 0xa91   :  { %4896 = vst [vmem:[#allocation1 + $0x5] ss:$9 sm:$0xff] %v14788_v21  ;;  %v14795_v21 = vld [vmem:[#allocation203_spill] sm:$0xff] }
 0xa92   :  { %4898 = vst [vmem:[#allocation1 + $0x6] ss:$9 sm:$0xff] %v14789_v51  ;;  %v14796_v51 = vld [vmem:[#allocation205_spill] sm:$0xff] }
 0xa93   :  { %4900 = vst [vmem:[#allocation1 + $0x7] ss:$9 sm:$0xff] %v14790_v48  ;;  %v3894_v48 = vpop.permute.xlu1 %3893 }
 0xa96   :  { %v3956_v49 = vpop.permute.xlu0 %3955 }
 0xa9a   :  { %v4901_v58 = vld [vmem:[#allocation1] sm:$0xff] }
 0xa9b   :  { %4903 = vst [vmem:[#allocation1] ss:$9 sm:$0xff] %v14791_v23  ;;  %4913 = vrot.lane.b32.xlu1 %v4901_v58, %s8247_s24  ;;  %v14799_v23 = vld [vmem:[#allocation72_spill] sm:$0xff]  ;;  %v3985_v7 = vpop.permute.xlu1 %3984 }
 0xa9c   :  { %4904 = vst [vmem:[#allocation1 + $0x1] ss:$9 sm:$0xff] %v14792_v0  ;;  %v4107_v58 = vsel %vm2635_vm2, %v14799_v23, %v3892_v44  ;;  %v4018_v0 = vpop.permute.xlu2 %4017 }
 0xa9d   :  { %4905 = vst [vmem:[#allocation1 + $0x2] ss:$9 sm:$0xff] %v14793_v37  ;;  %v4111_v37 = vsel %vm2640_vm4, %v4107_v58, %v3923_v1  ;;  %v14802_v1 = vld [vmem:[#allocation62_spill] sm:$0xff] }
 0xa9e   :  { %4906 = vst [vmem:[#allocation1 + $0x3] ss:$9 sm:$0xff] %v14794_v4  ;;  %v4047_v44 = vpop.permute.xlu0 %4046  ;;  %v14856_v4 = vld [vmem:[#allocation227_spill] sm:$0xff] }
 0xa9f   :  { %4907 = vst [vmem:[#allocation1 + $0x4] ss:$9 sm:$0xff] %v14795_v21  ;;  %v4115_v21 = vsel %vm2645_vm5, %v4111_v37, %v3954_v5  ;;  %v14803_v37 = vld [vmem:[#allocation14_spill] sm:$0xff] }
 0xaa0   :  { %4908 = vst [vmem:[#allocation1 + $0x5] ss:$9 sm:$0xff] %v14796_v51  ;;  %v14800_v51 = vld [vmem:[#allocation18_spill] sm:$0xff] }
 0xaa1   :  { %4909 = vst [vmem:[#allocation1 + $0x6] ss:$9 sm:$0xff] %v14797_v22  ;;  %v4119_v22 = vsel %vm2650_vm9, %v4115_v21, %v3985_v7  ;;  %v8199_v21 = vld [vmem:[%s13247_s3 + $0x38] sm:$0xff] }
 0xaa2   :  { %4910 = vst [vmem:[#allocation1 + $0x7] ss:$9 sm:$0xff] %v14798_v13  ;;  %v14801_v13 = vld [vmem:[#allocation70_spill] sm:$0xff]  ;;  %v4123_v23 = vsel %vm2655_vm10, %v4119_v22, %v4016_v60 }
 0xaa3   :  { %v4127_v5 = vsel %vm2660_vm11, %v4123_v23, %v4047_v44  ;;  %v8200_v60 = vld [vmem:[%s13247_s3 + $0x30] sm:$0xff]  ;;  %v8201_v23 = vld [vmem:[%s13247_s3 + $0x28] sm:$0xff] }
 0xaa4   :  { %v4078_v58 = vpop.permute.xlu2 %4077  ;;  %v14804_v22 = vld [vmem:[#allocation30_spill] sm:$0xff]  ;;  %v14805_v44 = vld [vmem:[#allocation81_spill] sm:$0xff] }
 0xaa9   :  { %v4911_v3 = vld [vmem:[#allocation1] sm:$0xff] }
 0xaaa   :  { %4917 = vst [vmem:[#allocation1] ss:$9 sm:$0xff] %v14107_v12  ;;  %4915 = vrot.lane.b32.xlu0 %v4911_v3, %s8247_s24  ;;  %v4131_v3 = vsel %vm2665_vm12, %v4127_v5, %v4078_v58  ;;  %v14806_v58 = vld [vmem:[#allocation82_spill] sm:$0xff]  ;;  %v14854_v12 = vld [vmem:[#allocation225_spill] sm:$0xff] }
 0xaab   :  { %4919 = vst [vmem:[#allocation1 + $0x1] ss:$9 sm:$0xff] %v14800_v51  ;;  %4186 = vmatmul.bf16.vlgmr.msra.gmra.mxu1 %v4131_v3  ;;  %v4109_v5 = vsel %vm2635_vm2, %v14806_v58, %v3894_v48  ;;  %v14807_v3 = vld [vmem:[#allocation104_spill] sm:$0xff]  ;;  %v8203_v48 = vld [vmem:[%s13247_s3 + $0x18] sm:$0xff]  ;;  %v4049_v58 = vpop.permute.xlu0 %4048  ;;  %v11907_v51 = vpop.f32.mrf.mxu3 }
 0xaac   :  { %4921 = vst [vmem:[#allocation1 + $0x2] ss:$9 sm:$0xff] %v14532_v55  ;;  %6064 = vmatpush.bf16.msra.mxu1 %v8199_v21  ;;  %v3987_v21 = vpop.permute.xlu1 %3986  ;;  %v14852_v55 = vld [vmem:[#allocation181_spill] sm:$0xff] }
 0xaad   :  { %4923 = vst [vmem:[#allocation1 + $0x3] ss:$9 sm:$0xff] %v14801_v13 }
 0xaae   :  { %4925 = vst [vmem:[#allocation1 + $0x4] ss:$9 sm:$0xff] %v14534_v29 }
 0xaaf   :  { %4927 = vst [vmem:[#allocation1 + $0x5] ss:$9 sm:$0xff] %v14802_v1  ;;  %v4339_v1 = vpop.permute.xlu2 %4338 }
 0xab0   :  { %4929 = vst [vmem:[#allocation1 + $0x6] ss:$9 sm:$0xff] %v14758_v42  ;;  %6065 = vmatpush.bf16.msra.mxu1 %v8200_v60  ;;  %v8202_v60 = vld [vmem:[%s13247_s3 + $0x20] sm:$0xff] }
 0xab1   :  { %4931 = vst [vmem:[#allocation1 + $0x7] ss:$9 sm:$0xff] %v14803_v37 }
 0xab2   :  { %14853 = vst [vmem:[#allocation144_spill] sm:$0xff] %v11907_v51 }
 0xab4   :  { %6066 = vmatpush.bf16.msra.mxu1 %v8201_v23  ;;  %v4113_v23 = vsel %vm2640_vm4, %v4109_v5, %v3925_v40  ;;  %v14810_v5 = vld [vmem:[#allocation53_spill] sm:$0xff] }
 0xab5   :  { %v4117_v37 = vsel %vm2645_vm5, %v4113_v23, %v3956_v49 }
 0xab6   :  { %v4121_v42 = vsel %vm2650_vm9, %v4117_v37, %v3987_v21  ;;  %v14809_v37 = vld [vmem:[#allocation115_spill] sm:$0xff]  ;;  %v14812_v21 = vld [vmem:[#allocation210_spill] sm:$0xff] }
 0xab8   :  { %v4932_v7 = vld [vmem:[#allocation1] sm:$0xff]  ;;  %6067 = vmatpush.bf16.msra.mxu1 %v8202_v60 }
 0xab9   :  { %4934 = vst [vmem:[#allocation1] ss:$9 sm:$0xff] %v14446_v52  ;;  %4944 = vrot.lane.b32.xlu2 %v4932_v7, %s8245_s22  ;;  %v14808_v7 = vld [vmem:[#allocation55_spill] sm:$0xff]  ;;  %v11929_v33 = vpop.f32.mrf.mxu3 }
 0xaba   :  { %4935 = vst [vmem:[#allocation1 + $0x1] ss:$9 sm:$0xff] %v14804_v22 }
 0xabb   :  { %4936 = vst [vmem:[#allocation1 + $0x2] ss:$9 sm:$0xff] %v14448_v8  ;;  %v14838_v8 = vld [vmem:[#allocation129_spill] sm:$0xff] }
 0xabc   :  { %4937 = vst [vmem:[#allocation1 + $0x3] ss:$9 sm:$0xff] %v14805_v44  ;;  %6068 = vmatpush.bf16.msra.mxu1 %v8203_v48  ;;  %v14814_v48 = vld [vmem:[#allocation60_spill] sm:$0xff]  ;;  %v11866_v22 = vrot.slane %v14838_v8, 1  ;;  %v14842_v8 = vld [vmem:[#allocation223_spill] sm:$0xff] }
 0xabd   :  { %4938 = vst [vmem:[#allocation1 + $0x4] ss:$9 sm:$0xff] %v14539_v14  ;;  %v4080_v14 = vpop.permute.xlu1 %4079 }
 0xabe   :  { %4939 = vst [vmem:[#allocation1 + $0x5] ss:$9 sm:$0xff] %v14807_v3  ;;  %v4125_v3 = vsel %vm2655_vm10, %v4121_v42, %v4018_v0  ;;  %v8205_v42 = vld [vmem:[%s13247_s3 + $0x8] sm:$0xff] }
 0xabf   :  { %4940 = vst [vmem:[#allocation1 + $0x6] ss:$9 sm:$0xff] %v14765_v39  ;;  %v4129_v60 = vsel %vm2660_vm11, %v4125_v3, %v4049_v58  ;;  %v14811_v0 = vld [vmem:[#allocation201_spill] sm:$0xff]  ;;  %v14815_v58 = vld [vmem:[#allocation124_spill] sm:$0xff] }
 0xac0   :  { %4941 = vst [vmem:[#allocation1 + $0x7] ss:$9 sm:$0xff] %v14808_v7  ;;  %v8204_v7 = vld [vmem:[%s13247_s3 + $0x10] sm:$0xff]  ;;  %v4134_v49 = vsel %vm2665_vm12, %v4129_v60, %v4080_v14  ;;  %v1073_v3 = vrot.slane %v14811_v0, 3  ;;  %v8206_v14 = vld [vmem:[%s13247_s3] sm:$0xff] }
 0xac1   :  { %6069 = vmatpush.bf16.msra.mxu1 %v8204_v7  ;;  %v14813_v7 = vld [vmem:[#allocation117_spill] sm:$0xff]  ;;  %v14816_v60 = vld [vmem:[#allocation206_spill] sm:$0xff]  ;;  %v14820_v0 = vld [vmem:[#allocation136_spill] sm:$0xff]  ;;  %14839 = vst [vmem:[#allocation122_spill] sm:$0xff] %v11866_v22 }
 0xac2   :  { %4191 = vmatmul.bf16.gmra.mxu1 %v4134_v49  ;;  %v14817_v49 = vld [vmem:[#allocation212_spill] sm:$0xff]  ;;  %14860 = vst [vmem:[#allocation159_spill] sm:$0xff] %v11929_v33 }
 0xac5   :  { %6070 = vmatpush.bf16.msra.mxu1 %v8205_v42  ;;  %v14819_v42 = vld [vmem:[#allocation134_spill] sm:$0xff] }
 0xac7   :  { %v4942_v40 = vld [vmem:[#allocation1] sm:$0xff] }
 0xac8   :  { %4948 = vst [vmem:[#allocation1] ss:$9 sm:$0xff] %v14809_v37  ;;  %4946 = vrot.lane.b32.xlu1 %v4942_v40, %s8245_s22  ;;  %v1289_v40 = vrot.slane %v14816_v60, 3  ;;  %v14818_v37 = vld [vmem:[#allocation128_spill] sm:$0xff] }
 0xac9   :  { %4950 = vst [vmem:[#allocation1 + $0x1] ss:$9 sm:$0xff] %v14501_v31  ;;  %6071 = vmatpush.bf16.msra.mxu1 %v8206_v14  ;;  %v14822_v14 = vld [vmem:[#allocation214_spill] sm:$0xff] }
 0xaca   :  { %4952 = vst [vmem:[#allocation1 + $0x2] ss:$9 sm:$0xff] %v14810_v5 }
 0xacb   :  { %4954 = vst [vmem:[#allocation1 + $0x3] ss:$9 sm:$0xff] %v14503_v24 }
 0xacc   :  { %4956 = vst [vmem:[#allocation1 + $0x4] ss:$9 sm:$0xff] %v14812_v21  ;;  %v14821_v21 = vld [vmem:[#allocation135_spill] sm:$0xff] }
 0xacd   :  { %4958 = vst [vmem:[#allocation1 + $0x5] ss:$9 sm:$0xff] %v14682_v59 }
 0xace   :  { %4960 = vst [vmem:[#allocation1 + $0x6] ss:$9 sm:$0xff] %v1073_v3 }
 0xacf   :  { %4962 = vst [vmem:[#allocation1 + $0x7] ss:$9 sm:$0xff] %v14813_v7 }
 0xad6   :  { %v4963_v23 = vld [vmem:[#allocation1] sm:$0xff] }
 0xad7   :  { %4965 = vst [vmem:[#allocation1] ss:$9 sm:$0xff] %v14814_v48  ;;  %4975 = vrot.lane.b32.xlu0 %v4963_v23, %s8246_s23  ;;  %v11814_v23 = vrot.slane %v14822_v14, 1  ;;  %v14824_v48 = vld [vmem:[#allocation66_spill] sm:$0xff] }
 0xad8   :  { %4966 = vst [vmem:[#allocation1 + $0x1] ss:$9 sm:$0xff] %v14415_v28 }
 0xad9   :  { %4967 = vst [vmem:[#allocation1 + $0x2] ss:$9 sm:$0xff] %v14815_v58  ;;  %v14825_v58 = vld [vmem:[#allocation215_spill] sm:$0xff] }
 0xada   :  { %4968 = vst [vmem:[#allocation1 + $0x3] ss:$9 sm:$0xff] %v14507_v43  ;;  %v11818_v60 = vrot.slane %v14825_v58, 2  ;;  %v14829_v58 = vld [vmem:[#allocation208_spill] sm:$0xff] }
 0xadb   :  { %4969 = vst [vmem:[#allocation1 + $0x4] ss:$9 sm:$0xff] %v14817_v49  ;;  %v11833_v39 = vrot.slane %v14829_v58, 2 }
 0xadc   :  { %4970 = vst [vmem:[#allocation1 + $0x5] ss:$9 sm:$0xff] %v14691_v61 }
 0xadd   :  { %4971 = vst [vmem:[#allocation1 + $0x6] ss:$9 sm:$0xff] %v1289_v40 }
 0xade   :  { %4972 = vst [vmem:[#allocation1 + $0x7] ss:$9 sm:$0xff] %v14818_v37 }
 0xadf   :  { %14823 = vst [vmem:[#allocation43_spill] sm:$0xff] %v11814_v23 }
 0xae0   :  { %14826 = vst [vmem:[#allocation240_spill] sm:$0xff] %v11818_v60 }
 0xae1   :  { %14830 = vst [vmem:[#allocation12_spill] sm:$0xff] %v11833_v39 }
 0xae5   :  { %v4973_v5 = vld [vmem:[#allocation1] sm:$0xff] }
 0xae6   :  { %4979 = vst [vmem:[#allocation1] ss:$9 sm:$0xff] %v14695_v10  ;;  %4977 = vrot.lane.b32.xlu2 %v4973_v5, %s8246_s23  ;;  %v14827_v5 = vld [vmem:[#allocation207_spill] sm:$0xff] }
 0xae7   :  { %4981 = vst [vmem:[#allocation1 + $0x1] ss:$9 sm:$0xff] %v14819_v42  ;;  %v11829_v14 = vrot.slane %v14827_v5, 1  ;;  %v4221_v5 = vshrl.u32 %v1073_v3, 16 }
 0xae8   :  { %4983 = vst [vmem:[#allocation1 + $0x2] ss:$9 sm:$0xff] %v14820_v0 }
 0xae9   :  { %4985 = vst [vmem:[#allocation1 + $0x3] ss:$9 sm:$0xff] %v14821_v21 }
 0xaea   :  { %4987 = vst [vmem:[#allocation1 + $0x4] ss:$9 sm:$0xff] %v14824_v48 }
 0xaeb   :  { %4989 = vst [vmem:[#allocation1 + $0x5] ss:$9 sm:$0xff] %v14702_v26 }
 0xaec   :  { %4991 = vst [vmem:[#allocation1 + $0x6] ss:$9 sm:$0xff] %v11814_v23 }
 0xaed   :  { %4993 = vst [vmem:[#allocation1 + $0x7] ss:$9 sm:$0xff] %v11818_v60 }
 0xaee   :  { %14828 = vst [vmem:[#allocation241_spill] sm:$0xff] %v11829_v14 }
 0xaf4   :  { %v4994_v49 = vld [vmem:[#allocation1] sm:$0xff] }
 0xaf5   :  { %4996 = vst [vmem:[#allocation1] ss:$9 sm:$0xff] %v14705_v56  ;;  %5006 = vrot.lane.b32.xlu1 %v4994_v49, %s8248_s25  ;;  %v14831_v49 = vld [vmem:[#allocation118_spill] sm:$0xff] }
 0xaf6   :  { %4997 = vst [vmem:[#allocation1 + $0x1] ss:$9 sm:$0xff] %v14706_v18  ;;  %v11839_v26 = vrot.slane %v14831_v49, 1  ;;  %v4228_v49 = vshrl.u32 %v14813_v7, 16 }
 0xaf7   :  { %4998 = vst [vmem:[#allocation1 + $0x2] ss:$9 sm:$0xff] %v14707_v20 }
 0xaf8   :  { %4999 = vst [vmem:[#allocation1 + $0x3] ss:$9 sm:$0xff] %v14708_v6  ;;  %v4233_v58 = vshll.u32 %v11839_v26, 16 }
 0xaf9   :  { %5000 = vst [vmem:[#allocation1 + $0x4] ss:$9 sm:$0xff] %v14709_v34  ;;  %v11844_v34 = vpop.f32.mrf.mxu1 }
 0xafa   :  { %5001 = vst [vmem:[#allocation1 + $0x5] ss:$9 sm:$0xff] %v14710_v19  ;;  %v4225_v19 = vshll.u32 %v14813_v7, 16  ;;  %v11859_v3 = vsel %vm8861_vm8, %v4228_v49, %v4233_v58  ;;  %v14840_v58 = vld [vmem:[#allocation169_spill] sm:$0xff]  ;;  %v4241_v49 = vshll.u32 %v14818_v37, 16 }
 0xafb   :  { %5002 = vst [vmem:[#allocation1 + $0x6] ss:$9 sm:$0xff] %v11829_v14 }
 0xafc   :  { %5003 = vst [vmem:[#allocation1 + $0x7] ss:$9 sm:$0xff] %v11833_v39 }
 0xafd   :  { %14832 = vst [vmem:[#allocation23_spill] sm:$0xff] %v11839_v26 }
 0xafe   :  { %14833 = vst [vmem:[#allocation217_spill] sm:$0xff] %v11844_v34 }
 0xaff   :  { %14836 = vst [vmem:[#allocation33_spill] sm:$0xff] %v11859_v3 }
 0xb01   :  { %v11863_v34 = vpop.f32.mrf.mxu1 }
 0xb02   :  { %14837 = vst [vmem:[#allocation112_spill] sm:$0xff] %v11863_v34  ;;  %v4244_v34 = vshrl.u32 %v14818_v37, 16 }
 0xb03   :  { %v5004_v48 = vld [vmem:[#allocation1] sm:$0xff] }
 0xb04   :  { %5010 = vst [vmem:[#allocation1] ss:$9 sm:$0xff] %v14712_v63  ;;  %5008 = vrot.lane.b32.xlu0 %v5004_v48, %s8248_s25  ;;  %v11854_v48 = vsel %vm8861_vm8, %v4221_v5, %v4225_v19  ;;  %v4237_v19 = vshrl.u32 %v1289_v40, 16  ;;  %v4249_v5 = vshll.u32 %v11866_v22, 16  ;;  %v14845_v40 = vld [vmem:[#allocation224_spill] sm:$0xff] }
 0xb05   :  { %5012 = vst [vmem:[#allocation1 + $0x1] ss:$9 sm:$0xff] %v14713_v9 }
 0xb06   :  { %5014 = vst [vmem:[#allocation1 + $0x2] ss:$9 sm:$0xff] %v14714_v35  ;;  %v11888_v52 = vsel %vm8861_vm8, %v4244_v34, %v4249_v5  ;;  %v4258_v34 = vshll.u32 %v11818_v60, 16  ;;  %v14850_v5 = vld [vmem:[#allocation179_spill] sm:$0xff] }
 0xb07   :  { %5016 = vst [vmem:[#allocation1 + $0x3] ss:$9 sm:$0xff] %v14715_v25 }
 0xb08   :  { %5018 = vst [vmem:[#allocation1 + $0x4] ss:$9 sm:$0xff] %v14717_v47 }
 0xb09   :  { %14835 = vst [vmem:[#allocation219_spill] sm:$0xff] %v11854_v48 }
 0xb0a   :  { %5020 = vst [vmem:[#allocation1 + $0x5] ss:$9 sm:$0xff] %v14718_v46  ;;  %v11884_v46 = vpop.f32.mrf.mxu2 }
 0xb0b   :  { %5023 = vst [vmem:[#allocation1 + $0x6] ss:$9 sm:$0xff] %v11854_v48  ;;  %v11877_v48 = vpop.f32.mrf.mxu1 }
 0xb0c   :  { %5026 = vst [vmem:[#allocation1 + $0x7] ss:$9 sm:$0xff] %v11859_v3  ;;  %v14841_v3 = vld [vmem:[#allocation170_spill] sm:$0xff] }
 0xb0d   :  { %14843 = vst [vmem:[#allocation137_spill] sm:$0xff] %v11877_v48 }
 0xb0e   :  { %14846 = vst [vmem:[#allocation145_spill] sm:$0xff] %v11884_v46  ;;  %v4253_v46 = vshrl.u32 %v11814_v23, 16 }
 0xb0f   :  { %14847 = vst [vmem:[#allocation143_spill] sm:$0xff] %v11888_v52 }
 0xb10   :  { %v11914_v23 = vsel %vm8861_vm8, %v4253_v46, %v4258_v34  ;;  %v14861_v34 = vld [vmem:[#allocation209_spill] sm:$0xff] }
 0xb11   :  { %14855 = vst [vmem:[#allocation146_spill] sm:$0xff] %v11914_v23 }
 0xb12   :  { %v11893_v48 = vpop.f32.mrf.mxu2 }
 0xb13   :  { %v5027_v47 = vld [vmem:[#allocation1] sm:$0xff] }
 0xb14   :  { %5029 = vst [vmem:[#allocation1] ss:$9 sm:$0xff] %v14723_v41  ;;  %5041 = vrot.lane.b32.xlu2 %v5027_v47, %s8243_s16  ;;  %v11881_v47 = vsel %vm8861_vm8, %v4237_v19, %v4241_v49  ;;  %v11895_v19 = vpop.f32.mrf.mxu1  ;;  %v14849_v49 = vld [vmem:[#allocation178_spill] sm:$0xff] }
 0xb15   :  { %5030 = vst [vmem:[#allocation1 + $0x1] ss:$9 sm:$0xff] %v14724_v62 }
 0xb16   :  { %5031 = vst [vmem:[#allocation1 + $0x2] ss:$9 sm:$0xff] %v14840_v58 }
 0xb17   :  { %5032 = vst [vmem:[#allocation1 + $0x3] ss:$9 sm:$0xff] %v14841_v3 }
 0xb18   :  { %5033 = vst [vmem:[#allocation1 + $0x4] ss:$9 sm:$0xff] %v14842_v8  ;;  %v14848_v8 = vld [vmem:[#allocation216_spill] sm:$0xff] }
 0xb19   :  { %14844 = vst [vmem:[#allocation34_spill] sm:$0xff] %v11881_v47  ;;  %v13810_v29 = vrot.slane %v14848_v8, 3 }
 0xb1a   :  { %5034 = vst [vmem:[#allocation1 + $0x5] ss:$9 sm:$0xff] %v14845_v40  ;;  %v14851_v40 = vld [vmem:[#allocation180_spill] sm:$0xff]  ;;  %v11925_v51 = vpop.f32.mrf.mxu2 }
 0xb1b   :  { %5036 = vst [vmem:[#allocation1 + $0x6] ss:$9 sm:$0xff] %v11881_v47  ;;  %v4266_v47 = vshll.u32 %v13810_v29, 16 }
 0xb1c   :  { %5038 = vst [vmem:[#allocation1 + $0x7] ss:$9 sm:$0xff] %v11888_v52  ;;  %v4261_v52 = vshrl.u32 %v11818_v60, 16  ;;  %v11917_v60 = vpop.permute.xlu2 %4371  ;;  %v11927_v8 = vpop.f32.mrf.mxu1 }
 0xb1d   :  { %14858 = vst [vmem:[#allocation157_spill] sm:$0xff] %v11925_v51 }
 0xb1e   :  { %v11921_v29 = vsel %vm8861_vm8, %v4261_v52, %v4266_v47  ;;  %14859 = vst [vmem:[#allocation158_spill] sm:$0xff] %v11927_v8  ;;  %v4270_v52 = vshrl.u32 %v11829_v14, 16  ;;  %v4275_v47 = vshll.u32 %v11833_v39, 16  ;;  %v4278_v8 = vshrl.u32 %v11833_v39, 16  ;;  %v14873_v39 = vld [vmem:[#allocation95_spill] sm:$0xff] }
 0xb1f   :  { %14857 = vst [vmem:[#allocation84_spill] sm:$0xff] %v11921_v29 }
 0xb20   :  { %v11949_v14 = vsel %vm8861_vm8, %v4270_v52, %v4275_v47 }
 0xb21   :  { %14869 = vst [vmem:[#allocation64_spill] sm:$0xff] %v11949_v14 }
 0xb22   :  { %v11937_v51 = vpop.f32.mrf.mxu2 }
 0xb23   :  { %v5039_v13 = vld [vmem:[#allocation1] sm:$0xff]  ;;  %14864 = vst [vmem:[#allocation160_spill] sm:$0xff] %v11937_v51 }
 0xb24   :  { %5045 = vst [vmem:[#allocation1] ss:$9 sm:$0xff] %v14849_v49  ;;  %5043 = vrot.lane.b32.xlu1 %v5039_v13, %s8243_s16  ;;  %v11910_v13 = vpop.permute.xlu1 %4340  ;;  %v4432_v38 = vpop.permute.xlu2 %4431 }
 0xb25   :  { %5047 = vst [vmem:[#allocation1 + $0x1] ss:$9 sm:$0xff] %v14850_v5 }
 0xb26   :  { %5049 = vst [vmem:[#allocation1 + $0x2] ss:$9 sm:$0xff] %v14851_v40 }
 0xb27   :  { %5051 = vst [vmem:[#allocation1 + $0x3] ss:$9 sm:$0xff] %v14852_v55 }
 0xb28   :  { %5053 = vst [vmem:[#allocation1 + $0x4] ss:$9 sm:$0xff] %v14854_v12  ;;  %v4370_v12 = vpop.permute.xlu0 %4369  ;;  %v11943_v15 = vpop.f32.mrf.mxu1 }
 0xb29   :  { %5055 = vst [vmem:[#allocation1 + $0x5] ss:$9 sm:$0xff] %v14856_v4  ;;  %v13824_v4 = vrot.slane %v14861_v34, 3 }
 0xb2a   :  { %5058 = vst [vmem:[#allocation1 + $0x6] ss:$9 sm:$0xff] %v11914_v23  ;;  %v14865_v23 = vld [vmem:[#allocation191_spill] sm:$0xff]  ;;  %v11964_v57 = vpop.f32.mrf.mxu2 }
 0xb2b   :  { %5061 = vst [vmem:[#allocation1 + $0x7] ss:$9 sm:$0xff] %v11921_v29  ;;  %v14863_v29 = vld [vmem:[#allocation190_spill] sm:$0xff]  ;;  %v4283_v33 = vshll.u32 %v13824_v4, 16  ;;  %v11957_v4 = vpop.f32.mrf.mxu3 }
 0xb2c   :  { %v4401_v46 = vpop.permute.xlu1 %4400  ;;  %14866 = vst [vmem:[#allocation11_spill] sm:$0xff] %v11943_v15  ;;  %v4465_v15 = vpop.permute.xlu2 %4464 }
 0xb2d   :  { %v11954_v34 = vsel %vm8861_vm8, %v4278_v8, %v4283_v33  ;;  %14872 = vst [vmem:[#allocation16_spill] sm:$0xff] %v11957_v4 }
 0xb2e   :  { %14871 = vst [vmem:[#allocation93_spill] sm:$0xff] %v11954_v34 }
 0xb2f   :  { %14874 = vst [vmem:[#allocation19_spill] sm:$0xff] %v11964_v57  ;;  %v14903_v57 = vld [vmem:[#allocation8_spill] sm:$0xff] }
 0xb30   :  { %v4403_v30 = vpop.permute.xlu0 %4402  ;;  %v11967_v44 = vpop.f32.mrf.mxu1 }
 0xb31   :  { %14875 = vst [vmem:[#allocation57_spill] sm:$0xff] %v11967_v44 }
 0xb32   :  { %v5062_v32 = vld [vmem:[#allocation1] sm:$0xff] }
 0xb33   :  { %5064 = vst [vmem:[#allocation1] ss:$9 sm:$0xff] %v14862_v53  ;;  %5076 = vrot.lane.b32.xlu0 %v5062_v32, %s8242_s19  ;;  %v14868_v32 = vld [vmem:[#allocation229_spill] sm:$0xff] }
 0xb34   :  { %5065 = vst [vmem:[#allocation1 + $0x1] ss:$9 sm:$0xff] %v14863_v29  ;;  %v4434_v51 = vpop.permute.xlu1 %4433  ;;  %v4525_v45 = vpop.permute.xlu2 %4524 }
 0xb35   :  { %5066 = vst [vmem:[#allocation1 + $0x2] ss:$9 sm:$0xff] %v14865_v23 }
 0xb36   :  { %5067 = vst [vmem:[#allocation1 + $0x3] ss:$9 sm:$0xff] %v14867_v27 }
 0xb37   :  { %5068 = vst [vmem:[#allocation1 + $0x4] ss:$9 sm:$0xff] %v14868_v32  ;;  %v4771_v32 = vsel %vm2635_vm2, %v14873_v39, %v4339_v1  ;;  %v14876_v39 = vld [vmem:[#allocation151_spill] sm:$0xff]  ;;  %v4173_v1 = vpop.f32.mrf.mxu3 }
 0xb38   :  { %5069 = vst [vmem:[#allocation1 + $0x5] ss:$9 sm:$0xff] %v14870_v16  ;;  %v4775_v52 = vsel %vm2640_vm4, %v4771_v32, %v4370_v12  ;;  %v4463_v16 = vpop.permute.xlu0 %4462  ;;  %v4211_v32 = vpop.f32.mrf.mxu2 }
 0xb39   :  { %5071 = vst [vmem:[#allocation1 + $0x6] ss:$9 sm:$0xff] %v11949_v14  ;;  %v4779_v47 = vsel %vm2645_vm5, %v4775_v52, %v4401_v46  ;;  %v14879_v52 = vld [vmem:[#allocation48_spill] sm:$0xff] }
 0xb3a   :  { %5073 = vst [vmem:[#allocation1 + $0x7] ss:$9 sm:$0xff] %v11954_v34  ;;  %v4783_v33 = vsel %vm2650_vm9, %v4779_v47, %v4432_v38  ;;  %v14877_v38 = vld [vmem:[#allocation152_spill] sm:$0xff]  ;;  %v11990_v47 = vadd.f32 %v11895_v19, %v14879_v52 }
 0xb3b   :  { %v4787_v8 = vsel %vm2655_vm10, %v4783_v33, %v4463_v16  ;;  %v8207_v16 = vld [vmem:[%s13247_s3 + $0xb8] sm:$0xff]  ;;  %v8210_v19 = vld [vmem:[%s13247_s3 + $0xa0] sm:$0xff] }
 0xb3c   :  { %v4494_v4 = vpop.permute.xlu1 %4493  ;;  %14880 = vst [vmem:[#allocation193_spill] sm:$0xff] %v11990_v47 }
 0xb3d   :  { %v4791_v34 = vsel %vm2660_vm11, %v4787_v8, %v4494_v4  ;;  %v4174_v4 = vadd.f32 %v4173_v1, %v11893_v48  ;;  %v8209_v8 = vld [vmem:[%s13247_s3 + $0xa8] sm:$0xff] }
 0xb3e   :  { %v4795_v12 = vsel %vm2665_vm12, %v4791_v34, %v4525_v45  ;;  %v14878_v45 = vld [vmem:[#allocation218_spill] sm:$0xff] }
 0xb3f   :  { %5147 = vmatmul.bf16.vlgmr.msra.gmra.mxu3 %v4795_v12  ;;  %v8208_v34 = vld [vmem:[%s13247_s3 + $0xb0] sm:$0xff]  ;;  %v14882_v12 = vld [vmem:[#allocation103_spill] sm:$0xff] }
 0xb40   :  { %6102 = vmatpush.bf16.msra.mxu3 %v8207_v16  ;;  %v4773_v1 = vsel %vm2635_vm2, %v14882_v12, %v11910_v13  ;;  %v4496_v52 = vpop.permute.xlu0 %4495 }
 0xb41   :  { %v5074_v14 = vld [vmem:[#allocation1] sm:$0xff] }
 0xb42   :  { %5080 = vst [vmem:[#allocation1] ss:$9 sm:$0xff] %v14501_v31  ;;  %5078 = vrot.lane.b32.xlu2 %v5074_v14, %s8242_s19  ;;  %v4192_v14 = vpop.f32.mrf.mxu1 }
 0xb43   :  { %5082 = vst [vmem:[#allocation1 + $0x1] ss:$9 sm:$0xff] %v14876_v39  ;;  %v4193_v46 = vadd.f32 %v4192_v14, %v4174_v4  ;;  %v14883_v4 = vld [vmem:[#allocation163_spill] sm:$0xff]  ;;  %v4777_v14 = vsel %vm2640_vm4, %v4773_v1, %v11917_v60 }
 0xb44   :  { %5084 = vst [vmem:[#allocation1 + $0x2] ss:$9 sm:$0xff] %v14503_v24  ;;  %6103 = vmatpush.bf16.msra.mxu3 %v8208_v34  ;;  %v14884_v34 = vld [vmem:[#allocation10_spill] sm:$0xff]  ;;  %v4527_v12 = vpop.permute.xlu1 %4526 }
 0xb45   :  { %5086 = vst [vmem:[#allocation1 + $0x3] ss:$9 sm:$0xff] %v14877_v38  ;;  %v11992_v33 = vadd.f32 %v4211_v32, %v4193_v46  ;;  %v4781_v46 = vsel %vm2645_vm5, %v4777_v14, %v4403_v30  ;;  %v8211_v32 = vld [vmem:[%s13247_s3 + $0x98] sm:$0xff] }
 0xb46   :  { %5088 = vst [vmem:[#allocation1 + $0x4] ss:$9 sm:$0xff] %v14682_v59  ;;  %v4785_v13 = vsel %vm2650_vm9, %v4781_v46, %v4434_v51  ;;  %v8212_v51 = vld [vmem:[%s13247_s3 + $0x90] sm:$0xff]  ;;  %v8214_v46 = vld [vmem:[%s13247_s3 + $0x80] sm:$0xff] }
 0xb47   :  { %5090 = vst [vmem:[#allocation1 + $0x5] ss:$9 sm:$0xff] %v14878_v45  ;;  %v4789_v60 = vsel %vm2655_vm10, %v4785_v13, %v4465_v15  ;;  %v14886_v15 = vld [vmem:[#allocation127_spill] sm:$0xff]  ;;  %v14887_v13 = vld [vmem:[#allocation130_spill] sm:$0xff] }
 0xb48   :  { %5092 = vst [vmem:[#allocation1 + $0x6] ss:$9 sm:$0xff] %v14813_v7  ;;  %6104 = vmatpush.bf16.msra.mxu3 %v8209_v8  ;;  %v14885_v8 = vld [vmem:[#allocation222_spill] sm:$0xff]  ;;  %v4793_v30 = vsel %vm2660_vm11, %v4789_v60, %v4496_v52  ;;  %v14889_v52 = vld [vmem:[#allocation133_spill] sm:$0xff] }
 0xb49   :  { %5094 = vst [vmem:[#allocation1 + $0x7] ss:$9 sm:$0xff] %v11839_v26  ;;  %v4798_v1 = vsel %vm2665_vm12, %v4793_v30, %v4527_v12  ;;  %v14890_v30 = vld [vmem:[#allocation140_spill] sm:$0xff]  ;;  %v14891_v12 = vld [vmem:[#allocation141_spill] sm:$0xff]  ;;  %v4583_v26 = vpop.permute.xlu2 %4582 }
 0xb4a   :  { %14881 = vst [vmem:[#allocation194_spill] sm:$0xff] %v11992_v33  ;;  %v14902_v33 = vld [vmem:[#allocation166_spill] sm:$0xff] }
 0xb4c   :  { %6105 = vmatpush.bf16.msra.mxu3 %v8210_v19  ;;  %v8213_v19 = vld [vmem:[%s13247_s3 + $0x88] sm:$0xff] }
 0xb4f   :  { %5152 = vmatmul.bf16.gmra.mxu3 %v4798_v1  ;;  %v14893_v1 = vld [vmem:[#allocation148_spill] sm:$0xff] }
 0xb50   :  { %v5095_v16 = vld [vmem:[#allocation1] sm:$0xff]  ;;  %6106 = vmatpush.bf16.msra.mxu3 %v8211_v32 }
 0xb51   :  { %5096 = vst [vmem:[#allocation1] ss:$9 sm:$0xff] %v14415_v28  ;;  %v14888_v32 = vld [vmem:[#allocation132_spill] sm:$0xff]  ;;  %v4643_v45 = vpop.permute.xlu2 %4642 }
 0xb52   :  { %5097 = vst [vmem:[#allocation1 + $0x1] ss:$9 sm:$0xff] %v14883_v4 }
 0xb53   :  { %5098 = vst [vmem:[#allocation1 + $0x2] ss:$9 sm:$0xff] %v14507_v43 }
 0xb54   :  { %5099 = vst [vmem:[#allocation1 + $0x3] ss:$9 sm:$0xff] %v14884_v34  ;;  %6107 = vmatpush.bf16.msra.mxu3 %v8212_v51  ;;  %v14892_v51 = vld [vmem:[#allocation147_spill] sm:$0xff] }
 0xb55   :  { %5100 = vst [vmem:[#allocation1 + $0x4] ss:$9 sm:$0xff] %v14691_v61  ;;  %v14914_v61 = vld [vmem:[#allocation150_spill] sm:$0xff] }
 0xb56   :  { %5101 = vst [vmem:[#allocation1 + $0x5] ss:$9 sm:$0xff] %v14885_v8  ;;  %v14913_v8 = vld [vmem:[#allocation114_spill] sm:$0xff] }
 0xb57   :  { %5102 = vst [vmem:[#allocation1 + $0x6] ss:$9 sm:$0xff] %v14818_v37  ;;  %v4581_v37 = vpop.permute.xlu0 %4580 }
 0xb58   :  { %5103 = vst [vmem:[#allocation1 + $0x7] ss:$9 sm:$0xff] %v11866_v22  ;;  %6108 = vmatpush.bf16.msra.mxu3 %v8213_v19  ;;  %v14895_v19 = vld [vmem:[#allocation153_spill] sm:$0xff] }
 0xb59   :  { %v14907_v22 = vld [vmem:[#allocation185_spill] sm:$0xff] }
 0xb5c   :  { %6109 = vmatpush.bf16.msra.mxu3 %v8214_v46  ;;  %v14897_v46 = vld [vmem:[#allocation155_spill] sm:$0xff] }
 0xb5f   :  { %v5104_v14 = vld [vmem:[#allocation1] sm:$0xff]  ;;  %7629 = vmatmul.msk.bf16.vlgmr.msrb.gmra.mxu3 %vm2635_vm2, %v5095_v16  ;;  %v4614_v7 = vpop.permute.xlu0 %4613 }
 0xb60   :  { %5219 = vst [vmem:[#allocation1] ss:$9 sm:$0xff] %v14886_v15  ;;  %v14896_v15 = vld [vmem:[#allocation154_spill] sm:$0xff] }
 0xb61   :  { %5221 = vst [vmem:[#allocation1 + $0x1] ss:$9 sm:$0xff] %v14887_v13 }
 0xb62   :  { %5223 = vst [vmem:[#allocation1 + $0x2] ss:$9 sm:$0xff] %v14888_v32 }
 0xb63   :  { %5225 = vst [vmem:[#allocation1 + $0x3] ss:$9 sm:$0xff] %v14889_v52 }
 0xb64   :  { %5227 = vst [vmem:[#allocation1 + $0x4] ss:$9 sm:$0xff] %v14695_v10 }
 0xb65   :  { %5229 = vst [vmem:[#allocation1 + $0x5] ss:$9 sm:$0xff] %v14819_v42 }
 0xb66   :  { %5231 = vst [vmem:[#allocation1 + $0x6] ss:$9 sm:$0xff] %v14820_v0 }
 0xb67   :  { %5233 = vst [vmem:[#allocation1 + $0x7] ss:$9 sm:$0xff] %v14821_v21  ;;  %v4674_v59 = vpop.permute.xlu0 %4673 }
 0xb6e   :  { %v12041_v60 = vld [vmem:[#allocation1] sm:$0xff] }
 0xb6f   :  { %5235 = vst [vmem:[#allocation1] ss:$9 sm:$0xff] %v14890_v30  ;;  %7630 = vmatmul.msk.bf16.gmra.mxu3 %vm2635_vm2, %v5104_v14  ;;  %v14898_v30 = vld [vmem:[#allocation156_spill] sm:$0xff]  ;;  %v14899_v14 = vld [vmem:[#allocation9_spill] sm:$0xff] }
 0xb70   :  { %5236 = vst [vmem:[#allocation1 + $0x1] ss:$9 sm:$0xff] %v14891_v12 }
 0xb71   :  { %5237 = vst [vmem:[#allocation1 + $0x2] ss:$9 sm:$0xff] %v14892_v51 }
 0xb72   :  { %5238 = vst [vmem:[#allocation1 + $0x3] ss:$9 sm:$0xff] %v14893_v1 }
 0xb73   :  { %5239 = vst [vmem:[#allocation1 + $0x4] ss:$9 sm:$0xff] %v14705_v56 }
 0xb74   :  { %5240 = vst [vmem:[#allocation1 + $0x5] ss:$9 sm:$0xff] %v14706_v18 }
 0xb75   :  { %5241 = vst [vmem:[#allocation1 + $0x6] ss:$9 sm:$0xff] %v14707_v20 }
 0xb76   :  { %5242 = vst [vmem:[#allocation1 + $0x7] ss:$9 sm:$0xff] %v14708_v6 }
 0xb7d   :  { %v12052_v16 = vld [vmem:[#allocation1] sm:$0xff] }
 0xb7e   :  { %14894 = vst [vmem:[#allocation28_spill] sm:$0xff] %v12052_v16  ;;  %v14911_v16 = vld [vmem:[#allocation52_spill] sm:$0xff] }
 0xb7f   :  { %5244 = vst [vmem:[#allocation1] ss:$9 sm:$0xff] %v14895_v19  ;;  %v14900_v19 = vld [vmem:[#allocation164_spill] sm:$0xff] }
 0xb80   :  { %5246 = vst [vmem:[#allocation1 + $0x1] ss:$9 sm:$0xff] %v14896_v15  ;;  %v14901_v15 = vld [vmem:[#allocation165_spill] sm:$0xff] }
 0xb81   :  { %5248 = vst [vmem:[#allocation1 + $0x2] ss:$9 sm:$0xff] %v14897_v46 }
 0xb82   :  { %5250 = vst [vmem:[#allocation1 + $0x3] ss:$9 sm:$0xff] %v14898_v30 }
 0xb83   :  { %5252 = vst [vmem:[#allocation1 + $0x4] ss:$9 sm:$0xff] %v14712_v63 }
 0xb84   :  { %5254 = vst [vmem:[#allocation1 + $0x5] ss:$9 sm:$0xff] %v14713_v9 }
 0xb85   :  { %5256 = vst [vmem:[#allocation1 + $0x6] ss:$9 sm:$0xff] %v14714_v35 }
 0xb86   :  { %5258 = vst [vmem:[#allocation1 + $0x7] ss:$9 sm:$0xff] %v14715_v25 }
 0xb8d   :  { %v5259_v48 = vld [vmem:[#allocation1] sm:$0xff] }
 0xb8e   :  { %5261 = vst [vmem:[#allocation1] ss:$9 sm:$0xff] %v14899_v14  ;;  %5271 = vrot.lane.b32.xlu1 %v5259_v48, %s8244_s21  ;;  %v14904_v48 = vld [vmem:[#allocation175_spill] sm:$0xff]  ;;  %v14905_v14 = vld [vmem:[#allocation176_spill] sm:$0xff] }
 0xb8f   :  { %5262 = vst [vmem:[#allocation1 + $0x1] ss:$9 sm:$0xff] %v14900_v19  ;;  %v14906_v19 = vld [vmem:[#allocation177_spill] sm:$0xff] }
 0xb90   :  { %5263 = vst [vmem:[#allocation1 + $0x2] ss:$9 sm:$0xff] %v14901_v15 }
 0xb91   :  { %5264 = vst [vmem:[#allocation1 + $0x3] ss:$9 sm:$0xff] %v14902_v33 }
 0xb92   :  { %5265 = vst [vmem:[#allocation1 + $0x4] ss:$9 sm:$0xff] %v14723_v41 }
 0xb93   :  { %5266 = vst [vmem:[#allocation1 + $0x5] ss:$9 sm:$0xff] %v14724_v62 }
 0xb94   :  { %5267 = vst [vmem:[#allocation1 + $0x6] ss:$9 sm:$0xff] %v14840_v58 }
 0xb95   :  { %5268 = vst [vmem:[#allocation1 + $0x7] ss:$9 sm:$0xff] %v14841_v3 }
 0xb9c   :  { %v5269_v47 = vld [vmem:[#allocation1] sm:$0xff] }
 0xb9d   :  { %5275 = vst [vmem:[#allocation1] ss:$9 sm:$0xff] %v14903_v57  ;;  %5273 = vrot.lane.b32.xlu0 %v5269_v47, %s8244_s21  ;;  %v14908_v57 = vld [vmem:[#allocation111_spill] sm:$0xff] }
 0xb9e   :  { %5277 = vst [vmem:[#allocation1 + $0x1] ss:$9 sm:$0xff] %v14904_v48  ;;  %v14909_v47 = vld [vmem:[#allocation187_spill] sm:$0xff]  ;;  %v14910_v48 = vld [vmem:[#allocation188_spill] sm:$0xff] }
 0xb9f   :  { %5279 = vst [vmem:[#allocation1 + $0x2] ss:$9 sm:$0xff] %v14905_v14 }
 0xba0   :  { %5281 = vst [vmem:[#allocation1 + $0x3] ss:$9 sm:$0xff] %v14906_v19 }
 0xba1   :  { %5283 = vst [vmem:[#allocation1 + $0x4] ss:$9 sm:$0xff] %v14849_v49 }
 0xba2   :  { %5285 = vst [vmem:[#allocation1 + $0x5] ss:$9 sm:$0xff] %v14850_v5 }
 0xba3   :  { %5287 = vst [vmem:[#allocation1 + $0x6] ss:$9 sm:$0xff] %v14851_v40 }
 0xba4   :  { %5289 = vst [vmem:[#allocation1 + $0x7] ss:$9 sm:$0xff] %v14852_v55 }
 0xbab   :  { %v5290_v44 = vld [vmem:[#allocation1] sm:$0xff] }
 0xbac   :  { %5292 = vst [vmem:[#allocation1] ss:$9 sm:$0xff] %v14907_v22  ;;  %5302 = vrot.lane.b32.xlu2 %v5290_v44, %s8247_s24  ;;  %v4612_v44 = vpop.permute.xlu1 %4611 }
 0xbad   :  { %5293 = vst [vmem:[#allocation1 + $0x1] ss:$9 sm:$0xff] %v14908_v57  ;;  %v14912_v57 = vld [vmem:[#allocation149_spill] sm:$0xff] }
 0xbae   :  { %5294 = vst [vmem:[#allocation1 + $0x2] ss:$9 sm:$0xff] %v14909_v47 }
 0xbaf   :  { %5295 = vst [vmem:[#allocation1 + $0x3] ss:$9 sm:$0xff] %v14910_v48 }
 0xbb0   :  { %5296 = vst [vmem:[#allocation1 + $0x4] ss:$9 sm:$0xff] %v14862_v53  ;;  %v14919_v53 = vld [vmem:[#allocation162_spill] sm:$0xff] }
 0xbb1   :  { %5297 = vst [vmem:[#allocation1 + $0x5] ss:$9 sm:$0xff] %v14863_v29  ;;  %v4707_v29 = vpop.permute.xlu0 %4706 }
 0xbb2   :  { %5298 = vst [vmem:[#allocation1 + $0x6] ss:$9 sm:$0xff] %v14865_v23  ;;  %v4676_v23 = vpop.permute.xlu2 %4675 }
 0xbb3   :  { %5299 = vst [vmem:[#allocation1 + $0x7] ss:$9 sm:$0xff] %v14867_v27  ;;  %v14915_v27 = vld [vmem:[#allocation22_spill] sm:$0xff] }
 0xbba   :  { %v5300_v22 = vld [vmem:[#allocation1] sm:$0xff] }
 0xbbb   :  { %5306 = vst [vmem:[#allocation1] ss:$9 sm:$0xff] %v14911_v16  ;;  %5304 = vrot.lane.b32.xlu1 %v5300_v22, %s8247_s24  ;;  %v4645_v16 = vpop.permute.xlu1 %4644  ;;  %v4801_v22 = vsel %vm2635_vm2, %v14915_v27, %v4581_v37 }
 0xbbc   :  { %5308 = vst [vmem:[#allocation1 + $0x1] ss:$9 sm:$0xff] %v14912_v57 }
 0xbbd   :  { %5310 = vst [vmem:[#allocation1 + $0x2] ss:$9 sm:$0xff] %v14913_v8  ;;  %v4805_v8 = vsel %vm2640_vm4, %v4801_v22, %v4612_v44  ;;  %v4767_v44 = vpop.permute.xlu0 %4766 }
 0xbbe   :  { %5312 = vst [vmem:[#allocation1 + $0x3] ss:$9 sm:$0xff] %v14914_v61  ;;  %v14916_v61 = vld [vmem:[#allocation121_spill] sm:$0xff] }
 0xbbf   :  { %5314 = vst [vmem:[#allocation1 + $0x4] ss:$9 sm:$0xff] %v14501_v31 }
 0xbc0   :  { %5316 = vst [vmem:[#allocation1 + $0x5] ss:$9 sm:$0xff] %v14876_v39  ;;  %v14917_v39 = vld [vmem:[#allocation161_spill] sm:$0xff] }
 0xbc1   :  { %5318 = vst [vmem:[#allocation1 + $0x6] ss:$9 sm:$0xff] %v14503_v24  ;;  %v14918_v24 = vld [vmem:[#allocation59_spill] sm:$0xff] }
 0xbc2   :  { %5320 = vst [vmem:[#allocation1 + $0x7] ss:$9 sm:$0xff] %v14877_v38  ;;  %v4809_v38 = vsel %vm2645_vm5, %v4805_v8, %v4643_v45 }
 0xbc3   :  { %v4705_v31 = vpop.permute.xlu1 %4704  ;;  %v4813_v27 = vsel %vm2650_vm9, %v4809_v38, %v4674_v59  ;;  %v8215_v59 = vld [vmem:[%s13247_s3 + $0xc0] sm:$0xff] }
 0xbc4   :  { %v4817_v37 = vsel %vm2655_vm10, %v4813_v27, %v4705_v31  ;;  %v14920_v31 = vld [vmem:[#allocation79_spill] sm:$0xff] }
 0xbc5   :  { %v4803_v8 = vsel %vm2635_vm2, %v14920_v31, %v4583_v26  ;;  %v14923_v26 = vld [vmem:[#allocation173_spill] sm:$0xff]  ;;  %v14928_v31 = vld [vmem:[#allocation184_spill] sm:$0xff] }
 0xbc6   :  { %v4807_v22 = vsel %vm2640_vm4, %v4803_v8, %v4614_v7 }
 0xbc7   :  { %v4811_v27 = vsel %vm2645_vm5, %v4807_v22, %v4645_v16  ;;  %v14929_v22 = vld [vmem:[#allocation41_spill] sm:$0xff] }
 0xbc9   :  { %v5321_v57 = vld [vmem:[#allocation1] sm:$0xff] }
 0xbca   :  { %5323 = vst [vmem:[#allocation1] ss:$9 sm:$0xff] %v14916_v61  ;;  %5333 = vrot.lane.b32.xlu0 %v5321_v57, %s8245_s22  ;;  %v4736_v61 = vpop.permute.xlu2 %4735  ;;  %v14921_v57 = vld [vmem:[#allocation171_spill] sm:$0xff] }
 0xbcb   :  { %5324 = vst [vmem:[#allocation1 + $0x1] ss:$9 sm:$0xff] %v14917_v39  ;;  %v4821_v39 = vsel %vm2660_vm11, %v4817_v37, %v4736_v61  ;;  %v14922_v37 = vld [vmem:[#allocation172_spill] sm:$0xff]  ;;  %v4738_v61 = vpop.permute.xlu1 %4737 }
 0xbcc   :  { %5325 = vst [vmem:[#allocation1 + $0x2] ss:$9 sm:$0xff] %v14918_v24  ;;  %v4825_v45 = vsel %vm2665_vm12, %v4821_v39, %v4767_v44  ;;  %v4815_v39 = vsel %vm2650_vm9, %v4811_v27, %v4676_v23  ;;  %v14924_v44 = vld [vmem:[#allocation174_spill] sm:$0xff]  ;;  %v14925_v23 = vld [vmem:[#allocation47_spill] sm:$0xff]  ;;  %v14931_v27 = vld [vmem:[#allocation45_spill] sm:$0xff] }
 0xbcd   :  { %5326 = vst [vmem:[#allocation1 + $0x3] ss:$9 sm:$0xff] %v14919_v53  ;;  %5166 = vmatmul.bf16.vlgmr.msrb.gmra.mxu1 %v4825_v45 }
 0xbce   :  { %5327 = vst [vmem:[#allocation1 + $0x4] ss:$9 sm:$0xff] %v14415_v28  ;;  %6128 = vmatpush.bf16.msrb.mxu1 %v8215_v59  ;;  %v14972_v28 = vld [vmem:[#allocation15_spill] sm:$0xff] }
 0xbcf   :  { %5328 = vst [vmem:[#allocation1 + $0x5] ss:$9 sm:$0xff] %v14883_v4 }
 0xbd0   :  { %5329 = vst [vmem:[#allocation1 + $0x6] ss:$9 sm:$0xff] %v14507_v43 }
 0xbd1   :  { %5330 = vst [vmem:[#allocation1 + $0x7] ss:$9 sm:$0xff] %v14884_v34 }
 0xbd2   :  { %v4769_v16 = vpop.permute.xlu2 %4768 }
 0xbd8   :  { %v5331_v38 = vld [vmem:[#allocation1] sm:$0xff] }
 0xbd9   :  { %5337 = vst [vmem:[#allocation1] ss:$9 sm:$0xff] %v14887_v13  ;;  %5335 = vrot.lane.b32.xlu2 %v5331_v38, %s8245_s22  ;;  %v4819_v13 = vsel %vm2655_vm10, %v4815_v39, %v4707_v29  ;;  %v14926_v29 = vld [vmem:[#allocation182_spill] sm:$0xff]  ;;  %v14927_v38 = vld [vmem:[#allocation183_spill] sm:$0xff]  ;;  %v14933_v39 = vld [vmem:[#allocation49_spill] sm:$0xff] }
 0xbda   :  { %5339 = vst [vmem:[#allocation1 + $0x1] ss:$9 sm:$0xff] %v14921_v57  ;;  %v4823_v7 = vsel %vm2660_vm11, %v4819_v13, %v4738_v61  ;;  %v14932_v61 = vld [vmem:[#allocation46_spill] sm:$0xff] }
 0xbdb   :  { %5341 = vst [vmem:[#allocation1 + $0x2] ss:$9 sm:$0xff] %v14889_v52  ;;  %v4828_v45 = vsel %vm2665_vm12, %v4823_v7, %v4769_v16  ;;  %v14934_v13 = vld [vmem:[#allocation50_spill] sm:$0xff]  ;;  %v14935_v7 = vld [vmem:[#allocation51_spill] sm:$0xff]  ;;  %v14936_v16 = vld [vmem:[#allocation61_spill] sm:$0xff] }
 0xbdc   :  { %5343 = vst [vmem:[#allocation1 + $0x3] ss:$9 sm:$0xff] %v14922_v37 }
 0xbdd   :  { %5345 = vst [vmem:[#allocation1 + $0x4] ss:$9 sm:$0xff] %v14819_v42  ;;  %5171 = vmatmul.bf16.gmra.mxu1 %v4828_v45  ;;  %v14937_v45 = vld [vmem:[#allocation71_spill] sm:$0xff] }
 0xbde   :  { %5347 = vst [vmem:[#allocation1 + $0x5] ss:$9 sm:$0xff] %v14923_v26  ;;  %v14970_v26 = vld [vmem:[#allocation123_spill] sm:$0xff] }
 0xbdf   :  { %5349 = vst [vmem:[#allocation1 + $0x6] ss:$9 sm:$0xff] %v14821_v21 }
 0xbe0   :  { %5351 = vst [vmem:[#allocation1 + $0x7] ss:$9 sm:$0xff] %v14924_v44 }
 0xbe7   :  { %v5352_v59 = vld [vmem:[#allocation1] sm:$0xff] }
 0xbe8   :  { %5354 = vst [vmem:[#allocation1] ss:$9 sm:$0xff] %v14891_v12  ;;  %5364 = vrot.lane.b32.xlu1 %v5352_v59, %s8246_s23  ;;  %v14930_v12 = vld [vmem:[#allocation42_spill] sm:$0xff] }
 0xbe9   :  { %5355 = vst [vmem:[#allocation1 + $0x1] ss:$9 sm:$0xff] %v14925_v23  ;;  %v14938_v59 = vld [vmem:[#allocation94_spill] sm:$0xff] }
 0xbea   :  { %5356 = vst [vmem:[#allocation1 + $0x2] ss:$9 sm:$0xff] %v14893_v1 }
 0xbeb   :  { %5357 = vst [vmem:[#allocation1 + $0x3] ss:$9 sm:$0xff] %v14926_v29  ;;  %v4945_v29 = vpop.permute.xlu2 %4944 }
 0xbec   :  { %5358 = vst [vmem:[#allocation1 + $0x4] ss:$9 sm:$0xff] %v14706_v18 }
 0xbed   :  { %5359 = vst [vmem:[#allocation1 + $0x5] ss:$9 sm:$0xff] %v14927_v38 }
 0xbee   :  { %5360 = vst [vmem:[#allocation1 + $0x6] ss:$9 sm:$0xff] %v14708_v6 }
 0xbef   :  { %5361 = vst [vmem:[#allocation1 + $0x7] ss:$9 sm:$0xff] %v14928_v31 }
 0xbf3   :  { %v4978_v34 = vpop.permute.xlu2 %4977 }
 0xbf6   :  { %v5362_v8 = vld [vmem:[#allocation1] sm:$0xff] }
 0xbf7   :  { %5368 = vst [vmem:[#allocation1] ss:$9 sm:$0xff] %v14929_v22  ;;  %5366 = vrot.lane.b32.xlu0 %v5362_v8, %s8246_s23  ;;  %v14939_v8 = vld [vmem:[#allocation73_spill] sm:$0xff]  ;;  %v14940_v22 = vld [vmem:[#allocation74_spill] sm:$0xff] }
 0xbf8   :  { %5370 = vst [vmem:[#allocation1 + $0x1] ss:$9 sm:$0xff] %v14930_v12 }
 0xbf9   :  { %5372 = vst [vmem:[#allocation1 + $0x2] ss:$9 sm:$0xff] %v14273_v2  ;;  %v14947_v2 = vld [vmem:[#allocation85_spill] sm:$0xff] }
 0xbfa   :  { %5374 = vst [vmem:[#allocation1 + $0x3] ss:$9 sm:$0xff] %v14274_v36 }
 0xbfb   :  { %5376 = vst [vmem:[#allocation1 + $0x4] ss:$9 sm:$0xff] %v14275_v11 }
 0xbfc   :  { %5378 = vst [vmem:[#allocation1 + $0x5] ss:$9 sm:$0xff] %v14276_v50 }
 0xbfd   :  { %5380 = vst [vmem:[#allocation1 + $0x6] ss:$9 sm:$0xff] %v14514_v17  ;;  %v14945_v17 = vld [vmem:[#allocation63_spill] sm:$0xff] }
 0xbfe   :  { %5382 = vst [vmem:[#allocation1 + $0x7] ss:$9 sm:$0xff] %v14429_v54 }
 0xc05   :  { %v5383_v57 = vld [vmem:[#allocation1] sm:$0xff] }
 0xc06   :  { %5385 = vst [vmem:[#allocation1] ss:$9 sm:$0xff] %v14931_v27  ;;  %5395 = vrot.lane.b32.xlu2 %v5383_v57, %s8248_s25  ;;  %v14941_v57 = vld [vmem:[#allocation75_spill] sm:$0xff]  ;;  %v14942_v27 = vld [vmem:[#allocation76_spill] sm:$0xff] }
 0xc07   :  { %5386 = vst [vmem:[#allocation1 + $0x1] ss:$9 sm:$0xff] %v14932_v61 }
 0xc08   :  { %5387 = vst [vmem:[#allocation1 + $0x2] ss:$9 sm:$0xff] %v14933_v39  ;;  %v14943_v39 = vld [vmem:[#allocation77_spill] sm:$0xff] }
 0xc09   :  { %5388 = vst [vmem:[#allocation1 + $0x3] ss:$9 sm:$0xff] %v14934_v13 }
 0xc0a   :  { %5389 = vst [vmem:[#allocation1 + $0x4] ss:$9 sm:$0xff] %v14935_v7  ;;  %v14944_v7 = vld [vmem:[#allocation78_spill] sm:$0xff] }
 0xc0b   :  { %5390 = vst [vmem:[#allocation1 + $0x5] ss:$9 sm:$0xff] %v14936_v16 }
 0xc0c   :  { %5391 = vst [vmem:[#allocation1 + $0x6] ss:$9 sm:$0xff] %v14937_v45  ;;  %v14946_v45 = vld [vmem:[#allocation83_spill] sm:$0xff] }
 0xc0d   :  { %5392 = vst [vmem:[#allocation1 + $0x7] ss:$9 sm:$0xff] %v14938_v59 }
 0xc14   :  { %v5393_v23 = vld [vmem:[#allocation1] sm:$0xff] }
 0xc15   :  { %5399 = vst [vmem:[#allocation1] ss:$9 sm:$0xff] %v14939_v8  ;;  %5397 = vrot.lane.b32.xlu1 %v5393_v23, %s8248_s25  ;;  %v14948_v23 = vld [vmem:[#allocation86_spill] sm:$0xff]  ;;  %v14949_v8 = vld [vmem:[#allocation87_spill] sm:$0xff] }
 0xc16   :  { %5401 = vst [vmem:[#allocation1 + $0x1] ss:$9 sm:$0xff] %v14940_v22  ;;  %v14950_v22 = vld [vmem:[#allocation88_spill] sm:$0xff] }
 0xc17   :  { %5403 = vst [vmem:[#allocation1 + $0x2] ss:$9 sm:$0xff] %v14941_v57  ;;  %v4885_v57 = vpop.permute.xlu1 %4884 }
 0xc18   :  { %5405 = vst [vmem:[#allocation1 + $0x3] ss:$9 sm:$0xff] %v14942_v27  ;;  %v14951_v27 = vld [vmem:[#allocation89_spill] sm:$0xff] }
 0xc19   :  { %5407 = vst [vmem:[#allocation1 + $0x4] ss:$9 sm:$0xff] %v14943_v39  ;;  %v14952_v39 = vld [vmem:[#allocation90_spill] sm:$0xff] }
 0xc1a   :  { %5409 = vst [vmem:[#allocation1 + $0x5] ss:$9 sm:$0xff] %v14944_v7  ;;  %v14953_v7 = vld [vmem:[#allocation113_spill] sm:$0xff] }
 0xc1b   :  { %5411 = vst [vmem:[#allocation1 + $0x6] ss:$9 sm:$0xff] %v14945_v17  ;;  %v14954_v17 = vld [vmem:[#allocation131_spill] sm:$0xff] }
 0xc1c   :  { %5413 = vst [vmem:[#allocation1 + $0x7] ss:$9 sm:$0xff] %v14946_v45  ;;  %v4883_v45 = vpop.permute.xlu0 %4882 }
 0xc1d   :  { %v5106_v37 = vsel %vm2635_vm2, %v14970_v26, %v4883_v45  ;;  %v14973_v45 = vld [vmem:[#allocation67_spill] sm:$0xff] }
 0xc1f   :  { %v4914_v38 = vpop.permute.xlu1 %4913 }
 0xc23   :  { %v5414_v11 = vld [vmem:[#allocation1] sm:$0xff] }
 0xc24   :  { %5416 = vst [vmem:[#allocation1] ss:$9 sm:$0xff] %v14947_v2  ;;  %5426 = vrot.lane.b32.xlu0 %v5414_v11, %s8243_s16  ;;  %v14955_v2 = vld [vmem:[#allocation96_spill] sm:$0xff]  ;;  %v14956_v11 = vld [vmem:[#allocation97_spill] sm:$0xff] }
 0xc25   :  { %5417 = vst [vmem:[#allocation1 + $0x1] ss:$9 sm:$0xff] %v14948_v23  ;;  %v14957_v23 = vld [vmem:[#allocation98_spill] sm:$0xff] }
 0xc26   :  { %5418 = vst [vmem:[#allocation1 + $0x2] ss:$9 sm:$0xff] %v14949_v8  ;;  %v14962_v8 = vld [vmem:[#allocation202_spill] sm:$0xff] }
 0xc27   :  { %5419 = vst [vmem:[#allocation1 + $0x3] ss:$9 sm:$0xff] %v14950_v22  ;;  %v14958_v22 = vld [vmem:[#allocation5_spill] sm:$0xff] }
 0xc28   :  { %5420 = vst [vmem:[#allocation1 + $0x4] ss:$9 sm:$0xff] %v14951_v27  ;;  %v14959_v27 = vld [vmem:[#allocation99_spill] sm:$0xff] }
 0xc29   :  { %5421 = vst [vmem:[#allocation1 + $0x5] ss:$9 sm:$0xff] %v14952_v39  ;;  %v14960_v39 = vld [vmem:[#allocation100_spill] sm:$0xff] }
 0xc2a   :  { %5422 = vst [vmem:[#allocation1 + $0x6] ss:$9 sm:$0xff] %v14953_v7  ;;  %v14961_v7 = vld [vmem:[#allocation120_spill] sm:$0xff] }
 0xc2b   :  { %5423 = vst [vmem:[#allocation1 + $0x7] ss:$9 sm:$0xff] %v14954_v17  ;;  %v4916_v17 = vpop.permute.xlu0 %4915 }
 0xc32   :  { %v5424_v31 = vld [vmem:[#allocation1] sm:$0xff] }
 0xc33   :  { %5430 = vst [vmem:[#allocation1] ss:$9 sm:$0xff] %v14955_v2  ;;  %5428 = vrot.lane.b32.xlu2 %v5424_v31, %s8243_s16  ;;  %v4976_v44 = vpop.permute.xlu0 %4975  ;;  %v14963_v31 = vld [vmem:[#allocation106_spill] sm:$0xff] }
 0xc34   :  { %5432 = vst [vmem:[#allocation1 + $0x1] ss:$9 sm:$0xff] %v14956_v11  ;;  %v14964_v11 = vld [vmem:[#allocation107_spill] sm:$0xff] }
 0xc35   :  { %5434 = vst [vmem:[#allocation1 + $0x2] ss:$9 sm:$0xff] %v14957_v23  ;;  %v14965_v23 = vld [vmem:[#allocation108_spill] sm:$0xff] }
 0xc36   :  { %5436 = vst [vmem:[#allocation1 + $0x3] ss:$9 sm:$0xff] %v14958_v22  ;;  %v4947_v22 = vpop.permute.xlu1 %4946 }
 0xc37   :  { %5438 = vst [vmem:[#allocation1 + $0x4] ss:$9 sm:$0xff] %v14959_v27  ;;  %v14966_v27 = vld [vmem:[#allocation109_spill] sm:$0xff] }
 0xc38   :  { %5440 = vst [vmem:[#allocation1 + $0x5] ss:$9 sm:$0xff] %v14960_v39  ;;  %v14967_v39 = vld [vmem:[#allocation7_spill] sm:$0xff] }
 0xc39   :  { %5442 = vst [vmem:[#allocation1 + $0x6] ss:$9 sm:$0xff] %v14961_v7  ;;  %v14968_v7 = vld [vmem:[#allocation110_spill] sm:$0xff] }
 0xc3a   :  { %5444 = vst [vmem:[#allocation1 + $0x7] ss:$9 sm:$0xff] %v14962_v8  ;;  %v14969_v8 = vld [vmem:[#allocation203_spill] sm:$0xff] }
 0xc3e   :  { %v5007_v43 = vpop.permute.xlu1 %5006 }
 0xc41   :  { %v5445_v2 = vld [vmem:[#allocation1] sm:$0xff] }
 0xc42   :  { %5447 = vst [vmem:[#allocation1] ss:$9 sm:$0xff] %v14963_v31  ;;  %5457 = vrot.lane.b32.xlu2 %v5445_v2, %s8242_s19  ;;  %v14971_v31 = vld [vmem:[#allocation205_spill] sm:$0xff]  ;;  %v5110_v2 = vsel %vm2640_vm4, %v5106_v37, %v4914_v38 }
 0xc43   :  { %5448 = vst [vmem:[#allocation1 + $0x1] ss:$9 sm:$0xff] %v14964_v11  ;;  %v5009_v11 = vpop.permute.xlu0 %5008  ;;  %v14974_v38 = vld [vmem:[#allocation17_spill] sm:$0xff] }
 0xc44   :  { %5449 = vst [vmem:[#allocation1 + $0x2] ss:$9 sm:$0xff] %v14965_v23  ;;  %v5114_v23 = vsel %vm2645_vm5, %v5110_v2, %v4945_v29  ;;  %v14975_v29 = vld [vmem:[#allocation18_spill] sm:$0xff] }
 0xc45   :  { %5450 = vst [vmem:[#allocation1 + $0x3] ss:$9 sm:$0xff] %v14966_v27  ;;  %v5118_v27 = vsel %vm2650_vm9, %v5114_v23, %v4976_v44  ;;  %v14976_v44 = vld [vmem:[#allocation20_spill] sm:$0xff] }
 0xc46   :  { %5451 = vst [vmem:[#allocation1 + $0x4] ss:$9 sm:$0xff] %v14967_v39  ;;  %v5122_v39 = vsel %vm2655_vm10, %v5118_v27, %v5007_v43  ;;  %v14977_v43 = vld [vmem:[#allocation70_spill] sm:$0xff]  ;;  %v14978_v27 = vld [vmem:[#allocation195_spill] sm:$0xff]  ;;  %v5044_v23 = vpop.permute.xlu1 %5043 }
 0xc47   :  { %5452 = vst [vmem:[#allocation1 + $0x5] ss:$9 sm:$0xff] %v14968_v7  ;;  %v5042_v7 = vpop.permute.xlu2 %5041 }
 0xc48   :  { %5453 = vst [vmem:[#allocation1 + $0x6] ss:$9 sm:$0xff] %v14969_v8  ;;  %v5126_v8 = vsel %vm2660_vm11, %v5122_v39, %v5042_v7  ;;  %v14980_v39 = vld [vmem:[#allocation186_spill] sm:$0xff] }
 0xc49   :  { %5454 = vst [vmem:[#allocation1 + $0x7] ss:$9 sm:$0xff] %v14971_v31 }
 0xc4b   :  { %v5077_v26 = vpop.permute.xlu0 %5076 }
 0xc4c   :  { %v5130_v37 = vsel %vm2665_vm12, %v5126_v8, %v5077_v26 }
 0xc4d   :  { %5185 = vmatmul.bf16.vlgmr.msrb.gmra.mxu2 %v5130_v37 }
 0xc50   :  { %v5455_v4 = vld [vmem:[#allocation1] sm:$0xff] }
 0xc51   :  { %5461 = vst [vmem:[#allocation1] ss:$9 sm:$0xff] %v14972_v28  ;;  %5459 = vrot.lane.b32.xlu0 %v5455_v4, %s8242_s19  ;;  %v14979_v28 = vld [vmem:[#allocation62_spill] sm:$0xff]  ;;  %v5108_v4 = vsel %vm2635_vm2, %v14980_v39, %v4885_v57  ;;  %v14988_v39 = vld [vmem:[#allocation104_spill] sm:$0xff] }
 0xc52   :  { %5463 = vst [vmem:[#allocation1 + $0x1] ss:$9 sm:$0xff] %v14973_v45  ;;  %v5112_v7 = vsel %vm2640_vm4, %v5108_v4, %v4916_v17  ;;  %v14984_v57 = vld [vmem:[#allocation30_spill] sm:$0xff] }
 0xc53   :  { %5465 = vst [vmem:[#allocation1 + $0x2] ss:$9 sm:$0xff] %v14974_v38  ;;  %v5116_v8 = vsel %vm2645_vm5, %v5112_v7, %v4947_v22  ;;  %v14985_v22 = vld [vmem:[#allocation32_spill] sm:$0xff]  ;;  %v14992_v7 = vld [vmem:[#allocation142_spill] sm:$0xff] }
 0xc54   :  { %5467 = vst [vmem:[#allocation1 + $0x3] ss:$9 sm:$0xff] %v14975_v29  ;;  %v5120_v2 = vsel %vm2650_vm9, %v5116_v8, %v4978_v34  ;;  %v14986_v34 = vld [vmem:[#allocation81_spill] sm:$0xff] }
 0xc55   :  { %5469 = vst [vmem:[#allocation1 + $0x4] ss:$9 sm:$0xff] %v14976_v44  ;;  %v5124_v26 = vsel %vm2655_vm10, %v5120_v2, %v5009_v11  ;;  %v14983_v44 = vld [vmem:[#allocation29_spill] sm:$0xff]  ;;  %v14995_v2 = vld [vmem:[#allocation6_spill] sm:$0xff] }
 0xc56   :  { %5471 = vst [vmem:[#allocation1 + $0x5] ss:$9 sm:$0xff] %v14977_v43  ;;  %v5128_v37 = vsel %vm2660_vm11, %v5124_v26, %v5044_v23  ;;  %v14981_v43 = vld [vmem:[#allocation27_spill] sm:$0xff]  ;;  %v14987_v11 = vld [vmem:[#allocation197_spill] sm:$0xff]  ;;  %v14994_v23 = vld [vmem:[#allocation102_spill] sm:$0xff] }
 0xc57   :  { %5473 = vst [vmem:[#allocation1 + $0x6] ss:$9 sm:$0xff] %v14978_v27  ;;  %v14982_v27 = vld [vmem:[#allocation80_spill] sm:$0xff] }
 0xc58   :  { %5475 = vst [vmem:[#allocation1 + $0x7] ss:$9 sm:$0xff] %v14979_v28  ;;  %v5079_v28 = vpop.permute.xlu2 %5078  ;;  %v14996_v26 = vld [vmem:[#allocation204_spill] sm:$0xff] }
 0xc59   :  { %v5133_v17 = vsel %vm2665_vm12, %v5128_v37, %v5079_v28  ;;  %v14991_v28 = vld [vmem:[#allocation24_spill] sm:$0xff] }
 0xc5d   :  { %5190 = vmatmul.bf16.gmra.mxu2 %v5133_v17  ;;  %v14998_v17 = vld [vmem:[#allocation126_spill] sm:$0xff] }
 0xc5f   :  { %v12221_v45 = vld [vmem:[#allocation1] sm:$0xff] }
 0xc60   :  { %5477 = vst [vmem:[#allocation1] ss:$9 sm:$0xff] %v14981_v43  ;;  %v14989_v43 = vld [vmem:[#allocation91_spill] sm:$0xff] }
 0xc61   :  { %5478 = vst [vmem:[#allocation1 + $0x1] ss:$9 sm:$0xff] %v14982_v27  ;;  %v14990_v27 = vld [vmem:[#allocation92_spill] sm:$0xff] }
 0xc62   :  { %5479 = vst [vmem:[#allocation1 + $0x2] ss:$9 sm:$0xff] %v14983_v44 }
 0xc63   :  { %5480 = vst [vmem:[#allocation1 + $0x3] ss:$9 sm:$0xff] %v14984_v57 }
 0xc64   :  { %5481 = vst [vmem:[#allocation1 + $0x4] ss:$9 sm:$0xff] %v14985_v22 }
 0xc65   :  { %5482 = vst [vmem:[#allocation1 + $0x5] ss:$9 sm:$0xff] %v14986_v34 }
 0xc66   :  { %5483 = vst [vmem:[#allocation1 + $0x6] ss:$9 sm:$0xff] %v14987_v11 }
 0xc67   :  { %5484 = vst [vmem:[#allocation1 + $0x7] ss:$9 sm:$0xff] %v14988_v39 }
 0xc6e   :  { %v12233_v4 = vld [vmem:[#allocation1] sm:$0xff] }
 0xc6f   :  { %5486 = vst [vmem:[#allocation1] ss:$9 sm:$0xff] %v14930_v12  ;;  %v14993_v12 = vld [vmem:[#allocation101_spill] sm:$0xff] }
 0xc70   :  { %5488 = vst [vmem:[#allocation1 + $0x1] ss:$9 sm:$0xff] %v14989_v43 }
 0xc71   :  { %5490 = vst [vmem:[#allocation1 + $0x2] ss:$9 sm:$0xff] %v14274_v36 }
 0xc72   :  { %5492 = vst [vmem:[#allocation1 + $0x3] ss:$9 sm:$0xff] %v14990_v27 }
 0xc73   :  { %5494 = vst [vmem:[#allocation1 + $0x4] ss:$9 sm:$0xff] %v14276_v50 }
 0xc74   :  { %5496 = vst [vmem:[#allocation1 + $0x5] ss:$9 sm:$0xff] %v14991_v28 }
 0xc75   :  { %5498 = vst [vmem:[#allocation1 + $0x6] ss:$9 sm:$0xff] %v14429_v54 }
 0xc76   :  { %5500 = vst [vmem:[#allocation1 + $0x7] ss:$9 sm:$0xff] %v14992_v7 }
 0xc7d   :  { %v5501_v8 = vld [vmem:[#allocation1] sm:$0xff] }
 0xc7e   :  { %5503 = vst [vmem:[#allocation1] ss:$9 sm:$0xff] %v14932_v61  ;;  %5513 = vrot.lane.b32.xlu1 %v5501_v8, %s8244_s21  ;;  %v14997_v61 = vld [vmem:[#allocation66_spill] sm:$0xff]  ;;  %v15000_v8 = vld [vmem:[#allocation139_spill] sm:$0xff] }
 0xc7f   :  { %5504 = vst [vmem:[#allocation1 + $0x1] ss:$9 sm:$0xff] %v14993_v12 }
 0xc80   :  { %5505 = vst [vmem:[#allocation1 + $0x2] ss:$9 sm:$0xff] %v14934_v13 }
 0xc81   :  { %5506 = vst [vmem:[#allocation1 + $0x3] ss:$9 sm:$0xff] %v14994_v23 }
 0xc82   :  { %5507 = vst [vmem:[#allocation1 + $0x4] ss:$9 sm:$0xff] %v14936_v16 }
 0xc83   :  { %5508 = vst [vmem:[#allocation1 + $0x5] ss:$9 sm:$0xff] %v14995_v2 }
 0xc84   :  { %5509 = vst [vmem:[#allocation1 + $0x6] ss:$9 sm:$0xff] %v14938_v59 }
 0xc85   :  { %5510 = vst [vmem:[#allocation1 + $0x7] ss:$9 sm:$0xff] %v14996_v26 }
 0xc8c   :  { %v5511_v37 = vld [vmem:[#allocation1] sm:$0xff] }
 0xc8d   :  { %5517 = vst [vmem:[#allocation1] ss:$9 sm:$0xff] %v14888_v32  ;;  %5515 = vrot.lane.b32.xlu1 %v5511_v37, %s8244_s21  ;;  %v14999_v32 = vld [vmem:[#allocation138_spill] sm:$0xff]  ;;  %v15002_v37 = vld [vmem:[#allocation221_spill] sm:$0xff] }
 0xc8e   :  { %5519 = vst [vmem:[#allocation1 + $0x1] ss:$9 sm:$0xff] %v14889_v52 }
 0xc8f   :  { %5521 = vst [vmem:[#allocation1 + $0x2] ss:$9 sm:$0xff] %v14695_v10 }
 0xc90   :  { %5523 = vst [vmem:[#allocation1 + $0x3] ss:$9 sm:$0xff] %v14819_v42 }
 0xc91   :  { %5525 = vst [vmem:[#allocation1 + $0x4] ss:$9 sm:$0xff] %v14820_v0 }
 0xc92   :  { %5527 = vst [vmem:[#allocation1 + $0x5] ss:$9 sm:$0xff] %v14821_v21 }
 0xc93   :  { %5529 = vst [vmem:[#allocation1 + $0x6] ss:$9 sm:$0xff] %v14997_v61 }
 0xc94   :  { %5531 = vst [vmem:[#allocation1 + $0x7] ss:$9 sm:$0xff] %v14998_v17 }
 0xc9b   :  { %v5532_v43 = vld [vmem:[#allocation1] sm:$0xff] }
 0xc9c   :  { %5534 = vst [vmem:[#allocation1] ss:$9 sm:$0xff] %v14892_v51  ;;  %5544 = vrot.lane.b32.xlu2 %v5532_v43, %s8247_s24  ;;  %v15001_v51 = vld [vmem:[#allocation220_spill] sm:$0xff] }
 0xc9d   :  { %5535 = vst [vmem:[#allocation1 + $0x1] ss:$9 sm:$0xff] %v14893_v1 }
 0xc9e   :  { %5536 = vst [vmem:[#allocation1 + $0x2] ss:$9 sm:$0xff] %v14705_v56 }
 0xc9f   :  { %5537 = vst [vmem:[#allocation1 + $0x3] ss:$9 sm:$0xff] %v14706_v18 }
 0xca0   :  { %5538 = vst [vmem:[#allocation1 + $0x4] ss:$9 sm:$0xff] %v14707_v20 }
 0xca1   :  { %5539 = vst [vmem:[#allocation1 + $0x5] ss:$9 sm:$0xff] %v14708_v6 }
 0xca2   :  { %5540 = vst [vmem:[#allocation1 + $0x6] ss:$9 sm:$0xff] %v14999_v32 }
 0xca3   :  { %5541 = vst [vmem:[#allocation1 + $0x7] ss:$9 sm:$0xff] %v15000_v8 }
 0xcaa   :  { %v5542_v12 = vld [vmem:[#allocation1] sm:$0xff] }
 0xcab   :  { %5548 = vst [vmem:[#allocation1] ss:$9 sm:$0xff] %v14897_v46  ;;  %5546 = vrot.lane.b32.xlu0 %v5542_v12, %s8247_s24  ;;  %v5303_v46 = vpop.permute.xlu2 %5302  ;;  %v15004_v12 = vld [vmem:[#allocation224_spill] sm:$0xff] }
 0xcac   :  { %5550 = vst [vmem:[#allocation1 + $0x1] ss:$9 sm:$0xff] %v14898_v30  ;;  %v15003_v30 = vld [vmem:[#allocation223_spill] sm:$0xff] }
 0xcad   :  { %5552 = vst [vmem:[#allocation1 + $0x2] ss:$9 sm:$0xff] %v14712_v63 }
 0xcae   :  { %5554 = vst [vmem:[#allocation1 + $0x3] ss:$9 sm:$0xff] %v14713_v9 }
 0xcaf   :  { %5556 = vst [vmem:[#allocation1 + $0x4] ss:$9 sm:$0xff] %v14714_v35 }
 0xcb0   :  { %5558 = vst [vmem:[#allocation1 + $0x5] ss:$9 sm:$0xff] %v14715_v25 }
 0xcb1   :  { %5560 = vst [vmem:[#allocation1 + $0x6] ss:$9 sm:$0xff] %v15001_v51  ;;  %v5272_v51 = vpop.permute.xlu1 %5271 }
 0xcb2   :  { %5562 = vst [vmem:[#allocation1 + $0x7] ss:$9 sm:$0xff] %v15002_v37 }
 0xcb3   :  { %v12288_v37 = vpop.permute.xlu2 %5335 }
 0xcb9   :  { %v5563_v43 = vld [vmem:[#allocation1] sm:$0xff] }
 0xcba   :  { %5565 = vst [vmem:[#allocation1] ss:$9 sm:$0xff] %v14901_v15  ;;  %5575 = vrot.lane.b32.xlu0 %v5563_v43, %s8245_s22  ;;  %v5274_v15 = vpop.permute.xlu0 %5273 }
 0xcbb   :  { %5566 = vst [vmem:[#allocation1 + $0x1] ss:$9 sm:$0xff] %v14902_v33  ;;  %v5396_v33 = vpop.permute.xlu2 %5395 }
 0xcbc   :  { %5567 = vst [vmem:[#allocation1 + $0x2] ss:$9 sm:$0xff] %v14723_v41 }
 0xcbd   :  { %5568 = vst [vmem:[#allocation1 + $0x3] ss:$9 sm:$0xff] %v14724_v62 }
 0xcbe   :  { %5569 = vst [vmem:[#allocation1 + $0x4] ss:$9 sm:$0xff] %v14840_v58  ;;  %v15006_v58 = vld [vmem:[#allocation227_spill] sm:$0xff] }
 0xcbf   :  { %5570 = vst [vmem:[#allocation1 + $0x5] ss:$9 sm:$0xff] %v14841_v3  ;;  %v5305_v3 = vpop.permute.xlu1 %5304 }
 0xcc0   :  { %5571 = vst [vmem:[#allocation1 + $0x6] ss:$9 sm:$0xff] %v15003_v30 }
 0xcc1   :  { %5572 = vst [vmem:[#allocation1 + $0x7] ss:$9 sm:$0xff] %v15004_v12  ;;  %v15005_v12 = vld [vmem:[#allocation225_spill] sm:$0xff] }
 0xcc2   :  { %v5334_v30 = vpop.permute.xlu0 %5333 }
 0xcc8   :  { %v5573_v43 = vld [vmem:[#allocation1] sm:$0xff] }
 0xcc9   :  { %5579 = vst [vmem:[#allocation1] ss:$9 sm:$0xff] %v14905_v14  ;;  %5577 = vrot.lane.b32.xlu2 %v5573_v43, %s8245_s22  ;;  %v5429_v14 = vpop.permute.xlu2 %5428  ;;  %v5704_v43 = vsel %vm2635_vm2, %v12041_v60, %v5272_v51  ;;  %v15009_v60 = vld [vmem:[#allocation191_spill] sm:$0xff]  ;;  %v15010_v51 = vld [vmem:[#allocation192_spill] sm:$0xff] }
 0xcca   :  { %5581 = vst [vmem:[#allocation1 + $0x1] ss:$9 sm:$0xff] %v14906_v19  ;;  %v5367_v19 = vpop.permute.xlu0 %5366 }
 0xccb   :  { %5583 = vst [vmem:[#allocation1 + $0x2] ss:$9 sm:$0xff] %v14849_v49  ;;  %v5365_v49 = vpop.permute.xlu1 %5364 }
 0xccc   :  { %5585 = vst [vmem:[#allocation1 + $0x3] ss:$9 sm:$0xff] %v14850_v5  ;;  %v5708_v5 = vsel %vm2640_vm4, %v5704_v43, %v5303_v46  ;;  %v15011_v46 = vld [vmem:[#allocation229_spill] sm:$0xff]  ;;  %v15012_v43 = vld [vmem:[#allocation230_spill] sm:$0xff] }
 0xccd   :  { %5587 = vst [vmem:[#allocation1 + $0x4] ss:$9 sm:$0xff] %v14851_v40  ;;  %v15008_v40 = vld [vmem:[#allocation190_spill] sm:$0xff] }
 0xcce   :  { %5589 = vst [vmem:[#allocation1 + $0x5] ss:$9 sm:$0xff] %v14852_v55  ;;  %v15007_v55 = vld [vmem:[#allocation189_spill] sm:$0xff] }
 0xccf   :  { %5591 = vst [vmem:[#allocation1 + $0x6] ss:$9 sm:$0xff] %v15005_v12  ;;  %v5712_v12 = vsel %vm2645_vm5, %v5708_v5, %v5334_v30  ;;  %v15013_v30 = vld [vmem:[#allocation114_spill] sm:$0xff] }
 0xcd0   :  { %5593 = vst [vmem:[#allocation1 + $0x7] ss:$9 sm:$0xff] %v15006_v58  ;;  %v5716_v58 = vsel %vm2650_vm9, %v5712_v12, %v5365_v49  ;;  %v15014_v12 = vld [vmem:[#allocation150_spill] sm:$0xff] }
 0xcd2   :  { %v5427_v41 = vpop.permute.xlu0 %5426 }
 0xcd7   :  { %v5594_v62 = vld [vmem:[#allocation1] sm:$0xff] }
 0xcd8   :  { %5596 = vst [vmem:[#allocation1] ss:$9 sm:$0xff] %v14909_v47  ;;  %5606 = vrot.lane.b32.xlu2 %v5594_v62, %s8246_s23  ;;  %v5720_v47 = vsel %vm2655_vm10, %v5716_v58, %v5396_v33  ;;  %v5458_v62 = vpop.permute.xlu2 %5457  ;;  %v15016_v58 = vld [vmem:[#allocation151_spill] sm:$0xff]  ;;  %v15017_v33 = vld [vmem:[#allocation58_spill] sm:$0xff] }
 0xcd9   :  { %5597 = vst [vmem:[#allocation1 + $0x1] ss:$9 sm:$0xff] %v14910_v48  ;;  %v5724_v48 = vsel %vm2660_vm11, %v5720_v47, %v5427_v41  ;;  %v15019_v41 = vld [vmem:[#allocation211_spill] sm:$0xff]  ;;  %v15020_v47 = vld [vmem:[#allocation218_spill] sm:$0xff] }
 0xcda   :  { %5598 = vst [vmem:[#allocation1 + $0x2] ss:$9 sm:$0xff] %v15007_v55  ;;  %v5728_v5 = vsel %vm2665_vm12, %v5724_v48, %v5458_v62  ;;  %v15021_v48 = vld [vmem:[#allocation65_spill] sm:$0xff] }
 0xcdb   :  { %5599 = vst [vmem:[#allocation1 + $0x3] ss:$9 sm:$0xff] %v15008_v40  ;;  %6072 = vmatmul.bf16.vlgmr.msra.gmra.mxu1 %v5728_v5  ;;  %v15022_v5 = vld [vmem:[#allocation163_spill] sm:$0xff] }
 0xcdc   :  { %5600 = vst [vmem:[#allocation1 + $0x4] ss:$9 sm:$0xff] %v15009_v60 }
 0xcdd   :  { %5601 = vst [vmem:[#allocation1 + $0x5] ss:$9 sm:$0xff] %v15010_v51  ;;  %v15015_v51 = vld [vmem:[#allocation116_spill] sm:$0xff] }
 0xcde   :  { %5602 = vst [vmem:[#allocation1 + $0x6] ss:$9 sm:$0xff] %v15011_v46  ;;  %v15018_v46 = vld [vmem:[#allocation152_spill] sm:$0xff] }
 0xcdf   :  { %5603 = vst [vmem:[#allocation1 + $0x7] ss:$9 sm:$0xff] %v15012_v43 }
 0xce6   :  { %v5604_v49 = vld [vmem:[#allocation1] sm:$0xff] }
 0xce7   :  { %5608 = vrot.lane.b32.xlu2 %v5604_v49, %s8246_s23  ;;  %5610 = vst [vmem:[#allocation1] ss:$9 sm:$0xff] %v15013_v30  ;;  %v15023_v49 = vld [vmem:[#allocation125_spill] sm:$0xff]  ;;  %v15024_v30 = vld [vmem:[#allocation10_spill] sm:$0xff] }
 0xce8   :  { %5612 = vst [vmem:[#allocation1 + $0x1] ss:$9 sm:$0xff] %v15014_v12  ;;  %v15025_v12 = vld [vmem:[#allocation213_spill] sm:$0xff] }
 0xce9   :  { %5614 = vst [vmem:[#allocation1 + $0x2] ss:$9 sm:$0xff] %v15015_v51 }
 0xcea   :  { %5616 = vst [vmem:[#allocation1 + $0x3] ss:$9 sm:$0xff] %v15016_v58 }
 0xceb   :  { %5618 = vst [vmem:[#allocation1 + $0x4] ss:$9 sm:$0xff] %v15017_v33 }
 0xcec   :  { %5620 = vst [vmem:[#allocation1 + $0x5] ss:$9 sm:$0xff] %v15018_v46 }
 0xced   :  { %5622 = vst [vmem:[#allocation1 + $0x6] ss:$9 sm:$0xff] %v15019_v41  ;;  %v15026_v41 = vld [vmem:[#allocation222_spill] sm:$0xff] }
 0xcee   :  { %5624 = vst [vmem:[#allocation1 + $0x7] ss:$9 sm:$0xff] %v15020_v47  ;;  %v15027_v47 = vld [vmem:[#allocation28_spill] sm:$0xff] }
 0xcef   :  { %v5706_v46 = vsel %vm2635_vm2, %v15027_v47, %v5274_v15  ;;  %v15029_v15 = vld [vmem:[#allocation173_spill] sm:$0xff]  ;;  %v15032_v47 = vld [vmem:[#allocation182_spill] sm:$0xff] }
 0xcf5   :  { %v5625_v62 = vld [vmem:[#allocation1] sm:$0xff] }
 0xcf6   :  { %5637 = vrot.lane.b32.xlu1 %v5625_v62, %s8248_s25  ;;  %5627 = vst [vmem:[#allocation1] ss:$9 sm:$0xff] %v14918_v24  ;;  %v5710_v62 = vsel %vm2640_vm4, %v5706_v46, %v5305_v3  ;;  %v5398_v24 = vpop.permute.xlu1 %5397  ;;  %v15030_v3 = vld [vmem:[#allocation174_spill] sm:$0xff]  ;;  %v5460_v46 = vpop.permute.xlu0 %5459 }
 0xcf7   :  { %5628 = vst [vmem:[#allocation1 + $0x1] ss:$9 sm:$0xff] %v14919_v53  ;;  %v5714_v53 = vsel %vm2645_vm5, %v5710_v62, %v12288_v37  ;;  %v15036_v62 = vld [vmem:[#allocation38_spill] sm:$0xff] }
 0xcf8   :  { %5629 = vst [vmem:[#allocation1 + $0x2] ss:$9 sm:$0xff] %v15021_v48 }
 0xcf9   :  { %5630 = vst [vmem:[#allocation1 + $0x3] ss:$9 sm:$0xff] %v15022_v5 }
 0xcfa   :  { %5631 = vst [vmem:[#allocation1 + $0x4] ss:$9 sm:$0xff] %v15023_v49  ;;  %v15028_v49 = vld [vmem:[#allocation172_spill] sm:$0xff] }
 0xcfb   :  { %5632 = vst [vmem:[#allocation1 + $0x5] ss:$9 sm:$0xff] %v15024_v30  ;;  %v5718_v30 = vsel %vm2650_vm9, %v5714_v53, %v5367_v19  ;;  %v15031_v19 = vld [vmem:[#allocation226_spill] sm:$0xff]  ;;  %v15039_v53 = vld [vmem:[#allocation39_spill] sm:$0xff] }
 0xcfc   :  { %5633 = vst [vmem:[#allocation1 + $0x6] ss:$9 sm:$0xff] %v15025_v12  ;;  %v15077_v12 = vld [vmem:[#allocation203_spill] sm:$0xff] }
 0xcfd   :  { %5634 = vst [vmem:[#allocation1 + $0x7] ss:$9 sm:$0xff] %v15026_v41  ;;  %v5722_v41 = vsel %vm2655_vm10, %v5718_v30, %v5398_v24  ;;  %v15038_v24 = vld [vmem:[#allocation25_spill] sm:$0xff] }
 0xcfe   :  { %v5726_v37 = vsel %vm2660_vm11, %v5722_v41, %v5429_v14  ;;  %v15034_v14 = vld [vmem:[#allocation184_spill] sm:$0xff] }
 0xcff   :  { %v15035_v41 = vld [vmem:[#allocation228_spill] sm:$0xff] }
 0xd04   :  { %v5635_v33 = vld [vmem:[#allocation1] sm:$0xff] }
 0xd05   :  { %5639 = vrot.lane.b32.xlu2 %v5635_v33, %s8248_s25  ;;  %5641 = vst [vmem:[#allocation1] ss:$9 sm:$0xff] %v14889_v52  ;;  %v5731_v52 = vsel %vm2665_vm12, %v5726_v37, %v5460_v46  ;;  %v15040_v46 = vld [vmem:[#allocation37_spill] sm:$0xff] }
 0xd06   :  { %5643 = vst [vmem:[#allocation1 + $0x1] ss:$9 sm:$0xff] %v15028_v49  ;;  %6077 = vmatmul.bf16.gmra.mxu1 %v5731_v52  ;;  %v15033_v49 = vld [vmem:[#allocation183_spill] sm:$0xff]  ;;  %v15041_v52 = vld [vmem:[#allocation49_spill] sm:$0xff] }
 0xd07   :  { %5645 = vst [vmem:[#allocation1 + $0x2] ss:$9 sm:$0xff] %v14819_v42 }
 0xd08   :  { %5647 = vst [vmem:[#allocation1 + $0x3] ss:$9 sm:$0xff] %v15029_v15 }
 0xd09   :  { %5649 = vst [vmem:[#allocation1 + $0x4] ss:$9 sm:$0xff] %v14821_v21 }
 0xd0a   :  { %5651 = vst [vmem:[#allocation1 + $0x5] ss:$9 sm:$0xff] %v15030_v3  ;;  %v15071_v3 = vld [vmem:[#allocation235_spill] sm:$0xff] }
 0xd0b   :  { %5653 = vst [vmem:[#allocation1 + $0x6] ss:$9 sm:$0xff] %v14998_v17 }
 0xd0c   :  { %5655 = vst [vmem:[#allocation1 + $0x7] ss:$9 sm:$0xff] %v15031_v19  ;;  %v15057_v19 = vld [vmem:[#allocation88_spill] sm:$0xff] }
 0xd13   :  { %v5656_v33 = vld [vmem:[#allocation1] sm:$0xff] }
 0xd14   :  { %5668 = vrot.lane.b32.xlu0 %v5656_v33, %s8243_s16  ;;  %5658 = vst [vmem:[#allocation1] ss:$9 sm:$0xff] %v14893_v1  ;;  %v15037_v1 = vld [vmem:[#allocation36_spill] sm:$0xff]  ;;  %v15042_v33 = vld [vmem:[#allocation51_spill] sm:$0xff] }
 0xd15   :  { %5659 = vst [vmem:[#allocation1 + $0x1] ss:$9 sm:$0xff] %v15032_v47  ;;  %v15043_v47 = vld [vmem:[#allocation71_spill] sm:$0xff] }
 0xd16   :  { %5660 = vst [vmem:[#allocation1 + $0x2] ss:$9 sm:$0xff] %v14706_v18 }
 0xd17   :  { %5661 = vst [vmem:[#allocation1 + $0x3] ss:$9 sm:$0xff] %v15033_v49  ;;  %v15056_v49 = vld [vmem:[#allocation87_spill] sm:$0xff] }
 0xd18   :  { %5662 = vst [vmem:[#allocation1 + $0x4] ss:$9 sm:$0xff] %v14708_v6 }
 0xd19   :  { %5663 = vst [vmem:[#allocation1 + $0x5] ss:$9 sm:$0xff] %v15034_v14  ;;  %v15054_v14 = vld [vmem:[#allocation232_spill] sm:$0xff] }
 0xd1a   :  { %5664 = vst [vmem:[#allocation1 + $0x6] ss:$9 sm:$0xff] %v15000_v8 }
 0xd1b   :  { %5665 = vst [vmem:[#allocation1 + $0x7] ss:$9 sm:$0xff] %v15035_v41  ;;  %v15052_v41 = vld [vmem:[#allocation83_spill] sm:$0xff] }
 0xd22   :  { %v5666_v30 = vld [vmem:[#allocation1] sm:$0xff] }
 0xd23   :  { %5670 = vrot.lane.b32.xlu2 %v5666_v30, %s8243_s16  ;;  %5672 = vst [vmem:[#allocation1] ss:$9 sm:$0xff] %v15036_v62  ;;  %v15044_v30 = vld [vmem:[#allocation198_spill] sm:$0xff]  ;;  %v15045_v62 = vld [vmem:[#allocation199_spill] sm:$0xff] }
 0xd24   :  { %5674 = vst [vmem:[#allocation1 + $0x1] ss:$9 sm:$0xff] %v14274_v36 }
 0xd25   :  { %5676 = vst [vmem:[#allocation1 + $0x2] ss:$9 sm:$0xff] %v15037_v1 }
 0xd26   :  { %5678 = vst [vmem:[#allocation1 + $0x3] ss:$9 sm:$0xff] %v14276_v50 }
 0xd27   :  { %5680 = vst [vmem:[#allocation1 + $0x4] ss:$9 sm:$0xff] %v15038_v24  ;;  %v15047_v24 = vld [vmem:[#allocation75_spill] sm:$0xff] }
 0xd28   :  { %5682 = vst [vmem:[#allocation1 + $0x5] ss:$9 sm:$0xff] %v14429_v54 }
 0xd29   :  { %5684 = vst [vmem:[#allocation1 + $0x6] ss:$9 sm:$0xff] %v15039_v53  ;;  %v15048_v53 = vld [vmem:[#allocation76_spill] sm:$0xff] }
 0xd2a   :  { %5686 = vst [vmem:[#allocation1 + $0x7] ss:$9 sm:$0xff] %v15040_v46 }
 0xd31   :  { %v5687_v37 = vld [vmem:[#allocation1] sm:$0xff] }
 0xd32   :  { %5699 = vrot.lane.b32.xlu2 %v5687_v37, %s8242_s19  ;;  %5689 = vst [vmem:[#allocation1] ss:$9 sm:$0xff] %v15041_v52  ;;  %v15049_v37 = vld [vmem:[#allocation77_spill] sm:$0xff]  ;;  %v15050_v52 = vld [vmem:[#allocation78_spill] sm:$0xff] }
 0xd33   :  { %5690 = vst [vmem:[#allocation1 + $0x1] ss:$9 sm:$0xff] %v14934_v13 }
 0xd34   :  { %5691 = vst [vmem:[#allocation1 + $0x2] ss:$9 sm:$0xff] %v15042_v33  ;;  %v15051_v33 = vld [vmem:[#allocation63_spill] sm:$0xff] }
 0xd35   :  { %5692 = vst [vmem:[#allocation1 + $0x3] ss:$9 sm:$0xff] %v14936_v16 }
 0xd36   :  { %5693 = vst [vmem:[#allocation1 + $0x4] ss:$9 sm:$0xff] %v15043_v47  ;;  %v15053_v47 = vld [vmem:[#allocation231_spill] sm:$0xff] }
 0xd37   :  { %5694 = vst [vmem:[#allocation1 + $0x5] ss:$9 sm:$0xff] %v14938_v59 }
 0xd38   :  { %5695 = vst [vmem:[#allocation1 + $0x6] ss:$9 sm:$0xff] %v15044_v30 }
 0xd39   :  { %5696 = vst [vmem:[#allocation1 + $0x7] ss:$9 sm:$0xff] %v15045_v62 }
 0xd40   :  { %v12379_v1 = vld [vmem:[#allocation1] sm:$0xff] }
 0xd41   :  { %15046 = vst [vmem:[#allocation105_spill] sm:$0xff] %v12379_v1 }
 0xd42   :  { %5763 = vst [vmem:[#allocation1] ss:$9 sm:$0xff] %v15047_v24  ;;  %v15058_v24 = vld [vmem:[#allocation89_spill] sm:$0xff] }
 0xd43   :  { %5765 = vst [vmem:[#allocation1 + $0x1] ss:$9 sm:$0xff] %v15048_v53  ;;  %v15059_v53 = vld [vmem:[#allocation90_spill] sm:$0xff] }
 0xd44   :  { %5767 = vst [vmem:[#allocation1 + $0x2] ss:$9 sm:$0xff] %v15049_v37  ;;  %v15060_v37 = vld [vmem:[#allocation113_spill] sm:$0xff] }
 0xd45   :  { %5769 = vst [vmem:[#allocation1 + $0x3] ss:$9 sm:$0xff] %v15050_v52  ;;  %v15061_v52 = vld [vmem:[#allocation131_spill] sm:$0xff] }
 0xd46   :  { %5771 = vst [vmem:[#allocation1 + $0x4] ss:$9 sm:$0xff] %v15051_v33  ;;  %v15062_v33 = vld [vmem:[#allocation233_spill] sm:$0xff] }
 0xd47   :  { %5773 = vst [vmem:[#allocation1 + $0x5] ss:$9 sm:$0xff] %v15052_v41  ;;  %v12398_v41 = vpop.permute.xlu2 %5544 }
 0xd48   :  { %5775 = vst [vmem:[#allocation1 + $0x6] ss:$9 sm:$0xff] %v15053_v47  ;;  %v15063_v47 = vld [vmem:[#allocation234_spill] sm:$0xff] }
 0xd49   :  { %5777 = vst [vmem:[#allocation1 + $0x7] ss:$9 sm:$0xff] %v15054_v14  ;;  %v12401_v14 = vpop.permute.xlu1 %5513 }
 0xd50   :  { %v12389_v30 = vld [vmem:[#allocation1] sm:$0xff] }
 0xd51   :  { %15055 = vst [vmem:[#allocation31_spill] sm:$0xff] %v12389_v30  ;;  %v5516_v15 = vpop.permute.xlu1 %5515 }
 0xd52   :  { %5779 = vst [vmem:[#allocation1] ss:$9 sm:$0xff] %v15056_v49  ;;  %v15065_v49 = vld [vmem:[#allocation98_spill] sm:$0xff] }
 0xd53   :  { %5780 = vst [vmem:[#allocation1 + $0x1] ss:$9 sm:$0xff] %v15057_v19  ;;  %v5578_v19 = vpop.permute.xlu2 %5577 }
 0xd54   :  { %5781 = vst [vmem:[#allocation1 + $0x2] ss:$9 sm:$0xff] %v15058_v24  ;;  %v15066_v24 = vld [vmem:[#allocation5_spill] sm:$0xff] }
 0xd55   :  { %5782 = vst [vmem:[#allocation1 + $0x3] ss:$9 sm:$0xff] %v15059_v53  ;;  %v15067_v53 = vld [vmem:[#allocation99_spill] sm:$0xff] }
 0xd56   :  { %5783 = vst [vmem:[#allocation1 + $0x4] ss:$9 sm:$0xff] %v15060_v37  ;;  %v15068_v37 = vld [vmem:[#allocation100_spill] sm:$0xff] }
 0xd57   :  { %5784 = vst [vmem:[#allocation1 + $0x5] ss:$9 sm:$0xff] %v15061_v52  ;;  %v15069_v52 = vld [vmem:[#allocation120_spill] sm:$0xff] }
 0xd58   :  { %5785 = vst [vmem:[#allocation1 + $0x6] ss:$9 sm:$0xff] %v15062_v33  ;;  %v15070_v33 = vld [vmem:[#allocation202_spill] sm:$0xff] }
 0xd59   :  { %5786 = vst [vmem:[#allocation1 + $0x7] ss:$9 sm:$0xff] %v15063_v47  ;;  %v15072_v47 = vld [vmem:[#allocation236_spill] sm:$0xff] }
 0xd5b   :  { %v12413_v1 = vpop.permute.xlu2 %5606 }
 0xd60   :  { %v12403_v30 = vld [vmem:[#allocation1] sm:$0xff] }
 0xd61   :  { %15064 = vst [vmem:[#allocation196_spill] sm:$0xff] %v12403_v30  ;;  %v5547_v30 = vpop.permute.xlu0 %5546 }
 0xd62   :  { %5788 = vst [vmem:[#allocation1] ss:$9 sm:$0xff] %v15065_v49  ;;  %v5736_v49 = vsel %vm2635_vm2, %v12233_v4, %v5516_v15  ;;  %v15078_v15 = vld [vmem:[#allocation238_spill] sm:$0xff] }
 0xd63   :  { %5790 = vst [vmem:[#allocation1 + $0x1] ss:$9 sm:$0xff] %v15066_v24  ;;  %v5740_v24 = vsel %vm2640_vm4, %v5736_v49, %v5547_v30  ;;  %v5609_v4 = vpop.permute.xlu2 %5608  ;;  %v15079_v49 = vld [vmem:[#allocation239_spill] sm:$0xff] }
 0xd64   :  { %5792 = vst [vmem:[#allocation1 + $0x2] ss:$9 sm:$0xff] %v15067_v53 }
 0xd65   :  { %5794 = vst [vmem:[#allocation1 + $0x3] ss:$9 sm:$0xff] %v15068_v37  ;;  %v15073_v37 = vld [vmem:[#allocation108_spill] sm:$0xff] }
 0xd66   :  { %5796 = vst [vmem:[#allocation1 + $0x4] ss:$9 sm:$0xff] %v15069_v52  ;;  %v15074_v52 = vld [vmem:[#allocation109_spill] sm:$0xff] }
 0xd67   :  { %5798 = vst [vmem:[#allocation1 + $0x5] ss:$9 sm:$0xff] %v15070_v33  ;;  %v15075_v33 = vld [vmem:[#allocation7_spill] sm:$0xff] }
 0xd68   :  { %5800 = vst [vmem:[#allocation1 + $0x6] ss:$9 sm:$0xff] %v15071_v3  ;;  %v5744_v3 = vsel %vm2645_vm5, %v5740_v24, %v5578_v19  ;;  %v15080_v19 = vld [vmem:[#allocation20_spill] sm:$0xff]  ;;  %v15081_v24 = vld [vmem:[#allocation70_spill] sm:$0xff] }
 0xd69   :  { %5802 = vst [vmem:[#allocation1 + $0x7] ss:$9 sm:$0xff] %v15072_v47  ;;  %v15076_v47 = vld [vmem:[#allocation110_spill] sm:$0xff]  ;;  %v5748_v30 = vsel %vm2650_vm9, %v5744_v3, %v5609_v4 }
 0xd70   :  { %v5803_v53 = vld [vmem:[#allocation1] sm:$0xff] }
 0xd71   :  { %5815 = vrot.lane.b32.xlu1 %v5803_v53, %s8244_s21  ;;  %5805 = vst [vmem:[#allocation1] ss:$9 sm:$0xff] %v15073_v37  ;;  %v15084_v37 = vld [vmem:[#allocation13_spill] sm:$0xff] }
 0xd72   :  { %5806 = vst [vmem:[#allocation1 + $0x1] ss:$9 sm:$0xff] %v15074_v52  ;;  %v15085_v52 = vld [vmem:[#allocation14_spill] sm:$0xff] }
 0xd73   :  { %5807 = vst [vmem:[#allocation1 + $0x2] ss:$9 sm:$0xff] %v15075_v33 }
 0xd74   :  { %5808 = vst [vmem:[#allocation1 + $0x3] ss:$9 sm:$0xff] %v15076_v47  ;;  %v15087_v47 = vld [vmem:[#allocation55_spill] sm:$0xff] }
 0xd75   :  { %5809 = vst [vmem:[#allocation1 + $0x4] ss:$9 sm:$0xff] %v15077_v12  ;;  %v15082_v12 = vld [vmem:[#allocation195_spill] sm:$0xff] }
 0xd76   :  { %5810 = vst [vmem:[#allocation1 + $0x5] ss:$9 sm:$0xff] %v14971_v31  ;;  %v15083_v31 = vld [vmem:[#allocation62_spill] sm:$0xff] }
 0xd77   :  { %5811 = vst [vmem:[#allocation1 + $0x6] ss:$9 sm:$0xff] %v15078_v15  ;;  %v15104_v15 = vld [vmem:[#allocation34_spill] sm:$0xff] }
 0xd78   :  { %5812 = vst [vmem:[#allocation1 + $0x7] ss:$9 sm:$0xff] %v15079_v49 }
 0xd7f   :  { %v5813_v53 = vld [vmem:[#allocation1] sm:$0xff] }
 0xd80   :  { %5817 = vrot.lane.b32.xlu0 %v5813_v53, %s8244_s21  ;;  %5819 = vst [vmem:[#allocation1] ss:$9 sm:$0xff] %v14974_v38  ;;  %v5640_v38 = vpop.permute.xlu2 %5639  ;;  %v15106_v53 = vld [vmem:[#allocation178_spill] sm:$0xff] }
 0xd81   :  { %5821 = vst [vmem:[#allocation1 + $0x1] ss:$9 sm:$0xff] %v14975_v29  ;;  %v15086_v29 = vld [vmem:[#allocation54_spill] sm:$0xff]  ;;  %v5752_v33 = vsel %vm2655_vm10, %v5748_v30, %v5640_v38  ;;  %v15105_v30 = vld [vmem:[#allocation143_spill] sm:$0xff] }
 0xd82   :  { %5823 = vst [vmem:[#allocation1 + $0x2] ss:$9 sm:$0xff] %v15080_v19  ;;  %v15107_v19 = vld [vmem:[#allocation179_spill] sm:$0xff] }
 0xd83   :  { %5825 = vst [vmem:[#allocation1 + $0x3] ss:$9 sm:$0xff] %v15081_v24  ;;  %v15108_v24 = vld [vmem:[#allocation180_spill] sm:$0xff] }
 0xd84   :  { %5827 = vst [vmem:[#allocation1 + $0x4] ss:$9 sm:$0xff] %v15082_v12  ;;  %v15109_v12 = vld [vmem:[#allocation181_spill] sm:$0xff] }
 0xd85   :  { %5829 = vst [vmem:[#allocation1 + $0x5] ss:$9 sm:$0xff] %v15083_v31  ;;  %v15110_v31 = vld [vmem:[#allocation225_spill] sm:$0xff] }
 0xd86   :  { %5831 = vst [vmem:[#allocation1 + $0x6] ss:$9 sm:$0xff] %v15084_v37  ;;  %v15111_v37 = vld [vmem:[#allocation227_spill] sm:$0xff] }
 0xd87   :  { %5833 = vst [vmem:[#allocation1 + $0x7] ss:$9 sm:$0xff] %v15085_v52  ;;  %v15112_v52 = vld [vmem:[#allocation146_spill] sm:$0xff] }
 0xd8e   :  { %v5834_v3 = vld [vmem:[#allocation1] sm:$0xff] }
 0xd8f   :  { %5846 = vrot.lane.b32.xlu0 %v5834_v3, %s8247_s24  ;;  %5836 = vst [vmem:[#allocation1] ss:$9 sm:$0xff] %v14983_v44  ;;  %v15088_v44 = vld [vmem:[#allocation200_spill] sm:$0xff] }
 0xd90   :  { %5837 = vst [vmem:[#allocation1 + $0x1] ss:$9 sm:$0xff] %v14984_v57  ;;  %v15113_v3 = vld [vmem:[#allocation84_spill] sm:$0xff] }
 0xd91   :  { %5838 = vst [vmem:[#allocation1 + $0x2] ss:$9 sm:$0xff] %v14985_v22 }
 0xd92   :  { %5839 = vst [vmem:[#allocation1 + $0x3] ss:$9 sm:$0xff] %v14986_v34  ;;  %v5576_v34 = vpop.permute.xlu0 %5575 }
 0xd93   :  { %5840 = vst [vmem:[#allocation1 + $0x4] ss:$9 sm:$0xff] %v14987_v11 }
 0xd94   :  { %5841 = vst [vmem:[#allocation1 + $0x5] ss:$9 sm:$0xff] %v14988_v39  ;;  %v5638_v39 = vpop.permute.xlu1 %5637 }
 0xd95   :  { %5842 = vst [vmem:[#allocation1 + $0x6] ss:$9 sm:$0xff] %v15086_v29  ;;  %v15114_v29 = vld [vmem:[#allocation192_spill] sm:$0xff] }
 0xd96   :  { %5843 = vst [vmem:[#allocation1 + $0x7] ss:$9 sm:$0xff] %v15087_v47  ;;  %v15116_v47 = vld [vmem:[#allocation64_spill] sm:$0xff] }
 0xd9d   :  { %v5844_v4 = vld [vmem:[#allocation1] sm:$0xff] }
 0xd9e   :  { %5848 = vrot.lane.b32.xlu0 %v5844_v4, %s8247_s24  ;;  %5850 = vst [vmem:[#allocation1] ss:$9 sm:$0xff] %v14274_v36  ;;  %v15089_v36 = vld [vmem:[#allocation237_spill] sm:$0xff] }
 0xd9f   :  { %5852 = vst [vmem:[#allocation1 + $0x1] ss:$9 sm:$0xff] %v14990_v27  ;;  %v15117_v4 = vld [vmem:[#allocation93_spill] sm:$0xff] }
 0xda0   :  { %5854 = vst [vmem:[#allocation1 + $0x2] ss:$9 sm:$0xff] %v14276_v50  ;;  %v5671_v50 = vpop.permute.xlu2 %5670 }
 0xda1   :  { %5856 = vst [vmem:[#allocation1 + $0x3] ss:$9 sm:$0xff] %v14991_v28  ;;  %v5669_v28 = vpop.permute.xlu0 %5668 }
 0xda2   :  { %5858 = vst [vmem:[#allocation1 + $0x4] ss:$9 sm:$0xff] %v14429_v54  ;;  %v12466_v54 = vsel %vm2660_vm11, %v5752_v33, %v5671_v50  ;;  %v15115_v33 = vld [vmem:[#allocation229_spill] sm:$0xff] }
 0xda3   :  { %5860 = vst [vmem:[#allocation1 + $0x5] ss:$9 sm:$0xff] %v14992_v7  ;;  %v15123_v50 = vld [vmem:[#allocation117_spill] sm:$0xff] }
 0xda4   :  { %5862 = vst [vmem:[#allocation1 + $0x6] ss:$9 sm:$0xff] %v15040_v46  ;;  %v15096_v46 = vld [vmem:[#allocation219_spill] sm:$0xff] }
 0xda5   :  { %5864 = vst [vmem:[#allocation1 + $0x7] ss:$9 sm:$0xff] %v15088_v44  ;;  %v15118_v44 = vld [vmem:[#allocation56_spill] sm:$0xff] }
 0xda8   :  { %v5700_v7 = vpop.permute.xlu2 %5699 }
 0xdac   :  { %v5865_v57 = vld [vmem:[#allocation1] sm:$0xff] }
 0xdad   :  { %5877 = vrot.lane.b32.xlu2 %v5865_v57, %s8245_s22  ;;  %5867 = vst [vmem:[#allocation1] ss:$9 sm:$0xff] %v14934_v13  ;;  %v15090_v13 = vld [vmem:[#allocation43_spill] sm:$0xff] }
 0xdae   :  { %5868 = vst [vmem:[#allocation1 + $0x1] ss:$9 sm:$0xff] %v14994_v23 }
 0xdaf   :  { %5869 = vst [vmem:[#allocation1 + $0x2] ss:$9 sm:$0xff] %v14936_v16  ;;  %v15091_v16 = vld [vmem:[#allocation240_spill] sm:$0xff] }
 0xdb0   :  { %5870 = vst [vmem:[#allocation1 + $0x3] ss:$9 sm:$0xff] %v14995_v2  ;;  %v15093_v2 = vld [vmem:[#allocation12_spill] sm:$0xff] }
 0xdb1   :  { %5871 = vst [vmem:[#allocation1 + $0x4] ss:$9 sm:$0xff] %v14938_v59  ;;  %v5734_v59 = vsel %vm2635_vm2, %v12221_v45, %v12401_v14  ;;  %v15103_v14 = vld [vmem:[#allocation224_spill] sm:$0xff] }
 0xdb2   :  { %5872 = vst [vmem:[#allocation1 + $0x5] ss:$9 sm:$0xff] %v14996_v26  ;;  %v5738_v11 = vsel %vm2640_vm4, %v5734_v59, %v12398_v41  ;;  %v15098_v41 = vld [vmem:[#allocation167_spill] sm:$0xff]  ;;  %v15128_v59 = vld [vmem:[#allocation222_spill] sm:$0xff] }
 0xdb3   :  { %5873 = vst [vmem:[#allocation1 + $0x6] ss:$9 sm:$0xff] %v15045_v62  ;;  %v15097_v62 = vld [vmem:[#allocation33_spill] sm:$0xff] }
 0xdb4   :  { %5874 = vst [vmem:[#allocation1 + $0x7] ss:$9 sm:$0xff] %v15089_v36  ;;  %v15124_v36 = vld [vmem:[#allocation23_spill] sm:$0xff] }
 0xdbb   :  { %v5875_v22 = vld [vmem:[#allocation1] sm:$0xff] }
 0xdbc   :  { %5879 = vrot.lane.b32.xlu0 %v5875_v22, %s8245_s22  ;;  %5881 = vst [vmem:[#allocation1] ss:$9 sm:$0xff] %v14695_v10  ;;  %s8249_s22 = smov [#allocation2]  }
 0xdbd   :  { %5883 = vst [vmem:[#allocation1 + $0x1] ss:$9 sm:$0xff] %v14819_v42 }
 0xdbe   :  { %5885 = vst [vmem:[#allocation1 + $0x2] ss:$9 sm:$0xff] %v14820_v0  ;;  %v5742_v0 = vsel %vm2645_vm5, %v5738_v11, %v5576_v34  ;;  %v15129_v34 = vld [vmem:[#allocation128_spill] sm:$0xff]  ;;  %v15131_v11 = vld [vmem:[#allocation105_spill] sm:$0xff] }
 0xdbf   :  { %5887 = vst [vmem:[#allocation1 + $0x3] ss:$9 sm:$0xff] %v14821_v21  ;;  %v5746_v45 = vsel %vm2650_vm9, %v5742_v0, %v12413_v1 }
 0xdc0   :  { %5889 = vst [vmem:[#allocation1 + $0x4] ss:$9 sm:$0xff] %v14997_v61  ;;  %v5750_v27 = vsel %vm2655_vm10, %v5746_v45, %v5638_v39  ;;  %v15094_v61 = vld [vmem:[#allocation220_spill] sm:$0xff]  ;;  %v15134_v39 = vld [vmem:[#allocation226_spill] sm:$0xff] }
 0xdc1   :  { %5891 = vst [vmem:[#allocation1 + $0x5] ss:$9 sm:$0xff] %v14998_v17  ;;  %v5754_v23 = vsel %vm2660_vm11, %v5750_v27, %v5669_v28  ;;  %v15135_v45 = vld [vmem:[#allocation216_spill] sm:$0xff] }
 0xdc2   :  { %5893 = vst [vmem:[#allocation1 + $0x6] ss:$9 sm:$0xff] %v15090_v13  ;;  %v15127_v13 = vld [vmem:[#allocation213_spill] sm:$0xff]  ;;  %v15136_v27 = vrot.slane %v15135_v45, 3 }
 0xdc3   :  { %5895 = vst [vmem:[#allocation1 + $0x7] ss:$9 sm:$0xff] %v15091_v16 }
 0xdca   :  { %v5896_v10 = vld [vmem:[#allocation1] sm:$0xff] }
 0xdcb   :  { %5908 = vrot.lane.b32.xlu1 %v5896_v10, %s8246_s23  ;;  %5898 = vst [vmem:[#allocation1] ss:$9 sm:$0xff] %v14705_v56  ;;  %v15092_v56 = vld [vmem:[#allocation241_spill] sm:$0xff]  ;;  %v15130_v10 = vld [vmem:[#allocation122_spill] sm:$0xff] }
 0xdcc   :  { %5899 = vst [vmem:[#allocation1 + $0x1] ss:$9 sm:$0xff] %v14706_v18 }
 0xdcd   :  { %5900 = vst [vmem:[#allocation1 + $0x2] ss:$9 sm:$0xff] %v14707_v20  ;;  %v5758_v20 = vsel %vm2665_vm12, %v5754_v23, %v5700_v7 }
 0xdce   :  { %5901 = vst [vmem:[#allocation1 + $0x3] ss:$9 sm:$0xff] %v14708_v6  ;;  %6091 = vmatmul.bf16.vlgmr.msra.gmra.mxu2 %v5758_v20 }
 0xdcf   :  { %5902 = vst [vmem:[#allocation1 + $0x4] ss:$9 sm:$0xff] %v14999_v32  ;;  %v15095_v32 = vld [vmem:[#allocation221_spill] sm:$0xff] }
 0xdd0   :  { %5903 = vst [vmem:[#allocation1 + $0x5] ss:$9 sm:$0xff] %v15000_v8 }
 0xdd1   :  { %5904 = vst [vmem:[#allocation1 + $0x6] ss:$9 sm:$0xff] %v15092_v56 }
 0xdd2   :  { %5905 = vst [vmem:[#allocation1 + $0x7] ss:$9 sm:$0xff] %v15093_v2 }
 0xdd9   :  { %v5906_v26 = vld [vmem:[#allocation1] sm:$0xff] }
 0xdda   :  { %5912 = vst [vmem:[#allocation1] ss:$9 sm:$0xff] %v14712_v63  ;;  %v15099_v63 = vld [vmem:[#allocation168_spill] sm:$0xff] }
 0xddb   :  { %5914 = vst [vmem:[#allocation1 + $0x1] ss:$9 sm:$0xff] %v14713_v9  ;;  %v15100_v9 = vld [vmem:[#allocation169_spill] sm:$0xff] }
 0xddc   :  { %5916 = vst [vmem:[#allocation1 + $0x2] ss:$9 sm:$0xff] %v14714_v35  ;;  %v15101_v35 = vld [vmem:[#allocation170_spill] sm:$0xff] }
 0xddd   :  { %5918 = vst [vmem:[#allocation1 + $0x3] ss:$9 sm:$0xff] %v14715_v25  ;;  %v15102_v25 = vld [vmem:[#allocation223_spill] sm:$0xff] }
 0xdde   :  { %5920 = vst [vmem:[#allocation1 + $0x4] ss:$9 sm:$0xff] %v15094_v61 }
 0xddf   :  { %5922 = vst [vmem:[#allocation1 + $0x5] ss:$9 sm:$0xff] %v15095_v32 }
 0xde0   :  { %5924 = vst [vmem:[#allocation1 + $0x6] ss:$9 sm:$0xff] %v15096_v46  ;;  %v15142_v46 = vld [vmem:[#allocation31_spill] sm:$0xff] }
 0xde1   :  { %5926 = vst [vmem:[#allocation1 + $0x7] ss:$9 sm:$0xff] %v15097_v62 }
 0xde8   :  { %v5927_v1 = vld [vmem:[#allocation1] sm:$0xff] }
 0xde9   :  { %5939 = vrot.lane.b32.xlu0 %v5927_v1, %s8248_s25  ;;  %5929 = vst [vmem:[#allocation1] ss:$9 sm:$0xff] %v15098_v41 }
 0xdea   :  { %5930 = vst [vmem:[#allocation1 + $0x1] ss:$9 sm:$0xff] %v15099_v63 }
 0xdeb   :  { %5931 = vst [vmem:[#allocation1 + $0x2] ss:$9 sm:$0xff] %v15100_v9 }
 0xdec   :  { %5932 = vst [vmem:[#allocation1 + $0x3] ss:$9 sm:$0xff] %v15101_v35 }
 0xded   :  { %5933 = vst [vmem:[#allocation1 + $0x4] ss:$9 sm:$0xff] %v15102_v25 }
 0xdee   :  { %5934 = vst [vmem:[#allocation1 + $0x5] ss:$9 sm:$0xff] %v15103_v14 }
 0xdef   :  { %5935 = vst [vmem:[#allocation1 + $0x6] ss:$9 sm:$0xff] %v15104_v15 }
 0xdf0   :  { %5936 = vst [vmem:[#allocation1 + $0x7] ss:$9 sm:$0xff] %v15105_v30 }
 0xdf1   :  { %5910 = vrot.lane.b32.xlu0 %v5906_v26, %s8246_s23  ;;  %v5816_v26 = vpop.permute.xlu1 %5815  ;;  %s7304_s23 = sshll.u32 %s8249_s22, 4  ;;  %s7305_s23 = int_to_ptr.vmem [resolvable:$true] %s7304_s23 }
 0xdf2   :  { %v5818_v7 = vpop.permute.xlu0 %5817 }
 0xdf7   :  { %v5937_v49 = vld [vmem:[#allocation1] sm:$0xff] }
 0xdf8   :  { %5943 = vst [vmem:[#allocation1] ss:$9 sm:$0xff] %v15106_v53 }
 0xdf9   :  { %5945 = vst [vmem:[#allocation1 + $0x1] ss:$9 sm:$0xff] %v15107_v19  ;;  %5941 = vrot.lane.b32.xlu0 %v5937_v49, %s8248_s25  ;;  %v15143_v49 = vld [vmem:[#allocation21_spill] sm:$0xff] }
 0xdfa   :  { %5947 = vst [vmem:[#allocation1 + $0x2] ss:$9 sm:$0xff] %v15108_v24  ;;  %v15144_v24 = vld [vmem:[#allocation196_spill] sm:$0xff] }
 0xdfb   :  { %5949 = vst [vmem:[#allocation1 + $0x3] ss:$9 sm:$0xff] %v15109_v12  ;;  %v6033_v12 = vsel %vm2635_vm2, %v15144_v24, %v5818_v7  ;;  %v15150_v24 = vld [vmem:[#allocation26_spill] sm:$0xff] }
 0xdfc   :  { %5951 = vst [vmem:[#allocation1 + $0x4] ss:$9 sm:$0xff] %v15110_v31 }
 0xdfd   :  { %5953 = vst [vmem:[#allocation1 + $0x5] ss:$9 sm:$0xff] %v15111_v37 }
 0xdfe   :  { %5955 = vst [vmem:[#allocation1 + $0x6] ss:$9 sm:$0xff] %v15112_v52 }
 0xdff   :  { %5957 = vst [vmem:[#allocation1 + $0x7] ss:$9 sm:$0xff] %v15113_v3 }
 0xe06   :  { %v5958_v38 = vld [vmem:[#allocation1] sm:$0xff] }
 0xe07   :  { %5970 = vrot.lane.b32.xlu1 %v5958_v38, %s8243_s16  ;;  %5960 = vst [vmem:[#allocation1] ss:$9 sm:$0xff] %v15007_v55  ;;  %v15119_v55 = vld [vmem:[#allocation58_spill] sm:$0xff]  ;;  %v5878_v62 = vpop.permute.xlu2 %5877 }
 0xe08   :  { %5961 = vst [vmem:[#allocation1 + $0x1] ss:$9 sm:$0xff] %v15008_v40  ;;  %v15120_v40 = vld [vmem:[#allocation152_spill] sm:$0xff] }
 0xe09   :  { %5962 = vst [vmem:[#allocation1 + $0x2] ss:$9 sm:$0xff] %v15009_v60  ;;  %v15121_v60 = vld [vmem:[#allocation211_spill] sm:$0xff] }
 0xe0a   :  { %5963 = vst [vmem:[#allocation1 + $0x3] ss:$9 sm:$0xff] %v15114_v29 }
 0xe0b   :  { %5964 = vst [vmem:[#allocation1 + $0x4] ss:$9 sm:$0xff] %v15115_v33 }
 0xe0c   :  { %5965 = vst [vmem:[#allocation1 + $0x5] ss:$9 sm:$0xff] %v15012_v43  ;;  %v15122_v43 = vld [vmem:[#allocation218_spill] sm:$0xff] }
 0xe0d   :  { %5966 = vst [vmem:[#allocation1 + $0x6] ss:$9 sm:$0xff] %v15116_v47 }
 0xe0e   :  { %5967 = vst [vmem:[#allocation1 + $0x7] ss:$9 sm:$0xff] %v15117_v4 }
 0xe0f   :  { %3533 = vrot.lane.b32.xlu1 %v15118_v44, %s8242_s19 }
 0xe15   :  { %v5968_v57 = vld [vmem:[#allocation1] sm:$0xff] }
 0xe16   :  { %5974 = vst [vmem:[#allocation1] ss:$9 sm:$0xff] %v15015_v51  ;;  %v15125_v51 = vld [vmem:[#allocation125_spill] sm:$0xff] }
 0xe17   :  { %5972 = vrot.lane.b32.xlu1 %v5968_v57, %s8243_s16  ;;  %5976 = vst [vmem:[#allocation1 + $0x1] ss:$9 sm:$0xff] %v15016_v58  ;;  %v15126_v58 = vld [vmem:[#allocation10_spill] sm:$0xff]  ;;  %v12597_v57 = vpop.f32.mrf.mxu1 }
 0xe18   :  { %5978 = vst [vmem:[#allocation1 + $0x2] ss:$9 sm:$0xff] %v15119_v55 }
 0xe19   :  { %5980 = vst [vmem:[#allocation1 + $0x3] ss:$9 sm:$0xff] %v15120_v40 }
 0xe1a   :  { %5982 = vst [vmem:[#allocation1 + $0x4] ss:$9 sm:$0xff] %v15121_v60 }
 0xe1b   :  { %5984 = vst [vmem:[#allocation1 + $0x5] ss:$9 sm:$0xff] %v15122_v43 }
 0xe1c   :  { %5986 = vst [vmem:[#allocation1 + $0x6] ss:$9 sm:$0xff] %v15123_v50 }
 0xe1d   :  { %5988 = vst [vmem:[#allocation1 + $0x7] ss:$9 sm:$0xff] %v15124_v36 }
 0xe1f   :  { %v5167_v55 = vpop.f32.mrf.mxu1 }
 0xe24   :  { %v5989_v22 = vld [vmem:[#allocation1] sm:$0xff] }
 0xe25   :  { %6001 = vrot.lane.b32.xlu2 %v5989_v22, %s8242_s19  ;;  %5991 = vst [vmem:[#allocation1] ss:$9 sm:$0xff] %v15021_v48  ;;  %v15132_v48 = vld [vmem:[#allocation173_spill] sm:$0xff]  ;;  %v12605_v22 = vpop.f32.mrf.mxu2 }
 0xe26   :  { %5992 = vst [vmem:[#allocation1 + $0x1] ss:$9 sm:$0xff] %v15022_v5  ;;  %v15133_v5 = vld [vmem:[#allocation174_spill] sm:$0xff] }
 0xe27   :  { %5993 = vst [vmem:[#allocation1 + $0x2] ss:$9 sm:$0xff] %v15125_v51  ;;  %v5169_v60 = vpop.f32.mrf.mxu1 }
 0xe28   :  { %5994 = vst [vmem:[#allocation1 + $0x3] ss:$9 sm:$0xff] %v15126_v58 }
 0xe29   :  { %5995 = vst [vmem:[#allocation1 + $0x4] ss:$9 sm:$0xff] %v15127_v13 }
 0xe2a   :  { %5996 = vst [vmem:[#allocation1 + $0x5] ss:$9 sm:$0xff] %v15128_v59 }
 0xe2b   :  { %5997 = vst [vmem:[#allocation1 + $0x6] ss:$9 sm:$0xff] %v15129_v34 }
 0xe2c   :  { %5998 = vst [vmem:[#allocation1 + $0x7] ss:$9 sm:$0xff] %v15130_v10 }
 0xe2d   :  { %5701 = vrot.lane.b32.xlu2 %v15131_v11, %s8242_s19  ;;  %v5186_v13 = vpop.f32.mrf.mxu2 }
 0xe2f   :  { %v12601_v50 = vpop.f32.mrf.mxu1 }
 0xe33   :  { %v5999_v0 = vld [vmem:[#allocation1] sm:$0xff] }
 0xe34   :  { %6005 = vst [vmem:[#allocation1] ss:$9 sm:$0xff] %v14819_v42  ;;  %v15137_v42 = vld [vmem:[#allocation183_spill] sm:$0xff] }
 0xe35   :  { %6003 = vrot.lane.b32.xlu2 %v5999_v0, %s8242_s19  ;;  %6007 = vst [vmem:[#allocation1 + $0x1] ss:$9 sm:$0xff] %v15132_v48  ;;  %v5188_v10 = vpop.f32.mrf.mxu2 }
 0xe36   :  { %6009 = vst [vmem:[#allocation1 + $0x2] ss:$9 sm:$0xff] %v14821_v21  ;;  %v15138_v21 = vld [vmem:[#allocation184_spill] sm:$0xff] }
 0xe37   :  { %6011 = vst [vmem:[#allocation1 + $0x3] ss:$9 sm:$0xff] %v15133_v5  ;;  %v12607_v51 = vpop.f32.mrf.mxu1 }
 0xe38   :  { %6013 = vst [vmem:[#allocation1 + $0x4] ss:$9 sm:$0xff] %v14998_v17  ;;  %v15139_v17 = vld [vmem:[#allocation228_spill] sm:$0xff] }
 0xe39   :  { %6015 = vst [vmem:[#allocation1 + $0x5] ss:$9 sm:$0xff] %v15134_v39 }
 0xe3a   :  { %6017 = vst [vmem:[#allocation1 + $0x6] ss:$9 sm:$0xff] %v15091_v16  ;;  %v15140_v16 = vld [vmem:[#allocation209_spill] sm:$0xff] }
 0xe3b   :  { %6019 = vst [vmem:[#allocation1 + $0x7] ss:$9 sm:$0xff] %v15136_v27  ;;  %v15141_v56 = vrot.slane %v15140_v16, 3  ;;  %v7649_v27 = vld [vmem:[%s13249_s5 + $0x30] sm:$0xf] }
 0xe3d   :  { %v12613_v48 = vpop.f32.mrf.mxu2 }
 0xe3f   :  { %v6073_v59 = vpop.f32.mrf.mxu1 }
 0xe42   :  { %v6020_v28 = vld [vmem:[#allocation1] sm:$0xff] }
 0xe43   :  { %7631 = vmatmul.msk.bf16.vlgmr.msrb.gmra.mxu1 %vm2635_vm2, %v6020_v28  ;;  %6021 = vst [vmem:[#allocation1] ss:$9 sm:$0xff] %v14706_v18  ;;  %v5847_v18 = vpop.permute.xlu0 %5846  ;;  %v8105_v28 = vld [vmem:[%s13249_s5 + $0x34] sm:$0xf0] }
 0xe44   :  { %6022 = vst [vmem:[#allocation1 + $0x1] ss:$9 sm:$0xff] %v15137_v42  ;;  %v8104_v42 = vld [vmem:[%s13249_s5 + $0x34] sm:$0xf] }
 0xe45   :  { %6023 = vst [vmem:[#allocation1 + $0x2] ss:$9 sm:$0xff] %v14708_v6  ;;  %v5909_v6 = vpop.permute.xlu1 %5908  ;;  %v12619_v45 = vpop.f32.mrf.mxu2 }
 0xe46   :  { %6024 = vst [vmem:[#allocation1 + $0x3] ss:$9 sm:$0xff] %v15138_v21  ;;  %v7650_v21 = vor.u32 %v8105_v28, %v7649_v27 }
 0xe47   :  { %6025 = vst [vmem:[#allocation1 + $0x4] ss:$9 sm:$0xff] %v15000_v8  ;;  %v6031_v8 = vsel %vm2635_vm2, %v15142_v46, %v5816_v26  ;;  %v6075_v11 = vpop.f32.mrf.mxu1 }
 0xe48   :  { %6026 = vst [vmem:[#allocation1 + $0x5] ss:$9 sm:$0xff] %v15139_v17  ;;  %v6035_v1 = vsel %vm2640_vm4, %v6031_v8, %v5847_v18  ;;  %v7651_v17 = vld [vmem:[%s13249_s5 + $0x38] sm:$0xf0]  ;;  %6209 = vmatpush.bf16.msrb.mxu2 %v7650_v21  ;;  %v7689_v21 = vld [vmem:[%s13249_s5 + $0x50] sm:$0xf] }
 0xe49   :  { %6027 = vst [vmem:[#allocation1 + $0x6] ss:$9 sm:$0xff] %v15093_v2  ;;  %v6039_v41 = vsel %vm2645_vm5, %v6035_v1, %v5878_v62  ;;  %v7654_v16 = vor.u32 %v8104_v42, %v7651_v17  ;;  %v15146_v8 = vld [vmem:[#allocation11_spill] sm:$0xff]  ;;  %v15154_v42 = vld [vmem:[#allocation57_spill] sm:$0xff] }
 0xe4a   :  { %6028 = vst [vmem:[#allocation1 + $0x7] ss:$9 sm:$0xff] %v15141_v56  ;;  %v6043_v63 = vsel %vm2650_vm9, %v6039_v41, %v5909_v6  ;;  %v7641_v1 = vld [vmem:[%s13249_s5 + $0x20] sm:$0xf]  ;;  %v8102_v41 = vld [vmem:[%s13249_s5 + $0x24] sm:$0xf] }
 0xe4b   :  { %v5849_v20 = vpop.permute.xlu0 %5848  ;;  %6222 = vmatpush.bf16.msrb.mxu3 %v7654_v16 }
 0xe4c   :  { %v6037_v37 = vsel %vm2640_vm4, %v6033_v12, %v5849_v20  ;;  %v15151_v12 = vld [vmem:[#allocation44_spill] sm:$0xff] }
 0xe4f   :  { %v12615_v5 = vpop.f32.mrf.mxu1 }
 0xe51   :  { %v6029_v23 = vld [vmem:[#allocation1] sm:$0xff] }
 0xe53   :  { %7632 = vmatmul.msk.bf16.gmra.mxu1 %vm2635_vm2, %v6029_v23  ;;  %v5880_v61 = vpop.permute.xlu0 %5879  ;;  %v6092_v23 = vpop.f32.mrf.mxu2 }
 0xe54   :  { %v6041_v3 = vsel %vm2645_vm5, %v6037_v37, %v5880_v61  ;;  %v15145_v61 = vld [vmem:[#allocation159_spill] sm:$0xff]  ;;  %v6093_v46 = vadd.f32 %v6092_v23, %v6073_v59 }
 0xe57   :  { %v12633_v56 = vpop.f32.mrf.mxu1 }
 0xe5b   :  { %v5940_v32 = vpop.permute.xlu0 %5939  ;;  %v6094_v37 = vpop.f32.mrf.mxu2 }
 0xe5c   :  { %v6047_v9 = vsel %vm2655_vm10, %v6043_v63, %v5940_v32  ;;  %v6095_v17 = vadd.f32 %v6094_v37, %v6075_v11 }
 0xe63   :  { %v5911_v14 = vpop.permute.xlu0 %5910 }
 0xe64   :  { %v6045_v29 = vsel %vm2650_vm9, %v6041_v3, %v5911_v14  ;;  %v15148_v14 = vld [vmem:[#allocation112_spill] sm:$0xff] }
 0xe6b   :  { %v5942_v52 = vpop.permute.xlu0 %5941 }
 0xe6c   :  { %v6049_v33 = vsel %vm2655_vm10, %v6045_v29, %v5942_v52 }
 0xe79   :  { %v5971_v2 = vpop.permute.xlu1 %5970 }
 0xe7a   :  { %v6051_v35 = vsel %vm2660_vm11, %v6047_v9, %v5971_v2  ;;  %v8103_v2 = vld [vmem:[%s13249_s5 + $0x24] sm:$0xf0] }
 0xe7b   :  { %v7642_v9 = vor.u32 %v8103_v2, %v7641_v1  ;;  %v7889_v1 = vld [vmem:[%s13249_s5 + $0x170] sm:$0xf] }
 0xe7d   :  { %6210 = vmatpush.bf16.msrb.mxu2 %v7642_v9  ;;  %v8145_v9 = vld [vmem:[%s13249_s5 + $0x174] sm:$0xf0] }
 0xe7f   :  { %v6002_v25 = vpop.permute.xlu2 %6001 }
 0xe80   :  { %v6055_v15 = vsel %vm2665_vm12, %v6051_v35, %v6002_v25  ;;  %v7643_v35 = vld [vmem:[%s13249_s5 + $0x28] sm:$0xf0]  ;;  %v15147_v25 = vld [vmem:[#allocation40_spill] sm:$0xff] }
 0xe81   :  { %6110 = vmatmul.bf16.vlgmr.msra.gmra.mxu3 %v6055_v15  ;;  %v3534_v30 = vpop.permute.xlu1 %3533  ;;  %v3286_v15 = vadd.f32 %v15148_v14, %v15147_v25  ;;  %v8143_v25 = vld [vmem:[%s13249_s5 + $0x164] sm:$0xf0] }
 0xe82   :  { %v3804_v53 = vsel %vm2665_vm12, %v15143_v49, %v3534_v30  ;;  %v15149_v49 = vld [vmem:[#allocation160_spill] sm:$0xff] }
 0xe83   :  { %4148 = vmatmul.bf16.vlgmr.msrb.gmra.mxu0 %v3804_v53 }
 0xe87   :  { %v5702_v19 = vpop.permute.xlu2 %5701 }
 0xe88   :  { %v5761_v31 = vsel %vm2665_vm12, %v12466_v54, %v5702_v19  ;;  %v12599_v54 = vpop.f32.mrf.mxu3  ;;  %v7646_v19 = vor.u32 %v8102_v41, %v7643_v35  ;;  %v7881_v35 = vld [vmem:[%s13249_s5 + $0x160] sm:$0xf] }
 0xe89   :  { %6096 = vmatmul.bf16.gmra.mxu2 %v5761_v31  ;;  %v5973_v38 = vpop.permute.xlu1 %5972  ;;  %v3250_v31 = vadd.f32 %v15151_v12, %v15150_v24  ;;  %v8098_v12 = vld [vmem:[%s13249_s5 + $0x4] sm:$0xf]  ;;  %v7882_v37 = vor.u32 %v8143_v25, %v7881_v35 }
 0xe8a   :  { %v6053_v47 = vsel %vm2660_vm11, %v6049_v33, %v5973_v38  ;;  %6223 = vmatpush.bf16.msrb.mxu3 %v7646_v19  ;;  %v15152_v38 = vld [vmem:[#allocation35_spill] sm:$0xff]  ;;  %v8099_v19 = vld [vmem:[%s13249_s5 + $0x4] sm:$0xf0] }
 0xe8b   :  { %v3269_v29 = vadd.f32 %v15152_v38, %v3250_v31 }
 0xe8f   :  { %v6004_v4 = vpop.permute.xlu2 %6003 }
 0xe90   :  { %v6058_v44 = vsel %vm2665_vm12, %v6053_v47, %v6004_v4  ;;  %v5148_v40 = vpop.f32.mrf.mxu3 }
 0xe91   :  { %6115 = vmatmul.bf16.gmra.mxu3 %v6058_v44  ;;  %v5168_v26 = vadd.f32 %v5167_v55, %v5148_v40  ;;  %v12660_v55 = vld [vmem:[%s13248_s4] ss:$0 sm:$0xff]  ;;  %v15153_v40 = vld [vmem:[#allocation16_spill] sm:$0xff] }
 0xe93   :  { %v5187_v32 = vadd.f32 %v5186_v13, %v5168_v26  ;;  %v15155_v26 = vld [vmem:[#allocation137_spill] sm:$0xff] }
 0xe98   :  { %v5150_v43 = vpop.f32.mrf.mxu3 }
 0xe99   :  { %v5170_v47 = vadd.f32 %v5169_v60, %v5150_v43  ;;  %v8109_v60 = vld [vmem:[%s13249_s5 + $0x54] sm:$0xf0]  ;;  %v7681_v43 = vld [vmem:[%s13249_s5 + $0x40] sm:$0xf] }
 0xe9a   :  { %v7690_v23 = vor.u32 %v8109_v60, %v7689_v21 }
 0xe9b   :  { %v5189_v27 = vadd.f32 %v5188_v10, %v5170_v47  ;;  %v8107_v10 = vld [vmem:[%s13249_s5 + $0x44] sm:$0xf0]  ;;  %v7713_v47 = vld [vmem:[%s13249_s5 + $0x78] sm:$0xf0] }
 0xe9c   :  { %6319 = vmatpush.bf16.msra.mxu1 %v7690_v23 }
 0xea0   :  { %v12603_v36 = vpop.f32.mrf.mxu3 }
 0xea8   :  { %v12609_v58 = vpop.f32.mrf.mxu3 }
 0xeb0   :  { %v5205_v34 = vpop.f32.mrf.mxu3 }
 0xeb1   :  { %v5206_v52 = vadd.f32 %v5205_v34, %v5187_v32  ;;  %v15156_v32 = vld [vmem:[#allocation19_spill] sm:$0xff] }
 0xeb8   :  { %v12611_v0 = vpop.f32.mrf.mxu3 }
 0xeb9   :  { %v5208_v14 = vadd.f32 %v12611_v0, %v5189_v27  ;;  %v7661_v0 = vld [vmem:[%s13249_s5 + $0x8] sm:$0xf0] }
 0xeba   :  { %v15159_v27 = vld [vmem:[#allocation145_spill] sm:$0xff] }
 0xec0   :  { %v12617_v39 = vpop.f32.mrf.mxu3  ;;  %v6130_v18 = vpop.f32.mrf.mxu1 }
 0xec8   :  { %v12635_v7 = vpop.f32.mrf.mxu3  ;;  %v6132_v59 = vpop.f32.mrf.mxu1 }
 0xf00   :  { %v4149_v20 = vpop.f32.mrf.mxu0 }
 0xf01   :  { %v4169_v6 = vadd.f32 %v15145_v61, %v4149_v20  ;;  %v8101_v20 = vld [vmem:[%s13249_s5 + $0x14] sm:$0xf0]  ;;  %v3288_v61 = vadd.f32 %v15155_v26, %v3269_v29 }
 0xf03   :  { %v4188_v62 = vadd.f32 %v15146_v8, %v4169_v6  ;;  %v5173_v6 = vadd.f32 %v12601_v50, %v12603_v36  ;;  %v8100_v8 = vld [vmem:[%s13249_s5 + $0x14] sm:$0xf]  ;;  %v7682_v50 = vor.u32 %v8107_v10, %v7681_v43  ;;  %v15161_v10 = vld [vmem:[#allocation193_spill] sm:$0xff] }
 0xf04   :  { %v6111_v63 = vpop.f32.mrf.mxu3 }
 0xf05   :  { %v6112_v30 = vadd.f32 %v6111_v63, %v6093_v46  ;;  %v4207_v53 = vadd.f32 %v15149_v49, %v4188_v62  ;;  %v7669_v62 = vld [vmem:[%s13249_s5 + $0x18] sm:$0xf0]  ;;  %v7890_v49 = vor.u32 %v8145_v9, %v7889_v1  ;;  %6320 = vmatpush.bf16.msra.mxu1 %v7682_v50  ;;  %v8153_v1 = vld [vmem:[%s13249_s5 + $0x1b4] sm:$0xf0] }
 0xf06   :  { %v7672_v63 = vor.u32 %v8100_v8, %v7669_v62  ;;  %v7933_v62 = vld [vmem:[%s13249_s5 + $0x1b0] sm:$0xf] }
 0xf07   :  { %v4216_v3 = vmax.f32 %v3286_v15, %v4207_v53  ;;  %v6131_v4 = vadd.f32 %v6130_v18, %v6112_v30  ;;  %v7667_v18 = vld [vmem:[%s13249_s5 + $0x10] sm:$0xf]  ;;  %v5192_v15 = vadd.f32 %v12613_v48, %v5173_v6  ;;  %v7659_v53 = vld [vmem:[%s13249_s5] sm:$0xf]  ;;  %6865 = vmatpush.bf16.msra.mxu0 %v7890_v49  ;;  %v7934_v50 = vor.u32 %v8153_v1, %v7933_v62 }
 0xf08   :  { %v4151_v33 = vpop.f32.mrf.mxu0  ;;  %v7668_v36 = vor.u32 %v8101_v20, %v7667_v18  ;;  %6274 = vmatpush.bf16.msra.mxu3 %v7672_v63  ;;  %v7660_v24 = vor.u32 %v8099_v19, %v7659_v53  ;;  %v15162_v18 = vld [vmem:[#allocation194_spill] sm:$0xff] }
 0xf09   :  { %v5215_v44 = vmax.f32 %v4216_v3, %v5206_v52  ;;  %v4171_v13 = vadd.f32 %v15153_v40, %v4151_v33  ;;  %v7664_v52 = vor.u32 %v8098_v12, %v7661_v0  ;;  %v15157_v3 = vld [vmem:[#allocation157_spill] sm:$0xff]  ;;  %v8112_v33 = vld [vmem:[%s13249_s5 + $0x74] sm:$0xf]  ;;  %v15163_v20 = vmax.f32 %v15161_v10, %v15162_v18 }
 0xf0a   :  { %6261 = vmatpush.bf16.msra.mxu2 %v7668_v36  ;;  %v4176_v38 = vadd.f32 %v12599_v54, %v15157_v3  ;;  %v7705_v54 = vld [vmem:[%s13249_s5 + $0x68] sm:$0xf0]  ;;  %v8151_v36 = vld [vmem:[%s13249_s5 + $0x1a4] sm:$0xf0]  ;;  %v8108_v19 = vld [vmem:[%s13249_s5 + $0x54] sm:$0xf] }
 0xf0b   :  { %v6140_v28 = vmax.f32 %v5215_v44, %v6131_v4  ;;  %v4190_v34 = vadd.f32 %v15154_v42, %v4171_v13  ;;  %v8110_v4 = vld [vmem:[%s13249_s5 + $0x64] sm:$0xf]  ;;  %v5211_v44 = vadd.f32 %v12617_v39, %v5192_v15  ;;  %v7716_v13 = vor.u32 %v8112_v33, %v7713_v47  ;;  %6866 = vmatpush.bf16.msra.mxu0 %v7882_v37  ;;  %v7711_v0 = vld [vmem:[%s13249_s5 + $0x70] sm:$0xf]  ;;  %v8121_v33 = vld [vmem:[%s13249_s5 + $0xb4] sm:$0xf0] }
 0xf0c   :  { %v6113_v16 = vpop.f32.mrf.mxu3  ;;  %v6097_v2 = vpop.f32.mrf.mxu2  ;;  %v4195_v42 = vadd.f32 %v12597_v57, %v4176_v38  ;;  %6275 = vmatpush.bf16.msra.mxu3 %v7664_v52  ;;  %v5175_v39 = vadd.f32 %v12607_v51, %v12609_v58  ;;  %v15164_v58 = vld [vmem:[#allocation158_spill] sm:$0xff] }
 0xf0d   :  { %v6148_v11 = vadd.f32 %v12660_v55, %v6140_v28  ;;  %v4209_v46 = vadd.f32 %v15156_v32, %v4190_v34  ;;  %v6114_v41 = vadd.f32 %v6113_v16, %v6095_v17  ;;  %v6098_v40 = vadd.f32 %v6097_v2, %v12615_v5  ;;  %v6135_v34 = vpop.f32.mrf.mxu1  ;;  %6392 = vmatpush.bf16.msrb.mxu1 %v7716_v13  ;;  %v15160_v17 = vld [vmem:[#allocation144_spill] sm:$0xff] }
 0xf0e   :  { %6262 = vmatpush.bf16.msra.mxu2 %v7660_v24  ;;  %v7708_v5 = vor.u32 %v8110_v4, %v7705_v54  ;;  %v5217_v26 = vmax.f32 %v15163_v20, %v5211_v44  ;;  %v5194_v57 = vadd.f32 %v12619_v45, %v5175_v39  ;;  %v4214_v32 = vadd.f32 %v12605_v22, %v4195_v42  ;;  %v7925_v45 = vld [vmem:[%s13249_s5 + $0x1a0] sm:$0xf]  ;;  %v7691_v24 = vld [vmem:[%s13249_s5 + $0x58] sm:$0xf0]  ;;  %v8106_v54 = vld [vmem:[%s13249_s5 + $0x44] sm:$0xf] }
 0xf0f   :  { %v4217_v30 = vmax.f32 %v3288_v61, %v4209_v46  ;;  %v6152_v48 = vmax.f32 %v6148_v11, 0.0  ;;  %v6133_v29 = vadd.f32 %v6132_v59, %v6114_v41  ;;  %v15158_v59 = vld [vmem:[#allocation217_spill] sm:$0xff]  ;;  %6985 = vmatpush.bf16.msrb.mxu0 %v7934_v50  ;;  %v7926_v15 = vor.u32 %v8151_v36, %v7925_v45  ;;  %v7703_v39 = vld [vmem:[%s13249_s5 + $0x60] sm:$0xf]  ;;  %v8161_v36 = vld [vmem:[%s13249_s5 + $0x1f4] sm:$0xf0] }
 0xf10   :  { %v3255_v28 = vadd.f32 %v15159_v27, %v15158_v59  ;;  %v5213_v2 = vadd.f32 %v12635_v7, %v5194_v57  ;;  %v7694_v38 = vor.u32 %v8108_v19, %v7691_v24  ;;  %v7683_v59 = vld [vmem:[%s13249_s5 + $0x48] sm:$0xf0]  ;;  %v7977_v50 = vld [vmem:[%s13249_s5 + $0x1f0] sm:$0xf]  ;;  %v7969_v19 = vld [vmem:[%s13249_s5 + $0x1e0] sm:$0xf] }
 0xf11   :  { %v5216_v31 = vmax.f32 %v4217_v30, %v5208_v14  ;;  %v6156_v23 = vpack.c.bf16 %v6152_v48, %v6152_v48  ;;  %6393 = vmatpush.bf16.msrb.mxu1 %v7708_v5  ;;  %v8113_v48 = vld [vmem:[%s13249_s5 + $0x74] sm:$0xf0]  ;;  %v8159_v24 = vld [vmem:[%s13249_s5 + $0x1e4] sm:$0xf0] }
 0xf12   :  { %v3274_v16 = vadd.f32 %v15160_v17, %v3255_v28  ;;  %v7712_v44 = vor.u32 %v8113_v48, %v7711_v0  ;;  %v8111_v17 = vld [vmem:[%s13249_s5 + $0x64] sm:$0xf0] }
 0xf13   :  { %v6141_v21 = vmax.f32 %v5216_v31, %v6133_v29  ;;  %v6171_v8 = vunpack.c.l.b16 %v6156_v23  ;;  %6986 = vmatpush.bf16.msrb.mxu0 %v7926_v15  ;;  %v7755_v29 = vld [vmem:[%s13249_s5 + $0xb0] sm:$0xf] }
 0xf14   :  { %v6116_v60 = vpop.f32.mrf.mxu3  ;;  %v6099_v6 = vpop.f32.mrf.mxu2  ;;  %v3293_v46 = vadd.f32 %v15164_v58, %v3274_v16  ;;  %v7756_v27 = vor.u32 %v8121_v33, %v7755_v29 }
 0xf15   :  { %v6117_v43 = vadd.f32 %v6116_v60, %v6098_v40  ;;  %v6149_v11 = vadd.f32 %v12660_v55, %v6141_v21  ;;  %v6100_v22 = vadd.f32 %v6099_v6, %v12633_v56  ;;  %v6137_v30 = vpop.f32.mrf.mxu1  ;;  %v12763_v49 = vunpack.i.l.s16 %v6171_v8 }
 0xf16   :  { %v4219_v35 = vmax.f32 %v3293_v46, %v4214_v32  ;;  %v8119_v32 = vld [vmem:[%s13249_s5 + $0xa4] sm:$0xf0]  ;;  %v7686_v46 = vor.u32 %v8106_v54, %v7683_v59  ;;  %v7704_v8 = vor.u32 %v8111_v17, %v7703_v39  ;;  %v7725_v54 = vld [vmem:[%s13249_s5 + $0x80] sm:$0xf]  ;;  %v7771_v39 = vld [vmem:[%s13249_s5 + $0xc8] sm:$0xf0] }
 0xf17   :  { %v6136_v61 = vadd.f32 %v6135_v34, %v6117_v43  ;;  %v6153_v63 = vmax.f32 %v6149_v11, 0.0  ;;  %v6177_v52 = vrot.slane %v12763_v49, 1  ;;  %v6286_v3 = vrot.slane %v12763_v49, 2  ;;  %v7747_v11 = vld [vmem:[%s13249_s5 + $0xa0] sm:$0xf] }
 0xf18   :  { %v5218_v7 = vmax.f32 %v4219_v35, %v5213_v2  ;;  %v6346_v40 = vrot.slane %v12763_v49, 3  ;;  %v6466_v28 = vrot.slane %v12763_v49, 5  ;;  %v6406_v42 = vrot.slane %v12763_v49, 4 }
 0xf19   :  { %v6142_v51 = vmax.f32 %v5217_v26, %v6136_v61  ;;  %v6157_v12 = vpack.c.bf16 %v6153_v63, %v6153_v63 }
 0xf1b   :  { %v6150_v41 = vadd.f32 %v12660_v55, %v6142_v51  ;;  %v6648_v13 = vunpack.c.l.b16 %v6157_v12  ;;  %v6526_v51 = vrot.slane %v12763_v49, 6  ;;  %v7733_v12 = vld [vmem:[%s13249_s5 + $0x90] sm:$0xf] }
 0xf1c   :  { %v6118_v9 = vpop.f32.mrf.mxu3 }
 0xf1d   :  { %v6154_v25 = vmax.f32 %v6150_v41, 0.0  ;;  %v6119_v14 = vadd.f32 %v6118_v9, %v6100_v22  ;;  %v12805_v57 = vunpack.i.l.s16 %v6648_v13  ;;  %v7748_v22 = vor.u32 %v8119_v32, %v7747_v11  ;;  %v8125_v11 = vld [vmem:[%s13249_s5 + $0xd4] sm:$0xf0]  ;;  %v7823_v32 = vld [vmem:[%s13249_s5 + $0x110] sm:$0xf] }
 0xf1e   :  { %v6586_v41 = vrot.slane %v12763_v49, 7 }
 0xf1f   :  { %v6158_v53 = vpack.c.bf16 %v6154_v25, %v6154_v25  ;;  %v6138_v56 = vadd.f32 %v6137_v30, %v6119_v14  ;;  %v6713_v9 = vrot.slane %v12805_v57, 1  ;;  %v6832_v35 = vrot.slane %v12805_v57, 3 }
 0xf20   :  { %v6892_v48 = vrot.slane %v12805_v57, 4  ;;  %v7012_v33 = vrot.slane %v12805_v57, 6 }
 0xf21   :  { %v6172_v31 = vunpack.c.l.b16 %v6158_v53  ;;  %v6143_v37 = vmax.f32 %v5218_v7, %v6138_v56  ;;  %v7978_v7 = vor.u32 %v8161_v36, %v7977_v50  ;;  %v6772_v53 = vrot.slane %v12805_v57, 2  ;;  %v8123_v50 = vld [vmem:[%s13249_s5 + $0xc4] sm:$0xf0] }
 0xf23   :  { %v7638_v47 = vunpack.i.l.s16 %v6172_v31  ;;  %v6151_v4 = vadd.f32 %v12660_v55, %v6143_v37  ;;  %v8117_v37 = vld [vmem:[%s13249_s5 + $0x94] sm:$0xf0] }
 0xf25   :  { %v6155_v34 = vmax.f32 %v6151_v4, 0.0  ;;  %v6178_v55 = vsel %vm918_vm3, %v7638_v47, %v6177_v52  ;;  %v6287_v21 = vrot.slane %v7638_v47, 1  ;;  %v6229_v60 = vrot.slane %v7638_v47, 7  ;;  %v8116_v52 = vld [vmem:[%s13249_s5 + $0x94] sm:$0xf] }
 0xf26   :  { %v6179_v43 = vpack.c.b16 %v6178_v55, %v6178_v55  ;;  %v6347_v5 = vrot.slane %v7638_v47, 2  ;;  %v6467_v16 = vrot.slane %v7638_v47, 4  ;;  %v6407_v23 = vrot.slane %v7638_v47, 3  ;;  %v8124_v4 = vld [vmem:[%s13249_s5 + $0xd4] sm:$0xf] }
 0xf27   :  { %v6159_v10 = vpack.c.bf16 %v6155_v34, %v6155_v34  ;;  %v6288_v18 = vsel %vm918_vm3, %v6287_v21, %v6286_v3  ;;  %v6230_v20 = vsel %vm918_vm3, %v6229_v60, %v12763_v49  ;;  %v6527_v26 = vrot.slane %v7638_v47, 5  ;;  %v7735_v3 = vld [vmem:[%s13249_s5 + $0x98] sm:$0xf0]  ;;  %v7727_v34 = vld [vmem:[%s13249_s5 + $0x88] sm:$0xf0] }
 0xf28   :  { %7655 = vmatmul.msk.bf16.vlgmr.msrb.gmra.mxu2 %vm2640_vm4, %v6179_v43  ;;  %7656 = vmatmul.msk.bf16.vlgmr.msrb.gmra.mxu3 %vm2640_vm4, %v6179_v43  ;;  %v12809_v61 = vpack.c.b16 %v6288_v18, %v6288_v18  ;;  %v6348_v6 = vsel %vm918_vm3, %v6347_v5, %v6346_v40  ;;  %v12820_v62 = vsel %vm918_vm3, %v6467_v16, %v6466_v28  ;;  %v6587_v63 = vrot.slane %v7638_v47, 6  ;;  %v8115_v28 = vld [vmem:[%s13249_s5 + $0x84] sm:$0xf0]  ;;  %v8122_v60 = vld [vmem:[%s13249_s5 + $0xc4] sm:$0xf] }
 0xf29   :  { %v6649_v58 = vunpack.c.l.b16 %v6159_v10  ;;  %6332 = vmatpush.bf16.msrb.mxu2 %v7694_v38  ;;  %6379 = vmatpush.bf16.msrb.mxu3 %v7712_v44  ;;  %v12825_v1 = vsel %vm918_vm3, %v6407_v23, %v6406_v42  ;;  %v12828_v45 = vsel %vm918_vm3, %v6527_v26, %v6526_v51  ;;  %v7970_v38 = vor.u32 %v8159_v24, %v7969_v19  ;;  %v7779_v44 = vld [vmem:[%s13249_s5 + $0xd8] sm:$0xf0]  ;;  %v8114_v42 = vld [vmem:[%s13249_s5 + $0x84] sm:$0xf]  ;;  %v8133_v51 = vld [vmem:[%s13249_s5 + $0x114] sm:$0xf0] }
 0xf2a   :  { %7695 = vmatmul.msk.bf16.vlgmr.msra.gmra.mxu1 %vm2640_vm4, %v12809_v61  ;;  %v12843_v14 = vsel %vm918_vm3, %v6587_v63, %v6586_v41  ;;  %v7734_v40 = vor.u32 %v8117_v37, %v7733_v12  ;;  %v7738_v13 = vor.u32 %v8116_v52, %v7735_v3  ;;  %v7782_v55 = vor.u32 %v8124_v4, %v7779_v44  ;;  %v7757_v26 = vld [vmem:[%s13249_s5 + $0xb8] sm:$0xf0]  ;;  %v7769_v41 = vld [vmem:[%s13249_s5 + $0xc0] sm:$0xf]  ;;  %v7799_v19 = vld [vmem:[%s13249_s5 + $0xf0] sm:$0xf] }
 0xf2b   :  { %v12830_v2 = vunpack.i.l.s16 %v6649_v58  ;;  %6499 = vmatpush.bf16.msra.mxu1 %v7756_v27  ;;  %v6231_v27 = vpack.c.b16 %v6230_v20, %v6230_v20  ;;  %v6349_v21 = vpack.c.b16 %v6348_v6, %v6348_v6  ;;  %v7726_v5 = vor.u32 %v8115_v28, %v7725_v54  ;;  %v8120_v20 = vld [vmem:[%s13249_s5 + $0xb4] sm:$0xf]  ;;  %v7777_v6 = vld [vmem:[%s13249_s5 + $0xd0] sm:$0xf]  ;;  %v8129_v24 = vld [vmem:[%s13249_s5 + $0xf4] sm:$0xf0] }
 0xf2c   :  { %v7730_v17 = vor.u32 %v8114_v42, %v7727_v34  ;;  %v6952_v16 = vrot.slane %v12805_v57, 5  ;;  %v7774_v23 = vor.u32 %v8122_v60, %v7771_v39  ;;  %v7760_v58 = vor.u32 %v8120_v20, %v7757_v26  ;;  %v8128_v12 = vld [vmem:[%s13249_s5 + $0xf4] sm:$0xf]  ;;  %v7847_v37 = vld [vmem:[%s13249_s5 + $0x138] sm:$0xf0] }
 0xf2d   :  { %v6833_v25 = vrot.slane %v12830_v2, 2  ;;  %6333 = vmatpush.bf16.msrb.mxu2 %v7686_v46  ;;  %6380 = vmatpush.bf16.msrb.mxu3 %v7704_v8  ;;  %v12847_v15 = vsel %vm918_vm3, %v12830_v2, %v6713_v9  ;;  %v6773_v30 = vrot.slane %v12830_v2, 1  ;;  %v6893_v31 = vrot.slane %v12830_v2, 3  ;;  %v8118_v8 = vld [vmem:[%s13249_s5 + $0xa4] sm:$0xf] }
 0xf2e   :  { %v7013_v47 = vrot.slane %v12830_v2, 5  ;;  %v6953_v43 = vrot.slane %v12830_v2, 4  ;;  %v7778_v46 = vor.u32 %v8125_v11, %v7777_v6  ;;  %v7824_v36 = vor.u32 %v8133_v51, %v7823_v32  ;;  %v7815_v9 = vld [vmem:[%s13249_s5 + $0x100] sm:$0xf]  ;;  %v8126_v4 = vld [vmem:[%s13249_s5 + $0xe4] sm:$0xf] }
 0xf2f   :  { %v6834_v49 = vsel %vm918_vm3, %v6833_v25, %v6832_v35  ;;  %6500 = vmatpush.bf16.msra.mxu1 %v7748_v22  ;;  %v12864_v0 = vsel %vm918_vm3, %v6773_v30, %v6772_v53  ;;  %v12880_v29 = vsel %vm918_vm3, %v6893_v31, %v6892_v48  ;;  %v7749_v22 = vld [vmem:[%s13249_s5 + $0xa8] sm:$0xf0]  ;;  %v6469_v63 = vpack.c.b16 %v12820_v62, %v12820_v62  ;;  %v8131_v35 = vld [vmem:[%s13249_s5 + $0x104] sm:$0xf0]  ;;  %v7801_v48 = vld [vmem:[%s13249_s5 + $0xf8] sm:$0xf0] }
 0xf30   :  { %v12852_v56 = vpack.c.b16 %v6834_v49, %v6834_v49  ;;  %v12894_v59 = vsel %vm918_vm3, %v7013_v47, %v7012_v33  ;;  %v6954_v10 = vsel %vm918_vm3, %v6953_v43, %v6952_v16  ;;  %v7073_v25 = vrot.slane %v12830_v2, 6  ;;  %v8136_v31 = vld [vmem:[%s13249_s5 + $0x134] sm:$0xf]  ;;  %v8127_v47 = vld [vmem:[%s13249_s5 + $0xe4] sm:$0xf0] }
 0xf31   :  { %v12917_v18 = vpack.c.b16 %v6954_v10, %v6954_v10  ;;  %v7752_v30 = vor.u32 %v8118_v8, %v7749_v22  ;;  %v7770_v49 = vor.u32 %v8123_v50, %v7769_v41  ;;  %v7816_v62 = vor.u32 %v8131_v35, %v7815_v9  ;;  %v7793_v44 = vld [vmem:[%s13249_s5 + $0xe8] sm:$0xf0]  ;;  %v8132_v34 = vld [vmem:[%s13249_s5 + $0x114] sm:$0xf]  ;;  %v8137_v60 = vld [vmem:[%s13249_s5 + $0x134] sm:$0xf0] }
 0xf32   :  { %7895 = vmatmul.msk.bf16.vlgmr.msra.gmra.mxu0 %vm2640_vm4, %v12852_v56  ;;  %v7800_v52 = vor.u32 %v8129_v24, %v7799_v19  ;;  %v7804_v3 = vor.u32 %v8128_v12, %v7801_v48  ;;  %v6409_v33 = vpack.c.b16 %v12825_v1, %v12825_v1  ;;  %v6529_v1 = vpack.c.b16 %v12828_v45, %v12828_v45  ;;  %v7839_v54 = vld [vmem:[%s13249_s5 + $0x128] sm:$0xf0]  ;;  %v7891_v39 = vld [vmem:[%s13249_s5 + $0x178] sm:$0xf0]  ;;  %v8130_v16 = vld [vmem:[%s13249_s5 + $0x104] sm:$0xf] }
 0xf33   :  { %7105 = vmatpush.bf16.msra.mxu0 %v7978_v7  ;;  %v7796_v28 = vor.u32 %v8126_v4, %v7793_v44  ;;  %v6654_v45 = vrot.slane %v12830_v2, 7  ;;  %v8144_v2 = vld [vmem:[%s13249_s5 + $0x174] sm:$0xf]  ;;  %v7837_v10 = vld [vmem:[%s13249_s5 + $0x120] sm:$0xf] }
 0xf34   :  { %v8135_v20 = vld [vmem:[%s13249_s5 + $0x124] sm:$0xf0]  ;;  %v7894_v26 = vor.u32 %v8144_v2, %v7891_v39  ;;  %v8142_v6 = vld [vmem:[%s13249_s5 + $0x164] sm:$0xf]  ;;  %v7883_v11 = vld [vmem:[%s13249_s5 + $0x168] sm:$0xf0] }
 0xf35   :  { %v6655_v43 = vsel %vm918_vm3, %v6654_v45, %v12805_v57  ;;  %v7838_v51 = vor.u32 %v8135_v20, %v7837_v10  ;;  %v8141_v8 = vld [vmem:[%s13249_s5 + $0x154] sm:$0xf0]  ;;  %v8140_v22 = vld [vmem:[%s13249_s5 + $0x154] sm:$0xf]  ;;  %v7869_v41 = vld [vmem:[%s13249_s5 + $0x158] sm:$0xf0]  ;;  %v6895_v10 = vpack.c.b16 %v12880_v29, %v12880_v29 }
 0xf36   :  { %v8152_v50 = vld [vmem:[%s13249_s5 + $0x1b4] sm:$0xf]  ;;  %v7872_v9 = vor.u32 %v8140_v22, %v7869_v41  ;;  %v7859_v35 = vld [vmem:[%s13249_s5 + $0x140] sm:$0xf]  ;;  %v7927_v19 = vld [vmem:[%s13249_s5 + $0x1a8] sm:$0xf0] }
 0xf37   :  { %7106 = vmatpush.bf16.msra.mxu0 %v7970_v38  ;;  %v7791_v38 = vld [vmem:[%s13249_s5 + $0xe0] sm:$0xf]  ;;  %v8147_v44 = vld [vmem:[%s13249_s5 + $0x184] sm:$0xf0] }
 0xf38   :  { %7673 = vmatmul.msk.bf16.vlgmr.msra.gmra.mxu2 %vm2640_vm4, %v6231_v27  ;;  %7674 = vmatmul.msk.bf16.vlgmr.msra.gmra.mxu3 %vm2640_vm4, %v6231_v27  ;;  %v7792_v27 = vor.u32 %v8127_v47, %v7791_v38  ;;  %v7979_v38 = vld [vmem:[%s13249_s5 + $0x1f8] sm:$0xf0]  ;;  %v7903_v4 = vld [vmem:[%s13249_s5 + $0x180] sm:$0xf] }
 0xf39   :  { %6439 = vmatpush.bf16.msra.mxu2 %v7734_v40  ;;  %6452 = vmatpush.bf16.msra.mxu3 %v7738_v13  ;;  %v7850_v40 = vor.u32 %v8136_v31, %v7847_v37  ;;  %v8134_v13 = vld [vmem:[%s13249_s5 + $0x124] sm:$0xf]  ;;  %v8149_v31 = vld [vmem:[%s13249_s5 + $0x194] sm:$0xf0]  ;;  %v8148_v37 = vld [vmem:[%s13249_s5 + $0x194] sm:$0xf] }
 0xf3a   :  { %7718 = vmatmul.msk.bf16.vlgmr.msrb.gmra.mxu1 %vm2640_vm4, %v6349_v21  ;;  %v7842_v42 = vor.u32 %v8134_v13, %v7839_v54  ;;  %v8158_v54 = vld [vmem:[%s13249_s5 + $0x1e4] sm:$0xf]  ;;  %v7947_v39 = vld [vmem:[%s13249_s5 + $0x1c0] sm:$0xf] }
 0xf3b   :  { %6572 = vmatpush.bf16.msrb.mxu1 %v7782_v55  ;;  %v7825_v55 = vld [vmem:[%s13249_s5 + $0x118] sm:$0xf0] }
 0xf3d   :  { %6440 = vmatpush.bf16.msra.mxu2 %v7726_v5  ;;  %6453 = vmatpush.bf16.msra.mxu3 %v7730_v17  ;;  %v7828_v5 = vor.u32 %v8132_v34, %v7825_v55  ;;  %v7955_v34 = vld [vmem:[%s13249_s5 + $0x1d0] sm:$0xf]  ;;  %v8157_v55 = vld [vmem:[%s13249_s5 + $0x1d4] sm:$0xf0] }
 0xf3f   :  { %6573 = vmatpush.bf16.msrb.mxu1 %v7774_v23  ;;  %v7817_v23 = vld [vmem:[%s13249_s5 + $0x108] sm:$0xf0] }
 0xf40   :  { %v7820_v32 = vor.u32 %v8130_v16, %v7817_v23  ;;  %v7949_v16 = vld [vmem:[%s13249_s5 + $0x1c8] sm:$0xf0] }
 0xf42   :  { %7939 = vmatmul.msk.bf16.vlgmr.msrb.gmra.mxu0 %vm2640_vm4, %v12917_v18 }
 0xf48   :  { %7696 = vmatmul.msk.bf16.vlgmr.msrb.gmra.mxu2 %vm2640_vm4, %v12809_v61  ;;  %7717 = vmatmul.msk.bf16.vlgmr.msrb.gmra.mxu3 %vm2640_vm4, %v6349_v21  ;;  %v7072_v61 = vrot.slane %v12805_v57, 7  ;;  %v7845_v21 = vld [vmem:[%s13249_s5 + $0x130] sm:$0xf]  ;;  %v6656_v57 = vpack.c.b16 %v6655_v43, %v6655_v43  ;;  %v6775_v43 = vpack.c.b16 %v12864_v0, %v12864_v0 }
 0xf49   :  { %6512 = vmatpush.bf16.msrb.mxu2 %v7760_v58  ;;  %6559 = vmatpush.bf16.msrb.mxu3 %v7778_v46  ;;  %v7846_v17 = vor.u32 %v8137_v60, %v7845_v21  ;;  %v7886_v58 = vor.u32 %v8142_v6, %v7883_v11  ;;  %v7867_v46 = vld [vmem:[%s13249_s5 + $0x150] sm:$0xf]  ;;  %v8156_v21 = vld [vmem:[%s13249_s5 + $0x1d4] sm:$0xf]  ;;  %v7956_v60 = vor.u32 %v8157_v55, %v7955_v34 }
 0xf4a   :  { %7761 = vmatmul.msk.bf16.vlgmr.msra.gmra.mxu1 %vm2640_vm4, %v6469_v63  ;;  %v7074_v7 = vsel %vm918_vm3, %v7073_v25, %v7072_v61  ;;  %v6589_v25 = vpack.c.b16 %v12843_v14, %v12843_v14  ;;  %v7861_v61 = vld [vmem:[%s13249_s5 + $0x148] sm:$0xf0]  ;;  %v6715_v14 = vpack.c.b16 %v12847_v15, %v12847_v15  ;;  %v7911_v15 = vld [vmem:[%s13249_s5 + $0x190] sm:$0xf]  ;;  %vm7297_vm3 = vcmask 74752  }
 0xf4b   :  { %6686 = vmatpush.bf16.msra.mxu1 %v7824_v36  ;;  %v12966_v53 = vpack.c.b16 %v7074_v7, %v7074_v7  ;;  %v7935_v36 = vld [vmem:[%s13249_s5 + $0x1b8] sm:$0xf0]  ;;  %v8150_v7 = vld [vmem:[%s13249_s5 + $0x1a4] sm:$0xf] }
 0xf4c   :  { %v7930_v48 = vor.u32 %v8150_v7, %v7927_v19 }
 0xf4d   :  { %6513 = vmatpush.bf16.msrb.mxu2 %v7752_v30  ;;  %6560 = vmatpush.bf16.msrb.mxu3 %v7770_v49  ;;  %v8139_v30 = vld [vmem:[%s13249_s5 + $0x144] sm:$0xf0]  ;;  %v8138_v49 = vld [vmem:[%s13249_s5 + $0x144] sm:$0xf] }
 0xf4e   :  { %v7860_v24 = vor.u32 %v8139_v30, %v7859_v35  ;;  %v7864_v12 = vor.u32 %v8138_v49, %v7861_v61 }
 0xf4f   :  { %6687 = vmatpush.bf16.msra.mxu1 %v7816_v62  ;;  %v7938_v62 = vor.u32 %v8152_v50, %v7935_v36 }
 0xf52   :  { %7983 = vmatmul.msk.bf16.vlgmr.msra.gmra.mxu0 %vm2640_vm4, %v12966_v53 }
 0xf58   :  { %7739 = vmatmul.msk.bf16.vlgmr.msra.gmra.mxu2 %vm2640_vm4, %v6409_v33  ;;  %7740 = vmatmul.msk.bf16.vlgmr.msra.gmra.mxu3 %vm2640_vm4, %v6409_v33  ;;  %v7912_v33 = vor.u32 %v8149_v31, %v7911_v15 }
 0xf59   :  { %6619 = vmatpush.bf16.msra.mxu2 %v7800_v52  ;;  %6632 = vmatpush.bf16.msra.mxu3 %v7804_v3  ;;  %v7913_v52 = vld [vmem:[%s13249_s5 + $0x198] sm:$0xf0]  ;;  %v8160_v3 = vld [vmem:[%s13249_s5 + $0x1f4] sm:$0xf] }
 0xf5a   :  { %7784 = vmatmul.msk.bf16.vlgmr.msrb.gmra.mxu1 %vm2640_vm4, %v6529_v1  ;;  %v7916_v47 = vor.u32 %v8148_v37, %v7913_v52  ;;  %v7982_v13 = vor.u32 %v8160_v3, %v7979_v38 }
 0xf5b   :  { %6758 = vmatpush.bf16.msrb.mxu1 %v7850_v40  ;;  %v8146_v40 = vld [vmem:[%s13249_s5 + $0x184] sm:$0xf] }
 0xf5d   :  { %6620 = vmatpush.bf16.msra.mxu2 %v7792_v27  ;;  %6633 = vmatpush.bf16.msra.mxu3 %v7796_v28  ;;  %v7971_v27 = vld [vmem:[%s13249_s5 + $0x1e8] sm:$0xf0]  ;;  %v7904_v28 = vor.u32 %v8147_v44, %v7903_v4 }
 0xf5e   :  { %v7974_v45 = vor.u32 %v8158_v54, %v7971_v27 }
 0xf5f   :  { %6759 = vmatpush.bf16.msrb.mxu1 %v7842_v42 }
 0xf68   :  { %7762 = vmatmul.msk.bf16.vlgmr.msrb.gmra.mxu2 %vm2640_vm4, %v6469_v63  ;;  %7783 = vmatmul.msk.bf16.vlgmr.msrb.gmra.mxu3 %vm2640_vm4, %v6529_v1  ;;  %v7868_v63 = vor.u32 %v8141_v8, %v7867_v46  ;;  %v7905_v1 = vld [vmem:[%s13249_s5 + $0x188] sm:$0xf0] }
 0xf69   :  { %6699 = vmatpush.bf16.msrb.mxu2 %v7828_v5  ;;  %6745 = vmatpush.bf16.msrb.mxu3 %v7846_v17  ;;  %v7908_v42 = vor.u32 %v8146_v40, %v7905_v1  ;;  %v8155_v5 = vld [vmem:[%s13249_s5 + $0x1c4] sm:$0xf0]  ;;  %v8154_v17 = vld [vmem:[%s13249_s5 + $0x1c4] sm:$0xf] }
 0xf6a   :  { %7829 = vmatmul.msk.bf16.vlgmr.msra.gmra.mxu1 %vm2640_vm4, %v6656_v57  ;;  %v7948_v23 = vor.u32 %v8155_v5, %v7947_v39  ;;  %v7952_v0 = vor.u32 %v8154_v17, %v7949_v16  ;;  %v8169_v5 = vld [vmem:[%s13251_s7 + $0x38] sm:$0xff] }
 0xf6b   :  { %6878 = vmatpush.bf16.msra.mxu1 %v7894_v26  ;;  %v8177_v17 = vld [vmem:[%s13251_s7 + $0x78] sm:$0xff] }
 0xf6d   :  { %6700 = vmatpush.bf16.msrb.mxu2 %v7820_v32  ;;  %6746 = vmatpush.bf16.msrb.mxu3 %v7838_v51  ;;  %v7015_v51 = vpack.c.b16 %v12894_v59, %v12894_v59 }
 0xf6f   :  { %6879 = vmatpush.bf16.msra.mxu1 %v7886_v58 }
 0xf78   :  { %7805 = vmatmul.msk.bf16.vlgmr.msra.gmra.mxu2 %vm2640_vm4, %v6589_v25  ;;  %7806 = vmatmul.msk.bf16.vlgmr.msra.gmra.mxu3 %vm2640_vm4, %v6589_v25 }
 0xf79   :  { %6805 = vmatpush.bf16.msra.mxu2 %v7868_v63  ;;  %6818 = vmatpush.bf16.msra.mxu3 %v7872_v9 }
 0xf7a   :  { %7852 = vmatmul.msk.bf16.vlgmr.msrb.gmra.mxu1 %vm2640_vm4, %v6715_v14 }
 0xf7b   :  { %6998 = vmatpush.bf16.msrb.mxu1 %v7938_v62 }
 0xf7d   :  { %6806 = vmatpush.bf16.msra.mxu2 %v7860_v24  ;;  %6819 = vmatpush.bf16.msra.mxu3 %v7864_v12 }
 0xf7f   :  { %6999 = vmatpush.bf16.msrb.mxu1 %v7930_v48 }
 0xf88   :  { %7830 = vmatmul.msk.bf16.vlgmr.msrb.gmra.mxu2 %vm2640_vm4, %v6656_v57  ;;  %7851 = vmatmul.msk.bf16.vlgmr.msrb.gmra.mxu3 %vm2640_vm4, %v6715_v14 }
 0xf89   :  { %6925 = vmatpush.bf16.msrb.mxu2 %v7912_v33  ;;  %6938 = vmatpush.bf16.msrb.mxu3 %v7916_v47 }
 0xf8a   :  { %7896 = vmatmul.msk.bf16.vlgmr.msra.gmra.mxu1 %vm2640_vm4, %v12852_v56  ;;  %v7957_v56 = vld [vmem:[%s13249_s5 + $0x1d8] sm:$0xf0] }
 0xf8b   :  { %7118 = vmatpush.bf16.msra.mxu1 %v7982_v13  ;;  %v7960_v2 = vor.u32 %v8156_v21, %v7957_v56 }
 0xf8d   :  { %6926 = vmatpush.bf16.msrb.mxu2 %v7904_v28  ;;  %6939 = vmatpush.bf16.msrb.mxu3 %v7908_v42 }
 0xf8f   :  { %7119 = vmatpush.bf16.msra.mxu1 %v7974_v45 }
 0xf98   :  { %7873 = vmatmul.msk.bf16.vlgmr.msra.gmra.mxu2 %vm2640_vm4, %v6775_v43  ;;  %7874 = vmatmul.msk.bf16.vlgmr.msra.gmra.mxu3 %vm2640_vm4, %v6775_v43 }
 0xf99   :  { %7045 = vmatpush.bf16.msra.mxu2 %v7956_v60  ;;  %7058 = vmatpush.bf16.msra.mxu3 %v7960_v2 }
 0xf9a   :  { %7940 = vmatmul.msk.bf16.vlgmr.msrb.gmra.mxu1 %vm2640_vm4, %v12917_v18 }
 0xf9d   :  { %7046 = vmatpush.bf16.msra.mxu2 %v7948_v23  ;;  %7059 = vmatpush.bf16.msra.mxu3 %v7952_v0  ;;  %v8168_v0 = vld [vmem:[%s13251_s7 + $0x30] sm:$0xff] }
 0xfa7   :  { %v6322_v20 = vpop.f32.mrf.mxu1 }
 0xfa8   :  { %7917 = vmatmul.msk.bf16.vlgmr.msrb.gmra.mxu2 %vm2640_vm4, %v6895_v10  ;;  %7918 = vmatmul.msk.bf16.vlgmr.msrb.gmra.mxu3 %vm2640_vm4, %v6895_v10  ;;  %v8176_v10 = vld [vmem:[%s13251_s7 + $0x70] sm:$0xff] }
 0xfa9   :  { %7271 = vmatpush.bf16.msrb.mxu2 %v8169_v5  ;;  %7284 = vmatpush.bf16.msrb.mxu3 %v8177_v17 }
 0xfaa   :  { %7984 = vmatmul.msk.bf16.vlgmr.msra.gmra.mxu1 %vm2640_vm4, %v12966_v53 }
 0xfab   :  { %v6212_v26 = vpop.f32.mrf.mxu2  ;;  %v6225_v57 = vpop.f32.mrf.mxu3 }
 0xfad   :  { %7272 = vmatpush.bf16.msrb.mxu2 %v8168_v0  ;;  %7285 = vmatpush.bf16.msrb.mxu3 %v8176_v10 }
 0xfaf   :  { %v6324_v6 = vpop.f32.mrf.mxu1  ;;  %v13174_v11 = vpop.f32.mrf.mxu0 }
 0xfb3   :  { %v6214_v32 = vpop.f32.mrf.mxu2  ;;  %v6227_v18 = vpop.f32.mrf.mxu3 }
 0xfb4   :  { %v8166_v18 = vld [vmem:[%s13251_s7 + $0x20] sm:$0xff] }
 0xfb7   :  { %v6395_v58 = vpop.f32.mrf.mxu1  ;;  %v6870_v29 = vpop.f32.mrf.mxu0 }
 0xfb8   :  { %7961 = vmatmul.msk.bf16.vlgmr.msra.gmra.mxu2 %vm2640_vm4, %v7015_v51  ;;  %7962 = vmatmul.msk.bf16.vlgmr.msra.gmra.mxu3 %vm2640_vm4, %v7015_v51  ;;  %v8174_v51 = vld [vmem:[%s13251_s7 + $0x60] sm:$0xff]  ;;  %v8173_v29 = vld [vmem:[%s13251_s7 + $0x58] sm:$0xff] }
 0xfbb   :  { %v6264_v46 = vpop.f32.mrf.mxu2  ;;  %v6277_v8 = vpop.f32.mrf.mxu3 }
 0xfbc   :  { %v6265_v22 = vadd.f32 %v6264_v46, %v6212_v26  ;;  %v6278_v53 = vadd.f32 %v6277_v8, %v6225_v57  ;;  %v8167_v26 = vld [vmem:[%s13251_s7 + $0x28] sm:$0xff] }
 0xfbd   :  { %v8175_v57 = vld [vmem:[%s13251_s7 + $0x68] sm:$0xff]  ;;  %7273 = vmatpush.bf16.msrb.mxu2 %v8167_v26 }
 0xfbe   :  { %v6339_v41 = vadd.f32 %v6322_v20, %v6265_v22  ;;  %7286 = vmatpush.bf16.msrb.mxu3 %v8175_v57 }
 0xfbf   :  { %v6397_v50 = vpop.f32.mrf.mxu1  ;;  %v13180_v36 = vpop.f32.mrf.mxu0 }
 0xfc1   :  { %7274 = vmatpush.bf16.msrb.mxu2 %v8166_v18 }
 0xfc2   :  { %7287 = vmatpush.bf16.msrb.mxu3 %v8174_v51 }
 0xfc3   :  { %v6266_v63 = vpop.f32.mrf.mxu2  ;;  %v6279_v9 = vpop.f32.mrf.mxu3 }
 0xfc4   :  { %v8164_v63 = vld [vmem:[%s13251_s7 + $0x10] sm:$0xff] }
 0xfc5   :  { %v8172_v9 = vld [vmem:[%s13251_s7 + $0x50] sm:$0xff] }
 0xfc6   :  { %7288 = vmatpush.bf16.msrb.mxu3 %v8173_v29 }
 0xfc7   :  { %v6502_v35 = vpop.f32.mrf.mxu1  ;;  %v6990_v25 = vpop.f32.mrf.mxu0 }
 0xfc8   :  { %v8171_v25 = vld [vmem:[%s13251_s7 + $0x48] sm:$0xff] }
 0xfca   :  { %7289 = vmatpush.bf16.msrb.mxu3 %v8172_v9 }
 0xfcb   :  { %v6335_v30 = vpop.f32.mrf.mxu2  ;;  %v6382_v59 = vpop.f32.mrf.mxu3 }
 0xfcc   :  { %v6340_v49 = vadd.f32 %v6335_v30, %v6278_v53  ;;  %v6399_v61 = vadd.f32 %v6382_v59, %v6339_v41 }
 0xfce   :  { %v6400_v62 = vadd.f32 %v6395_v58, %v6340_v49  ;;  %v8165_v58 = vld [vmem:[%s13251_s7 + $0x18] sm:$0xff]  ;;  %7290 = vmatpush.bf16.msrb.mxu3 %v8171_v25 }
 0xfcf   :  { %v6504_v14 = vpop.f32.mrf.mxu1  ;;  %v13182_v7 = vpop.f32.mrf.mxu0  ;;  %7275 = vmatpush.bf16.msrb.mxu2 %v8165_v58 }
 0xfd3   :  { %v6337_v19 = vpop.f32.mrf.mxu2  ;;  %v6384_v24 = vpop.f32.mrf.mxu3  ;;  %7276 = vmatpush.bf16.msrb.mxu2 %v8164_v63 }
 0xfd7   :  { %v6575_v12 = vpop.f32.mrf.mxu1  ;;  %v7110_v48 = vpop.f32.mrf.mxu0 }
 0xfdb   :  { %v6442_v15 = vpop.f32.mrf.mxu2  ;;  %v6455_v31 = vpop.f32.mrf.mxu3 }
 0xfdc   :  { %v6459_v37 = vadd.f32 %v6442_v15, %v6399_v61  ;;  %v6460_v52 = vadd.f32 %v6455_v31, %v6400_v62  ;;  %v8162_v61 = vld [vmem:[%s13251_s7] sm:$0xff] }
 0xfdd   :  { %v8170_v62 = vld [vmem:[%s13251_s7 + $0x40] sm:$0xff] }
 0xfde   :  { %v6519_v3 = vadd.f32 %v6502_v35, %v6459_v37  ;;  %v8163_v35 = vld [vmem:[%s13251_s7 + $0x8] sm:$0xff]  ;;  %7291 = vmatpush.bf16.msrb.mxu3 %v8170_v62 }
 0xfdf   :  { %v6577_v38 = vpop.f32.mrf.mxu1  ;;  %7277 = vmatpush.bf16.msrb.mxu2 %v8163_v35 }
 0xfe3   :  { %v6444_v33 = vpop.f32.mrf.mxu2  ;;  %v6457_v47 = vpop.f32.mrf.mxu3  ;;  %7278 = vmatpush.bf16.msrb.mxu2 %v8162_v61 }
 0xfe7   :  { %v6689_v4 = vpop.f32.mrf.mxu1 }
 0xfeb   :  { %v6515_v44 = vpop.f32.mrf.mxu2  ;;  %v6562_v40 = vpop.f32.mrf.mxu3 }
 0xfec   :  { %v6520_v1 = vadd.f32 %v6515_v44, %v6460_v52  ;;  %v6579_v13 = vadd.f32 %v6562_v40, %v6519_v3 }
 0xfee   :  { %v6580_v54 = vadd.f32 %v6575_v12, %v6520_v1 }
 0xfef   :  { %v6691_v27 = vpop.f32.mrf.mxu1 }
 0xff3   :  { %v6517_v28 = vpop.f32.mrf.mxu2  ;;  %v6564_v42 = vpop.f32.mrf.mxu3 }
 0xff7   :  { %v6761_v45 = vpop.f32.mrf.mxu1 }
 0xffb   :  { %v6622_v34 = vpop.f32.mrf.mxu2  ;;  %v6635_v55 = vpop.f32.mrf.mxu3 }
 0xffc   :  { %v6639_v21 = vadd.f32 %v6622_v34, %v6579_v13  ;;  %v6640_v59 = vadd.f32 %v6635_v55, %v6580_v54 }
 0xffe   :  { %v6706_v56 = vadd.f32 %v6689_v4, %v6639_v21  ;;  %v7127_v4 = vld [vmem:[%s13250_s6] sm:$0x3] }
 0xfff   :  { %v6763_v60 = vpop.f32.mrf.mxu1  ;;  %v7129_v27 = vperm.slane %v7127_v4, 0  ;;  %v7130_v42 = vperm.slane %v7127_v4, 1 }
0x1003   :  { %v6624_v2 = vpop.f32.mrf.mxu2  ;;  %v6637_v39 = vpop.f32.mrf.mxu3 }
0x1007   :  { %v6881_v43 = vpop.f32.mrf.mxu1 }
0x100b   :  { %v6702_v16 = vpop.f32.mrf.mxu2  ;;  %v6748_v23 = vpop.f32.mrf.mxu3 }
0x100c   :  { %v6707_v49 = vadd.f32 %v6702_v16, %v6640_v59  ;;  %v6765_v24 = vadd.f32 %v6748_v23, %v6706_v56 }
0x100e   :  { %v6766_v12 = vadd.f32 %v6761_v45, %v6707_v49 }
0x100f   :  { %v6883_v20 = vpop.f32.mrf.mxu1 }
0x1013   :  { %v6704_v6 = vpop.f32.mrf.mxu2  ;;  %v6750_v32 = vpop.f32.mrf.mxu3 }
0x1017   :  { %v7001_v46 = vpop.f32.mrf.mxu1 }
0x101b   :  { %v6808_v8 = vpop.f32.mrf.mxu2  ;;  %v6821_v22 = vpop.f32.mrf.mxu3 }
0x101c   :  { %v6825_v15 = vadd.f32 %v6808_v8, %v6765_v24  ;;  %v6826_v31 = vadd.f32 %v6821_v22, %v6766_v12 }
0x101e   :  { %v6885_v3 = vadd.f32 %v13174_v11, %v6825_v15  ;;  %v6886_v38 = vadd.f32 %v6881_v43, %v6826_v31 }
0x101f   :  { %v7003_v53 = vpop.f32.mrf.mxu1 }
0x1023   :  { %v6810_v41 = vpop.f32.mrf.mxu2  ;;  %v6823_v50 = vpop.f32.mrf.mxu3 }
0x1027   :  { %v7121_v30 = vpop.f32.mrf.mxu1 }
0x102b   :  { %v6928_v14 = vpop.f32.mrf.mxu2  ;;  %v6941_v19 = vpop.f32.mrf.mxu3 }
0x102c   :  { %v6945_v33 = vadd.f32 %v6928_v14, %v6885_v3  ;;  %v6946_v47 = vadd.f32 %v6941_v19, %v6886_v38 }
0x102e   :  { %v7005_v44 = vadd.f32 %v13180_v36, %v6945_v33  ;;  %v7006_v40 = vadd.f32 %v7001_v46, %v6946_v47  ;;  %v8196_v36 = vld [vmem:[%s13252_s8] ss:$0 sm:$0xff] }
0x102f   :  { %v7123_v48 = vpop.f32.mrf.mxu1 }
0x1033   :  { %v6930_v37 = vpop.f32.mrf.mxu2  ;;  %v6943_v52 = vpop.f32.mrf.mxu3 }
0x103b   :  { %v7048_v1 = vpop.f32.mrf.mxu2  ;;  %v7061_v13 = vpop.f32.mrf.mxu3 }
0x103c   :  { %v7065_v54 = vadd.f32 %v7048_v1, %v7005_v44  ;;  %v7066_v28 = vadd.f32 %v7061_v13, %v7006_v40 }
0x103e   :  { %v7125_v45 = vadd.f32 %v13182_v7, %v7065_v54  ;;  %v7126_v34 = vadd.f32 %v7121_v30, %v7066_v28 }
0x1040   :  { %v7133_v11 = vadd.f32 %v7129_v27, %v7125_v45  ;;  %v7134_v55 = vadd.f32 %v7130_v42, %v7126_v34 }
0x1042   :  { %v7135_v21 = vmax.f32 %v7133_v11, 0.0  ;;  %v7136_v56 = vmax.f32 %v7134_v55, 0.0 }
0x1043   :  { %v7050_v60 = vpop.f32.mrf.mxu2  ;;  %v7063_v2 = vpop.f32.mrf.mxu3 }
0x1044   :  { %v7137_v39 = vpack.c.bf16 %v7135_v21, %v7135_v21  ;;  %v7138_v43 = vpack.c.bf16 %v7136_v56, %v7136_v56 }
0x1046   :  { %7279 = vmatmul.bf16.vlgmr.msrb.gmra.mxu2 %v7137_v39  ;;  %7292 = vmatmul.bf16.vlgmr.msrb.gmra.mxu3 %v7138_v43 }
0x10c9   :  { %v7280_v5 = vpop.f32.mrf.mxu2  ;;  %v7293_v17 = vpop.f32.mrf.mxu3 }
0x10ca   :  { %v7281_v7 = vadd.f32 %v8196_v36, %v7280_v5 }
0x10cc   :  { %v7294_v16 = vadd.f32 %v7293_v17, %v7281_v7 }
0x10ce   :  { %7298 = vst.msk [vmem:[#allocation2] sm:$0x3] %vm7297_vm3, %v7294_v16 }
0x10cf   :  { %7309 = dma.vmem_to_hbm [thread:$0]  %s7305_s23, 32, %s7307_s27, [#allocation3]  }
0x10d1   :  { %v7282_v23 = vpop.f32.mrf.mxu2  ;;  %v7295_v0 = vpop.f32.mrf.mxu3 }
0x10d2   :  { %8240 = dma.done.wait [#allocation3], 32  }
0x10d3   :  { %8241 = vsyncadd [#allocation3], 4294967264 }
0x10d4   :  { %7314 = vsyncpa [#allocation3], 1 }

</bundles_post_ra>
